<compile_context>
chip_gen: v6e
topology: v6e:2x2x1
jax: 0.10.0
libtpu: 0.0.40
codegen_flags: <defaults>
</compile_context>

<pallas_src>
from functools import partial

import jax
import jax.numpy as jnp
from jax.experimental import pallas as pl
from jax.experimental.pallas import tpu as pltpu

LANE = 128  # every weight/activation channel dim is padded to 128 lanes
_VMEM = pl.BlockSpec(memory_space=pltpu.MemorySpace.VMEM)


# ------------------------------- Pallas kernels ------------------------------- #

def _conv_relu_pool_kernel(p0_ref, p1_ref, p2_ref, p3_ref, w_ref, b_ref, o_ref):
    """Fused conv (im2col matmul) + bias + ReLU + 2x2 maxpool.

    p{0..3} hold the im2col patches of the four corners of each 2x2 pool window,
    all with identical row ordering (n, pooled_h, pooled_w).  Because bias-add and
    ReLU are monotone, pool(relu(conv)) == relu(max_c(patch_c @ W) + b).
    """
    w = w_ref[...]
    acc = jnp.dot(p0_ref[...], w, preferred_element_type=jnp.float32)
    acc = jnp.maximum(acc, jnp.dot(p1_ref[...], w, preferred_element_type=jnp.float32))
    acc = jnp.maximum(acc, jnp.dot(p2_ref[...], w, preferred_element_type=jnp.float32))
    acc = jnp.maximum(acc, jnp.dot(p3_ref[...], w, preferred_element_type=jnp.float32))
    o_ref[...] = jnp.maximum(acc + b_ref[...], 0.0)


def _head_kernel(p0_ref, p1_ref, p2_ref, p3_ref, w3_ref, b3_ref,
                 wf1_ref, bf1_ref, wf2_ref, bf2_ref, wf3_ref, bf3_ref,
                 wf4_ref, bf4_ref, o_ref):
    """conv3 + ReLU + pool (to 1x1) + flatten + the 4 Linear layers, in one kernel."""
    wc = w3_ref[...]
    acc = jnp.dot(p0_ref[...], wc, preferred_element_type=jnp.float32)
    acc = jnp.maximum(acc, jnp.dot(p1_ref[...], wc, preferred_element_type=jnp.float32))
    acc = jnp.maximum(acc, jnp.dot(p2_ref[...], wc, preferred_element_type=jnp.float32))
    acc = jnp.maximum(acc, jnp.dot(p3_ref[...], wc, preferred_element_type=jnp.float32))
    h = jnp.maximum(acc + b3_ref[...], 0.0)                       # (N, 128), flatten == identity (1x1 spatial)
    h = jnp.dot(h, wf1_ref[...], preferred_element_type=jnp.float32) + bf1_ref[...]
    h = jnp.dot(h, wf2_ref[...], preferred_element_type=jnp.float32) + bf2_ref[...]
    h = jnp.dot(h, wf3_ref[...], preferred_element_type=jnp.float32) + bf3_ref[...]
    o_ref[...] = jnp.dot(h, wf4_ref[...], preferred_element_type=jnp.float32) + bf4_ref[...]


# ------------------------------ pallas_call wrappers -------------------------- #

def _row_tile(rows, max_tile=512):
    """Largest multiple-of-8 divisor of `rows` that is <= max_tile (else full `rows`)."""
    if rows <= max_tile:
        return rows
    best = rows
    for t in range(8, max_tile + 1, 8):
        if rows % t == 0:
            best = t
    return best


def _conv_relu_pool(corners, w_mat, b_row):
    rows, k = corners[0].shape
    cout = w_mat.shape[1]
    tile = _row_tile(rows)
    grid = rows // tile
    p_spec = pl.BlockSpec((tile, k), lambda i: (i, 0))
    return pl.pallas_call(
        _conv_relu_pool_kernel,
        out_shape=jax.ShapeDtypeStruct((rows, cout), jnp.float32),
        grid=(grid,),
        in_specs=[p_spec, p_spec, p_spec, p_spec,
                  pl.BlockSpec((k, cout), lambda i: (0, 0)),      # weight resident across steps
                  pl.BlockSpec((1, cout), lambda i: (0, 0))],
        out_specs=pl.BlockSpec((tile, cout), lambda i: (i, 0)),
        compiler_params=pltpu.CompilerParams(dimension_semantics=("parallel",)),
    )(*corners, w_mat, b_row)


def _fused_head(corners, w3_mat, b3_row, fc_packed):
    n = corners[0].shape[0]
    args = list(corners) + [w3_mat, b3_row]
    for w, b in fc_packed:
        args += [w, b]
    return pl.pallas_call(
        _head_kernel,
        out_shape=jax.ShapeDtypeStruct((n, LANE), jnp.float32),
        in_specs=[_VMEM] * len(args),
        out_specs=_VMEM,
    )(*args)


# ----------------------------------- glue ------------------------------------- #

def _im2col_pool_corners(x, kh, kw, stride):
    """x: (N, H, W, C) f32 -> four corner patch matrices, each (N*PH*PW, kh*kw*C).

    Row ordering (n, ph, pw) is identical across corners; column ordering (ki, kj, c)
    matches the packed conv weight.  (PH, PW) is the pooled output size.
    """
    n, h, w, c = x.shape
    oh = (h - kh) // stride + 1
    ow = (w - kw) // stride + 1
    ph, pw = oh // 2, ow // 2
    pats = [x[:, i:i + stride * oh:stride, j:j + stride * ow:stride, :]
            for i in range(kh) for j in range(kw)]
    p = jnp.stack(pats, axis=3).reshape(n, oh, ow, kh * kw * c)
    corners = [p[:, ci:2 * ph:2, cj:2 * pw:2, :].reshape(n * ph * pw, kh * kw * c)
               for ci in range(2) for cj in range(2)]
    return corners, ph, pw


def _pad_bias(b):
    return jnp.pad(b.astype(jnp.float32), (0, LANE - b.shape[0])).reshape(1, LANE)


def _conv_weight_mat(w_oihw, cin_pad, scale=None):
    """PyTorch conv weight (Cout, Cin, KH, KW) -> (KH*KW*cin_pad, 128) matmul operand."""
    cout, cin, kh, kw = w_oihw.shape
    w = jnp.transpose(w_oihw.astype(jnp.float32), (2, 3, 1, 0))       # (kh, kw, cin, cout)
    w = jnp.pad(w, ((0, 0), (0, 0), (0, cin_pad - cin), (0, LANE - cout)))
    w = w.reshape(kh * kw * cin_pad, LANE)
    if scale is not None:
        w = w * jnp.float32(scale)
    return w


def _fc_weight_mat(w_out_in):
    """PyTorch Linear weight (out, in) -> (128, 128) zero-padded matmul operand."""
    o, i = w_out_in.shape
    return jnp.pad(w_out_in.T.astype(jnp.float32), ((0, LANE - i), (0, LANE - o)))


def pack_params(conv_raw, fc_raw):
    """Pack PyTorch-layout parameters into padded, MXU/lane-aligned operands."""
    (w1, b1, _), (w2, b2, _), (w3, b3, _) = conv_raw
    conv_packed = [
        # conv1: Cin 3 -> 4 (K = 8*8*4 = 256); /255 input scale folded into W.
        (_conv_weight_mat(w1, cin_pad=4, scale=1.0 / 255.0), _pad_bias(b1)),
        # conv2/conv3 consume the 128-lane padded activations of the previous layer.
        (_conv_weight_mat(w2, cin_pad=LANE), _pad_bias(b2)),
        (_conv_weight_mat(w3, cin_pad=LANE), _pad_bias(b3)),
    ]
    fc_packed = [(_fc_weight_mat(w), _pad_bias(b)) for (w, b) in fc_raw]
    return conv_packed, fc_packed


def cnn_qnetwork_forward(x_nhwc_u8, conv_packed, fc_packed, *, action_dim):
    """Equivalent of CNNQNetwork.forward: NHWC uint8 image -> (N, action_dim) Q-values."""
    n = x_nhwc_u8.shape[0]
    x = x_nhwc_u8.astype(jnp.float32)                  # /255 is folded into conv1's W
    x = jnp.pad(x, ((0, 0), (0, 0), (0, 0), (0, 1)))   # Cin 3 -> 4 so conv1's K = 256

    # conv1 + ReLU + pool and conv2 + ReLU + pool: one fused kernel each.
    for (w, b), (k, s) in zip(conv_packed[:2], ((8, 4), (4, 2))):
        corners, ph, pw = _im2col_pool_corners(x, k, k, s)
        y = _conv_relu_pool(corners, w, b)             # (n*ph*pw, 128) lane-dense
        x = y.reshape(n, ph, pw, LANE)

    # conv3 + ReLU + pool + flatten + fc1..fc4: single fused kernel.
    corners, ph, pw = _im2col_pool_corners(x, 3, 3, 1)
    # TODO(synk): the fused head assumes the final pooled feature map is 1x1 (true for
    # 148x148 inputs, matching fc1's in_features=64); a general NCHW flatten is not done.
    assert ph == 1 and pw == 1, "head kernel requires a 1x1 final feature map"
    w3, b3 = conv_packed[2]
    q = _fused_head(corners, w3, b3, fc_packed)        # (n, 128) lane-dense
    return q[:, :action_dim]


# ----------------------------- reference & example ----------------------------- #

def _reference_forward(x_nhwc_u8, conv_raw, fc_raw):
    """Pure-JAX reference mirroring the PyTorch module (f32, HIGHEST precision)."""
    x = x_nhwc_u8.astype(jnp.float32) / 255.0
    x = jnp.transpose(x, (0, 3, 1, 2))                                 # NCHW
    for w, b, stride in conv_raw:
        x = jax.lax.conv_general_dilated(
            x, w, (stride, stride), "VALID",
            dimension_numbers=("NCHW", "OIHW", "NCHW"),
            precision=jax.lax.Precision.HIGHEST)
        x = jnp.maximum(x + b[None, :, None, None], 0.0)
        x = jax.lax.reduce_window(x, -jnp.inf, jax.lax.max,
                                  (1, 1, 2, 2), (1, 1, 2, 2), "VALID")
    x = x.reshape(x.shape[0], -1)
    for w, b in fc_raw:
        x = jnp.dot(x, w.T, precision=jax.lax.Precision.HIGHEST) + b
    return x


def init_raw_params(key, action_dim):
    ks = jax.random.split(key, 14)
    s = 0.05
    conv = [
        (jax.random.normal(ks[0], (32, 3, 8, 8), jnp.float32) * s,
         jax.random.normal(ks[1], (32,), jnp.float32) * s, 4),
        (jax.random.normal(ks[2], (64, 32, 4, 4), jnp.float32) * s,
         jax.random.normal(ks[3], (64,), jnp.float32) * s, 2),
        (jax.random.normal(ks[4], (64, 64, 3, 3), jnp.float32) * s,
         jax.random.normal(ks[5], (64,), jnp.float32) * s, 1),
    ]
    fc = [
        (jax.random.normal(ks[6], (128, 64), jnp.float32) * s,
         jax.random.normal(ks[7], (128,), jnp.float32) * s),
        (jax.random.normal(ks[8], (128, 128), jnp.float32) * s,
         jax.random.normal(ks[9], (128,), jnp.float32) * s),
        (jax.random.normal(ks[10], (64, 128), jnp.float32) * s,
         jax.random.normal(ks[11], (64,), jnp.float32) * s),
        (jax.random.normal(ks[12], (action_dim, 64), jnp.float32) * s,
         jax.random.normal(ks[13], (action_dim,), jnp.float32) * s),
    ]
    return conv, fc


if __name__ == "__main__":
    # 148x148 is the smallest spatial size the conv/pool stack admits and yields the
    # 1x1x64 feature map that the PyTorch module's fc1 (in_features=64) implies.
    N, H, W, C = 2, 148, 148, 3
    ACTION_DIM = 5

    key = jax.random.PRNGKey(0)
    k_params, k_x = jax.random.split(key)
    conv_raw, fc_raw = init_raw_params(k_params, ACTION_DIM)
    conv_packed, fc_packed = pack_params(conv_raw, fc_raw)

    x = jax.random.randint(k_x, (N, H, W, C), 0, 256, dtype=jnp.int32).astype(jnp.uint8)

    fwd = jax.jit(partial(cnn_qnetwork_forward, action_dim=ACTION_DIM))
    out = jax.block_until_ready(fwd(x, conv_packed, fc_packed))

    assert out.shape == (N, ACTION_DIM), out.shape
    assert bool(jnp.all(jnp.isfinite(out)))

    ref = _reference_forward(x, conv_raw, fc_raw)
    max_err = float(jnp.max(jnp.abs(out - ref)))
    assert jnp.allclose(out, ref, rtol=1e-2, atol=1e-3), f"max abs err {max_err}"

    print("KERNEL_OK")
</pallas_src>

<mosaic_0001>
module attributes {stable_mosaic.version = 11 : i64} {
  func.func @_conv_relu_pool_kernel(%arg0: i32, %arg1: memref<216x256xf32, #tpu.memory_space<vmem>>, %arg2: memref<216x256xf32, #tpu.memory_space<vmem>>, %arg3: memref<216x256xf32, #tpu.memory_space<vmem>>, %arg4: memref<216x256xf32, #tpu.memory_space<vmem>>, %arg5: memref<256x128xf32, #tpu.memory_space<vmem>>, %arg6: memref<1x128xf32, #tpu.memory_space<vmem>>, %arg7: memref<216x128xf32, #tpu.memory_space<vmem>>) attributes {dimension_semantics = [#tpu.dimension_semantics<parallel>], iteration_bounds = array<i64: 3>, scalar_prefetch = 0 : i64, scratch_operands = 0 : i64, tpu.core_type = #tpu.core_type<tc>, window_params = [{transform_indices = @transform_0, window_bounds = array<i64: 216, 256>}, {transform_indices = @transform_1, window_bounds = array<i64: 216, 256>}, {transform_indices = @transform_2, window_bounds = array<i64: 216, 256>}, {transform_indices = @transform_3, window_bounds = array<i64: 216, 256>}, {pipeline_mode = #tpu.pipeline_mode<synchronous>, transform_indices = @transform_4, window_bounds = array<i64: 256, 128>}, {pipeline_mode = #tpu.pipeline_mode<synchronous>, transform_indices = @transform_5, window_bounds = array<i64: 1, 128>}, {transform_indices = @transform_6, window_bounds = array<i64: 216, 128>}]} {
    %c0 = arith.constant 0 : index
    %c0_0 = arith.constant 0 : index
    %0 = vector.load %arg5[%c0, %c0_0] : memref<256x128xf32, #tpu.memory_space<vmem>>, vector<256x128xf32>
    %c0_1 = arith.constant 0 : index
    %c0_2 = arith.constant 0 : index
    %1 = vector.load %arg1[%c0_1, %c0_2] : memref<216x256xf32, #tpu.memory_space<vmem>>, vector<216x256xf32>
    %cst = arith.constant dense<0.000000e+00> : vector<216x128xf32>
    %2 = tpu.matmul %1, %0, %cst {dimension_numbers = #tpu.dot_dimension_numbers<[1], [0], [0], [1], [0, 0, 1, 1], [], []>} : vector<216x256xf32>, vector<256x128xf32>, vector<216x128xf32> -> vector<216x128xf32>
    %c0_3 = arith.constant 0 : index
    %c0_4 = arith.constant 0 : index
    %3 = vector.load %arg2[%c0_3, %c0_4] : memref<216x256xf32, #tpu.memory_space<vmem>>, vector<216x256xf32>
    %cst_5 = arith.constant dense<0.000000e+00> : vector<216x128xf32>
    %4 = tpu.matmul %3, %0, %cst_5 {dimension_numbers = #tpu.dot_dimension_numbers<[1], [0], [0], [1], [0, 0, 1, 1], [], []>} : vector<216x256xf32>, vector<256x128xf32>, vector<216x128xf32> -> vector<216x128xf32>
    %5 = arith.maximumf %2, %4 : vector<216x128xf32>
    %c0_6 = arith.constant 0 : index
    %c0_7 = arith.constant 0 : index
    %6 = vector.load %arg3[%c0_6, %c0_7] : memref<216x256xf32, #tpu.memory_space<vmem>>, vector<216x256xf32>
    %cst_8 = arith.constant dense<0.000000e+00> : vector<216x128xf32>
    %7 = tpu.matmul %6, %0, %cst_8 {dimension_numbers = #tpu.dot_dimension_numbers<[1], [0], [0], [1], [0, 0, 1, 1], [], []>} : vector<216x256xf32>, vector<256x128xf32>, vector<216x128xf32> -> vector<216x128xf32>
    %8 = arith.maximumf %5, %7 : vector<216x128xf32>
    %c0_9 = arith.constant 0 : index
    %c0_10 = arith.constant 0 : index
    %9 = vector.load %arg4[%c0_9, %c0_10] : memref<216x256xf32, #tpu.memory_space<vmem>>, vector<216x256xf32>
    %cst_11 = arith.constant dense<0.000000e+00> : vector<216x128xf32>
    %10 = tpu.matmul %9, %0, %cst_11 {dimension_numbers = #tpu.dot_dimension_numbers<[1], [0], [0], [1], [0, 0, 1, 1], [], []>} : vector<216x256xf32>, vector<256x128xf32>, vector<216x128xf32> -> vector<216x128xf32>
    %11 = arith.maximumf %8, %10 : vector<216x128xf32>
    %c0_12 = arith.constant 0 : index
    %c0_13 = arith.constant 0 : index
    %12 = vector.load %arg6[%c0_12, %c0_13] : memref<1x128xf32, #tpu.memory_space<vmem>>, vector<1x128xf32>
    %13 = vector.broadcast %12 : vector<1x128xf32> to vector<216x128xf32>
    %14 = arith.addf %11, %13 : vector<216x128xf32>
    %cst_14 = arith.constant 0.000000e+00 : f32
    %15 = vector.broadcast %cst_14 : f32 to vector<216x128xf32>
    %16 = arith.maximumf %14, %15 : vector<216x128xf32>
    %c0_15 = arith.constant 0 : index
    %c0_16 = arith.constant 0 : index
    %17 = vector.load %arg7[%c0_15, %c0_16] : memref<216x128xf32, #tpu.memory_space<vmem>>, vector<216x128xf32>
    tpu.vector_store %arg7[%c0_15, %c0_16], %16 {strides = array<i32>} : memref<216x128xf32, #tpu.memory_space<vmem>>, vector<216x128xf32>,
    return
  }
  func.func @transform_0(%arg0: i32) -> (i32, i32) {
    %c0_i32 = arith.constant 0 : i32
    %c0_i32_0 = arith.constant 0 : i32
    return %arg0, %c0_i32 : i32, i32
  }
  func.func @transform_1(%arg0: i32) -> (i32, i32) {
    %c0_i32 = arith.constant 0 : i32
    %c0_i32_0 = arith.constant 0 : i32
    return %arg0, %c0_i32 : i32, i32
  }
  func.func @transform_2(%arg0: i32) -> (i32, i32) {
    %c0_i32 = arith.constant 0 : i32
    %c0_i32_0 = arith.constant 0 : i32
    return %arg0, %c0_i32 : i32, i32
  }
  func.func @transform_3(%arg0: i32) -> (i32, i32) {
    %c0_i32 = arith.constant 0 : i32
    %c0_i32_0 = arith.constant 0 : i32
    return %arg0, %c0_i32 : i32, i32
  }
  func.func @transform_4(%arg0: i32) -> (i32, i32) {
    %c0_i32 = arith.constant 0 : i32
    %c0_i32_0 = arith.constant 0 : i32
    %c0_i32_1 = arith.constant 0 : i32
    return %c0_i32, %c0_i32_0 : i32, i32
  }
  func.func @transform_5(%arg0: i32) -> (i32, i32) {
    %c0_i32 = arith.constant 0 : i32
    %c0_i32_0 = arith.constant 0 : i32
    %c0_i32_1 = arith.constant 0 : i32
    return %c0_i32, %c0_i32_0 : i32, i32
  }
  func.func @transform_6(%arg0: i32) -> (i32, i32) {
    %c0_i32 = arith.constant 0 : i32
    %c0_i32_0 = arith.constant 0 : i32
    return %arg0, %c0_i32 : i32, i32
  }
}

module attributes {stable_mosaic.version = 11 : i64} {
  func.func @_conv_relu_pool_kernel(%arg0: i32, %arg1: memref<32x2048xf32, #tpu.memory_space<vmem>>, %arg2: memref<32x2048xf32, #tpu.memory_space<vmem>>, %arg3: memref<32x2048xf32, #tpu.memory_space<vmem>>, %arg4: memref<32x2048xf32, #tpu.memory_space<vmem>>, %arg5: memref<2048x128xf32, #tpu.memory_space<vmem>>, %arg6: memref<1x128xf32, #tpu.memory_space<vmem>>, %arg7: memref<32x128xf32, #tpu.memory_space<vmem>>) attributes {dimension_semantics = [#tpu.dimension_semantics<parallel>], iteration_bounds = array<i64: 1>, scalar_prefetch = 0 : i64, scratch_operands = 0 : i64, tpu.core_type = #tpu.core_type<tc>, window_params = [{transform_indices = @transform_0, window_bounds = array<i64: 32, 2048>}, {transform_indices = @transform_1, window_bounds = array<i64: 32, 2048>}, {transform_indices = @transform_2, window_bounds = array<i64: 32, 2048>}, {transform_indices = @transform_3, window_bounds = array<i64: 32, 2048>}, {pipeline_mode = #tpu.pipeline_mode<synchronous>, transform_indices = @transform_4, window_bounds = array<i64: 2048, 128>}, {pipeline_mode = #tpu.pipeline_mode<synchronous>, transform_indices = @transform_5, window_bounds = array<i64: 1, 128>}, {transform_indices = @transform_6, window_bounds = array<i64: 32, 128>}]} {
    %c0 = arith.constant 0 : index
    %c0_0 = arith.constant 0 : index
    %0 = vector.load %arg5[%c0, %c0_0] : memref<2048x128xf32, #tpu.memory_space<vmem>>, vector<2048x128xf32>
    %c0_1 = arith.constant 0 : index
    %c0_2 = arith.constant 0 : index
    %1 = vector.load %arg1[%c0_1, %c0_2] : memref<32x2048xf32, #tpu.memory_space<vmem>>, vector<32x2048xf32>
    %cst = arith.constant dense<0.000000e+00> : vector<32x128xf32>
    %2 = tpu.matmul %1, %0, %cst {dimension_numbers = #tpu.dot_dimension_numbers<[1], [0], [0], [1], [0, 0, 1, 1], [], []>} : vector<32x2048xf32>, vector<2048x128xf32>, vector<32x128xf32> -> vector<32x128xf32>
    %c0_3 = arith.constant 0 : index
    %c0_4 = arith.constant 0 : index
    %3 = vector.load %arg2[%c0_3, %c0_4] : memref<32x2048xf32, #tpu.memory_space<vmem>>, vector<32x2048xf32>
    %cst_5 = arith.constant dense<0.000000e+00> : vector<32x128xf32>
    %4 = tpu.matmul %3, %0, %cst_5 {dimension_numbers = #tpu.dot_dimension_numbers<[1], [0], [0], [1], [0, 0, 1, 1], [], []>} : vector<32x2048xf32>, vector<2048x128xf32>, vector<32x128xf32> -> vector<32x128xf32>
    %5 = arith.maximumf %2, %4 : vector<32x128xf32>
    %c0_6 = arith.constant 0 : index
    %c0_7 = arith.constant 0 : index
    %6 = vector.load %arg3[%c0_6, %c0_7] : memref<32x2048xf32, #tpu.memory_space<vmem>>, vector<32x2048xf32>
    %cst_8 = arith.constant dense<0.000000e+00> : vector<32x128xf32>
    %7 = tpu.matmul %6, %0, %cst_8 {dimension_numbers = #tpu.dot_dimension_numbers<[1], [0], [0], [1], [0, 0, 1, 1], [], []>} : vector<32x2048xf32>, vector<2048x128xf32>, vector<32x128xf32> -> vector<32x128xf32>
    %8 = arith.maximumf %5, %7 : vector<32x128xf32>
    %c0_9 = arith.constant 0 : index
    %c0_10 = arith.constant 0 : index
    %9 = vector.load %arg4[%c0_9, %c0_10] : memref<32x2048xf32, #tpu.memory_space<vmem>>, vector<32x2048xf32>
    %cst_11 = arith.constant dense<0.000000e+00> : vector<32x128xf32>
    %10 = tpu.matmul %9, %0, %cst_11 {dimension_numbers = #tpu.dot_dimension_numbers<[1], [0], [0], [1], [0, 0, 1, 1], [], []>} : vector<32x2048xf32>, vector<2048x128xf32>, vector<32x128xf32> -> vector<32x128xf32>
    %11 = arith.maximumf %8, %10 : vector<32x128xf32>
    %c0_12 = arith.constant 0 : index
    %c0_13 = arith.constant 0 : index
    %12 = vector.load %arg6[%c0_12, %c0_13] : memref<1x128xf32, #tpu.memory_space<vmem>>, vector<1x128xf32>
    %13 = vector.broadcast %12 : vector<1x128xf32> to vector<32x128xf32>
    %14 = arith.addf %11, %13 : vector<32x128xf32>
    %cst_14 = arith.constant 0.000000e+00 : f32
    %15 = vector.broadcast %cst_14 : f32 to vector<32x128xf32>
    %16 = arith.maximumf %14, %15 : vector<32x128xf32>
    %c0_15 = arith.constant 0 : index
    %c0_16 = arith.constant 0 : index
    %17 = vector.load %arg7[%c0_15, %c0_16] : memref<32x128xf32, #tpu.memory_space<vmem>>, vector<32x128xf32>
    tpu.vector_store %arg7[%c0_15, %c0_16], %16 {strides = array<i32>} : memref<32x128xf32, #tpu.memory_space<vmem>>, vector<32x128xf32>,
    return
  }
  func.func @transform_0(%arg0: i32) -> (i32, i32) {
    %c0_i32 = arith.constant 0 : i32
    %c0_i32_0 = arith.constant 0 : i32
    return %arg0, %c0_i32 : i32, i32
  }
  func.func @transform_1(%arg0: i32) -> (i32, i32) {
    %c0_i32 = arith.constant 0 : i32
    %c0_i32_0 = arith.constant 0 : i32
    return %arg0, %c0_i32 : i32, i32
  }
  func.func @transform_2(%arg0: i32) -> (i32, i32) {
    %c0_i32 = arith.constant 0 : i32
    %c0_i32_0 = arith.constant 0 : i32
    return %arg0, %c0_i32 : i32, i32
  }
  func.func @transform_3(%arg0: i32) -> (i32, i32) {
    %c0_i32 = arith.constant 0 : i32
    %c0_i32_0 = arith.constant 0 : i32
    return %arg0, %c0_i32 : i32, i32
  }
  func.func @transform_4(%arg0: i32) -> (i32, i32) {
    %c0_i32 = arith.constant 0 : i32
    %c0_i32_0 = arith.constant 0 : i32
    %c0_i32_1 = arith.constant 0 : i32
    return %c0_i32, %c0_i32_0 : i32, i32
  }
  func.func @transform_5(%arg0: i32) -> (i32, i32) {
    %c0_i32 = arith.constant 0 : i32
    %c0_i32_0 = arith.constant 0 : i32
    %c0_i32_1 = arith.constant 0 : i32
    return %c0_i32, %c0_i32_0 : i32, i32
  }
  func.func @transform_6(%arg0: i32) -> (i32, i32) {
    %c0_i32 = arith.constant 0 : i32
    %c0_i32_0 = arith.constant 0 : i32
    return %arg0, %c0_i32 : i32, i32
  }
}

module attributes {stable_mosaic.version = 11 : i64} {
  func.func @_head_kernel(%arg0: memref<2x1152xf32, #tpu.memory_space<vmem>>, %arg1: memref<2x1152xf32, #tpu.memory_space<vmem>>, %arg2: memref<2x1152xf32, #tpu.memory_space<vmem>>, %arg3: memref<2x1152xf32, #tpu.memory_space<vmem>>, %arg4: memref<1152x128xf32, #tpu.memory_space<vmem>>, %arg5: memref<1x128xf32, #tpu.memory_space<vmem>>, %arg6: memref<128x128xf32, #tpu.memory_space<vmem>>, %arg7: memref<1x128xf32, #tpu.memory_space<vmem>>, %arg8: memref<128x128xf32, #tpu.memory_space<vmem>>, %arg9: memref<1x128xf32, #tpu.memory_space<vmem>>, %arg10: memref<128x128xf32, #tpu.memory_space<vmem>>, %arg11: memref<1x128xf32, #tpu.memory_space<vmem>>, %arg12: memref<128x128xf32, #tpu.memory_space<vmem>>, %arg13: memref<1x128xf32, #tpu.memory_space<vmem>>, %arg14: memref<2x128xf32, #tpu.memory_space<vmem>>) attributes {dimension_semantics = [], scalar_prefetch = 0 : i64, scratch_operands = 0 : i64, tpu.core_type = #tpu.core_type<tc>} {
    %c0 = arith.constant 0 : index
    %c0_0 = arith.constant 0 : index
    %0 = vector.load %arg4[%c0, %c0_0] : memref<1152x128xf32, #tpu.memory_space<vmem>>, vector<1152x128xf32>
    %c0_1 = arith.constant 0 : index
    %c0_2 = arith.constant 0 : index
    %1 = vector.load %arg0[%c0_1, %c0_2] : memref<2x1152xf32, #tpu.memory_space<vmem>>, vector<2x1152xf32>
    %cst = arith.constant dense<0.000000e+00> : vector<2x128xf32>
    %2 = tpu.matmul %1, %0, %cst {dimension_numbers = #tpu.dot_dimension_numbers<[1], [0], [0], [1], [0, 0, 1, 1], [], []>} : vector<2x1152xf32>, vector<1152x128xf32>, vector<2x128xf32> -> vector<2x128xf32>
    %c0_3 = arith.constant 0 : index
    %c0_4 = arith.constant 0 : index
    %3 = vector.load %arg1[%c0_3, %c0_4] : memref<2x1152xf32, #tpu.memory_space<vmem>>, vector<2x1152xf32>
    %cst_5 = arith.constant dense<0.000000e+00> : vector<2x128xf32>
    %4 = tpu.matmul %3, %0, %cst_5 {dimension_numbers = #tpu.dot_dimension_numbers<[1], [0], [0], [1], [0, 0, 1, 1], [], []>} : vector<2x1152xf32>, vector<1152x128xf32>, vector<2x128xf32> -> vector<2x128xf32>
    %5 = arith.maximumf %2, %4 : vector<2x128xf32>
    %c0_6 = arith.constant 0 : index
    %c0_7 = arith.constant 0 : index
    %6 = vector.load %arg2[%c0_6, %c0_7] : memref<2x1152xf32, #tpu.memory_space<vmem>>, vector<2x1152xf32>
    %cst_8 = arith.constant dense<0.000000e+00> : vector<2x128xf32>
    %7 = tpu.matmul %6, %0, %cst_8 {dimension_numbers = #tpu.dot_dimension_numbers<[1], [0], [0], [1], [0, 0, 1, 1], [], []>} : vector<2x1152xf32>, vector<1152x128xf32>, vector<2x128xf32> -> vector<2x128xf32>
    %8 = arith.maximumf %5, %7 : vector<2x128xf32>
    %c0_9 = arith.constant 0 : index
    %c0_10 = arith.constant 0 : index
    %9 = vector.load %arg3[%c0_9, %c0_10] : memref<2x1152xf32, #tpu.memory_space<vmem>>, vector<2x1152xf32>
    %cst_11 = arith.constant dense<0.000000e+00> : vector<2x128xf32>
    %10 = tpu.matmul %9, %0, %cst_11 {dimension_numbers = #tpu.dot_dimension_numbers<[1], [0], [0], [1], [0, 0, 1, 1], [], []>} : vector<2x1152xf32>, vector<1152x128xf32>, vector<2x128xf32> -> vector<2x128xf32>
    %11 = arith.maximumf %8, %10 : vector<2x128xf32>
    %c0_12 = arith.constant 0 : index
    %c0_13 = arith.constant 0 : index
    %12 = vector.load %arg5[%c0_12, %c0_13] : memref<1x128xf32, #tpu.memory_space<vmem>>, vector<1x128xf32>
    %13 = vector.broadcast %12 : vector<1x128xf32> to vector<2x128xf32>
    %14 = arith.addf %11, %13 : vector<2x128xf32>
    %cst_14 = arith.constant 0.000000e+00 : f32
    %15 = vector.broadcast %cst_14 : f32 to vector<2x128xf32>
    %16 = arith.maximumf %14, %15 : vector<2x128xf32>
    %c0_15 = arith.constant 0 : index
    %c0_16 = arith.constant 0 : index
    %17 = vector.load %arg6[%c0_15, %c0_16] : memref<128x128xf32, #tpu.memory_space<vmem>>, vector<128x128xf32>
    %cst_17 = arith.constant dense<0.000000e+00> : vector<2x128xf32>
    %18 = tpu.matmul %16, %17, %cst_17 {dimension_numbers = #tpu.dot_dimension_numbers<[1], [0], [0], [1], [0, 0, 1, 1], [], []>} : vector<2x128xf32>, vector<128x128xf32>, vector<2x128xf32> -> vector<2x128xf32>
    %c0_18 = arith.constant 0 : index
    %c0_19 = arith.constant 0 : index
    %19 = vector.load %arg7[%c0_18, %c0_19] : memref<1x128xf32, #tpu.memory_space<vmem>>, vector<1x128xf32>
    %20 = vector.broadcast %19 : vector<1x128xf32> to vector<2x128xf32>
    %21 = arith.addf %18, %20 : vector<2x128xf32>
    %c0_20 = arith.constant 0 : index
    %c0_21 = arith.constant 0 : index
    %22 = vector.load %arg8[%c0_20, %c0_21] : memref<128x128xf32, #tpu.memory_space<vmem>>, vector<128x128xf32>
    %cst_22 = arith.constant dense<0.000000e+00> : vector<2x128xf32>
    %23 = tpu.matmul %21, %22, %cst_22 {dimension_numbers = #tpu.dot_dimension_numbers<[1], [0], [0], [1], [0, 0, 1, 1], [], []>} : vector<2x128xf32>, vector<128x128xf32>, vector<2x128xf32> -> vector<2x128xf32>
    %c0_23 = arith.constant 0 : index
    %c0_24 = arith.constant 0 : index
    %24 = vector.load %arg9[%c0_23, %c0_24] : memref<1x128xf32, #tpu.memory_space<vmem>>, vector<1x128xf32>
    %25 = vector.broadcast %24 : vector<1x128xf32> to vector<2x128xf32>
    %26 = arith.addf %23, %25 : vector<2x128xf32>
    %c0_25 = arith.constant 0 : index
    %c0_26 = arith.constant 0 : index
    %27 = vector.load %arg10[%c0_25, %c0_26] : memref<128x128xf32, #tpu.memory_space<vmem>>, vector<128x128xf32>
    %cst_27 = arith.constant dense<0.000000e+00> : vector<2x128xf32>
    %28 = tpu.matmul %26, %27, %cst_27 {dimension_numbers = #tpu.dot_dimension_numbers<[1], [0], [0], [1], [0, 0, 1, 1], [], []>} : vector<2x128xf32>, vector<128x128xf32>, vector<2x128xf32> -> vector<2x128xf32>
    %c0_28 = arith.constant 0 : index
    %c0_29 = arith.constant 0 : index
    %29 = vector.load %arg11[%c0_28, %c0_29] : memref<1x128xf32, #tpu.memory_space<vmem>>, vector<1x128xf32>
    %30 = vector.broadcast %29 : vector<1x128xf32> to vector<2x128xf32>
    %31 = arith.addf %28, %30 : vector<2x128xf32>
    %c0_30 = arith.constant 0 : index
    %c0_31 = arith.constant 0 : index
    %32 = vector.load %arg12[%c0_30, %c0_31] : memref<128x128xf32, #tpu.memory_space<vmem>>, vector<128x128xf32>
    %cst_32 = arith.constant dense<0.000000e+00> : vector<2x128xf32>
    %33 = tpu.matmul %31, %32, %cst_32 {dimension_numbers = #tpu.dot_dimension_numbers<[1], [0], [0], [1], [0, 0, 1, 1], [], []>} : vector<2x128xf32>, vector<128x128xf32>, vector<2x128xf32> -> vector<2x128xf32>
    %c0_33 = arith.constant 0 : index
    %c0_34 = arith.constant 0 : index
    %34 = vector.load %arg13[%c0_33, %c0_34] : memref<1x128xf32, #tpu.memory_space<vmem>>, vector<1x128xf32>
    %35 = vector.broadcast %34 : vector<1x128xf32> to vector<2x128xf32>
    %36 = arith.addf %33, %35 : vector<2x128xf32>
    %c0_35 = arith.constant 0 : index
    %c0_36 = arith.constant 0 : index
    %37 = vector.load %arg14[%c0_35, %c0_36] : memref<2x128xf32, #tpu.memory_space<vmem>>, vector<2x128xf32>
    tpu.vector_store %arg14[%c0_35, %c0_36], %36 {strides = array<i32>} : memref<2x128xf32, #tpu.memory_space<vmem>>, vector<2x128xf32>,
    return
  }
}

</mosaic_0001>

<bundles_post_ra>
// kernel: cnn_qnetwork_forward.5
= control target key start
LH: loop header
LB: loop body
LE: loop exit
PB: predicated region body
PF: predicated region fallthrough
CT: control target
= control target key end

     0   :  { %v3378_v30 = vmov 1983009808   ;;  %v202_v32 = vlaneseq  ;;  %s5523_s0 = inlined_call_operand.vmem [shape: f32[2,1152], index: 0, kind: input, shape index: {}]   ;;  %s5524_s1 = inlined_call_operand.vmem [shape: f32[2,1152], index: 1, kind: input, shape index: {}]   ;;  %s5525_s2 = inlined_call_operand.vmem [shape: f32[2,1152], index: 2, kind: input, shape index: {}]   ;;  %s5526_s3 = inlined_call_operand.vmem [shape: f32[2,1152], index: 3, kind: input, shape index: {}]   ;;  %s5527_s4 = inlined_call_operand.vmem [shape: f32[1152,128], index: 4, kind: input, shape index: {}]   ;;  %s5528_s5 = inlined_call_operand.vmem [shape: f32[1,128], index: 5, kind: input, shape index: {}]   ;;  %s5529_s6 = inlined_call_operand.vmem [shape: f32[128,128], index: 6, kind: input, shape index: {}]   ;;  %s5530_s7 = inlined_call_operand.vmem [shape: f32[1,128], index: 7, kind: input, shape index: {}]   ;;  %s5531_s8 = inlined_call_operand.vmem [shape: f32[128,128], index: 8, kind: input, shape index: {}]   ;;  %s5532_s9 = inlined_call_operand.vmem [shape: f32[1,128], index: 9, kind: input, shape index: {}]   ;;  %s5533_s10 = inlined_call_operand.vmem [shape: f32[128,128], index: 10, kind: input, shape index: {}]   ;;  %s5534_s11 = inlined_call_operand.vmem [shape: f32[1,128], index: 11, kind: input, shape index: {}]   ;;  %s5535_s12 = inlined_call_operand.vmem [shape: f32[128,128], index: 12, kind: input, shape index: {}]   ;;  %s5536_s13 = inlined_call_operand.vmem [shape: f32[1,128], index: 13, kind: input, shape index: {}]   ;;  %s5537_s14 = inlined_call_operand.hbm [shape: f32[2,128], index: 14, kind: output, shape index: {}]  }
   0x1   :  { %v3460_v0 = vld [vmem:[%s5527_s4 + $0xf8] sm:$0xff]  ;;  %v3482_v4 = vld [vmem:[%s5527_s4 + $0xf0] sm:$0xff]  ;;  %v3504_v8 = vld [vmem:[%s5527_s4 + $0xe8] sm:$0xff]  ;;  %v200_v31 = vunpack.c.l.s4 %v3378_v30 }
   0x2   :  { %v3465_v1 = vld [vmem:[%s5527_s4 + $0x1f8] sm:$0xff]  ;;  %2224 = vmatprep.subr.mxu0 %v3460_v0  ;;  %v3487_v5 = vld [vmem:[%s5527_s4 + $0x1f0] sm:$0xff]  ;;  %v3511_v9 = vld [vmem:[%s5527_s4 + $0x1e8] sm:$0xff]  ;;  %v203_v42 = vshrl.u32 %v202_v32, 7 }
   0x3   :  { %v3470_v2 = vld [vmem:[%s5527_s4 + $0x78] sm:$0xff]  ;;  %2259 = vmatprep.subr.mxu1 %v3465_v1  ;;  %v3494_v6 = vld [vmem:[%s5527_s4 + $0x70] sm:$0xff]  ;;  %v3516_v10 = vld [vmem:[%s5527_s4 + $0x68] sm:$0xff]  ;;  %v201_v41 = vunpack.c.0.s8 %v200_v31 }
   0x4   :  { %v3477_v3 = vld [vmem:[%s5527_s4 + $0x178] sm:$0xff]  ;;  %2225 = vmatpush3.msra.mxu0 %v3470_v2  ;;  %v3499_v7 = vld [vmem:[%s5527_s4 + $0x170] sm:$0xff]  ;;  %v3521_v11 = vld [vmem:[%s5527_s4 + $0x168] sm:$0xff] }
   0x5   :  { %2260 = vmatpush3.msra.mxu1 %v3477_v3  ;;  %2226 = vmatprep.subr.mxu0 %v3482_v4  ;;  %v3528_v12 = vld [vmem:[%s5527_s4 + $0xe0] sm:$0xff]  ;;  %v3552_v16 = vld [vmem:[%s5527_s4 + $0xd8] sm:$0xff]  ;;  %v3576_v20 = vld [vmem:[%s5527_s4 + $0xd0] sm:$0xff]  ;;  %v3727_v51 = vsub.s32 %v201_v41, %v203_v42 }
   0x6   :  { %2261 = vmatprep.subr.mxu1 %v3487_v5  ;;  %2227 = vmatpush3.msra.mxu0 %v3494_v6  ;;  %v3533_v13 = vld [vmem:[%s5527_s4 + $0x1e0] sm:$0xff]  ;;  %v3557_v17 = vld [vmem:[%s5527_s4 + $0x1d8] sm:$0xff]  ;;  %v3581_v21 = vld [vmem:[%s5527_s4 + $0x1d0] sm:$0xff] }
   0x7   :  { %2262 = vmatpush3.msra.mxu1 %v3499_v7  ;;  %2228 = vmatprep.subr.mxu0 %v3504_v8  ;;  %v3540_v14 = vld [vmem:[%s5527_s4 + $0x60] sm:$0xff]  ;;  %v3564_v18 = vld [vmem:[%s5527_s4 + $0x58] sm:$0xff]  ;;  %5732 = vst [vmem:[#allocation5_spill] sm:$0xff] %v3581_v21  ;;  %v3588_v22 = vld [vmem:[%s5527_s4 + $0x50] sm:$0xff] }
   0x8   :  { %2263 = vmatprep.subr.mxu1 %v3511_v9  ;;  %v3545_v15 = vld [vmem:[%s5527_s4 + $0x160] sm:$0xff]  ;;  %2229 = vmatpush3.msra.mxu0 %v3516_v10  ;;  %v3569_v19 = vld [vmem:[%s5527_s4 + $0x158] sm:$0xff]  ;;  %v3593_v23 = vld [vmem:[%s5527_s4 + $0x150] sm:$0xff] }
   0x9   :  { %2264 = vmatpush3.msra.mxu1 %v3521_v11  ;;  %2230 = vmatprep.subr.mxu0 %v3528_v12  ;;  %5733 = vst [vmem:[#allocation6_spill] sm:$0xff] %v3593_v23  ;;  %v3600_v24 = vld [vmem:[%s5527_s4 + $0xc8] sm:$0xff]  ;;  %v3624_v28 = vld [vmem:[%s5527_s4 + $0xc0] sm:$0xff]  ;;  %v3648_v35 = vld [vmem:[%s5527_s4 + $0xb8] sm:$0xff] }
   0xa   :  { %2265 = vmatprep.subr.mxu1 %v3533_v13  ;;  %2231 = vmatpush3.msra.mxu0 %v3540_v14  ;;  %v3605_v25 = vld [vmem:[%s5527_s4 + $0x1c8] sm:$0xff]  ;;  %v3629_v29 = vld [vmem:[%s5527_s4 + $0x1c0] sm:$0xff]  ;;  %v3653_v36 = vld [vmem:[%s5527_s4 + $0x1b8] sm:$0xff] }
   0xb   :  { %2266 = vmatpush3.msra.mxu1 %v3545_v15  ;;  %2232 = vmatprep.subr.mxu0 %v3552_v16  ;;  %5734 = vst [vmem:[#allocation7_spill] sm:$0xff] %v3605_v25  ;;  %v3612_v26 = vld [vmem:[%s5527_s4 + $0x48] sm:$0xff]  ;;  %5736 = vst [vmem:[#allocation9_spill] sm:$0xff] %v3629_v29  ;;  %v3636_v33 = vld [vmem:[%s5527_s4 + $0x40] sm:$0xff] }
   0xc   :  { %2267 = vmatprep.subr.mxu1 %v3557_v17  ;;  %2233 = vmatpush3.msra.mxu0 %v3564_v18  ;;  %v3617_v27 = vld [vmem:[%s5527_s4 + $0x148] sm:$0xff]  ;;  %v3641_v34 = vld [vmem:[%s5527_s4 + $0x140] sm:$0xff]  ;;  %5738 = vst [vmem:[#allocation11_spill] sm:$0xff] %v3653_v36  ;;  %v3660_v37 = vld [vmem:[%s5527_s4 + $0x38] sm:$0xff] }
   0xd   :  { %2268 = vmatpush3.msra.mxu1 %v3569_v19  ;;  %2234 = vmatprep.subr.mxu0 %v3576_v20  ;;  %5735 = vst [vmem:[#allocation8_spill] sm:$0xff] %v3617_v27  ;;  %5737 = vst [vmem:[#allocation10_spill] sm:$0xff] %v3641_v34  ;;  %v3665_v38 = vld [vmem:[%s5527_s4 + $0x138] sm:$0xff]  ;;  %v3672_v39 = vld [vmem:[%s5527_s4 + $0xb0] sm:$0xff] }
   0xe   :  { %2269 = vmatprep.subr.mxu1 %v3581_v21  ;;  %2235 = vmatpush3.msra.mxu0 %v3588_v22  ;;  %5739 = vst [vmem:[#allocation12_spill] sm:$0xff] %v3665_v38  ;;  %v3677_v40 = vld [vmem:[%s5527_s4 + $0x1b0] sm:$0xff]  ;;  %v3696_v45 = vld [vmem:[%s5527_s4 + $0xa8] sm:$0xff]  ;;  %v3720_v49 = vld [vmem:[%s5527_s4 + $0xa0] sm:$0xff] }
   0xf   :  { %2270 = vmatpush3.msra.mxu1 %v3593_v23  ;;  %2236 = vmatprep.subr.mxu0 %v3600_v24  ;;  %5740 = vst [vmem:[#allocation13_spill] sm:$0xff] %v3677_v40  ;;  %v3684_v43 = vld [vmem:[%s5527_s4 + $0x30] sm:$0xff]  ;;  %5743 = vst [vmem:[#allocation16_spill] sm:$0xff] %v3696_v45  ;;  %v3701_v46 = vld [vmem:[%s5527_s4 + $0x1a8] sm:$0xff] }
  0x10   :  { %2271 = vmatprep.subr.mxu1 %v3605_v25  ;;  %2237 = vmatpush3.msra.mxu0 %v3612_v26  ;;  %5741 = vst [vmem:[#allocation14_spill] sm:$0xff] %v3684_v43  ;;  %v3689_v44 = vld [vmem:[%s5527_s4 + $0x130] sm:$0xff]  ;;  %5744 = vst [vmem:[#allocation17_spill] sm:$0xff] %v3701_v46  ;;  %v3708_v47 = vld [vmem:[%s5527_s4 + $0x28] sm:$0xff] }
  0x11   :  { %2272 = vmatpush3.msra.mxu1 %v3617_v27  ;;  %2238 = vmatprep.subr.mxu0 %v3624_v28  ;;  %5742 = vst [vmem:[#allocation15_spill] sm:$0xff] %v3689_v44  ;;  %5745 = vst [vmem:[#allocation18_spill] sm:$0xff] %v3708_v47  ;;  %v3713_v48 = vld [vmem:[%s5527_s4 + $0x128] sm:$0xff]  ;;  %v3725_v50 = vld [vmem:[%s5527_s4 + $0x1a0] sm:$0xff] }
  0x12   :  { %2273 = vmatprep.subr.mxu1 %v3629_v29  ;;  %2239 = vmatpush3.msra.mxu0 %v3636_v33  ;;  %5746 = vst [vmem:[#allocation19_spill] sm:$0xff] %v3713_v48  ;;  %5747 = vst [vmem:[#allocation20_spill] sm:$0xff] %v3720_v49  ;;  %v3734_v52 = vld [vmem:[%s5527_s4 + $0x20] sm:$0xff]  ;;  %v3749_v55 = vld [vmem:[%s5527_s4 + $0x98] sm:$0xff] }
  0x13   :  { %2274 = vmatpush3.msra.mxu1 %v3641_v34  ;;  %2240 = vmatprep.subr.mxu0 %v3648_v35  ;;  %5748 = vst [vmem:[#allocation21_spill] sm:$0xff] %v3725_v50  ;;  %5749 = vst [vmem:[#allocation22_spill] sm:$0xff] %v3734_v52  ;;  %v3739_v53 = vld [vmem:[%s5527_s4 + $0x120] sm:$0xff]  ;;  %v3754_v56 = vld [vmem:[%s5527_s4 + $0x198] sm:$0xff] }
  0x14   :  { %2275 = vmatprep.subr.mxu1 %v3653_v36  ;;  %2241 = vmatpush3.msra.mxu0 %v3660_v37  ;;  %5750 = vst [vmem:[#allocation23_spill] sm:$0xff] %v3739_v53  ;;  %v192_v54 = vld [vmem:[%s5523_s0] sm:$0xff]  ;;  %5751 = vst [vmem:[#allocation24_spill] sm:$0xff] %v3749_v55  ;;  %v3761_v58 = vld [vmem:[%s5527_s4 + $0x18] sm:$0xff] }
  0x15   :  { %2276 = vmatpush3.msra.mxu1 %v3665_v38  ;;  %2242 = vmatprep.subr.mxu0 %v3672_v39  ;;  %5752 = vst [vmem:[#allocation25_spill] sm:$0xff] %v3754_v56  ;;  %v198_v57 = vcombine.high %v192_v54, %v192_v54  ;;  %5753 = vst [vmem:[#allocation26_spill] sm:$0xff] %v3761_v58  ;;  %v3766_v59 = vld [vmem:[%s5527_s4 + $0x118] sm:$0xff]  ;;  %v3773_v60 = vld [vmem:[%s5527_s4 + $0x90] sm:$0xff]  ;;  %v205_v62 = vrot.slane %v192_v54, %v3727_v51 }
  0x16   :  { %2277 = vmatprep.subr.mxu1 %v3677_v40  ;;  %2243 = vmatpush3.msra.mxu0 %v3684_v43  ;;  %5754 = vst [vmem:[#allocation27_spill] sm:$0xff] %v3766_v59  ;;  %5755 = vst [vmem:[#allocation28_spill] sm:$0xff] %v3773_v60  ;;  %v3778_v61 = vld [vmem:[%s5527_s4 + $0x190] sm:$0xff]  ;;  %v3799_v32 = vld [vmem:[%s5527_s4 + $0x88] sm:$0xff] }
  0x17   :  { %2278 = vmatpush3.msra.mxu1 %v3689_v44  ;;  %2244 = vmatprep.subr.mxu0 %v3696_v45  ;;  %5756 = vst [vmem:[#allocation29_spill] sm:$0xff] %v3778_v61  ;;  %v3786_v63 = vld [vmem:[%s5527_s4 + $0x10] sm:$0xff]  ;;  %v212_v31 = vrot.slane %v198_v57, %v3727_v51  ;;  %5759 = vst [vmem:[#allocation32_spill] sm:$0xff] %v3799_v32  ;;  %v3804_v41 = vld [vmem:[%s5527_s4 + $0x188] sm:$0xff] }
  0x18   :  { %2279 = vmatprep.subr.mxu1 %v3701_v46  ;;  %2245 = vmatpush3.msra.mxu0 %v3708_v47  ;;  %5757 = vst [vmem:[#allocation30_spill] sm:$0xff] %v3786_v63  ;;  %v3791_v30 = vld [vmem:[%s5527_s4 + $0x110] sm:$0xff]  ;;  %5760 = vst [vmem:[#allocation33_spill] sm:$0xff] %v3804_v41  ;;  %v3811_v42 = vld [vmem:[%s5527_s4 + $0x8] sm:$0xff] }
  0x19   :  { %2280 = vmatpush3.msra.mxu1 %v3713_v48  ;;  %2246 = vmatprep.subr.mxu0 %v3720_v49  ;;  %5758 = vst [vmem:[#allocation31_spill] sm:$0xff] %v3791_v30  ;;  %5761 = vst [vmem:[#allocation34_spill] sm:$0xff] %v3811_v42  ;;  %v3816_v54 = vld [vmem:[%s5527_s4 + $0x108] sm:$0xff]  ;;  %v3823_v57 = vld [vmem:[%s5527_s4 + $0x80] sm:$0xff] }
  0x1a   :  { %2281 = vmatprep.subr.mxu1 %v3725_v50  ;;  %2247 = vmatpush3.msra.mxu0 %v3734_v52  ;;  %5762 = vst [vmem:[#allocation35_spill] sm:$0xff] %v3816_v54  ;;  %5763 = vst [vmem:[#allocation36_spill] sm:$0xff] %v3823_v57  ;;  %v3871_v50 = vld [vmem:[%s5527_s4 + $0x2f0] sm:$0xff]  ;;  %v3907_v48 = vld [vmem:[%s5527_s4 + $0x268] sm:$0xff] }
  0x1b   :  { %2282 = vmatpush3.msra.mxu1 %v3739_v53  ;;  %2248 = vmatprep.subr.mxu0 %v3749_v55  ;;  %v3842_v53 = vld [vmem:[%s5527_s4 + $0x100] sm:$0xff]  ;;  %5771 = vst [vmem:[#allocation44_spill] sm:$0xff] %v3871_v50  ;;  %5777 = vst [vmem:[#allocation50_spill] sm:$0xff] %v3907_v48  ;;  %v3943_v40 = vld [vmem:[%s5527_s4 + $0x2d8] sm:$0xff] }
  0x1c   :  { %2283 = vmatprep.subr.mxu1 %v3754_v56  ;;  %2249 = vmatpush3.msra.mxu0 %v3761_v58  ;;  %v3835_v56 = vld [vmem:[%s5527_s4] sm:$0xff]  ;;  %5766 = vst [vmem:[#allocation39_spill] sm:$0xff] %v3842_v53  ;;  %5783 = vst [vmem:[#allocation56_spill] sm:$0xff] %v3943_v40  ;;  %v3955_v38 = vld [vmem:[%s5527_s4 + $0x258] sm:$0xff] }
  0x1d   :  { %2284 = vmatpush3.msra.mxu1 %v3766_v59  ;;  %2250 = vmatprep.subr.mxu0 %v3773_v60  ;;  %v213_v59 = vcombine.high %v205_v62, %v205_v62  ;;  %5765 = vst [vmem:[#allocation38_spill] sm:$0xff] %v3835_v56  ;;  %v3919_v46 = vld [vmem:[%s5527_s4 + $0x2e0] sm:$0xff]  ;;  %5785 = vst [vmem:[#allocation58_spill] sm:$0xff] %v3955_v38  ;;  %v3967_v36 = vld [vmem:[%s5527_s4 + $0x2d0] sm:$0xff] }
  0x1e   :  { %2285 = vmatprep.subr.mxu1 %v3778_v61  ;;  %2251 = vmatpush3.msra.mxu0 %v3786_v63  ;;  %v3828_v61 = vld [vmem:[%s5527_s4 + $0x180] sm:$0xff]  ;;  %5779 = vst [vmem:[#allocation52_spill] sm:$0xff] %v3919_v46  ;;  %5787 = vst [vmem:[#allocation60_spill] sm:$0xff] %v3967_v36  ;;  %v3979_v34 = vld [vmem:[%s5527_s4 + $0x250] sm:$0xff] }
  0x1f   :  { %2286 = vmatpush3.msra.mxu1 %v3791_v30  ;;  %5764 = vst [vmem:[#allocation37_spill] sm:$0xff] %v3828_v61  ;;  %2252 = vmatprep.subr.mxu0 %v3799_v32  ;;  %v214_v30 = vcombine.high %v212_v31, %v212_v31  ;;  %v3931_v44 = vld [vmem:[%s5527_s4 + $0x260] sm:$0xff]  ;;  %5789 = vst [vmem:[#allocation62_spill] sm:$0xff] %v3979_v34  ;;  %v3991_v29 = vld [vmem:[%s5527_s4 + $0x2c8] sm:$0xff] }
  0x20   :  { %2287 = vmatprep.subr.mxu1 %v3804_v41  ;;  %2253 = vmatpush3.msra.mxu0 %v3811_v42  ;;  %v3850_v41 = vld [vmem:[%s5527_s4 + $0x2f8] sm:$0xff]  ;;  %5781 = vst [vmem:[#allocation54_spill] sm:$0xff] %v3931_v44  ;;  %5791 = vst [vmem:[#allocation64_spill] sm:$0xff] %v3991_v29  ;;  %v4003_v27 = vld [vmem:[%s5527_s4 + $0x248] sm:$0xff] }
  0x21   :  { %2288 = vmatpush3.msra.mxu1 %v3816_v54  ;;  %2254 = vmatprep.subr.mxu0 %v3823_v57  ;;  %5767 = vst [vmem:[#allocation40_spill] sm:$0xff] %v3850_v41  ;;  %v3855_v54 = vld [vmem:[%s5527_s4 + $0x3f8] sm:$0xff]  ;;  %5793 = vst [vmem:[#allocation66_spill] sm:$0xff] %v4003_v27  ;;  %v4015_v25 = vld [vmem:[%s5527_s4 + $0x2c0] sm:$0xff] }
  0x22   :  { %2289 = vmatprep.subr.mxu1 %v3828_v61  ;;  %2255 = vmatpush3.msra.mxu0 %v3835_v56  ;;  %5768 = vst [vmem:[#allocation41_spill] sm:$0xff] %v3855_v54  ;;  %v3861_v61 = vld [vmem:[%s5527_s4 + $0x278] sm:$0xff]  ;;  %5795 = vst [vmem:[#allocation68_spill] sm:$0xff] %v4015_v25 }
  0x23   :  { %312 = vmatprep.mubr.f32.mxu0 %v213_v59  ;;  %2290 = vmatpush3.msra.mxu1 %v3842_v53  ;;  %5769 = vst [vmem:[#allocation42_spill] sm:$0xff] %v3861_v61  ;;  %v3866_v59 = vld [vmem:[%s5527_s4 + $0x378] sm:$0xff]  ;;  %v3883_v53 = vld [vmem:[%s5527_s4 + $0x270] sm:$0xff] }
  0x24   :  { %382 = vmatprep.mubr.f32.mxu1 %v214_v30  ;;  %5770 = vst [vmem:[#allocation43_spill] sm:$0xff] %v3866_v59  ;;  %313 = vmatmul.mubr.f32.vlgmr.msra.gmra.mxu0 %v205_v62  ;;  %v3876_v30 = vld [vmem:[%s5527_s4 + $0x3f0] sm:$0xff]  ;;  %5773 = vst [vmem:[#allocation46_spill] sm:$0xff] %v3883_v53 }
  0x25   :  { %383 = vmatmul.mubr.f32.vlgmr.msra.gmra.mxu1 %v212_v31  ;;  %5772 = vst [vmem:[#allocation45_spill] sm:$0xff] %v3876_v30  ;;  %2294 = vmatprep.subr.mxu0 %v3850_v41  ;;  %v3888_v62 = vld [vmem:[%s5527_s4 + $0x370] sm:$0xff]  ;;  %v3895_v31 = vld [vmem:[%s5527_s4 + $0x2e8] sm:$0xff] }
  0x26   :  { %2329 = vmatprep.subr.mxu1 %v3855_v54  ;;  %5774 = vst [vmem:[#allocation47_spill] sm:$0xff] %v3888_v62  ;;  %2295 = vmatpush3.msra.mxu0 %v3861_v61  ;;  %5775 = vst [vmem:[#allocation48_spill] sm:$0xff] %v3895_v31  ;;  %v3900_v54 = vld [vmem:[%s5527_s4 + $0x3e8] sm:$0xff] }
  0x27   :  { %2330 = vmatpush3.msra.mxu1 %v3866_v59  ;;  %5776 = vst [vmem:[#allocation49_spill] sm:$0xff] %v3900_v54  ;;  %2296 = vmatprep.subr.mxu0 %v3871_v50  ;;  %v3912_v59 = vld [vmem:[%s5527_s4 + $0x368] sm:$0xff] }
  0x28   :  { %2331 = vmatprep.subr.mxu1 %v3876_v30  ;;  %5778 = vst [vmem:[#allocation51_spill] sm:$0xff] %v3912_v59  ;;  %2297 = vmatpush3.msra.mxu0 %v3883_v53  ;;  %v3924_v30 = vld [vmem:[%s5527_s4 + $0x3e0] sm:$0xff] }
  0x29   :  { %2332 = vmatpush3.msra.mxu1 %v3888_v62  ;;  %5780 = vst [vmem:[#allocation53_spill] sm:$0xff] %v3924_v30  ;;  %2298 = vmatprep.subr.mxu0 %v3895_v31  ;;  %v3936_v62 = vld [vmem:[%s5527_s4 + $0x360] sm:$0xff] }
  0x2a   :  { %2333 = vmatprep.subr.mxu1 %v3900_v54  ;;  %5782 = vst [vmem:[#allocation55_spill] sm:$0xff] %v3936_v62  ;;  %2299 = vmatpush3.msra.mxu0 %v3907_v48  ;;  %v3948_v54 = vld [vmem:[%s5527_s4 + $0x3d8] sm:$0xff] }
  0x2b   :  { %2334 = vmatpush3.msra.mxu1 %v3912_v59  ;;  %5784 = vst [vmem:[#allocation57_spill] sm:$0xff] %v3948_v54  ;;  %2300 = vmatprep.subr.mxu0 %v3919_v46  ;;  %v3960_v59 = vld [vmem:[%s5527_s4 + $0x358] sm:$0xff] }
  0x2c   :  { %2335 = vmatprep.subr.mxu1 %v3924_v30  ;;  %5786 = vst [vmem:[#allocation59_spill] sm:$0xff] %v3960_v59  ;;  %2301 = vmatpush3.msra.mxu0 %v3931_v44  ;;  %v3972_v30 = vld [vmem:[%s5527_s4 + $0x3d0] sm:$0xff] }
  0x2d   :  { %2336 = vmatpush3.msra.mxu1 %v3936_v62  ;;  %5788 = vst [vmem:[#allocation61_spill] sm:$0xff] %v3972_v30  ;;  %2302 = vmatprep.subr.mxu0 %v3943_v40  ;;  %v3984_v62 = vld [vmem:[%s5527_s4 + $0x350] sm:$0xff] }
  0x2e   :  { %2337 = vmatprep.subr.mxu1 %v3948_v54  ;;  %5790 = vst [vmem:[#allocation63_spill] sm:$0xff] %v3984_v62  ;;  %2303 = vmatpush3.msra.mxu0 %v3955_v38  ;;  %v3996_v54 = vld [vmem:[%s5527_s4 + $0x3c8] sm:$0xff] }
  0x2f   :  { %2338 = vmatpush3.msra.mxu1 %v3960_v59  ;;  %5792 = vst [vmem:[#allocation65_spill] sm:$0xff] %v3996_v54  ;;  %2304 = vmatprep.subr.mxu0 %v3967_v36  ;;  %v4008_v59 = vld [vmem:[%s5527_s4 + $0x348] sm:$0xff] }
  0x30   :  { %2339 = vmatprep.subr.mxu1 %v3972_v30  ;;  %5794 = vst [vmem:[#allocation67_spill] sm:$0xff] %v4008_v59  ;;  %2305 = vmatpush3.msra.mxu0 %v3979_v34  ;;  %v4020_v30 = vld [vmem:[%s5527_s4 + $0x3c0] sm:$0xff] }
  0x31   :  { %2340 = vmatpush3.msra.mxu1 %v3984_v62  ;;  %5796 = vst [vmem:[#allocation69_spill] sm:$0xff] %v4020_v30  ;;  %2306 = vmatprep.subr.mxu0 %v3991_v29  ;;  %v4027_v34 = vld [vmem:[%s5527_s4 + $0x240] sm:$0xff]  ;;  %v4039_v29 = vld [vmem:[%s5527_s4 + $0x2b8] sm:$0xff] }
  0x32   :  { %2341 = vmatprep.subr.mxu1 %v3996_v54  ;;  %5797 = vst [vmem:[#allocation70_spill] sm:$0xff] %v4027_v34  ;;  %v4032_v62 = vld [vmem:[%s5527_s4 + $0x340] sm:$0xff]  ;;  %2307 = vmatpush3.msra.mxu0 %v4003_v27  ;;  %5799 = vst [vmem:[#allocation72_spill] sm:$0xff] %v4039_v29  ;;  %v4044_v54 = vld [vmem:[%s5527_s4 + $0x3b8] sm:$0xff] }
  0x33   :  { %5798 = vst [vmem:[#allocation71_spill] sm:$0xff] %v4032_v62  ;;  %2342 = vmatpush3.msra.mxu1 %v4008_v59  ;;  %5800 = vst [vmem:[#allocation73_spill] sm:$0xff] %v4044_v54  ;;  %2308 = vmatprep.subr.mxu0 %v4015_v25  ;;  %v4051_v27 = vld [vmem:[%s5527_s4 + $0x238] sm:$0xff]  ;;  %v4063_v25 = vld [vmem:[%s5527_s4 + $0x2b0] sm:$0xff] }
  0x34   :  { %2343 = vmatprep.subr.mxu1 %v4020_v30  ;;  %5801 = vst [vmem:[#allocation74_spill] sm:$0xff] %v4051_v27  ;;  %v4056_v59 = vld [vmem:[%s5527_s4 + $0x338] sm:$0xff]  ;;  %2309 = vmatpush3.msra.mxu0 %v4027_v34  ;;  %5803 = vst [vmem:[#allocation76_spill] sm:$0xff] %v4063_v25  ;;  %v4068_v30 = vld [vmem:[%s5527_s4 + $0x3b0] sm:$0xff] }
  0x35   :  { %5802 = vst [vmem:[#allocation75_spill] sm:$0xff] %v4056_v59  ;;  %2344 = vmatpush3.msra.mxu1 %v4032_v62  ;;  %5804 = vst [vmem:[#allocation77_spill] sm:$0xff] %v4068_v30 }
  0x36   :  { %19 = vsyncpa [#allocation3], 0  ;;  %2310 = vmatprep.subr.mxu0 %v4039_v29  ;;  %2345 = vmatprep.subr.mxu1 %v4044_v54  ;;  %v4075_v34 = vld [vmem:[%s5527_s4 + $0x230] sm:$0xff]  ;;  %v4087_v29 = vld [vmem:[%s5527_s4 + $0x2a8] sm:$0xff]  ;;  %vm3380_vm0 = vmmov 0  }
  0x37   :  { %5805 = vst [vmem:[#allocation78_spill] sm:$0xff] %v4075_v34  ;;  %v4080_v62 = vld [vmem:[%s5527_s4 + $0x330] sm:$0xff]  ;;  %2311 = vmatpush3.msra.mxu0 %v4051_v27  ;;  %2346 = vmatpush3.msra.mxu1 %v4056_v59  ;;  %5807 = vst [vmem:[#allocation80_spill] sm:$0xff] %v4087_v29  ;;  %v4092_v54 = vld [vmem:[%s5527_s4 + $0x3a8] sm:$0xff] }
  0x38   :  { %5806 = vst [vmem:[#allocation79_spill] sm:$0xff] %v4080_v62  ;;  %5808 = vst [vmem:[#allocation81_spill] sm:$0xff] %v4092_v54  ;;  %2312 = vmatprep.subr.mxu0 %v4063_v25  ;;  %2347 = vmatprep.subr.mxu1 %v4068_v30  ;;  %v4099_v27 = vld [vmem:[%s5527_s4 + $0x228] sm:$0xff]  ;;  %v4114_v30 = vld [vmem:[%s5527_s4 + $0x2a0] sm:$0xff] }
  0x39   :  { %5809 = vst [vmem:[#allocation82_spill] sm:$0xff] %v4099_v27  ;;  %v4104_v59 = vld [vmem:[%s5527_s4 + $0x328] sm:$0xff]  ;;  %2313 = vmatpush3.msra.mxu0 %v4075_v34  ;;  %2348 = vmatpush3.msra.mxu1 %v4080_v62  ;;  %5811 = vst [vmem:[#allocation84_spill] sm:$0xff] %v4114_v30  ;;  %v4119_v25 = vld [vmem:[%s5527_s4 + $0x3a0] sm:$0xff] }
  0x3a   :  { %5810 = vst [vmem:[#allocation83_spill] sm:$0xff] %v4104_v59  ;;  %v193_v23 = vld [vmem:[%s5523_s0 + $0x8] sm:$0xff]  ;;  %5812 = vst [vmem:[#allocation85_spill] sm:$0xff] %v4119_v25  ;;  %2314 = vmatprep.subr.mxu0 %v4087_v29  ;;  %2349 = vmatprep.subr.mxu1 %v4092_v54  ;;  %v4126_v34 = vld [vmem:[%s5527_s4 + $0x220] sm:$0xff] }
  0x3b   :  { %5813 = vst [vmem:[#allocation86_spill] sm:$0xff] %v4126_v34  ;;  %v4131_v62 = vld [vmem:[%s5527_s4 + $0x320] sm:$0xff]  ;;  %2315 = vmatpush3.msra.mxu0 %v4099_v27  ;;  %2350 = vmatpush3.msra.mxu1 %v4104_v59  ;;  %v4138_v29 = vld [vmem:[%s5527_s4 + $0x298] sm:$0xff]  ;;  %v215_v36 = vcombine.high %v193_v23, %v193_v23  ;;  %v222_v21 = vrot.slane %v193_v23, %v3727_v51  ;;  %v4187_v23 = vld [vmem:[%s5527_s4 + $0x288] sm:$0xff] }
  0x3c   :  { %5814 = vst [vmem:[#allocation87_spill] sm:$0xff] %v4131_v62  ;;  %5815 = vst [vmem:[#allocation88_spill] sm:$0xff] %v4138_v29  ;;  %v4143_v54 = vld [vmem:[%s5527_s4 + $0x398] sm:$0xff]  ;;  %2316 = vmatprep.subr.mxu0 %v4114_v30  ;;  %2351 = vmatprep.subr.mxu1 %v4119_v25  ;;  %v4162_v30 = vld [vmem:[%s5527_s4 + $0x290] sm:$0xff] }
  0x3d   :  { %5816 = vst [vmem:[#allocation89_spill] sm:$0xff] %v4143_v54  ;;  %v4150_v27 = vld [vmem:[%s5527_s4 + $0x218] sm:$0xff]  ;;  %2317 = vmatpush3.msra.mxu0 %v4126_v34  ;;  %2352 = vmatpush3.msra.mxu1 %v4131_v62  ;;  %5819 = vst [vmem:[#allocation92_spill] sm:$0xff] %v4162_v30  ;;  %v4167_v25 = vld [vmem:[%s5527_s4 + $0x390] sm:$0xff] }
  0x3e   :  { %5817 = vst [vmem:[#allocation90_spill] sm:$0xff] %v4150_v27  ;;  %v4155_v59 = vld [vmem:[%s5527_s4 + $0x318] sm:$0xff]  ;;  %5820 = vst [vmem:[#allocation93_spill] sm:$0xff] %v4167_v25  ;;  %2318 = vmatprep.subr.mxu0 %v4138_v29  ;;  %2353 = vmatprep.subr.mxu1 %v4143_v54  ;;  %v4175_v62 = vld [vmem:[%s5527_s4 + $0x210] sm:$0xff]  ;;  %v229_v29 = vrot.slane %v215_v36, %v3727_v51 }
  0x3f   :  { %5818 = vst [vmem:[#allocation91_spill] sm:$0xff] %v4155_v59  ;;  %5821 = vst [vmem:[#allocation94_spill] sm:$0xff] %v4175_v62  ;;  %v4180_v34 = vld [vmem:[%s5527_s4 + $0x310] sm:$0xff]  ;;  %2319 = vmatpush3.msra.mxu0 %v4150_v27  ;;  %2354 = vmatpush3.msra.mxu1 %v4155_v59  ;;  %v4192_v54 = vld [vmem:[%s5527_s4 + $0x388] sm:$0xff] }
  0x40   :  { %5822 = vst [vmem:[#allocation95_spill] sm:$0xff] %v4180_v34  ;;  %5823 = vst [vmem:[#allocation96_spill] sm:$0xff] %v4187_v23  ;;  %2320 = vmatprep.subr.mxu0 %v4162_v30  ;;  %2355 = vmatprep.subr.mxu1 %v4167_v25  ;;  %v4200_v59 = vld [vmem:[%s5527_s4 + $0x208] sm:$0xff]  ;;  %v4212_v36 = vld [vmem:[%s5527_s4 + $0x280] sm:$0xff]  ;;  %v230_v30 = vcombine.high %v222_v21, %v222_v21  ;;  %v231_v38 = vcombine.high %v229_v29, %v229_v29 }
  0x41   :  { %5824 = vst [vmem:[#allocation97_spill] sm:$0xff] %v4192_v54  ;;  %5825 = vst [vmem:[#allocation98_spill] sm:$0xff] %v4200_v59  ;;  %v4205_v27 = vld [vmem:[%s5527_s4 + $0x308] sm:$0xff]  ;;  %2321 = vmatpush3.msra.mxu0 %v4175_v62  ;;  %2356 = vmatpush3.msra.mxu1 %v4180_v34  ;;  %v4217_v25 = vld [vmem:[%s5527_s4 + $0x380] sm:$0xff] }
  0x42   :  { %5826 = vst [vmem:[#allocation99_spill] sm:$0xff] %v4205_v27  ;;  %5827 = vst [vmem:[#allocation100_spill] sm:$0xff] %v4212_v36  ;;  %2322 = vmatprep.subr.mxu0 %v4187_v23  ;;  %2357 = vmatprep.subr.mxu1 %v4192_v54  ;;  %v4224_v62 = vld [vmem:[%s5527_s4 + $0x200] sm:$0xff]  ;;  %v5690_v54 = vmov 0.0  }
  0x43   :  { %5828 = vst [vmem:[#allocation101_spill] sm:$0xff] %v4217_v25  ;;  %5829 = vst [vmem:[#allocation102_spill] sm:$0xff] %v4224_v62  ;;  %2323 = vmatpush3.msra.mxu0 %v4200_v59  ;;  %2358 = vmatpush3.msra.mxu1 %v4205_v27  ;;  %v4231_v34 = vld [vmem:[%s5527_s4 + $0x300] sm:$0xff]  ;;  %v4240_v27 = vld [vmem:[%s5527_s4 + $0x478] sm:$0xff] }
  0x44   :  { %2324 = vmatprep.subr.mxu0 %v4212_v36  ;;  %2359 = vmatprep.subr.mxu1 %v4217_v25  ;;  %5830 = vst [vmem:[#allocation103_spill] sm:$0xff] %v4240_v27  ;;  %v4247_v25 = vld [vmem:[%s5527_s4 + $0x470] sm:$0xff] }
  0x45   :  { %2325 = vmatpush3.msra.mxu0 %v4224_v62  ;;  %452 = vmatprep.mubr.f32.mxu0 %v230_v30  ;;  %5831 = vst [vmem:[#allocation104_spill] sm:$0xff] %v4247_v25  ;;  %v4337_v30 = vld [vmem:[%s5527_s4 + $0x420] sm:$0xff] }
  0x46   :  { %2360 = vmatpush3.msra.mxu1 %v4231_v34  ;;  %453 = vmatmul.mubr.f32.vlgmr.msra.gmra.mxu0 %v222_v21  ;;  %v4256_v21 = vld [vmem:[%s5527_s4 + $0x468] sm:$0xff]  ;;  %5841 = vst [vmem:[#allocation114_spill] sm:$0xff] %v4337_v30 }
  0x47   :  { %522 = vmatprep.mubr.f32.mxu1 %v231_v38  ;;  %2920 = vmatprep.subr.mxu0 %v5690_v54  ;;  %5832 = vst [vmem:[#allocation105_spill] sm:$0xff] %v4256_v21  ;;  %v4328_v38 = vld [vmem:[%s5527_s4 + $0x428] sm:$0xff] }
  0x48   :  { %2381 = vmatprep.subr.mxu1 %v3460_v0  ;;  %523 = vmatmul.mubr.f32.vlgmr.msra.gmra.mxu1 %v229_v29  ;;  %v4265_v0 = vld [vmem:[%s5527_s4 + $0x460] sm:$0xff]  ;;  %v4319_v29 = vld [vmem:[%s5527_s4 + $0x430] sm:$0xff]  ;;  %5840 = vst [vmem:[#allocation113_spill] sm:$0xff] %v4328_v38 }
  0x49   :  { %2921 = vmatpush3.msra.mxu0 %v4240_v27  ;;  %2382 = vmatpush3.msra.mxu1 %v3470_v2  ;;  %5833 = vst [vmem:[#allocation106_spill] sm:$0xff] %v4265_v0  ;;  %v4274_v2 = vld [vmem:[%s5527_s4 + $0x458] sm:$0xff]  ;;  %5839 = vst [vmem:[#allocation112_spill] sm:$0xff] %v4319_v29 }
  0x4a   :  { %2922 = vmatprep.subr.mxu0 %v5690_v54  ;;  %2383 = vmatprep.subr.mxu1 %v3482_v4  ;;  %5834 = vst [vmem:[#allocation107_spill] sm:$0xff] %v4274_v2  ;;  %v4283_v4 = vld [vmem:[%s5527_s4 + $0x450] sm:$0xff] }
  0x4b   :  { %2923 = vmatpush3.msra.mxu0 %v4247_v25  ;;  %2384 = vmatpush3.msra.mxu1 %v3494_v6  ;;  %5835 = vst [vmem:[#allocation108_spill] sm:$0xff] %v4283_v4  ;;  %v4292_v6 = vld [vmem:[%s5527_s4 + $0x448] sm:$0xff] }
  0x4c   :  { %2924 = vmatprep.subr.mxu0 %v5690_v54  ;;  %2385 = vmatprep.subr.mxu1 %v3504_v8  ;;  %5836 = vst [vmem:[#allocation109_spill] sm:$0xff] %v4292_v6  ;;  %v4301_v8 = vld [vmem:[%s5527_s4 + $0x440] sm:$0xff] }
  0x4d   :  { %2925 = vmatpush3.msra.mxu0 %v4256_v21  ;;  %2386 = vmatpush3.msra.mxu1 %v3516_v10  ;;  %5837 = vst [vmem:[#allocation110_spill] sm:$0xff] %v4301_v8  ;;  %v4310_v10 = vld [vmem:[%s5527_s4 + $0x438] sm:$0xff] }
  0x4e   :  { %2926 = vmatprep.subr.mxu0 %v5690_v54  ;;  %2387 = vmatprep.subr.mxu1 %v3528_v12  ;;  %5838 = vst [vmem:[#allocation111_spill] sm:$0xff] %v4310_v10 }
  0x4f   :  { %2927 = vmatpush3.msra.mxu0 %v4265_v0  ;;  %2388 = vmatpush3.msra.mxu1 %v3540_v14 }
  0x50   :  { %2928 = vmatprep.subr.mxu0 %v5690_v54  ;;  %2389 = vmatprep.subr.mxu1 %v3552_v16 }
  0x51   :  { %2929 = vmatpush3.msra.mxu0 %v4274_v2  ;;  %2390 = vmatpush3.msra.mxu1 %v3564_v18 }
  0x52   :  { %2930 = vmatprep.subr.mxu0 %v5690_v54  ;;  %2391 = vmatprep.subr.mxu1 %v3576_v20 }
  0x53   :  { %2931 = vmatpush3.msra.mxu0 %v4283_v4  ;;  %2392 = vmatpush3.msra.mxu1 %v3588_v22 }
  0x54   :  { %2932 = vmatprep.subr.mxu0 %v5690_v54  ;;  %2393 = vmatprep.subr.mxu1 %v3600_v24 }
  0x55   :  { %2933 = vmatpush3.msra.mxu0 %v4292_v6  ;;  %2394 = vmatpush3.msra.mxu1 %v3612_v26 }
  0x56   :  { %2934 = vmatprep.subr.mxu0 %v5690_v54  ;;  %2395 = vmatprep.subr.mxu1 %v3624_v28 }
  0x57   :  { %2935 = vmatpush3.msra.mxu0 %v4301_v8  ;;  %2396 = vmatpush3.msra.mxu1 %v3636_v33 }
  0x58   :  { %2936 = vmatprep.subr.mxu0 %v5690_v54  ;;  %2397 = vmatprep.subr.mxu1 %v3648_v35 }
  0x59   :  { %2937 = vmatpush3.msra.mxu0 %v4310_v10  ;;  %2398 = vmatpush3.msra.mxu1 %v3660_v37 }
  0x5a   :  { %2938 = vmatprep.subr.mxu0 %v5690_v54  ;;  %2399 = vmatprep.subr.mxu1 %v3672_v39 }
  0x5b   :  { %2939 = vmatpush3.msra.mxu0 %v4319_v29  ;;  %2400 = vmatpush3.msra.mxu1 %v3684_v43  ;;  %v4346_v43 = vld [vmem:[%s5527_s4 + $0x418] sm:$0xff] }
  0x5c   :  { %2940 = vmatprep.subr.mxu0 %v5690_v54  ;;  %2401 = vmatprep.subr.mxu1 %v3696_v45  ;;  %5842 = vst [vmem:[#allocation115_spill] sm:$0xff] %v4346_v43  ;;  %v4351_v45 = vld [vmem:[%s5524_s1] sm:$0xff] }
  0x5d   :  { %2941 = vmatpush3.msra.mxu0 %v4328_v38  ;;  %2402 = vmatpush3.msra.mxu1 %v3708_v47  ;;  %v611_v47 = vrot.slane %v4351_v45, %v3727_v51 }
  0x5e   :  { %2942 = vmatprep.subr.mxu0 %v5690_v54  ;;  %2403 = vmatprep.subr.mxu1 %v3720_v49  ;;  %v4360_v49 = vld [vmem:[%s5527_s4 + $0x410] sm:$0xff] }
  0x5f   :  { %2943 = vmatpush3.msra.mxu0 %v4337_v30  ;;  %2404 = vmatpush3.msra.mxu1 %v3734_v52  ;;  %5843 = vst [vmem:[#allocation116_spill] sm:$0xff] %v4360_v49  ;;  %v619_v52 = vcombine.high %v611_v47, %v611_v47 }
  0x60   :  { %2944 = vmatprep.subr.mxu0 %v5690_v54  ;;  %2405 = vmatprep.subr.mxu1 %v3749_v55  ;;  %v4371_v55 = vld [vmem:[%s5527_s4 + $0x408] sm:$0xff] }
  0x61   :  { %2945 = vmatpush3.msra.mxu0 %v4346_v43  ;;  %2406 = vmatpush3.msra.mxu1 %v3761_v58  ;;  %5844 = vst [vmem:[#allocation117_spill] sm:$0xff] %v4371_v55  ;;  %v4380_v58 = vld [vmem:[%s5527_s4 + $0x400] sm:$0xff] }
  0x62   :  { %2946 = vmatprep.subr.mxu0 %v5690_v54  ;;  %2407 = vmatprep.subr.mxu1 %v3773_v60  ;;  %5845 = vst [vmem:[#allocation118_spill] sm:$0xff] %v4380_v58  ;;  %v2215_v60 = vld.sshfl [vmem:[%s5523_s0 + $0x10] sm:$0x3 pattern:$0x76325410]  ;;  %s3381_s0 = smov [#allocation2]  }
  0x63   :  { %2947 = vmatpush3.msra.mxu0 %v4360_v49  ;;  %2408 = vmatpush3.msra.mxu1 %v3786_v63  ;;  %v5880_v63 = vld [vmem:[#allocation92_spill] sm:$0xff]  ;;  %s2207_s21 = sshll.u32 %s3381_s0, 4  ;;  %s2208_s21 = int_to_ptr.vmem [resolvable:$true] %s2207_s21 }
  0x64   :  { %2948 = vmatprep.subr.mxu0 %v5690_v54  ;;  %2409 = vmatprep.subr.mxu1 %v3799_v32  ;;  %v5879_v32 = vld [vmem:[#allocation29_spill] sm:$0xff]  ;;  %p3361_p1 = scmp.lt.s32.totalorder %s2208_s21, %s2208_s21 }
  0x65   :  { %2949 = vmatpush3.msra.mxu0 %v4371_v55  ;;  %2410 = vmatpush3.msra.mxu1 %v3811_v42  ;;  %v5878_v42 = vld [vmem:[#allocation90_spill] sm:$0xff] }
  0x66   :  { %2950 = vmatprep.subr.mxu0 %v5690_v54  ;;  %2411 = vmatprep.subr.mxu1 %v3823_v57  ;;  %v5876_v57 = vld [vmem:[#allocation88_spill] sm:$0xff] }
  0x67   :  { %2951 = vmatpush3.msra.mxu0 %v4380_v58  ;;  %2952 = vmatprep.mubr.msk.f32.mxu0 %vm3380_vm0, %v5690_v54  ;;  %v5855_v54 = vld [vmem:[#allocation9_spill] sm:$0xff] }
  0x68   :  { %2412 = vmatpush3.msra.mxu1 %v3835_v56  ;;  %2953 = vmatmul.mubr.f32.vlgmr.msra.gmra.mxu0 %v2215_v60  ;;  %v5854_v60 = vld [vmem:[#allocation66_spill] sm:$0xff] }
  0x69   :  { %718 = vmatprep.mubr.f32.mxu1 %v619_v52  ;;  %2416 = vmatprep.subr.mxu0 %v3465_v1  ;;  %v5846_v1 = vld [vmem:[#allocation58_spill] sm:$0xff]  ;;  %v5853_v52 = vld [vmem:[#allocation8_spill] sm:$0xff] }
  0x6a   :  { %2451 = vmatprep.subr.mxu1 %v3850_v41  ;;  %719 = vmatmul.mubr.f32.vlgmr.msra.gmra.mxu1 %v611_v47  ;;  %v5852_v47 = vld [vmem:[#allocation64_spill] sm:$0xff] }
  0x6b   :  { %2417 = vmatpush3.msra.mxu0 %v3477_v3  ;;  %2452 = vmatpush3.msra.mxu1 %v3861_v61  ;;  %v5847_v3 = vld [vmem:[#allocation5_spill] sm:$0xff]  ;;  %v5870_v61 = vld [vmem:[#allocation82_spill] sm:$0xff]  ;;  %v5872_v41 = vld [vmem:[#allocation84_spill] sm:$0xff] }
  0x6c   :  { %2418 = vmatprep.subr.mxu0 %v3487_v5  ;;  %2453 = vmatprep.subr.mxu1 %v3871_v50  ;;  %v5848_v5 = vld [vmem:[#allocation60_spill] sm:$0xff] }
  0x6d   :  { %2419 = vmatpush3.msra.mxu0 %v3499_v7  ;;  %2454 = vmatpush3.msra.mxu1 %v3883_v53  ;;  %v5849_v7 = vld [vmem:[#allocation6_spill] sm:$0xff]  ;;  %v5868_v50 = vld [vmem:[#allocation80_spill] sm:$0xff] }
  0x6e   :  { %2420 = vmatprep.subr.mxu0 %v3511_v9  ;;  %2455 = vmatprep.subr.mxu1 %v3895_v31  ;;  %v5850_v9 = vld [vmem:[#allocation62_spill] sm:$0xff]  ;;  %v5864_v31 = vld [vmem:[#allocation76_spill] sm:$0xff] }
  0x6f   :  { %2421 = vmatpush3.msra.mxu0 %v3521_v11  ;;  %2456 = vmatpush3.msra.mxu1 %v3907_v48  ;;  %v5851_v11 = vld [vmem:[#allocation7_spill] sm:$0xff]  ;;  %v5862_v48 = vld [vmem:[#allocation74_spill] sm:$0xff] }
  0x70   :  { %2422 = vmatprep.subr.mxu0 %v3533_v13  ;;  %2457 = vmatprep.subr.mxu1 %v3919_v46  ;;  %v5860_v46 = vld [vmem:[#allocation72_spill] sm:$0xff]  ;;  %v5866_v53 = vld [vmem:[#allocation78_spill] sm:$0xff] }
  0x71   :  { %2423 = vmatpush3.msra.mxu0 %v3545_v15  ;;  %2458 = vmatpush3.msra.mxu1 %v3931_v44  ;;  %v5858_v44 = vld [vmem:[#allocation70_spill] sm:$0xff] }
  0x72   :  { %2424 = vmatprep.subr.mxu0 %v3557_v17  ;;  %2459 = vmatprep.subr.mxu1 %v3943_v40  ;;  %v5856_v40 = vld [vmem:[#allocation68_spill] sm:$0xff] }
  0x73   :  { %2425 = vmatpush3.msra.mxu0 %v3569_v19  ;;  %2460 = vmatpush3.msra.mxu1 %v5846_v1  ;;  %v5857_v1 = vld [vmem:[#allocation10_spill] sm:$0xff] }
  0x74   :  { %2426 = vmatprep.subr.mxu0 %v5847_v3  ;;  %2461 = vmatprep.subr.mxu1 %v5848_v5  ;;  %v5859_v5 = vld [vmem:[#allocation11_spill] sm:$0xff] }
  0x75   :  { %2427 = vmatpush3.msra.mxu0 %v5849_v7  ;;  %2462 = vmatpush3.msra.mxu1 %v5850_v9  ;;  %v5861_v9 = vld [vmem:[#allocation12_spill] sm:$0xff] }
  0x76   :  { %2428 = vmatprep.subr.mxu0 %v5851_v11  ;;  %2463 = vmatprep.subr.mxu1 %v5852_v47  ;;  %v5863_v47 = vld [vmem:[#allocation13_spill] sm:$0xff] }
  0x77   :  { %2429 = vmatpush3.msra.mxu0 %v5853_v52  ;;  %2464 = vmatpush3.msra.mxu1 %v5854_v60  ;;  %v5865_v60 = vld [vmem:[#allocation15_spill] sm:$0xff] }
  0x78   :  { %2430 = vmatprep.subr.mxu0 %v5855_v54  ;;  %2465 = vmatprep.subr.mxu1 %v5856_v40  ;;  %v604_v40 = vcombine.high %v4351_v45, %v4351_v45  ;;  %v5874_v45 = vld [vmem:[#allocation86_spill] sm:$0xff] }
  0x79   :  { %2431 = vmatpush3.msra.mxu0 %v5857_v1  ;;  %2466 = vmatpush3.msra.mxu1 %v5858_v44  ;;  %v5867_v44 = vld [vmem:[#allocation17_spill] sm:$0xff] }
  0x7a   :  { %2432 = vmatprep.subr.mxu0 %v5859_v5  ;;  %2467 = vmatprep.subr.mxu1 %v5860_v46  ;;  %v5869_v46 = vld [vmem:[#allocation19_spill] sm:$0xff]  ;;  %v618_v56 = vrot.slane %v604_v40, %v3727_v51 }
  0x7b   :  { %2433 = vmatpush3.msra.mxu0 %v5861_v9  ;;  %2468 = vmatpush3.msra.mxu1 %v5862_v48  ;;  %v5871_v48 = vld [vmem:[#allocation21_spill] sm:$0xff] }
  0x7c   :  { %2434 = vmatprep.subr.mxu0 %v5863_v47  ;;  %2469 = vmatprep.subr.mxu1 %v5864_v31  ;;  %v4444_v31 = vld [vmem:[%s5524_s1 + $0x8] sm:$0xff]  ;;  %v620_v40 = vcombine.high %v618_v56, %v618_v56 }
  0x7d   :  { %2435 = vmatpush3.msra.mxu0 %v5865_v60  ;;  %2470 = vmatpush3.msra.mxu1 %v5866_v53  ;;  %v5873_v53 = vld [vmem:[#allocation23_spill] sm:$0xff] }
  0x7e   :  { %2436 = vmatprep.subr.mxu0 %v5867_v44  ;;  %2471 = vmatprep.subr.mxu1 %v5868_v50  ;;  %v5875_v50 = vld [vmem:[#allocation25_spill] sm:$0xff] }
  0x7f   :  { %2437 = vmatpush3.msra.mxu0 %v5869_v46  ;;  %2472 = vmatpush3.msra.mxu1 %v5870_v61  ;;  %v5877_v61 = vld [vmem:[#allocation27_spill] sm:$0xff] }
  0x80   :  { %2438 = vmatprep.subr.mxu0 %v5871_v48  ;;  %2473 = vmatprep.subr.mxu1 %v5872_v41  ;;  %v628_v41 = vrot.slane %v4444_v31, %v3727_v51  ;;  %v5883_v48 = vld [vmem:[#allocation33_spill] sm:$0xff] }
  0x81   :  { %2439 = vmatpush3.msra.mxu0 %v5873_v53  ;;  %2474 = vmatpush3.msra.mxu1 %v5874_v45  ;;  %v5881_v53 = vld [vmem:[#allocation31_spill] sm:$0xff]  ;;  %v5882_v45 = vld [vmem:[#allocation94_spill] sm:$0xff] }
  0x82   :  { %2440 = vmatprep.subr.mxu0 %v5875_v50  ;;  %2475 = vmatprep.subr.mxu1 %v5876_v57  ;;  %v5884_v57 = vld [vmem:[#allocation35_spill] sm:$0xff] }
  0x83   :  { %2441 = vmatpush3.msra.mxu0 %v5877_v61  ;;  %2476 = vmatpush3.msra.mxu1 %v5878_v42  ;;  %v636_v42 = vcombine.high %v628_v41, %v628_v41  ;;  %v5885_v61 = vld [vmem:[#allocation37_spill] sm:$0xff] }
  0x84   :  { %2442 = vmatprep.subr.mxu0 %v5879_v32  ;;  %2477 = vmatprep.subr.mxu1 %v5880_v63  ;;  %v5886_v32 = vld [vmem:[#allocation39_spill] sm:$0xff]  ;;  %v5888_v63 = vmov 0.0  }
  0x85   :  { %2443 = vmatpush3.msra.mxu0 %v5881_v53  ;;  %2478 = vmatpush3.msra.mxu1 %v5882_v45  ;;  %v5887_v45 = vld [vmem:[#allocation41_spill] sm:$0xff] }
  0x86   :  { %2444 = vmatprep.subr.mxu0 %v5883_v48  ;;  %2479 = vmatprep.subr.mxu1 %v4187_v23  ;;  %v5889_v23 = vld [vmem:[#allocation43_spill] sm:$0xff] }
  0x87   :  { %2445 = vmatpush3.msra.mxu0 %v5884_v57  ;;  %2480 = vmatpush3.msra.mxu1 %v4200_v59  ;;  %v5890_v59 = vld [vmem:[#allocation45_spill] sm:$0xff] }
  0x88   :  { %2446 = vmatprep.subr.mxu0 %v5885_v61  ;;  %2481 = vmatprep.subr.mxu1 %v4212_v36  ;;  %v5891_v36 = vld [vmem:[#allocation47_spill] sm:$0xff] }
  0x89   :  { %2447 = vmatpush3.msra.mxu0 %v5886_v32  ;;  %788 = vmatprep.mubr.f32.mxu0 %v620_v40  ;;  %v5892_v40 = vld [vmem:[#allocation49_spill] sm:$0xff] }
  0x8a   :  { %2482 = vmatpush3.msra.mxu1 %v4224_v62  ;;  %789 = vmatmul.mubr.f32.vlgmr.msra.gmra.mxu0 %v618_v56  ;;  %v5893_v56 = vld [vmem:[#allocation51_spill] sm:$0xff]  ;;  %v5898_v62 = vld [vmem:[#allocation61_spill] sm:$0xff] }
  0x8b   :  { %858 = vmatprep.mubr.f32.mxu1 %v636_v42  ;;  %2486 = vmatprep.subr.mxu0 %v5887_v45  ;;  %v5895_v42 = vld [vmem:[#allocation55_spill] sm:$0xff] }
  0x8c   :  { %2955 = vmatprep.subr.mxu1 %v5888_v63  ;;  %859 = vmatmul.mubr.f32.vlgmr.msra.gmra.mxu1 %v628_v41  ;;  %v5894_v41 = vld [vmem:[#allocation53_spill] sm:$0xff] }
  0x8d   :  { %2487 = vmatpush3.msra.mxu0 %v5889_v23  ;;  %2956 = vmatpush3.msra.mxu1 %v4240_v27  ;;  %v5896_v27 = vld [vmem:[#allocation57_spill] sm:$0xff] }
  0x8e   :  { %2488 = vmatprep.subr.mxu0 %v5890_v59  ;;  %2957 = vmatprep.subr.mxu1 %v5888_v63 }
  0x8f   :  { %2489 = vmatpush3.msra.mxu0 %v5891_v36  ;;  %2958 = vmatpush3.msra.mxu1 %v4247_v25  ;;  %v5897_v25 = vld [vmem:[#allocation59_spill] sm:$0xff] }
  0x90   :  { %2490 = vmatprep.subr.mxu0 %v5892_v40  ;;  %2959 = vmatprep.subr.mxu1 %v5888_v63 }
  0x91   :  { %2491 = vmatpush3.msra.mxu0 %v5893_v56  ;;  %2960 = vmatpush3.msra.mxu1 %v4256_v21  ;;  %v5899_v21 = vld [vmem:[#allocation63_spill] sm:$0xff] }
  0x92   :  { %2492 = vmatprep.subr.mxu0 %v5894_v41  ;;  %2961 = vmatprep.subr.mxu1 %v5888_v63  ;;  %v5900_v41 = vld [vmem:[#allocation65_spill] sm:$0xff] }
  0x93   :  { %2493 = vmatpush3.msra.mxu0 %v5895_v42  ;;  %2962 = vmatpush3.msra.mxu1 %v4265_v0  ;;  %v5901_v0 = vld [vmem:[#allocation67_spill] sm:$0xff] }
  0x94   :  { %2494 = vmatprep.subr.mxu0 %v5896_v27  ;;  %2963 = vmatprep.subr.mxu1 %v5888_v63  ;;  %v5902_v27 = vld [vmem:[#allocation69_spill] sm:$0xff] }
  0x95   :  { %2495 = vmatpush3.msra.mxu0 %v5897_v25  ;;  %2964 = vmatpush3.msra.mxu1 %v4274_v2  ;;  %v5903_v2 = vld [vmem:[#allocation71_spill] sm:$0xff] }
  0x96   :  { %2496 = vmatprep.subr.mxu0 %v5898_v62  ;;  %2965 = vmatprep.subr.mxu1 %v5888_v63  ;;  %v5904_v62 = vld [vmem:[#allocation73_spill] sm:$0xff] }
  0x97   :  { %2497 = vmatpush3.msra.mxu0 %v5899_v21  ;;  %2966 = vmatpush3.msra.mxu1 %v4283_v4  ;;  %v5905_v4 = vld [vmem:[#allocation75_spill] sm:$0xff] }
  0x98   :  { %2498 = vmatprep.subr.mxu0 %v5900_v41  ;;  %2967 = vmatprep.subr.mxu1 %v5888_v63  ;;  %v5906_v41 = vld [vmem:[#allocation77_spill] sm:$0xff] }
  0x99   :  { %2499 = vmatpush3.msra.mxu0 %v5901_v0  ;;  %2968 = vmatpush3.msra.mxu1 %v4292_v6  ;;  %v5907_v6 = vld [vmem:[#allocation79_spill] sm:$0xff] }
  0x9a   :  { %2500 = vmatprep.subr.mxu0 %v5902_v27  ;;  %2969 = vmatprep.subr.mxu1 %v5888_v63 }
  0x9b   :  { %2501 = vmatpush3.msra.mxu0 %v5903_v2  ;;  %2970 = vmatpush3.msra.mxu1 %v4301_v8  ;;  %v621_v2 = vcombine.high %v4444_v31, %v4444_v31  ;;  %v5908_v8 = vld [vmem:[#allocation81_spill] sm:$0xff]  ;;  %v5913_v31 = vld [vmem:[#allocation91_spill] sm:$0xff] }
  0x9c   :  { %2502 = vmatprep.subr.mxu0 %v5904_v62  ;;  %2971 = vmatprep.subr.mxu1 %v5888_v63  ;;  %v5909_v62 = vld [vmem:[#allocation83_spill] sm:$0xff] }
  0x9d   :  { %2503 = vmatpush3.msra.mxu0 %v5905_v4  ;;  %2972 = vmatpush3.msra.mxu1 %v4310_v10  ;;  %v5910_v10 = vld [vmem:[#allocation85_spill] sm:$0xff] }
  0x9e   :  { %2504 = vmatprep.subr.mxu0 %v5906_v41  ;;  %2973 = vmatprep.subr.mxu1 %v5888_v63  ;;  %v5911_v41 = vld [vmem:[#allocation87_spill] sm:$0xff] }
  0x9f   :  { %2505 = vmatpush3.msra.mxu0 %v5907_v6  ;;  %2974 = vmatpush3.msra.mxu1 %v4319_v29  ;;  %v635_v29 = vrot.slane %v621_v2, %v3727_v51  ;;  %v5912_v6 = vld [vmem:[#allocation89_spill] sm:$0xff]  ;;  %v5917_v2 = vld [vmem:[#allocation99_spill] sm:$0xff] }
  0xa0   :  { %2506 = vmatprep.subr.mxu0 %v5908_v8  ;;  %2975 = vmatprep.subr.mxu1 %v5888_v63 }
  0xa1   :  { %2507 = vmatpush3.msra.mxu0 %v5909_v62  ;;  %2976 = vmatpush3.msra.mxu1 %v4328_v38  ;;  %v5914_v62 = vld [vmem:[#allocation93_spill] sm:$0xff]  ;;  %v5915_v38 = vld [vmem:[#allocation95_spill] sm:$0xff] }
  0xa2   :  { %2508 = vmatprep.subr.mxu0 %v5910_v10  ;;  %2977 = vmatprep.subr.mxu1 %v5888_v63 }
  0xa3   :  { %2509 = vmatpush3.msra.mxu0 %v5911_v41  ;;  %2978 = vmatpush3.msra.mxu1 %v4337_v30  ;;  %v637_v41 = vcombine.high %v635_v29, %v635_v29  ;;  %v5916_v30 = vld [vmem:[#allocation97_spill] sm:$0xff] }
  0xa4   :  { %2510 = vmatprep.subr.mxu0 %v5912_v6  ;;  %2979 = vmatprep.subr.mxu1 %v5888_v63 }
  0xa5   :  { %2511 = vmatpush3.msra.mxu0 %v5913_v31  ;;  %2980 = vmatpush3.msra.mxu1 %v4346_v43  ;;  %v5918_v31 = vld [vmem:[#allocation101_spill] sm:$0xff]  ;;  %v4566_v43 = vld [vmem:[%s5527_s4 + $0xf0] sm:$0xff] }
  0xa6   :  { %2512 = vmatprep.subr.mxu0 %v5914_v62  ;;  %2981 = vmatprep.subr.mxu1 %v5888_v63  ;;  %5921 = vst [vmem:[#allocation7_spill] sm:$0xff] %v4566_v43 }
  0xa7   :  { %2513 = vmatpush3.msra.mxu0 %v5915_v38  ;;  %2982 = vmatpush3.msra.mxu1 %v4360_v49  ;;  %v2216_v49 = vld.sshfl [vmem:[%s5524_s1 + $0x10] sm:$0x3 pattern:$0x76325410] }
  0xa8   :  { %2514 = vmatprep.subr.mxu0 %v5916_v30  ;;  %2983 = vmatprep.subr.mxu1 %v5888_v63 }
  0xa9   :  { %2515 = vmatpush3.msra.mxu0 %v5917_v2  ;;  %2984 = vmatpush3.msra.mxu1 %v4371_v55  ;;  %v4542_v55 = vld [vmem:[%s5527_s4 + $0xf8] sm:$0xff] }
  0xaa   :  { %2516 = vmatprep.subr.mxu0 %v5918_v31  ;;  %2985 = vmatprep.subr.mxu1 %v5888_v63 }
  0xab   :  { %2517 = vmatpush3.msra.mxu0 %v4231_v34  ;;  %928 = vmatprep.mubr.f32.mxu0 %v637_v41  ;;  %v4548_v41 = vld [vmem:[%s5527_s4 + $0x1f8] sm:$0xff] }
  0xac   :  { %2986 = vmatpush3.msra.mxu1 %v4380_v58  ;;  %929 = vmatmul.mubr.f32.vlgmr.msra.gmra.mxu0 %v635_v29  ;;  %5919 = vst [vmem:[#allocation5_spill] sm:$0xff] %v4548_v41  ;;  %v4554_v29 = vld [vmem:[%s5527_s4 + $0x78] sm:$0xff] }
  0xad   :  { %2987 = vmatprep.mubr.msk.f32.mxu1 %vm3380_vm0, %v5888_v63  ;;  %2538 = vmatprep.subr.mxu0 %v4542_v55  ;;  %v4560_v58 = vld [vmem:[%s5527_s4 + $0x178] sm:$0xff] }
  0xae   :  { %2573 = vmatprep.subr.mxu1 %v4548_v41  ;;  %2988 = vmatmul.mubr.f32.vlgmr.msra.gmra.mxu1 %v2216_v49  ;;  %5920 = vst [vmem:[#allocation6_spill] sm:$0xff] %v4560_v58  ;;  %v4572_v49 = vld [vmem:[%s5527_s4 + $0x1f0] sm:$0xff] }
  0xaf   :  { %2539 = vmatpush3.msra.mxu0 %v4554_v29  ;;  %2574 = vmatpush3.msra.mxu1 %v4560_v58  ;;  %5922 = vst [vmem:[#allocation8_spill] sm:$0xff] %v4572_v49  ;;  %v4578_v41 = vld [vmem:[%s5527_s4 + $0x70] sm:$0xff] }
  0xb0   :  { %2540 = vmatprep.subr.mxu0 %v4566_v43  ;;  %2575 = vmatprep.subr.mxu1 %v4572_v49  ;;  %5923 = vst [vmem:[#allocation9_spill] sm:$0xff] %v4578_v41  ;;  %v4584_v58 = vld [vmem:[%s5527_s4 + $0x170] sm:$0xff]  ;;  %v4590_v43 = vld [vmem:[%s5527_s4 + $0xe8] sm:$0xff] }
  0xb1   :  { %2541 = vmatpush3.msra.mxu0 %v4578_v41  ;;  %5924 = vst [vmem:[#allocation10_spill] sm:$0xff] %v4584_v58  ;;  %2576 = vmatpush3.msra.mxu1 %v4584_v58  ;;  %v4596_v49 = vld [vmem:[%s5527_s4 + $0x1e8] sm:$0xff] }
  0xb2   :  { %2542 = vmatprep.subr.mxu0 %v4590_v43  ;;  %2577 = vmatprep.subr.mxu1 %v4596_v49  ;;  %v4602_v41 = vld [vmem:[%s5527_s4 + $0x68] sm:$0xff] }
  0xb3   :  { %2543 = vmatpush3.msra.mxu0 %v4602_v41  ;;  %v4608_v58 = vld [vmem:[%s5527_s4 + $0x168] sm:$0xff] }
  0xb4   :  { %2578 = vmatpush3.msra.mxu1 %v4608_v58  ;;  %2544 = vmatprep.subr.mxu0 %v3528_v12  ;;  %v1005_v12 = vld [vmem:[%s5525_s2] sm:$0xff] }
  0xb5   :  { %2579 = vmatprep.subr.mxu1 %v3533_v13  ;;  %2545 = vmatpush3.msra.mxu0 %v3540_v14  ;;  %v5925_v13 = vld [vmem:[#allocation14_spill] sm:$0xff]  ;;  %v5926_v14 = vld [vmem:[#allocation16_spill] sm:$0xff] }
  0xb6   :  { %2580 = vmatpush3.msra.mxu1 %v3545_v15  ;;  %2546 = vmatprep.subr.mxu0 %v3552_v16  ;;  %v1011_v15 = vcombine.high %v1005_v12, %v1005_v12  ;;  %v5927_v16 = vld [vmem:[#allocation18_spill] sm:$0xff] }
  0xb7   :  { %2581 = vmatprep.subr.mxu1 %v3557_v17  ;;  %2547 = vmatpush3.msra.mxu0 %v3564_v18  ;;  %v5928_v17 = vld [vmem:[#allocation20_spill] sm:$0xff]  ;;  %v5929_v18 = vld [vmem:[#allocation21_spill] sm:$0xff] }
  0xb8   :  { %2582 = vmatpush3.msra.mxu1 %v3569_v19  ;;  %2548 = vmatprep.subr.mxu0 %v3576_v20  ;;  %v5930_v19 = vld [vmem:[#allocation22_spill] sm:$0xff]  ;;  %v5931_v20 = vld [vmem:[#allocation23_spill] sm:$0xff] }
  0xb9   :  { %2583 = vmatprep.subr.mxu1 %v5847_v3  ;;  %2549 = vmatpush3.msra.mxu0 %v3588_v22  ;;  %v1018_v22 = vrot.slane %v1005_v12, %v3727_v51  ;;  %v5941_v3 = vld [vmem:[#allocation38_spill] sm:$0xff]  ;;  %v5962_v12 = vld [vmem:[#allocation71_spill] sm:$0xff] }
  0xba   :  { %2584 = vmatpush3.msra.mxu1 %v5849_v7  ;;  %2550 = vmatprep.subr.mxu0 %v3600_v24  ;;  %v5932_v24 = vld [vmem:[#allocation24_spill] sm:$0xff] }
  0xbb   :  { %2585 = vmatprep.subr.mxu1 %v5851_v11  ;;  %2551 = vmatpush3.msra.mxu0 %v3612_v26  ;;  %v1025_v26 = vrot.slane %v1011_v15, %v3727_v51  ;;  %v5948_v7 = vld [vmem:[#allocation52_spill] sm:$0xff]  ;;  %v5952_v11 = vld [vmem:[#allocation57_spill] sm:$0xff] }
  0xbc   :  { %2586 = vmatpush3.msra.mxu1 %v5853_v52  ;;  %2552 = vmatprep.subr.mxu0 %v3624_v28  ;;  %v5933_v28 = vld [vmem:[#allocation26_spill] sm:$0xff]  ;;  %v5955_v52 = vld [vmem:[#allocation61_spill] sm:$0xff]  ;;  %v5966_v15 = vld [vmem:[#allocation76_spill] sm:$0xff] }
  0xbd   :  { %2587 = vmatprep.subr.mxu1 %v5855_v54  ;;  %2553 = vmatpush3.msra.mxu0 %v3636_v33  ;;  %v5934_v33 = vld [vmem:[#allocation27_spill] sm:$0xff]  ;;  %v5939_v54 = vld [vmem:[#allocation34_spill] sm:$0xff] }
  0xbe   :  { %2588 = vmatpush3.msra.mxu1 %v5857_v1  ;;  %2554 = vmatprep.subr.mxu0 %v3648_v35  ;;  %v5935_v35 = vld [vmem:[#allocation28_spill] sm:$0xff] }
  0xbf   :  { %2589 = vmatprep.subr.mxu1 %v5859_v5  ;;  %2555 = vmatpush3.msra.mxu0 %v3660_v37  ;;  %v5936_v37 = vld [vmem:[#allocation29_spill] sm:$0xff]  ;;  %v5940_v1 = vld [vmem:[#allocation36_spill] sm:$0xff]  ;;  %v5947_v5 = vld [vmem:[#allocation50_spill] sm:$0xff] }
  0xc0   :  { %2590 = vmatpush3.msra.mxu1 %v5861_v9  ;;  %2556 = vmatprep.subr.mxu0 %v3672_v39  ;;  %v5937_v39 = vld [vmem:[#allocation30_spill] sm:$0xff]  ;;  %v5949_v9 = vld [vmem:[#allocation53_spill] sm:$0xff] }
  0xc1   :  { %2591 = vmatprep.subr.mxu1 %v5863_v47  ;;  %2557 = vmatpush3.msra.mxu0 %v5925_v13  ;;  %v5954_v47 = vld [vmem:[#allocation60_spill] sm:$0xff] }
  0xc2   :  { %2592 = vmatpush3.msra.mxu1 %v5865_v60  ;;  %2558 = vmatprep.subr.mxu0 %v5926_v14  ;;  %v5956_v60 = vld [vmem:[#allocation62_spill] sm:$0xff]  ;;  %v5963_v13 = vld [vmem:[#allocation72_spill] sm:$0xff]  ;;  %v5964_v14 = vld [vmem:[#allocation73_spill] sm:$0xff] }
  0xc3   :  { %2593 = vmatprep.subr.mxu1 %v5867_v44  ;;  %2559 = vmatpush3.msra.mxu0 %v5927_v16  ;;  %v1026_v44 = vcombine.high %v1018_v22, %v1018_v22  ;;  %v5967_v16 = vld [vmem:[#allocation77_spill] sm:$0xff] }
  0xc4   :  { %2594 = vmatpush3.msra.mxu1 %v5869_v46  ;;  %2560 = vmatprep.subr.mxu0 %v5928_v17  ;;  %v5938_v46 = vld [vmem:[#allocation32_spill] sm:$0xff]  ;;  %v5969_v17 = vld [vmem:[#allocation79_spill] sm:$0xff] }
  0xc5   :  { %2595 = vmatprep.subr.mxu1 %v5929_v18  ;;  %2561 = vmatpush3.msra.mxu0 %v5930_v19  ;;  %v5970_v18 = vld [vmem:[#allocation80_spill] sm:$0xff]  ;;  %v5971_v19 = vld [vmem:[#allocation82_spill] sm:$0xff] }
  0xc6   :  { %2596 = vmatpush3.msra.mxu1 %v5931_v20  ;;  %2562 = vmatprep.subr.mxu0 %v5932_v24  ;;  %v5972_v20 = vld [vmem:[#allocation83_spill] sm:$0xff] }
  0xc7   :  { %2597 = vmatprep.subr.mxu1 %v5875_v50  ;;  %2563 = vmatpush3.msra.mxu0 %v5933_v28  ;;  %v1027_v50 = vcombine.high %v1025_v26, %v1025_v26  ;;  %v5973_v28 = vld [vmem:[#allocation84_spill] sm:$0xff] }
  0xc8   :  { %2598 = vmatpush3.msra.mxu1 %v5934_v33  ;;  %2564 = vmatprep.subr.mxu0 %v5935_v35  ;;  %v5974_v33 = vld [vmem:[#allocation86_spill] sm:$0xff]  ;;  %v5975_v35 = vld [vmem:[#allocation87_spill] sm:$0xff] }
  0xc9   :  { %2599 = vmatprep.subr.mxu1 %v5936_v37  ;;  %2565 = vmatpush3.msra.mxu0 %v5937_v39 }
  0xca   :  { %2600 = vmatpush3.msra.mxu1 %v5881_v53  ;;  %2566 = vmatprep.subr.mxu0 %v5938_v46  ;;  %v5942_v53 = vld [vmem:[#allocation40_spill] sm:$0xff] }
  0xcb   :  { %2601 = vmatprep.subr.mxu1 %v5883_v48  ;;  %2567 = vmatpush3.msra.mxu0 %v5939_v54  ;;  %v5943_v48 = vld [vmem:[#allocation42_spill] sm:$0xff]  ;;  %v5978_v54 = vld [vmem:[#allocation91_spill] sm:$0xff] }
  0xcc   :  { %2602 = vmatpush3.msra.mxu1 %v5884_v57  ;;  %2568 = vmatprep.subr.mxu0 %v5940_v1  ;;  %v5944_v57 = vld [vmem:[#allocation44_spill] sm:$0xff] }
  0xcd   :  { %2603 = vmatprep.subr.mxu1 %v5885_v61  ;;  %2569 = vmatpush3.msra.mxu0 %v5941_v3  ;;  %v5945_v61 = vld [vmem:[#allocation46_spill] sm:$0xff] }
  0xce   :  { %1125 = vmatprep.mubr.f32.mxu0 %v1026_v44  ;;  %2604 = vmatpush3.msra.mxu1 %v5886_v32  ;;  %v5946_v32 = vld [vmem:[#allocation48_spill] sm:$0xff] }
  0xcf   :  { %1195 = vmatprep.mubr.f32.mxu1 %v1027_v50  ;;  %1126 = vmatmul.mubr.f32.vlgmr.msra.gmra.mxu0 %v1018_v22  ;;  %v5977_v50 = vld [vmem:[#allocation90_spill] sm:$0xff] }
  0xd0   :  { %1196 = vmatmul.mubr.f32.vlgmr.msra.gmra.mxu1 %v1025_v26  ;;  %2608 = vmatprep.subr.mxu0 %v5942_v53 }
  0xd1   :  { %2643 = vmatprep.subr.mxu1 %v5887_v45  ;;  %2609 = vmatpush3.msra.mxu0 %v5943_v48  ;;  %v5957_v45 = vld [vmem:[#allocation64_spill] sm:$0xff]  ;;  %v5980_v48 = vld [vmem:[#allocation94_spill] sm:$0xff] }
  0xd2   :  { %2644 = vmatpush3.msra.mxu1 %v5889_v23  ;;  %2610 = vmatprep.subr.mxu0 %v5944_v57  ;;  %v5950_v23 = vld [vmem:[#allocation54_spill] sm:$0xff] }
  0xd3   :  { %2645 = vmatprep.subr.mxu1 %v5890_v59  ;;  %2611 = vmatpush3.msra.mxu0 %v5945_v61  ;;  %v5951_v59 = vld [vmem:[#allocation56_spill] sm:$0xff]  ;;  %v5982_v57 = vld [vmem:[#allocation98_spill] sm:$0xff] }
  0xd4   :  { %2646 = vmatpush3.msra.mxu1 %v5891_v36  ;;  %2612 = vmatprep.subr.mxu0 %v5946_v32  ;;  %v5953_v36 = vld [vmem:[#allocation58_spill] sm:$0xff]  ;;  %v5983_v32 = vld [vmem:[#allocation100_spill] sm:$0xff] }
  0xd5   :  { %2647 = vmatprep.subr.mxu1 %v5892_v40  ;;  %2613 = vmatpush3.msra.mxu0 %v5947_v5  ;;  %v5958_v40 = vld [vmem:[#allocation65_spill] sm:$0xff]  ;;  %v5984_v5 = vld [vmem:[#allocation102_spill] sm:$0xff] }
  0xd6   :  { %2648 = vmatpush3.msra.mxu1 %v5893_v56  ;;  %2614 = vmatprep.subr.mxu0 %v5948_v7  ;;  %v5959_v56 = vld [vmem:[#allocation66_spill] sm:$0xff]  ;;  %v3225_v7 = vld [vmem:[%s5527_s4 + $0x60] sm:$0xff] }
  0xd7   :  { %2649 = vmatprep.subr.mxu1 %v5949_v9  ;;  %2615 = vmatpush3.msra.mxu0 %v5950_v23  ;;  %v3227_v9 = vld [vmem:[%s5527_s4 + $0x58] sm:$0xff]  ;;  %v3228_v23 = vld [vmem:[%s5527_s4 + $0xd0] sm:$0xff] }
  0xd8   :  { %2650 = vmatpush3.msra.mxu1 %v5895_v42  ;;  %2616 = vmatprep.subr.mxu0 %v5951_v59  ;;  %v5960_v42 = vld [vmem:[#allocation68_spill] sm:$0xff]  ;;  %v5993_v59 = vld [vmem:[#allocation109_spill] sm:$0xff] }
  0xd9   :  { %2651 = vmatprep.subr.mxu1 %v5952_v11  ;;  %2617 = vmatpush3.msra.mxu0 %v5953_v36  ;;  %v3229_v11 = vld [vmem:[%s5527_s4 + $0x50] sm:$0xff]  ;;  %v3230_v36 = vld [vmem:[%s5527_s4 + $0xc8] sm:$0xff] }
  0xda   :  { %2652 = vmatpush3.msra.mxu1 %v5897_v25  ;;  %2618 = vmatprep.subr.mxu0 %v5954_v47  ;;  %v5961_v25 = vld [vmem:[#allocation70_spill] sm:$0xff] }
  0xdb   :  { %2653 = vmatprep.subr.mxu1 %v5955_v52  ;;  %2619 = vmatpush3.msra.mxu0 %v5956_v60  ;;  %v5994_v47 = vld [vmem:[#allocation110_spill] sm:$0xff]  ;;  %v3232_v60 = vld [vmem:[%s5527_s4 + $0xc0] sm:$0xff] }
  0xdc   :  { %2654 = vmatpush3.msra.mxu1 %v5899_v21  ;;  %2620 = vmatprep.subr.mxu0 %v5957_v45  ;;  %v5965_v21 = vld [vmem:[#allocation74_spill] sm:$0xff]  ;;  %v5995_v45 = vld [vmem:[#allocation111_spill] sm:$0xff] }
  0xdd   :  { %2655 = vmatprep.subr.mxu1 %v5958_v40  ;;  %2621 = vmatpush3.msra.mxu0 %v5959_v56  ;;  %v3231_v52 = vld [vmem:[%s5527_s4 + $0x48] sm:$0xff]  ;;  %v3233_v40 = vld [vmem:[%s5527_s4 + $0x40] sm:$0xff]  ;;  %v3234_v56 = vld [vmem:[%s5527_s4 + $0xb8] sm:$0xff] }
  0xde   :  { %2656 = vmatpush3.msra.mxu1 %v5901_v0  ;;  %2622 = vmatprep.subr.mxu0 %v5960_v42  ;;  %v5968_v0 = vld [vmem:[#allocation78_spill] sm:$0xff]  ;;  %v5996_v42 = vld [vmem:[#allocation112_spill] sm:$0xff] }
  0xdf   :  { %2657 = vmatprep.subr.mxu1 %v5902_v27  ;;  %2623 = vmatpush3.msra.mxu0 %v5961_v25  ;;  %v1006_v27 = vld [vmem:[%s5525_s2 + $0x8] sm:$0xff]  ;;  %v3235_v25 = vld [vmem:[%s5527_s4 + $0x38] sm:$0xff] }
  0xe0   :  { %2658 = vmatpush3.msra.mxu1 %v5962_v12  ;;  %2624 = vmatprep.subr.mxu0 %v5963_v13  ;;  %v1028_v26 = vcombine.high %v1006_v27, %v1006_v27  ;;  %v3236_v12 = vld [vmem:[%s5527_s4 + $0xb0] sm:$0xff]  ;;  %v5997_v13 = vld [vmem:[#allocation113_spill] sm:$0xff] }
  0xe1   :  { %2659 = vmatprep.subr.mxu1 %v5964_v14  ;;  %2625 = vmatpush3.msra.mxu0 %v5965_v21  ;;  %v3237_v14 = vld [vmem:[%s5527_s4 + $0x30] sm:$0xff] }
  0xe2   :  { %2660 = vmatpush3.msra.mxu1 %v5905_v4  ;;  %2626 = vmatprep.subr.mxu0 %v5966_v15  ;;  %v1035_v4 = vrot.slane %v1006_v27, %v3727_v51  ;;  %v1042_v3 = vrot.slane %v1028_v26, %v3727_v51  ;;  %v3238_v15 = vld [vmem:[%s5527_s4 + $0xa8] sm:$0xff]  ;;  %v3242_v26 = vld [vmem:[%s5527_s4 + $0x98] sm:$0xff] }
  0xe3   :  { %2661 = vmatprep.subr.mxu1 %v5967_v16  ;;  %2627 = vmatpush3.msra.mxu0 %v5968_v0  ;;  %v5998_v16 = vld [vmem:[#allocation114_spill] sm:$0xff] }
  0xe4   :  { %2662 = vmatpush3.msra.mxu1 %v5969_v17  ;;  %2628 = vmatprep.subr.mxu0 %v5970_v18  ;;  %v2256_v22 = vpop.f32.mrf.mxu0  ;;  %v1043_v1 = vcombine.high %v1035_v4, %v1035_v4  ;;  %v1044_v61 = vcombine.high %v1042_v3, %v1042_v3  ;;  %v3239_v27 = vld [vmem:[%s5527_s4 + $0x28] sm:$0xff]  ;;  %v3240_v18 = vld [vmem:[%s5527_s4 + $0xa0] sm:$0xff] }
  0xe5   :  { %2663 = vmatprep.subr.mxu1 %v5908_v8  ;;  %2629 = vmatpush3.msra.mxu0 %v5971_v19  ;;  %v2291_v24 = vpop.f32.mrf.mxu1  ;;  %v5976_v8 = vld [vmem:[#allocation88_spill] sm:$0xff] }
  0xe6   :  { %2664 = vmatpush3.msra.mxu1 %v5972_v20  ;;  %2630 = vmatprep.subr.mxu0 %v5973_v28  ;;  %v2257_v37 = vpop.f32.mrf.mxu0  ;;  %v4824_v20 = vld [vmem:[%s5526_s3] sm:$0xff] }
  0xe7   :  { %2665 = vmatprep.subr.mxu1 %v5910_v10  ;;  %2631 = vmatpush3.msra.mxu0 %v5974_v33  ;;  %v2292_v39 = vpop.f32.mrf.mxu1  ;;  %v2258_v44 = vadd.f32 %v2257_v37, %v2256_v22  ;;  %v5979_v10 = vld [vmem:[#allocation92_spill] sm:$0xff] }
  0xe8   :  { %2666 = vmatpush3.msra.mxu1 %v5975_v35  ;;  %2632 = vmatprep.subr.mxu0 %v5976_v8  ;;  %v2293_v46 = vadd.f32 %v2292_v39, %v2291_v24  ;;  %v3241_v22 = vld [vmem:[%s5527_s4 + $0x20] sm:$0xff]  ;;  %v3243_v37 = vld [vmem:[%s5527_s4 + $0x18] sm:$0xff]  ;;  %v1425_v39 = vrot.slane %v4824_v20, %v3727_v51  ;;  %v3244_v8 = vld [vmem:[%s5527_s4 + $0x90] sm:$0xff] }
  0xe9   :  { %2667 = vmatprep.subr.mxu1 %v5912_v6  ;;  %2633 = vmatpush3.msra.mxu0 %v5977_v50  ;;  %v5981_v6 = vld [vmem:[#allocation96_spill] sm:$0xff]  ;;  %v3245_v50 = vld [vmem:[%s5527_s4 + $0x10] sm:$0xff] }
  0xea   :  { %2668 = vmatpush3.msra.mxu1 %v5978_v54  ;;  %2634 = vmatprep.subr.mxu0 %v5979_v10  ;;  %v4727_v53 = vadd.f32 %v2293_v46, %v2258_v44  ;;  %v6000_v35 = vld [vmem:[#allocation116_spill] sm:$0xff]  ;;  %v6001_v46 = vld [vmem:[#allocation117_spill] sm:$0xff]  ;;  %v2217_v54 = vld.sshfl [vmem:[%s5525_s2 + $0x10] sm:$0x3 pattern:$0x76325410]  ;;  %v1433_v10 = vcombine.high %v1425_v39, %v1425_v39 }
  0xeb   :  { %2669 = vmatprep.subr.mxu1 %v5914_v62  ;;  %2635 = vmatpush3.msra.mxu0 %v5980_v48  ;;  %v5985_v62 = vld [vmem:[#allocation103_spill] sm:$0xff]  ;;  %v3248_v48 = vld [vmem:[%s5527_s4 + $0x80] sm:$0xff] }
  0xec   :  { %2670 = vmatpush3.msra.mxu1 %v5915_v38  ;;  %2636 = vmatprep.subr.mxu0 %v5981_v6  ;;  %v5986_v38 = vld [vmem:[#allocation104_spill] sm:$0xff]  ;;  %v6003_v6 = vld [vmem:[#allocation5_spill] sm:$0xff] }
  0xed   :  { %2671 = vmatprep.subr.mxu1 %v5916_v30  ;;  %2637 = vmatpush3.msra.mxu0 %v5982_v57  ;;  %v5987_v30 = vld [vmem:[#allocation7_spill] sm:$0xff]  ;;  %v3249_v57 = vld [vmem:[%s5527_s4] sm:$0xff] }
  0xee   :  { %1265 = vmatprep.mubr.f32.mxu0 %v1043_v1  ;;  %2638 = vmatprep.subr.mxu0 %v5983_v32  ;;  %v3246_v1 = vld [vmem:[%s5527_s4 + $0x88] sm:$0xff]  ;;  %v6005_v32 = vld [vmem:[#allocation8_spill] sm:$0xff] }
  0xef   :  { %2672 = vmatpush3.msra.mxu1 %v5917_v2  ;;  %2639 = vmatpush3.msra.mxu0 %v5984_v5  ;;  %v5989_v2 = vld [vmem:[#allocation9_spill] sm:$0xff]  ;;  %v3250_v5 = vld [vmem:[%s5527_s4 + $0x2f8] sm:$0xff] }
  0xf0   :  { %2673 = vmatprep.subr.mxu1 %v5918_v31  ;;  %1266 = vmatmul.mubr.f32.vlgmr.msra.gmra.mxu0 %v1035_v4  ;;  %v5988_v31 = vld [vmem:[#allocation105_spill] sm:$0xff]  ;;  %v5999_v4 = vld [vmem:[#allocation115_spill] sm:$0xff] }
  0xf1   :  { %2990 = vmatprep.subr.mxu0 %v5888_v63  ;;  %2674 = vmatpush3.msra.mxu1 %v4231_v34  ;;  %v5990_v34 = vld [vmem:[#allocation106_spill] sm:$0xff] }
  0xf2   :  { %1335 = vmatprep.mubr.f32.mxu1 %v1044_v61  ;;  %2991 = vmatpush3.msra.mxu0 %v5985_v62  ;;  %v6004_v61 = vld [vmem:[#allocation6_spill] sm:$0xff] }
  0xf3   :  { %1336 = vmatmul.mubr.f32.vlgmr.msra.gmra.mxu1 %v1042_v3  ;;  %2992 = vmatprep.subr.mxu0 %v5888_v63  ;;  %v6002_v3 = vld [vmem:[#allocation118_spill] sm:$0xff] }
  0xf4   :  { %2695 = vmatprep.subr.mxu1 %v4542_v55  ;;  %2993 = vmatpush3.msra.mxu0 %v5986_v38  ;;  %v3224_v55 = vld [vmem:[%s5527_s4 + $0xe0] sm:$0xff]  ;;  %v6006_v62 = vld [vmem:[#allocation10_spill] sm:$0xff]  ;;  %v3251_v38 = vld [vmem:[%s5527_s4 + $0x278] sm:$0xff] }
  0xf5   :  { %2696 = vmatpush3.msra.mxu1 %v4554_v29  ;;  %2994 = vmatprep.subr.mxu0 %v5888_v63  ;;  %v5991_v29 = vld [vmem:[#allocation107_spill] sm:$0xff] }
  0xf6   :  { %2697 = vmatprep.subr.mxu1 %v5987_v30  ;;  %2995 = vmatpush3.msra.mxu0 %v5988_v31  ;;  %v3252_v30 = vld [vmem:[%s5527_s4 + $0x2f0] sm:$0xff] }
  0xf7   :  { %2698 = vmatpush3.msra.mxu1 %v5989_v2  ;;  %2996 = vmatprep.subr.mxu0 %v5888_v63  ;;  %v3253_v31 = vld [vmem:[%s5527_s4 + $0x270] sm:$0xff]  ;;  %v3254_v2 = vld [vmem:[%s5527_s4 + $0x1e0] sm:$0xff] }
  0xf8   :  { %2699 = vmatprep.subr.mxu1 %v4590_v43  ;;  %2997 = vmatpush3.msra.mxu0 %v5990_v34  ;;  %v3226_v43 = vld [vmem:[%s5527_s4 + $0xd8] sm:$0xff]  ;;  %v3256_v34 = vld [vmem:[%s5527_s4 + $0x160] sm:$0xff] }
  0xf9   :  { %2700 = vmatpush3.msra.mxu1 %v4602_v41  ;;  %2998 = vmatprep.subr.mxu0 %v5888_v63  ;;  %v5992_v41 = vld [vmem:[#allocation108_spill] sm:$0xff] }
  0xfa   :  { %2701 = vmatprep.subr.mxu1 %v3224_v55  ;;  %2999 = vmatpush3.msra.mxu0 %v5991_v29  ;;  %v3258_v55 = vld [vmem:[%s5527_s4 + $0x1d8] sm:$0xff]  ;;  %v3259_v29 = vld [vmem:[%s5527_s4 + $0x2e0] sm:$0xff] }
  0xfb   :  { %2702 = vmatpush3.msra.mxu1 %v3225_v7  ;;  %3000 = vmatprep.subr.mxu0 %v5888_v63  ;;  %v3260_v7 = vld [vmem:[%s5527_s4 + $0x158] sm:$0xff] }
  0xfc   :  { %2703 = vmatprep.subr.mxu1 %v3226_v43  ;;  %3001 = vmatpush3.msra.mxu0 %v5992_v41  ;;  %v3261_v43 = vld [vmem:[%s5527_s4 + $0x260] sm:$0xff]  ;;  %v3262_v41 = vld [vmem:[%s5527_s4 + $0x1d0] sm:$0xff] }
  0xfd   :  { %2704 = vmatpush3.msra.mxu1 %v3227_v9  ;;  %3002 = vmatprep.subr.mxu0 %v5888_v63  ;;  %v3263_v9 = vld [vmem:[%s5527_s4 + $0x2d8] sm:$0xff] }
  0xfe   :  { %2705 = vmatprep.subr.mxu1 %v3228_v23  ;;  %3003 = vmatpush3.msra.mxu0 %v5993_v59  ;;  %v3264_v23 = vld [vmem:[%s5527_s4 + $0x150] sm:$0xff]  ;;  %v3265_v59 = vld [vmem:[%s5527_s4 + $0x258] sm:$0xff] }
  0xff   :  { %2706 = vmatpush3.msra.mxu1 %v3229_v11  ;;  %3004 = vmatprep.subr.mxu0 %v5888_v63  ;;  %v3266_v11 = vld [vmem:[%s5527_s4 + $0x1c8] sm:$0xff] }
 0x100   :  { %2707 = vmatprep.subr.mxu1 %v3230_v36  ;;  %3005 = vmatpush3.msra.mxu0 %v5994_v47  ;;  %v3267_v36 = vld [vmem:[%s5527_s4 + $0x2d0] sm:$0xff]  ;;  %v3268_v47 = vld [vmem:[%s5527_s4 + $0x148] sm:$0xff] }
 0x101   :  { %2708 = vmatpush3.msra.mxu1 %v3231_v52  ;;  %3006 = vmatprep.subr.mxu0 %v5888_v63  ;;  %v3269_v52 = vld [vmem:[%s5527_s4 + $0x250] sm:$0xff] }
 0x102   :  { %2709 = vmatprep.subr.mxu1 %v3232_v60  ;;  %3007 = vmatpush3.msra.mxu0 %v5995_v45  ;;  %v3270_v60 = vld [vmem:[%s5527_s4 + $0x1c0] sm:$0xff]  ;;  %v3271_v45 = vld [vmem:[%s5527_s4 + $0x2c8] sm:$0xff] }
 0x103   :  { %2710 = vmatpush3.msra.mxu1 %v3233_v40  ;;  %3008 = vmatprep.subr.mxu0 %v5888_v63  ;;  %v3272_v40 = vld [vmem:[%s5527_s4 + $0x140] sm:$0xff] }
 0x104   :  { %2711 = vmatprep.subr.mxu1 %v3234_v56  ;;  %3009 = vmatpush3.msra.mxu0 %v5996_v42  ;;  %v3273_v56 = vld [vmem:[%s5527_s4 + $0x248] sm:$0xff]  ;;  %v3274_v42 = vld [vmem:[%s5527_s4 + $0x1b8] sm:$0xff] }
 0x105   :  { %2712 = vmatpush3.msra.mxu1 %v3235_v25  ;;  %3010 = vmatprep.subr.mxu0 %v5888_v63  ;;  %v3275_v25 = vld [vmem:[%s5527_s4 + $0x2c0] sm:$0xff] }
 0x106   :  { %2713 = vmatprep.subr.mxu1 %v3236_v12  ;;  %3011 = vmatpush3.msra.mxu0 %v5997_v13  ;;  %v2326_v21 = vpop.f32.mrf.mxu0  ;;  %v3276_v12 = vld [vmem:[%s5527_s4 + $0x138] sm:$0xff]  ;;  %v3277_v13 = vld [vmem:[%s5527_s4 + $0x240] sm:$0xff] }
 0x107   :  { %2714 = vmatpush3.msra.mxu1 %v3237_v14  ;;  %3012 = vmatprep.subr.mxu0 %v5888_v63  ;;  %v3278_v14 = vld [vmem:[%s5527_s4 + $0x1b0] sm:$0xff] }
 0x108   :  { %2715 = vmatprep.subr.mxu1 %v3238_v15  ;;  %3013 = vmatpush3.msra.mxu0 %v5998_v16  ;;  %v2327_v0 = vpop.f32.mrf.mxu0  ;;  %v2361_v17 = vpop.f32.mrf.mxu1  ;;  %v3280_v15 = vld [vmem:[%s5527_s4 + $0x130] sm:$0xff]  ;;  %v3281_v16 = vld [vmem:[%s5527_s4 + $0x238] sm:$0xff] }
 0x109   :  { %2716 = vmatpush3.msra.mxu1 %v3239_v27  ;;  %3014 = vmatprep.subr.mxu0 %v5888_v63  ;;  %v2328_v19 = vadd.f32 %v2327_v0, %v2326_v21  ;;  %v3279_v21 = vld [vmem:[%s5527_s4 + $0x2b8] sm:$0xff]  ;;  %v1418_v27 = vcombine.high %v4824_v20, %v4824_v20  ;;  %v3282_v0 = vld [vmem:[%s5527_s4 + $0x1a8] sm:$0xff] }
 0x10a   :  { %2717 = vmatprep.subr.mxu1 %v3240_v18  ;;  %3015 = vmatpush3.msra.mxu0 %v5999_v4  ;;  %v2362_v24 = vpop.f32.mrf.mxu1  ;;  %v3284_v18 = vld [vmem:[%s5527_s4 + $0x128] sm:$0xff]  ;;  %v3286_v4 = vld [vmem:[%s5527_s4 + $0x1a0] sm:$0xff] }
 0x10b   :  { %2718 = vmatpush3.msra.mxu1 %v3241_v22  ;;  %3016 = vmatprep.subr.mxu0 %v5888_v63  ;;  %v455_v28 = vadd.f32 %v2328_v19, %v4727_v53  ;;  %v2363_v33 = vadd.f32 %v2362_v24, %v2361_v17  ;;  %v3247_v53 = vld [vmem:[%s5527_s4 + $0x8] sm:$0xff]  ;;  %v3283_v17 = vld [vmem:[%s5527_s4 + $0x2b0] sm:$0xff] }
 0x10c   :  { %2719 = vmatprep.subr.mxu1 %v3242_v26  ;;  %3017 = vmatpush3.msra.mxu0 %v6000_v35  ;;  %v3285_v19 = vld [vmem:[%s5527_s4 + $0x230] sm:$0xff]  ;;  %v3287_v22 = vld [vmem:[%s5527_s4 + $0x2a8] sm:$0xff]  ;;  %v3288_v26 = vld [vmem:[%s5527_s4 + $0x120] sm:$0xff] }
 0x10d   :  { %2720 = vmatpush3.msra.mxu1 %v3243_v37  ;;  %3018 = vmatprep.subr.mxu0 %v5888_v63  ;;  %v4845_v44 = vadd.f32 %v2363_v33, %v455_v28  ;;  %v3289_v28 = vld [vmem:[%s5527_s4 + $0x228] sm:$0xff]  ;;  %v1432_v33 = vrot.slane %v1418_v27, %v3727_v51  ;;  %v3332_v27 = vld [vmem:[%s5527_s4 + $0x338] sm:$0xff] }
 0x10e   :  { %2721 = vmatprep.subr.mxu1 %v3244_v8  ;;  %3019 = vmatpush3.msra.mxu0 %v6001_v46  ;;  %v5005_v35 = vld [vmem:[%s5526_s3 + $0x8] sm:$0xff]  ;;  %v3290_v8 = vld [vmem:[%s5527_s4 + $0x198] sm:$0xff] }
 0x10f   :  { %2722 = vmatpush3.msra.mxu1 %v3245_v50  ;;  %3020 = vmatprep.subr.mxu0 %v5888_v63  ;;  %v3292_v46 = vld [vmem:[%s5527_s4 + $0x118] sm:$0xff]  ;;  %v3293_v50 = vld [vmem:[%s5527_s4 + $0x220] sm:$0xff] }
 0x110   :  { %2723 = vmatprep.subr.mxu1 %v3246_v1  ;;  %3021 = vmatpush3.msra.mxu0 %v6002_v3  ;;  %v3294_v1 = vld [vmem:[%s5527_s4 + $0x190] sm:$0xff]  ;;  %v3295_v3 = vld [vmem:[%s5527_s4 + $0x298] sm:$0xff] }
 0x111   :  { %3022 = vmatprep.mubr.msk.f32.mxu0 %vm3380_vm0, %v5888_v63  ;;  %2724 = vmatpush3.msra.mxu1 %v3247_v53 }
 0x112   :  { %3023 = vmatmul.mubr.f32.vlgmr.msra.gmra.mxu0 %v2217_v54  ;;  %2725 = vmatprep.subr.mxu1 %v3248_v48  ;;  %v3296_v48 = vld [vmem:[%s5527_s4 + $0x110] sm:$0xff] }
 0x113   :  { %2730 = vmatprep.subr.mxu0 %v6003_v6  ;;  %2726 = vmatpush3.msra.mxu1 %v3249_v57  ;;  %v3297_v6 = vld [vmem:[%s5527_s4 + $0x218] sm:$0xff]  ;;  %v1434_v57 = vcombine.high %v1432_v33, %v1432_v33 }
 0x114   :  { %2731 = vmatpush3.msra.mxu0 %v6004_v61  ;;  %1532 = vmatprep.mubr.f32.mxu1 %v1433_v10  ;;  %v1442_v10 = vrot.slane %v5005_v35, %v3727_v51  ;;  %v3298_v61 = vld [vmem:[%s5527_s4 + $0x188] sm:$0xff] }
 0x115   :  { %2732 = vmatprep.subr.mxu0 %v6005_v32  ;;  %2765 = vmatprep.subr.mxu1 %v3250_v5  ;;  %v3299_v32 = vld [vmem:[%s5527_s4 + $0x290] sm:$0xff]  ;;  %v3300_v5 = vld [vmem:[%s5527_s4 + $0x108] sm:$0xff] }
 0x116   :  { %1533 = vmatmul.mubr.f32.vlgmr.msra.gmra.mxu1 %v1425_v39  ;;  %2733 = vmatpush3.msra.mxu0 %v6006_v62  ;;  %v3301_v62 = vld [vmem:[%s5527_s4 + $0x210] sm:$0xff] }
 0x117   :  { %2766 = vmatpush3.msra.mxu1 %v3251_v38  ;;  %2734 = vmatprep.subr.mxu0 %v4596_v49  ;;  %v3255_v49 = vld [vmem:[%s5527_s4 + $0x2e8] sm:$0xff]  ;;  %v3302_v38 = vld [vmem:[%s5527_s4 + $0x180] sm:$0xff] }
 0x118   :  { %2767 = vmatprep.subr.mxu1 %v3252_v30  ;;  %2735 = vmatpush3.msra.mxu0 %v4608_v58  ;;  %v3257_v58 = vld [vmem:[%s5527_s4 + $0x268] sm:$0xff] }
 0x119   :  { %2768 = vmatpush3.msra.mxu1 %v3253_v31  ;;  %2736 = vmatprep.subr.mxu0 %v3254_v2  ;;  %v3303_v30 = vld [vmem:[%s5527_s4 + $0x288] sm:$0xff]  ;;  %v1450_v31 = vcombine.high %v1442_v10, %v1442_v10  ;;  %v3304_v2 = vld [vmem:[%s5527_s4 + $0x100] sm:$0xff] }
 0x11a   :  { %2769 = vmatprep.subr.mxu1 %v3255_v49  ;;  %2737 = vmatpush3.msra.mxu0 %v3256_v34  ;;  %v3305_v49 = vld [vmem:[%s5527_s4 + $0x208] sm:$0xff]  ;;  %v3306_v34 = vld [vmem:[%s5527_s4 + $0x280] sm:$0xff] }
 0x11b   :  { %2770 = vmatpush3.msra.mxu1 %v3257_v58  ;;  %2738 = vmatprep.subr.mxu0 %v3258_v55  ;;  %v3307_v58 = vld [vmem:[%s5527_s4 + $0x3f8] sm:$0xff]  ;;  %v3308_v55 = vld [vmem:[%s5527_s4 + $0x200] sm:$0xff] }
 0x11c   :  { %2771 = vmatprep.subr.mxu1 %v3259_v29  ;;  %2739 = vmatpush3.msra.mxu0 %v3260_v7  ;;  %v3309_v29 = vld [vmem:[%s5527_s4 + $0x378] sm:$0xff]  ;;  %v3310_v7 = vld [vmem:[%s5527_s4 + $0x3f0] sm:$0xff] }
 0x11d   :  { %2772 = vmatpush3.msra.mxu1 %v3261_v43  ;;  %2740 = vmatprep.subr.mxu0 %v3262_v41  ;;  %v3311_v43 = vld [vmem:[%s5527_s4 + $0x370] sm:$0xff]  ;;  %v3312_v41 = vld [vmem:[%s5527_s4 + $0x478] sm:$0xff] }
 0x11e   :  { %2773 = vmatprep.subr.mxu1 %v3263_v9  ;;  %2741 = vmatpush3.msra.mxu0 %v3264_v23  ;;  %v3313_v9 = vld [vmem:[%s5527_s4 + $0x3e8] sm:$0xff] }
 0x11f   :  { %2774 = vmatpush3.msra.mxu1 %v3265_v59  ;;  %2742 = vmatprep.subr.mxu0 %v3266_v11  ;;  %v3314_v23 = vld [vmem:[%s5527_s4 + $0x368] sm:$0xff]  ;;  %v3315_v59 = vld [vmem:[%s5527_s4 + $0x470] sm:$0xff]  ;;  %v3316_v11 = vld [vmem:[%s5527_s4 + $0x3e0] sm:$0xff] }
 0x120   :  { %2775 = vmatprep.subr.mxu1 %v3267_v36  ;;  %2743 = vmatpush3.msra.mxu0 %v3268_v47  ;;  %v3317_v36 = vld [vmem:[%s5527_s4 + $0x360] sm:$0xff]  ;;  %v3318_v47 = vld [vmem:[%s5527_s4 + $0x468] sm:$0xff] }
 0x121   :  { %2776 = vmatpush3.msra.mxu1 %v3269_v52  ;;  %2744 = vmatprep.subr.mxu0 %v3270_v60  ;;  %v3319_v52 = vld [vmem:[%s5527_s4 + $0x3d8] sm:$0xff] }
 0x122   :  { %2777 = vmatprep.subr.mxu1 %v3271_v45  ;;  %2745 = vmatpush3.msra.mxu0 %v3272_v40  ;;  %v3320_v60 = vld [vmem:[%s5527_s4 + $0x358] sm:$0xff]  ;;  %v3321_v45 = vld [vmem:[%s5527_s4 + $0x460] sm:$0xff]  ;;  %v3322_v40 = vld [vmem:[%s5527_s4 + $0x3d0] sm:$0xff] }
 0x123   :  { %2778 = vmatpush3.msra.mxu1 %v3273_v56  ;;  %2746 = vmatprep.subr.mxu0 %v3274_v42  ;;  %v3323_v56 = vld [vmem:[%s5527_s4 + $0x350] sm:$0xff]  ;;  %v3324_v42 = vld [vmem:[%s5527_s4 + $0x458] sm:$0xff] }
 0x124   :  { %2779 = vmatprep.subr.mxu1 %v3275_v25  ;;  %2747 = vmatpush3.msra.mxu0 %v3276_v12  ;;  %v3325_v25 = vld [vmem:[%s5527_s4 + $0x3c8] sm:$0xff] }
 0x125   :  { %2780 = vmatpush3.msra.mxu1 %v3277_v13  ;;  %2748 = vmatprep.subr.mxu0 %v3278_v14  ;;  %v3326_v12 = vld [vmem:[%s5527_s4 + $0x348] sm:$0xff]  ;;  %v3327_v13 = vld [vmem:[%s5527_s4 + $0x450] sm:$0xff]  ;;  %v3328_v14 = vld [vmem:[%s5527_s4 + $0x3c0] sm:$0xff] }
 0x126   :  { %2781 = vmatprep.subr.mxu1 %v3279_v21  ;;  %2749 = vmatpush3.msra.mxu0 %v3280_v15  ;;  %v3329_v21 = vld [vmem:[%s5527_s4 + $0x340] sm:$0xff]  ;;  %v3330_v15 = vld [vmem:[%s5527_s4 + $0x448] sm:$0xff] }
 0x127   :  { %2782 = vmatpush3.msra.mxu1 %v3281_v16  ;;  %2750 = vmatprep.subr.mxu0 %v3282_v0  ;;  %v3331_v16 = vld [vmem:[%s5527_s4 + $0x3b8] sm:$0xff]  ;;  %v3333_v0 = vld [vmem:[%s5527_s4 + $0x440] sm:$0xff] }
 0x128   :  { %2783 = vmatprep.subr.mxu1 %v3283_v17  ;;  %2751 = vmatpush3.msra.mxu0 %v3284_v18  ;;  %v594_v20 = vpop.f32.mrf.mxu0  ;;  %v1435_v17 = vcombine.high %v5005_v35, %v5005_v35  ;;  %v3334_v18 = vld [vmem:[%s5527_s4 + $0x3b0] sm:$0xff]  ;;  %v3340_v35 = vld [vmem:[%s5527_s4 + $0x3a0] sm:$0xff] }
 0x129   :  { %2784 = vmatpush3.msra.mxu1 %v3285_v19  ;;  %2752 = vmatprep.subr.mxu0 %v3286_v4  ;;  %v4993_v24 = vadd.f32 %v594_v20, %v4845_v44  ;;  %v3291_v44 = vld [vmem:[%s5527_s4 + $0x2a0] sm:$0xff]  ;;  %v3335_v19 = vld [vmem:[%s5527_s4 + $0x330] sm:$0xff]  ;;  %v3336_v20 = vld [vmem:[%s5527_s4 + $0x438] sm:$0xff] }
 0x12a   :  { %2785 = vmatprep.subr.mxu1 %v3287_v22  ;;  %2753 = vmatpush3.msra.mxu0 %v3288_v26  ;;  %v2954_v37 = vpop.f32.mrf.mxu0  ;;  %v2413_v39 = vpop.f32.mrf.mxu1  ;;  %v3337_v4 = vld [vmem:[%s5527_s4 + $0x3a8] sm:$0xff]  ;;  %v3339_v26 = vld [vmem:[%s5527_s4 + $0x430] sm:$0xff] }
 0x12b   :  { %2786 = vmatpush3.msra.mxu1 %v3289_v28  ;;  %2754 = vmatprep.subr.mxu0 %v3290_v8  ;;  %v3338_v22 = vld [vmem:[%s5527_s4 + $0x328] sm:$0xff]  ;;  %v1449_v28 = vrot.slane %v1435_v17, %v3727_v51  ;;  %v3341_v37 = vld [vmem:[%s5527_s4 + $0x320] sm:$0xff]  ;;  %v1935_v17 = vld [vmem:[%s5531_s8 + $0x70] sm:$0xff] }
 0x12c   :  { %2787 = vmatprep.subr.mxu1 %v3291_v44  ;;  %2755 = vmatpush3.msra.mxu0 %v3292_v46  ;;  %v2414_v54 = vpop.f32.mrf.mxu1  ;;  %v3343_v44 = vld [vmem:[%s5527_s4 + $0x398] sm:$0xff] }
 0x12d   :  { %2788 = vmatpush3.msra.mxu1 %v3293_v50  ;;  %2756 = vmatprep.subr.mxu0 %v3294_v1  ;;  %v5027_v53 = vadd.f32 %v2414_v54, %v2413_v39  ;;  %v3342_v39 = vld [vmem:[%s5527_s4 + $0x428] sm:$0xff]  ;;  %v3344_v50 = vld [vmem:[%s5527_s4 + $0x318] sm:$0xff]  ;;  %v3345_v54 = vld [vmem:[%s5527_s4 + $0x420] sm:$0xff]  ;;  %v1451_v1 = vcombine.high %v1449_v28, %v1449_v28 }
 0x12e   :  { %2789 = vmatprep.subr.mxu1 %v3295_v3  ;;  %2757 = vmatpush3.msra.mxu0 %v3296_v48 }
 0x12f   :  { %2790 = vmatpush3.msra.mxu1 %v3297_v6  ;;  %2758 = vmatprep.subr.mxu0 %v3298_v61  ;;  %v3348_v61 = vld [vmem:[%s5527_s4 + $0x418] sm:$0xff] }
 0x130   :  { %2791 = vmatprep.subr.mxu1 %v3299_v32  ;;  %2759 = vmatpush3.msra.mxu0 %v3300_v5  ;;  %v3349_v32 = vld [vmem:[%s5527_s4 + $0x388] sm:$0xff] }
 0x131   :  { %2792 = vmatpush3.msra.mxu1 %v3301_v62  ;;  %2760 = vmatprep.subr.mxu0 %v3302_v38  ;;  %v3351_v62 = vld [vmem:[%s5527_s4 + $0x380] sm:$0xff]  ;;  %v3352_v38 = vld [vmem:[%s5527_s4 + $0x410] sm:$0xff] }
 0x132   :  { %2793 = vmatprep.subr.mxu1 %v3303_v30  ;;  %2761 = vmatpush3.msra.mxu0 %v3304_v2  ;;  %v3353_v30 = vld [vmem:[%s5527_s4 + $0x300] sm:$0xff]  ;;  %v2218_v2 = vld.sshfl [vmem:[%s5526_s3 + $0x10] sm:$0x3 pattern:$0x76325410] }
 0x133   :  { %1602 = vmatprep.mubr.f32.mxu0 %v1434_v57  ;;  %2794 = vmatpush3.msra.mxu1 %v3305_v49  ;;  %v3347_v57 = vld [vmem:[%s5527_s4 + $0x310] sm:$0xff]  ;;  %v3355_v49 = vld [vmem:[%s5527_s4 + $0x400] sm:$0xff] }
 0x134   :  { %1603 = vmatmul.mubr.f32.vlgmr.msra.gmra.mxu0 %v1432_v33  ;;  %2795 = vmatprep.subr.mxu1 %v3306_v34 }
 0x135   :  { %2800 = vmatprep.subr.mxu0 %v3307_v58  ;;  %2796 = vmatpush3.msra.mxu1 %v3308_v55 }
 0x136   :  { %1672 = vmatprep.mubr.f32.mxu1 %v1450_v31  ;;  %2801 = vmatpush3.msra.mxu0 %v3309_v29  ;;  %v3354_v31 = vld [vmem:[%s5527_s4 + $0x408] sm:$0xff] }
 0x137   :  { %1673 = vmatmul.mubr.f32.vlgmr.msra.gmra.mxu1 %v1442_v10  ;;  %2802 = vmatprep.subr.mxu0 %v3310_v7  ;;  %v3346_v10 = vld [vmem:[%s5527_s4 + $0x390] sm:$0xff] }
 0x138   :  { %3025 = vmatprep.subr.mxu1 %v5888_v63  ;;  %2803 = vmatpush3.msra.mxu0 %v3311_v43 }
 0x139   :  { %3026 = vmatpush3.msra.mxu1 %v3312_v41  ;;  %2804 = vmatprep.subr.mxu0 %v3313_v9 }
 0x13a   :  { %3027 = vmatprep.subr.mxu1 %v5888_v63  ;;  %2805 = vmatpush3.msra.mxu0 %v3314_v23  ;;  %v1843_v23 = vld [vmem:[%s5529_s6 + $0x78] sm:$0xff] }
 0x13b   :  { %3028 = vmatpush3.msra.mxu1 %v3315_v59  ;;  %2806 = vmatprep.subr.mxu0 %v3316_v11  ;;  %v1842_v59 = vld [vmem:[%s5529_s6 + $0x70] sm:$0xff]  ;;  %v1841_v11 = vld [vmem:[%s5529_s6 + $0x68] sm:$0xff] }
 0x13c   :  { %3029 = vmatprep.subr.mxu1 %v5888_v63  ;;  %2807 = vmatpush3.msra.mxu0 %v3317_v36  ;;  %v1840_v36 = vld [vmem:[%s5529_s6 + $0x60] sm:$0xff] }
 0x13d   :  { %3030 = vmatpush3.msra.mxu1 %v3318_v47  ;;  %2808 = vmatprep.subr.mxu0 %v3319_v52  ;;  %v1839_v47 = vld [vmem:[%s5529_s6 + $0x58] sm:$0xff]  ;;  %v1838_v52 = vld [vmem:[%s5529_s6 + $0x50] sm:$0xff] }
 0x13e   :  { %3031 = vmatprep.subr.mxu1 %v5888_v63  ;;  %2809 = vmatpush3.msra.mxu0 %v3320_v60  ;;  %v1837_v60 = vld [vmem:[%s5529_s6 + $0x48] sm:$0xff] }
 0x13f   :  { %3032 = vmatpush3.msra.mxu1 %v3321_v45  ;;  %2810 = vmatprep.subr.mxu0 %v3322_v40  ;;  %v1836_v45 = vld [vmem:[%s5529_s6 + $0x40] sm:$0xff] }
 0x140   :  { %3033 = vmatprep.subr.mxu1 %v5888_v63  ;;  %2811 = vmatpush3.msra.mxu0 %v3323_v56 }
 0x141   :  { %3034 = vmatpush3.msra.mxu1 %v3324_v42  ;;  %2812 = vmatprep.subr.mxu0 %v3325_v25  ;;  %v1835_v25 = vld [vmem:[%s5529_s6 + $0x38] sm:$0xff] }
 0x142   :  { %3035 = vmatprep.subr.mxu1 %v5888_v63  ;;  %2813 = vmatpush3.msra.mxu0 %v3326_v12  ;;  %v1834_v12 = vld [vmem:[%s5529_s6 + $0x30] sm:$0xff] }
 0x143   :  { %3036 = vmatpush3.msra.mxu1 %v3327_v13  ;;  %2814 = vmatprep.subr.mxu0 %v3328_v14  ;;  %v1833_v13 = vld [vmem:[%s5529_s6 + $0x28] sm:$0xff]  ;;  %v1832_v14 = vld [vmem:[%s5529_s6 + $0x20] sm:$0xff] }
 0x144   :  { %3037 = vmatprep.subr.mxu1 %v5888_v63  ;;  %2815 = vmatpush3.msra.mxu0 %v3329_v21  ;;  %v1831_v21 = vld [vmem:[%s5529_s6 + $0x18] sm:$0xff] }
 0x145   :  { %3038 = vmatpush3.msra.mxu1 %v3330_v15  ;;  %2816 = vmatprep.subr.mxu0 %v3331_v16  ;;  %v1830_v15 = vld [vmem:[%s5529_s6 + $0x10] sm:$0xff]  ;;  %v1829_v16 = vld [vmem:[%s5529_s6 + $0x8] sm:$0xff] }
 0x146   :  { %3039 = vmatprep.subr.mxu1 %v5888_v63  ;;  %2817 = vmatpush3.msra.mxu0 %v3332_v27  ;;  %v1828_v27 = vld [vmem:[%s5529_s6] sm:$0xff] }
 0x147   :  { %3040 = vmatpush3.msra.mxu1 %v3333_v0  ;;  %2818 = vmatprep.subr.mxu0 %v3334_v18  ;;  %v1936_v0 = vld [vmem:[%s5531_s8 + $0x78] sm:$0xff]  ;;  %v1934_v18 = vld [vmem:[%s5531_s8 + $0x68] sm:$0xff] }
 0x148   :  { %3041 = vmatprep.subr.mxu1 %v5888_v63  ;;  %2819 = vmatpush3.msra.mxu0 %v3335_v19 }
 0x149   :  { %3042 = vmatpush3.msra.mxu1 %v3336_v20  ;;  %2820 = vmatprep.subr.mxu0 %v3337_v4  ;;  %v1933_v20 = vld [vmem:[%s5531_s8 + $0x60] sm:$0xff]  ;;  %v1932_v4 = vld [vmem:[%s5531_s8 + $0x58] sm:$0xff] }
 0x14a   :  { %3043 = vmatprep.subr.mxu1 %v5888_v63  ;;  %2821 = vmatpush3.msra.mxu0 %v3338_v22  ;;  %v2448_v33 = vpop.f32.mrf.mxu0 }
 0x14b   :  { %3044 = vmatpush3.msra.mxu1 %v3339_v26  ;;  %2822 = vmatprep.subr.mxu0 %v3340_v35  ;;  %v1931_v26 = vld [vmem:[%s5531_s8 + $0x50] sm:$0xff] }
 0x14c   :  { %3045 = vmatprep.subr.mxu1 %v5888_v63  ;;  %2823 = vmatpush3.msra.mxu0 %v3341_v37  ;;  %v2449_v8 = vpop.f32.mrf.mxu0  ;;  %v2483_v51 = vpop.f32.mrf.mxu1  ;;  %v1929_v37 = vld [vmem:[%s5531_s8 + $0x40] sm:$0xff] }
 0x14d   :  { %3046 = vmatpush3.msra.mxu1 %v3342_v39  ;;  %2824 = vmatprep.subr.mxu0 %v3343_v44  ;;  %v2450_v46 = vadd.f32 %v2449_v8, %v2448_v33  ;;  %v1928_v8 = vld [vmem:[%s5531_s8 + $0x38] sm:$0xff] }
 0x14e   :  { %3047 = vmatprep.subr.mxu1 %v5888_v63  ;;  %2825 = vmatpush3.msra.mxu0 %v3344_v50  ;;  %v2484_v3 = vpop.f32.mrf.mxu1 }
 0x14f   :  { %3048 = vmatpush3.msra.mxu1 %v3345_v54  ;;  %2826 = vmatprep.subr.mxu0 %v3346_v10  ;;  %v791_v48 = vadd.f32 %v2450_v46, %v5027_v53  ;;  %v2485_v6 = vadd.f32 %v2484_v3, %v2483_v51  ;;  %v3350_v53 = vld [vmem:[%s5527_s4 + $0x308] sm:$0xff]  ;;  %v1927_v46 = vld [vmem:[%s5531_s8 + $0x30] sm:$0xff]  ;;  %v1924_v3 = vld [vmem:[%s5531_s8 + $0x18] sm:$0xff] }
 0x150   :  { %3049 = vmatprep.subr.mxu1 %v5888_v63  ;;  %2827 = vmatpush3.msra.mxu0 %v3347_v57  ;;  %v1926_v54 = vld [vmem:[%s5531_s8 + $0x28] sm:$0xff]  ;;  %v1923_v10 = vld [vmem:[%s5531_s8 + $0x10] sm:$0xff] }
 0x151   :  { %3050 = vmatpush3.msra.mxu1 %v3348_v61  ;;  %2828 = vmatprep.subr.mxu0 %v3349_v32  ;;  %v861_v5 = vadd.f32 %v2485_v6, %v791_v48 }
 0x152   :  { %3051 = vmatprep.subr.mxu1 %v5888_v63  ;;  %2829 = vmatpush3.msra.mxu0 %v3350_v53 }
 0x153   :  { %1742 = vmatprep.mubr.f32.mxu0 %v1451_v1  ;;  %2830 = vmatprep.subr.mxu0 %v3351_v62  ;;  %v1925_v1 = vld [vmem:[%s5531_s8 + $0x20] sm:$0xff] }
 0x154   :  { %3052 = vmatpush3.msra.mxu1 %v3352_v38  ;;  %2831 = vmatpush3.msra.mxu0 %v3353_v30 }
 0x155   :  { %3053 = vmatprep.subr.mxu1 %v5888_v63  ;;  %1743 = vmatmul.mubr.f32.vlgmr.msra.gmra.mxu0 %v1449_v28  ;;  %v1930_v28 = vld [vmem:[%s5531_s8 + $0x48] sm:$0xff] }
 0x156   :  { %3054 = vmatpush3.msra.mxu1 %v3354_v31  ;;  %3057 = vmatprep.mubr.msk.f32.mxu1 %vm3380_vm0, %v5888_v63 }
 0x157   :  { %3055 = vmatprep.subr.mxu1 %v5888_v63  ;;  %3060 = vmatprep.subr.mxu0 %v5888_v63 }
 0x158   :  { %3056 = vmatpush3.msra.mxu1 %v3355_v49  ;;  %3092 = vmatprep.mubr.msk.f32.mxu0 %vm3380_vm0, %v5888_v63 }
 0x159   :  { %3058 = vmatmul.mubr.f32.vlgmr.msra.gmra.mxu1 %v2218_v2  ;;  %3095 = vmatprep.subr.mxu1 %v5888_v63 }
 0x15a   :  { %3127 = vmatprep.mubr.msk.f32.mxu1 %vm3380_vm0, %v5888_v63  ;;  %3061 = vmatpush3.msra.mxu0 %v1843_v23 }
 0x15b   :  { %3062 = vmatprep.subr.mxu0 %v5888_v63  ;;  %3096 = vmatpush3.msra.mxu1 %v1936_v0  ;;  %v2020_v0 = vld [vmem:[%s5533_s10 + $0x30] sm:$0xff] }
 0x15c   :  { %3063 = vmatpush3.msra.mxu0 %v1842_v59  ;;  %3097 = vmatprep.subr.mxu1 %v5888_v63 }
 0x15d   :  { %3064 = vmatprep.subr.mxu0 %v5888_v63  ;;  %3098 = vmatpush3.msra.mxu1 %v1935_v17  ;;  %v2019_v17 = vld [vmem:[%s5533_s10 + $0x28] sm:$0xff] }
 0x15e   :  { %3065 = vmatpush3.msra.mxu0 %v1841_v11  ;;  %3099 = vmatprep.subr.mxu1 %v5888_v63 }
 0x15f   :  { %3066 = vmatprep.subr.mxu0 %v5888_v63  ;;  %3100 = vmatpush3.msra.mxu1 %v1934_v18  ;;  %v2018_v18 = vld [vmem:[%s5533_s10 + $0x20] sm:$0xff] }
 0x160   :  { %3067 = vmatpush3.msra.mxu0 %v1840_v36  ;;  %3101 = vmatprep.subr.mxu1 %v5888_v63 }
 0x161   :  { %3068 = vmatprep.subr.mxu0 %v5888_v63  ;;  %3102 = vmatpush3.msra.mxu1 %v1933_v20  ;;  %v2016_v20 = vld [vmem:[%s5533_s10 + $0x10] sm:$0xff] }
 0x162   :  { %3069 = vmatpush3.msra.mxu0 %v1839_v47  ;;  %3103 = vmatprep.subr.mxu1 %v5888_v63 }
 0x163   :  { %3070 = vmatprep.subr.mxu0 %v5888_v63  ;;  %3104 = vmatpush3.msra.mxu1 %v1932_v4  ;;  %v2220_v4 = vld [vmem:[%s5530_s7] ss:$0 sm:$0xff] }
 0x164   :  { %3071 = vmatpush3.msra.mxu0 %v1838_v52  ;;  %3105 = vmatprep.subr.mxu1 %v5888_v63 }
 0x165   :  { %3072 = vmatprep.subr.mxu0 %v5888_v63  ;;  %3106 = vmatpush3.msra.mxu1 %v1931_v26 }
 0x166   :  { %3073 = vmatpush3.msra.mxu0 %v1837_v60  ;;  %3107 = vmatprep.subr.mxu1 %v5888_v63 }
 0x167   :  { %3074 = vmatprep.subr.mxu0 %v5888_v63  ;;  %3108 = vmatpush3.msra.mxu1 %v1930_v28 }
 0x168   :  { %3075 = vmatpush3.msra.mxu0 %v1836_v45  ;;  %3109 = vmatprep.subr.mxu1 %v5888_v63 }
 0x169   :  { %3076 = vmatprep.subr.mxu0 %v5888_v63  ;;  %3110 = vmatpush3.msra.mxu1 %v1929_v37  ;;  %v2122_v37 = vld [vmem:[%s5535_s12 + $0x78] sm:$0xff] }
 0x16a   :  { %3077 = vmatpush3.msra.mxu0 %v1835_v25  ;;  %3111 = vmatprep.subr.mxu1 %v5888_v63  ;;  %v2028_v25 = vld [vmem:[%s5533_s10 + $0x70] sm:$0xff] }
 0x16b   :  { %3078 = vmatprep.subr.mxu0 %v5888_v63  ;;  %3112 = vmatpush3.msra.mxu1 %v1928_v8  ;;  %v2120_v8 = vld [vmem:[%s5535_s12 + $0x68] sm:$0xff] }
 0x16c   :  { %v2518_v34 = vpop.f32.mrf.mxu0  ;;  %3079 = vmatpush3.msra.mxu0 %v1834_v12  ;;  %3113 = vmatprep.subr.mxu1 %v5888_v63  ;;  %v2027_v12 = vld [vmem:[%s5533_s10 + $0x68] sm:$0xff] }
 0x16d   :  { %3080 = vmatprep.subr.mxu0 %v5888_v63  ;;  %3114 = vmatpush3.msra.mxu1 %v1927_v46  ;;  %v2117_v46 = vld [vmem:[%s5535_s12 + $0x50] sm:$0xff] }
 0x16e   :  { %v2519_v58 = vpop.f32.mrf.mxu0  ;;  %v1000_v55 = vpop.f32.mrf.mxu1  ;;  %3081 = vmatpush3.msra.mxu0 %v1833_v13  ;;  %3115 = vmatprep.subr.mxu1 %v5888_v63  ;;  %v2026_v13 = vld [vmem:[%s5533_s10 + $0x60] sm:$0xff] }
 0x16f   :  { %v2520_v29 = vadd.f32 %v2519_v58, %v2518_v34  ;;  %3082 = vmatprep.subr.mxu0 %v5888_v63  ;;  %3116 = vmatpush3.msra.mxu1 %v1926_v54  ;;  %v2115_v54 = vld [vmem:[%s5535_s12 + $0x40] sm:$0xff] }
 0x170   :  { %v2989_v7 = vpop.f32.mrf.mxu1  ;;  %3083 = vmatpush3.msra.mxu0 %v1832_v14  ;;  %3117 = vmatprep.subr.mxu1 %v5888_v63  ;;  %v2025_v14 = vld [vmem:[%s5533_s10 + $0x58] sm:$0xff] }
 0x171   :  { %v931_v43 = vadd.f32 %v2520_v29, %v861_v5  ;;  %3084 = vmatprep.subr.mxu0 %v5888_v63  ;;  %3118 = vmatpush3.msra.mxu1 %v1925_v1  ;;  %v2114_v1 = vld [vmem:[%s5535_s12 + $0x38] sm:$0xff] }
 0x172   :  { %3085 = vmatpush3.msra.mxu0 %v1831_v21  ;;  %3119 = vmatprep.subr.mxu1 %v5888_v63  ;;  %v2024_v21 = vld [vmem:[%s5533_s10 + $0x50] sm:$0xff] }
 0x173   :  { %v5240_v41 = vadd.f32 %v1000_v55, %v931_v43  ;;  %3086 = vmatprep.subr.mxu0 %v5888_v63  ;;  %3120 = vmatpush3.msra.mxu1 %v1924_v3  ;;  %v2113_v3 = vld [vmem:[%s5535_s12 + $0x30] sm:$0xff] }
 0x174   :  { %3087 = vmatpush3.msra.mxu0 %v1830_v15  ;;  %3121 = vmatprep.subr.mxu1 %v5888_v63  ;;  %v2023_v15 = vld [vmem:[%s5533_s10 + $0x48] sm:$0xff] }
 0x175   :  { %v1004_v9 = vmax.f32 %v4993_v24, %v5240_v41  ;;  %3088 = vmatprep.subr.mxu0 %v5888_v63  ;;  %3122 = vmatpush3.msra.mxu1 %v1923_v10  ;;  %v2219_v24 = vld [vmem:[%s5528_s5] ss:$0 sm:$0xff]  ;;  %v2112_v10 = vld [vmem:[%s5535_s12 + $0x28] sm:$0xff] }
 0x176   :  { %3089 = vmatpush3.msra.mxu0 %v1829_v16  ;;  %3123 = vmatprep.subr.mxu1 %v5888_v63  ;;  %v2022_v16 = vld [vmem:[%s5533_s10 + $0x40] sm:$0xff] }
 0x177   :  { %3090 = vmatprep.subr.mxu0 %v5888_v63 }
 0x178   :  { %3091 = vmatpush3.msra.mxu0 %v1828_v27  ;;  %v2021_v27 = vld [vmem:[%s5533_s10 + $0x38] sm:$0xff] }
 0x179   :  { %3130 = vmatprep.subr.mxu0 %v5888_v63 }
 0x18f   :  { %v2570_v40 = vpop.f32.mrf.mxu0 }
 0x190   :  { %v2605_v19 = vpop.f32.mrf.mxu1 }
 0x191   :  { %v2571_v56 = vpop.f32.mrf.mxu0 }
 0x192   :  { %v2572_v42 = vadd.f32 %v2571_v56, %v2570_v40  ;;  %v2606_v22 = vpop.f32.mrf.mxu1  ;;  %v1922_v40 = vld [vmem:[%s5531_s8 + $0x8] sm:$0xff]  ;;  %v1921_v56 = vld [vmem:[%s5531_s8] sm:$0xff] }
 0x193   :  { %v2607_v33 = vadd.f32 %v2606_v22, %v2605_v19  ;;  %3124 = vmatpush3.msra.mxu1 %v1922_v40  ;;  %v2017_v19 = vld [vmem:[%s5533_s10 + $0x18] sm:$0xff] }
 0x194   :  { %3125 = vmatprep.subr.mxu1 %v5888_v63 }
 0x195   :  { %v1198_v51 = vadd.f32 %v2607_v33, %v2572_v42  ;;  %3126 = vmatpush3.msra.mxu1 %v1921_v56  ;;  %v2029_v42 = vld [vmem:[%s5533_s10 + $0x78] sm:$0xff]  ;;  %v2015_v33 = vld [vmem:[%s5533_s10 + $0x8] sm:$0xff] }
 0x196   :  { %3165 = vmatprep.subr.mxu1 %v5888_v63 }
 0x1b0   :  { %v2640_v35 = vpop.f32.mrf.mxu0 }
 0x1b2   :  { %v2641_v39 = vpop.f32.mrf.mxu0 }
 0x1b3   :  { %v2642_v44 = vadd.f32 %v2641_v39, %v2640_v35  ;;  %v2675_v48 = vpop.f32.mrf.mxu1  ;;  %v2014_v35 = vld [vmem:[%s5533_s10] sm:$0xff]  ;;  %v2121_v39 = vld [vmem:[%s5535_s12 + $0x70] sm:$0xff] }
 0x1b5   :  { %v1268_v50 = vadd.f32 %v2642_v44, %v1198_v51  ;;  %v2676_v6 = vpop.f32.mrf.mxu1  ;;  %v2119_v51 = vld [vmem:[%s5535_s12 + $0x60] sm:$0xff]  ;;  %v2118_v44 = vld [vmem:[%s5535_s12 + $0x58] sm:$0xff] }
 0x1b6   :  { %v2677_v57 = vadd.f32 %v2676_v6, %v2675_v48  ;;  %v2111_v48 = vld [vmem:[%s5535_s12 + $0x20] sm:$0xff]  ;;  %v2110_v6 = vld [vmem:[%s5535_s12 + $0x18] sm:$0xff] }
 0x1b8   :  { %v1338_v61 = vadd.f32 %v2677_v57, %v1268_v50  ;;  %v2116_v50 = vld [vmem:[%s5535_s12 + $0x48] sm:$0xff]  ;;  %v2109_v57 = vld [vmem:[%s5535_s12 + $0x10] sm:$0xff] }
 0x1d2   :  { %v1407_v32 = vpop.f32.mrf.mxu0 }
 0x1d3   :  { %v1408_v5 = vadd.f32 %v1407_v32, %v1338_v61  ;;  %v2221_v61 = vld [vmem:[%s5532_s9] ss:$0 sm:$0xff] }
 0x1d4   :  { %v3024_v53 = vpop.f32.mrf.mxu0 }
 0x1d5   :  { %v1411_v62 = vmax.f32 %v1004_v9, %v1408_v5 }
 0x1d6   :  { %v2727_v38 = vpop.f32.mrf.mxu1 }
 0x1d8   :  { %v2728_v31 = vpop.f32.mrf.mxu1 }
 0x1d9   :  { %v2729_v55 = vadd.f32 %v2728_v31, %v2727_v38  ;;  %v2107_v38 = vld [vmem:[%s5535_s12] sm:$0xff] }
 0x1f4   :  { %v2762_v30 = vpop.f32.mrf.mxu0 }
 0x1f6   :  { %v2763_v2 = vpop.f32.mrf.mxu0 }
 0x1f7   :  { %v2797_v49 = vpop.f32.mrf.mxu1  ;;  %v2764_v34 = vadd.f32 %v2763_v2, %v2762_v30  ;;  %v2222_v30 = vld [vmem:[%s5534_s11] ss:$0 sm:$0xff] }
 0x1f9   :  { %v2798_v58 = vpop.f32.mrf.mxu1  ;;  %v1605_v29 = vadd.f32 %v2764_v34, %v2729_v55  ;;  %v2223_v34 = vld [vmem:[%s5536_s13] ss:$0 sm:$0xff] }
 0x1fa   :  { %v2799_v7 = vadd.f32 %v2798_v58, %v2797_v49 }
 0x1fc   :  { %v1675_v59 = vadd.f32 %v2799_v7, %v1605_v29 }
 0x215   :  { %v2832_v43 = vpop.f32.mrf.mxu0 }
 0x217   :  { %v2833_v23 = vpop.f32.mrf.mxu0 }
 0x218   :  { %v2834_v11 = vadd.f32 %v2833_v23, %v2832_v43 }
 0x219   :  { %v1814_v36 = vpop.f32.mrf.mxu1 }
 0x21a   :  { %v1745_v47 = vadd.f32 %v2834_v11, %v1675_v59 }
 0x21b   :  { %v3059_v52 = vpop.f32.mrf.mxu1 }
 0x21c   :  { %v1815_v60 = vadd.f32 %v1814_v36, %v1745_v47 }
 0x21e   :  { %v1818_v41 = vmax.f32 %v1411_v62, %v1815_v60  ;;  %v2108_v62 = vld [vmem:[%s5535_s12 + $0x8] sm:$0xff]  ;;  %s3356_s12 = scalar_lea.vmem %s2208_s21, 32 }
 0x21f   :  { %p3357_p0 = scmp.ne.s32.totalorder %s2208_s21, %s3356_s12  ;;  %p3362_p2 = scmp.lt.s32.totalorder %s3356_s12, %s3356_s12 }
 0x220   :  { %v1826_v9 = vadd.f32 %v2219_v24, %v1818_v41 }
 0x221   :  { %p3363_p3 = por %p3362_p2, %p3361_p1 }
 0x222   :  { %v1827_v45 = vmax.f32 %v1826_v9, 0.0 }
 0x223   :  { %p3364_p4 = pnand %p3363_p3, %p3357_p0 }
 0x224   :  { %3093 = vmatmul.mubr.f32.vlgmr.msra.gmra.mxu0 %v1827_v45 }
 0x225   :  { %3162 = vmatprep.mubr.msk.f32.mxu0 %vm3380_vm0, %v5888_v63  ;;  %3131 = vmatpush3.msra.mxu0 %v2029_v42 }
 0x226   :  { %3132 = vmatprep.subr.mxu0 %v5888_v63 }
 0x227   :  { %3133 = vmatpush3.msra.mxu0 %v2028_v25 }
 0x228   :  { %3134 = vmatprep.subr.mxu0 %v5888_v63 }
 0x229   :  { %3135 = vmatpush3.msra.mxu0 %v2027_v12 }
 0x22a   :  { %3136 = vmatprep.subr.mxu0 %v5888_v63 }
 0x22b   :  { %3137 = vmatpush3.msra.mxu0 %v2026_v13 }
 0x22c   :  { %3138 = vmatprep.subr.mxu0 %v5888_v63 }
 0x22d   :  { %3139 = vmatpush3.msra.mxu0 %v2025_v14 }
 0x22e   :  { %3140 = vmatprep.subr.mxu0 %v5888_v63 }
 0x22f   :  { %3141 = vmatpush3.msra.mxu0 %v2024_v21 }
 0x230   :  { %3142 = vmatprep.subr.mxu0 %v5888_v63 }
 0x231   :  { %3143 = vmatpush3.msra.mxu0 %v2023_v15 }
 0x232   :  { %3144 = vmatprep.subr.mxu0 %v5888_v63 }
 0x233   :  { %3145 = vmatpush3.msra.mxu0 %v2022_v16 }
 0x234   :  { %3146 = vmatprep.subr.mxu0 %v5888_v63 }
 0x235   :  { %3147 = vmatpush3.msra.mxu0 %v2021_v27 }
 0x236   :  { %3148 = vmatprep.subr.mxu0 %v5888_v63 }
 0x237   :  { %3149 = vmatpush3.msra.mxu0 %v2020_v0 }
 0x238   :  { %3150 = vmatprep.subr.mxu0 %v5888_v63 }
 0x239   :  { %3151 = vmatpush3.msra.mxu0 %v2019_v17 }
 0x23a   :  { %3152 = vmatprep.subr.mxu0 %v5888_v63 }
 0x23b   :  { %3153 = vmatpush3.msra.mxu0 %v2018_v18 }
 0x23c   :  { %3154 = vmatprep.subr.mxu0 %v5888_v63 }
 0x23d   :  { %3155 = vmatpush3.msra.mxu0 %v2017_v19 }
 0x23e   :  { %3156 = vmatprep.subr.mxu0 %v5888_v63 }
 0x23f   :  { %3157 = vmatpush3.msra.mxu0 %v2016_v20 }
 0x240   :  { %3158 = vmatprep.subr.mxu0 %v5888_v63 }
 0x241   :  { %3159 = vmatpush3.msra.mxu0 %v2015_v33 }
 0x242   :  { %3160 = vmatprep.subr.mxu0 %v5888_v63 }
 0x243   :  { %3161 = vmatpush3.msra.mxu0 %v2014_v35 }
 0x2e4   :  { %v1917_v22 = vpop.f32.mrf.mxu0 }
 0x2e5   :  { %v1918_v26 = vadd.f32 %v2220_v4, %v1917_v22 }
 0x2e6   :  { %v3094_v28 = vpop.f32.mrf.mxu0 }
 0x2e7   :  { %3128 = vmatmul.mubr.f32.vlgmr.msra.gmra.mxu1 %v1918_v26 }
 0x2e8   :  { %3197 = vmatprep.mubr.msk.f32.mxu1 %vm3380_vm0, %v5888_v63  ;;  %3166 = vmatpush3.msra.mxu1 %v2122_v37 }
 0x2e9   :  { %3167 = vmatprep.subr.mxu1 %v5888_v63 }
 0x2ea   :  { %3168 = vmatpush3.msra.mxu1 %v2121_v39 }
 0x2eb   :  { %3169 = vmatprep.subr.mxu1 %v5888_v63 }
 0x2ec   :  { %3170 = vmatpush3.msra.mxu1 %v2120_v8 }
 0x2ed   :  { %3171 = vmatprep.subr.mxu1 %v5888_v63 }
 0x2ee   :  { %3172 = vmatpush3.msra.mxu1 %v2119_v51 }
 0x2ef   :  { %3173 = vmatprep.subr.mxu1 %v5888_v63 }
 0x2f0   :  { %3174 = vmatpush3.msra.mxu1 %v2118_v44 }
 0x2f1   :  { %3175 = vmatprep.subr.mxu1 %v5888_v63 }
 0x2f2   :  { %3176 = vmatpush3.msra.mxu1 %v2117_v46 }
 0x2f3   :  { %3177 = vmatprep.subr.mxu1 %v5888_v63 }
 0x2f4   :  { %3178 = vmatpush3.msra.mxu1 %v2116_v50 }
 0x2f5   :  { %3179 = vmatprep.subr.mxu1 %v5888_v63 }
 0x2f6   :  { %3180 = vmatpush3.msra.mxu1 %v2115_v54 }
 0x2f7   :  { %3181 = vmatprep.subr.mxu1 %v5888_v63 }
 0x2f8   :  { %3182 = vmatpush3.msra.mxu1 %v2114_v1 }
 0x2f9   :  { %3183 = vmatprep.subr.mxu1 %v5888_v63 }
 0x2fa   :  { %3184 = vmatpush3.msra.mxu1 %v2113_v3 }
 0x2fb   :  { %3185 = vmatprep.subr.mxu1 %v5888_v63 }
 0x2fc   :  { %3186 = vmatpush3.msra.mxu1 %v2112_v10 }
 0x2fd   :  { %3187 = vmatprep.subr.mxu1 %v5888_v63 }
 0x2fe   :  { %3188 = vmatpush3.msra.mxu1 %v2111_v48 }
 0x2ff   :  { %3189 = vmatprep.subr.mxu1 %v5888_v63 }
 0x300   :  { %3190 = vmatpush3.msra.mxu1 %v2110_v6 }
 0x301   :  { %3191 = vmatprep.subr.mxu1 %v5888_v63 }
 0x302   :  { %3192 = vmatpush3.msra.mxu1 %v2109_v57 }
 0x303   :  { %3193 = vmatprep.subr.mxu1 %v5888_v63 }
 0x304   :  { %3194 = vmatpush3.msra.mxu1 %v2108_v62 }
 0x305   :  { %3195 = vmatprep.subr.mxu1 %v5888_v63 }
 0x306   :  { %3196 = vmatpush3.msra.mxu1 %v2107_v38 }
 0x3a7   :  { %v2010_v32 = vpop.f32.mrf.mxu1 }
 0x3a8   :  { %v2011_v5 = vadd.f32 %v2221_v61, %v2010_v32 }
 0x3a9   :  { %v3129_v53 = vpop.f32.mrf.mxu1 }
 0x3aa   :  { %3163 = vmatmul.mubr.f32.vlgmr.msra.gmra.mxu0 %v2011_v5 }
 0x46a   :  { %v2103_v31 = vpop.f32.mrf.mxu0 }
 0x46b   :  { %v2104_v2 = vadd.f32 %v2222_v30, %v2103_v31 }
 0x46c   :  { %v3164_v49 = vpop.f32.mrf.mxu0 }
 0x46d   :  { %3198 = vmatmul.mubr.f32.vlgmr.msra.gmra.mxu1 %v2104_v2 }
 0x52d   :  { %v2196_v63 = vpop.f32.mrf.mxu1 }
 0x52e   :  { %v2197_v58 = vadd.f32 %v2223_v34, %v2196_v63 }
 0x52f   :  { %v3199_v55 = vpop.f32.mrf.mxu1 }
 0x530   :  { %2200 = vst [vmem:[#allocation2] sm:$0x3] %v2197_v58 }
 0x531   :  { %3367 = shalt.err (!%p3364_p4)
}
 0x532   :  { %2210 = dma.vmem_to_hbm [thread:$0]  %s2208_s21, 32, %s5537_s14, [#allocation3]  }
 0x533   :  { %3376 = dma.done.wait [#allocation3], 32  }
 0x534   :  { %3377 = vsyncadd [#allocation3], 4294967264 }
 0x535   :  { %2214 = vsyncpa [#allocation3], 1 }

// kernel: cnn_qnetwork_forward.3
= control target key start
LH: loop header
LB: loop body
LE: loop exit
PB: predicated region body
PF: predicated region fallthrough
CT: control target
= control target key end

     0   :  { %s1716_s21 = smov 0   ;;  %s2698_s0 = inlined_call_operand.vmem [shape: f32[648,256], index: 0, kind: input, shape index: {}]   ;;  %s2699_s1 = inlined_call_operand.vmem [shape: f32[648,256], index: 1, kind: input, shape index: {}]   ;;  %s2700_s2 = inlined_call_operand.vmem [shape: f32[648,256], index: 2, kind: input, shape index: {}]   ;;  %s2701_s3 = inlined_call_operand.vmem [shape: f32[648,256], index: 3, kind: input, shape index: {}]   ;;  %s2702_s4 = inlined_call_operand.vmem [shape: f32[256,128], index: 4, kind: input, shape index: {}]   ;;  %s2703_s5 = inlined_call_operand.vmem [shape: f32[1,128], index: 5, kind: input, shape index: {}]   ;;  %s2704_s6 = inlined_call_operand.vmem [shape: f32[648,128], index: 6, kind: output, shape index: {}]  }
   0x1 LB: > { %s1642_s22 = sadd.s32 4294967295, %s1678_s21   ;;  %p1646_p0 = scmp.ge.s32.totalorder %s1678_s21, 1  ;;  %s1678_s21 = sphi %s1716_s21, %s16_s21  }
   0x2   : > { %p250_p1 = scmp.lt.s32.totalorder %s1678_s21, 4 }
   0x4   : > { %p251_p2 = pnand %p1646_p0, %p250_p1 }
   0x6   : > { %254 = sbr.rel (%p251_p2) target bundleno = 500 (0x1f4), region = 44 }
   0xb   : > { %v1727_v0 = vld [vmem:[%s2702_s4 + $0x78] sm:$0xff]  ;;  %v1680_v1 = vmov 0.0   ;;  %v1734_v2 = vld [vmem:[%s2702_s4 + $0x70] sm:$0xff]  ;;  %v1743_v3 = vld [vmem:[%s2702_s4 + $0x68] sm:$0xff]  ;;  %s299_s23 = smul.u32 27, %s1642_s22 }
   0xc   : > { %419 = vmatprep.subr.mxu0 %v1680_v1  ;;  %673 = vmatprep.subr.mxu1 %v1680_v1  ;;  %v1752_v4 = vld [vmem:[%s2702_s4 + $0x60] sm:$0xff]  ;;  %v1761_v5 = vld [vmem:[%s2702_s4 + $0x58] sm:$0xff]  ;;  %v1770_v6 = vld [vmem:[%s2702_s4 + $0x50] sm:$0xff] }
   0xd   : > { %420 = vmatpush1.msra.mxu0 %v1727_v0  ;;  %674 = vmatpush1.msra.mxu1 %v1727_v0  ;;  %v1779_v7 = vld [vmem:[%s2702_s4 + $0x48] sm:$0xff]  ;;  %v1788_v8 = vld [vmem:[%s2702_s4 + $0x40] sm:$0xff]  ;;  %v1797_v9 = vld [vmem:[%s2702_s4 + $0x38] sm:$0xff]  ;;  %p300_p3 = scmp.lt.s32.totalorder %s299_s23, 80 }
   0xe   : > { %421 = vmatprep.subr.mxu0 %v1680_v1  ;;  %675 = vmatprep.subr.mxu1 %v1680_v1  ;;  %v1806_v10 = vld [vmem:[%s2702_s4 + $0x30] sm:$0xff]  ;;  %v1815_v11 = vld [vmem:[%s2702_s4 + $0x28] sm:$0xff]  ;;  %v1824_v12 = vld [vmem:[%s2702_s4 + $0x20] sm:$0xff] }
   0xf   : > { %422 = vmatpush1.msra.mxu0 %v1734_v2  ;;  %676 = vmatpush1.msra.mxu1 %v1734_v2  ;;  %v1833_v13 = vld [vmem:[%s2702_s4 + $0x18] sm:$0xff]  ;;  %v1842_v14 = vld [vmem:[%s2702_s4 + $0x10] sm:$0xff]  ;;  %v1851_v15 = vld [vmem:[%s2702_s4 + $0x8] sm:$0xff]  ;;  %s2744_s23 = smov (!%p300_p3, %s299_s23), 80 }
  0x10   : > { %423 = vmatprep.subr.mxu0 %v1680_v1  ;;  %677 = vmatprep.subr.mxu1 %v1680_v1  ;;  %v1860_v16 = vld [vmem:[%s2702_s4] sm:$0xff]  ;;  %v1869_v17 = vld [vmem:[%s2702_s4 + $0xf8] sm:$0xff]  ;;  %v1878_v18 = vld [vmem:[%s2702_s4 + $0xf0] sm:$0xff]  ;;  %s1977_s11 = sshll.u32 %s2744_s23, 4  ;;  %s1655_s12 = sshll.u32 %s2744_s23, 3 }
  0x11   : > { %424 = vmatpush1.msra.mxu0 %v1743_v3  ;;  %678 = vmatpush1.msra.mxu1 %v1743_v3  ;;  %v1887_v19 = vld [vmem:[%s2702_s4 + $0xe8] sm:$0xff]  ;;  %v1896_v20 = vld [vmem:[%s2702_s4 + $0xe0] sm:$0xff]  ;;  %v1905_v21 = vld [vmem:[%s2702_s4 + $0xd8] sm:$0xff]  ;;  %s1999_s18 = scalar_lea.vmem %s2698_s0, %s1977_s11  ;;  %s2017_s26 = scalar_lea.vmem %s2699_s1, %s1977_s11 }
  0x12   : > { %425 = vmatprep.subr.mxu0 %v1680_v1  ;;  %679 = vmatprep.subr.mxu1 %v1680_v1  ;;  %v1914_v22 = vld [vmem:[%s2702_s4 + $0xd0] sm:$0xff]  ;;  %v1925_v23 = vld [vmem:[%s2702_s4 + $0xc8] sm:$0xff]  ;;  %v1934_v24 = vld [vmem:[%s2702_s4 + $0xc0] sm:$0xff]  ;;  %s2262_s30 = scalar_lea.vmem %s2700_s2, %s1977_s11  ;;  %s2271_s9 = scalar_lea.vmem %s2701_s3, %s1977_s11 }
  0x13   : > { %426 = vmatpush1.msra.mxu0 %v1752_v4  ;;  %680 = vmatpush1.msra.mxu1 %v1752_v4  ;;  %v1943_v25 = vld [vmem:[%s2702_s4 + $0xb8] sm:$0xff]  ;;  %v1952_v26 = vld [vmem:[%s2702_s4 + $0xb0] sm:$0xff]  ;;  %v1963_v27 = vld [vmem:[%s2702_s4 + $0xa8] sm:$0xff]  ;;  %s2565_s15 = scalar_lea.vmem %s2704_s6, %s1655_s12 }
  0x14   : > { %427 = vmatprep.subr.mxu0 %v1680_v1  ;;  %681 = vmatprep.subr.mxu1 %v1680_v1  ;;  %v1972_v28 = vld [vmem:[%s2702_s4 + $0xa0] sm:$0xff]  ;;  %v1984_v29 = vld [vmem:[%s2702_s4 + $0x98] sm:$0xff]  ;;  %v1993_v30 = vld [vmem:[%s2702_s4 + $0x90] sm:$0xff] }
  0x15   : > { %428 = vmatpush1.msra.mxu0 %v1761_v5  ;;  %682 = vmatpush1.msra.mxu1 %v1761_v5  ;;  %v2008_v31 = vld [vmem:[%s2702_s4 + $0x88] sm:$0xff]  ;;  %v2024_v33 = vld [vmem:[%s2702_s4 + $0x80] sm:$0xff]  ;;  %v368_v37 = vld [vmem:[%s1999_s18 + $0x18] sm:$0xff] }
  0x16   : > { %429 = vmatprep.subr.mxu0 %v1680_v1  ;;  %683 = vmatprep.subr.mxu1 %v1680_v1  ;;  %v366_v32 = vld [vmem:[%s1999_s18 + $0x8] sm:$0xff]  ;;  %v365_v34 = vld [vmem:[%s1999_s18] sm:$0xff]  ;;  %v367_v38 = vld [vmem:[%s1999_s18 + $0x10] sm:$0xff] }
  0x17   : > { %430 = vmatpush1.msra.mxu0 %v1770_v6  ;;  %684 = vmatpush1.msra.mxu1 %v1770_v6  ;;  %v620_v35 = vld [vmem:[%s2017_s26 + $0x8] sm:$0xff]  ;;  %v619_v36 = vld [vmem:[%s2017_s26] sm:$0xff]  ;;  %v622_v39 = vld [vmem:[%s2017_s26 + $0x18] sm:$0xff] }
  0x18   : > { %431 = vmatprep.subr.mxu0 %v1680_v1  ;;  %685 = vmatprep.subr.mxu1 %v1680_v1  ;;  %v621_v40 = vld [vmem:[%s2017_s26 + $0x10] sm:$0xff]  ;;  %v370_v41 = vld [vmem:[%s1999_s18 + $0x28] sm:$0xff]  ;;  %v369_v42 = vld [vmem:[%s1999_s18 + $0x20] sm:$0xff] }
  0x19   : > { %432 = vmatpush1.msra.mxu0 %v1779_v7  ;;  %686 = vmatpush1.msra.mxu1 %v1779_v7  ;;  %v624_v43 = vld [vmem:[%s2017_s26 + $0x28] sm:$0xff]  ;;  %v623_v44 = vld [vmem:[%s2017_s26 + $0x20] sm:$0xff]  ;;  %v372_v45 = vld [vmem:[%s1999_s18 + $0x38] sm:$0xff] }
  0x1a   : > { %433 = vmatprep.subr.mxu0 %v1680_v1  ;;  %687 = vmatprep.subr.mxu1 %v1680_v1  ;;  %v371_v46 = vld [vmem:[%s1999_s18 + $0x30] sm:$0xff]  ;;  %v626_v47 = vld [vmem:[%s2017_s26 + $0x38] sm:$0xff]  ;;  %v374_v49 = vld [vmem:[%s1999_s18 + $0x48] sm:$0xff] }
  0x1b   : > { %434 = vmatpush1.msra.mxu0 %v1788_v8  ;;  %688 = vmatpush1.msra.mxu1 %v1788_v8  ;;  %v625_v48 = vld [vmem:[%s2017_s26 + $0x30] sm:$0xff]  ;;  %v628_v50 = vld [vmem:[%s2017_s26 + $0x48] sm:$0xff]  ;;  %v373_v51 = vld [vmem:[%s1999_s18 + $0x40] sm:$0xff] }
  0x1c   : > { %435 = vmatprep.subr.mxu0 %v1680_v1  ;;  %689 = vmatprep.subr.mxu1 %v1680_v1  ;;  %v627_v52 = vld [vmem:[%s2017_s26 + $0x40] sm:$0xff]  ;;  %v376_v53 = vld [vmem:[%s1999_s18 + $0x58] sm:$0xff]  ;;  %v375_v54 = vld [vmem:[%s1999_s18 + $0x50] sm:$0xff] }
  0x1d   : > { %436 = vmatpush1.msra.mxu0 %v1797_v9  ;;  %690 = vmatpush1.msra.mxu1 %v1797_v9  ;;  %v630_v55 = vld [vmem:[%s2017_s26 + $0x58] sm:$0xff]  ;;  %v629_v56 = vld [vmem:[%s2017_s26 + $0x50] sm:$0xff]  ;;  %v378_v57 = vld [vmem:[%s1999_s18 + $0x68] sm:$0xff] }
  0x1e   : > { %437 = vmatprep.subr.mxu0 %v1680_v1  ;;  %691 = vmatprep.subr.mxu1 %v1680_v1  ;;  %v377_v58 = vld [vmem:[%s1999_s18 + $0x60] sm:$0xff]  ;;  %v632_v59 = vld [vmem:[%s2017_s26 + $0x68] sm:$0xff]  ;;  %v380_v61 = vld [vmem:[%s1999_s18 + $0x78] sm:$0xff] }
  0x1f   : > { %438 = vmatpush1.msra.mxu0 %v1806_v10  ;;  %692 = vmatpush1.msra.mxu1 %v1806_v10  ;;  %v631_v60 = vld [vmem:[%s2017_s26 + $0x60] sm:$0xff]  ;;  %v379_v62 = vld [vmem:[%s1999_s18 + $0x70] sm:$0xff]  ;;  %v634_v63 = vld [vmem:[%s2017_s26 + $0x78] sm:$0xff] }
  0x20   : > { %439 = vmatprep.subr.mxu0 %v1680_v1  ;;  %693 = vmatprep.subr.mxu1 %v1680_v1 }
  0x21   : > { %440 = vmatpush1.msra.mxu0 %v1815_v11  ;;  %694 = vmatpush1.msra.mxu1 %v1815_v11 }
  0x22   : > { %441 = vmatprep.subr.mxu0 %v1680_v1  ;;  %695 = vmatprep.subr.mxu1 %v1680_v1 }
  0x23   : > { %442 = vmatpush1.msra.mxu0 %v1824_v12  ;;  %696 = vmatpush1.msra.mxu1 %v1824_v12 }
  0x24   : > { %443 = vmatprep.subr.mxu0 %v1680_v1  ;;  %697 = vmatprep.subr.mxu1 %v1680_v1 }
  0x25   : > { %444 = vmatpush1.msra.mxu0 %v1833_v13  ;;  %698 = vmatpush1.msra.mxu1 %v1833_v13 }
  0x26   : > { %445 = vmatprep.subr.mxu0 %v1680_v1  ;;  %699 = vmatprep.subr.mxu1 %v1680_v1 }
  0x27   : > { %446 = vmatpush1.msra.mxu0 %v1842_v14  ;;  %700 = vmatpush1.msra.mxu1 %v1842_v14 }
  0x28   : > { %447 = vmatprep.subr.mxu0 %v1680_v1  ;;  %701 = vmatprep.subr.mxu1 %v1680_v1 }
  0x29   : > { %448 = vmatpush1.msra.mxu0 %v1851_v15  ;;  %702 = vmatpush1.msra.mxu1 %v1851_v15 }
  0x2a   : > { %449 = vmatprep.subr.mxu0 %v1680_v1  ;;  %703 = vmatprep.subr.mxu1 %v1680_v1 }
  0x2b   : > { %450 = vmatpush1.msra.mxu0 %v1860_v16  ;;  %704 = vmatpush1.msra.mxu1 %v1860_v16 }
  0x2c   : > { %451 = vmatprep.subr.mxu0 %v1680_v1  ;;  %705 = vmatprep.subr.mxu1 %v1680_v1 }
  0x2d   : > { %452 = vmatpush2.msra.mxu0 %v1869_v17  ;;  %706 = vmatpush2.msra.mxu1 %v1869_v17 }
  0x2e   : > { %453 = vmatprep.subr.mxu0 %v1680_v1  ;;  %707 = vmatprep.subr.mxu1 %v1680_v1 }
  0x2f   : > { %454 = vmatpush2.msra.mxu0 %v1878_v18  ;;  %708 = vmatpush2.msra.mxu1 %v1878_v18 }
  0x30   : > { %455 = vmatprep.subr.mxu0 %v1680_v1  ;;  %709 = vmatprep.subr.mxu1 %v1680_v1 }
  0x31   : > { %456 = vmatpush2.msra.mxu0 %v1887_v19  ;;  %710 = vmatpush2.msra.mxu1 %v1887_v19 }
  0x32   : > { %457 = vmatprep.subr.mxu0 %v1680_v1  ;;  %711 = vmatprep.subr.mxu1 %v1680_v1 }
  0x33   : > { %458 = vmatpush2.msra.mxu0 %v1896_v20  ;;  %712 = vmatpush2.msra.mxu1 %v1896_v20 }
  0x34   : > { %459 = vmatprep.subr.mxu0 %v1680_v1  ;;  %713 = vmatprep.subr.mxu1 %v1680_v1 }
  0x35   : > { %460 = vmatpush2.msra.mxu0 %v1905_v21  ;;  %714 = vmatpush2.msra.mxu1 %v1905_v21 }
  0x36   : > { %461 = vmatprep.subr.mxu0 %v1680_v1  ;;  %715 = vmatprep.subr.mxu1 %v1680_v1 }
  0x37   : > { %462 = vmatpush2.msra.mxu0 %v1914_v22  ;;  %716 = vmatpush2.msra.mxu1 %v1914_v22 }
  0x38   : > { %463 = vmatprep.subr.mxu0 %v1680_v1  ;;  %717 = vmatprep.subr.mxu1 %v1680_v1 }
  0x39   : > { %464 = vmatpush2.msra.mxu0 %v1925_v23  ;;  %718 = vmatpush2.msra.mxu1 %v1925_v23 }
  0x3a   : > { %465 = vmatprep.subr.mxu0 %v1680_v1  ;;  %719 = vmatprep.subr.mxu1 %v1680_v1 }
  0x3b   : > { %466 = vmatpush2.msra.mxu0 %v1934_v24  ;;  %720 = vmatpush2.msra.mxu1 %v1934_v24 }
  0x3c   : > { %467 = vmatprep.subr.mxu0 %v1680_v1  ;;  %721 = vmatprep.subr.mxu1 %v1680_v1 }
  0x3d   : > { %468 = vmatpush2.msra.mxu0 %v1943_v25  ;;  %722 = vmatpush2.msra.mxu1 %v1943_v25 }
  0x3e   : > { %469 = vmatprep.subr.mxu0 %v1680_v1  ;;  %723 = vmatprep.subr.mxu1 %v1680_v1 }
  0x3f   : > { %470 = vmatpush2.msra.mxu0 %v1952_v26  ;;  %724 = vmatpush2.msra.mxu1 %v1952_v26 }
  0x40   : > { %471 = vmatprep.subr.mxu0 %v1680_v1  ;;  %725 = vmatprep.subr.mxu1 %v1680_v1 }
  0x41   : > { %472 = vmatpush2.msra.mxu0 %v1963_v27  ;;  %726 = vmatpush2.msra.mxu1 %v1963_v27 }
  0x42   : > { %473 = vmatprep.subr.mxu0 %v1680_v1  ;;  %727 = vmatprep.subr.mxu1 %v1680_v1 }
  0x43   : > { %474 = vmatpush2.msra.mxu0 %v1972_v28  ;;  %728 = vmatpush2.msra.mxu1 %v1972_v28 }
  0x44   : > { %475 = vmatprep.subr.mxu0 %v1680_v1  ;;  %729 = vmatprep.subr.mxu1 %v1680_v1 }
  0x45   : > { %476 = vmatpush2.msra.mxu0 %v1984_v29  ;;  %730 = vmatpush2.msra.mxu1 %v1984_v29 }
  0x46   : > { %477 = vmatprep.subr.mxu0 %v1680_v1  ;;  %731 = vmatprep.subr.mxu1 %v1680_v1 }
  0x47   : > { %478 = vmatpush2.msra.mxu0 %v1993_v30  ;;  %732 = vmatpush2.msra.mxu1 %v1993_v30 }
  0x48   : > { %479 = vmatprep.subr.mxu0 %v1680_v1  ;;  %733 = vmatprep.subr.mxu1 %v1680_v1 }
  0x49   : > { %480 = vmatpush2.msra.mxu0 %v2008_v31  ;;  %734 = vmatpush2.msra.mxu1 %v2008_v31 }
  0x4a   : > { %481 = vmatprep.subr.mxu0 %v1680_v1  ;;  %483 = vmatprep.mubr.f32.mxu0 %v366_v32  ;;  %v386_v32 = vld [vmem:[%s1999_s18 + $0xa8] sm:$0xff] }
  0x4b   : > { %482 = vmatpush2.msra.mxu0 %v2024_v33  ;;  %735 = vmatprep.subr.mxu1 %v1680_v1 }
  0x4c   : > { %484 = vmatmul.mubr.f32.vlgmr.msra.gmra.mxu0 %v365_v34  ;;  %736 = vmatpush2.msra.mxu1 %v2024_v33  ;;  %v640_v34 = vld [vmem:[%s2017_s26 + $0xa8] sm:$0xff] }
  0x4d   : > { %737 = vmatprep.mubr.f32.mxu1 %v620_v35  ;;  %954 = vmatprep.subr.mxu0 %v1680_v1  ;;  %v385_v35 = vld [vmem:[%s1999_s18 + $0xa0] sm:$0xff] }
  0x4e   : > { %738 = vmatmul.mubr.f32.vlgmr.msra.gmra.mxu1 %v619_v36  ;;  %955 = vmatpush1.msra.mxu0 %v1727_v0  ;;  %v388_v36 = vld [vmem:[%s1999_s18 + $0xb8] sm:$0xff] }
  0x4f   : > { %1235 = vmatprep.subr.mxu1 %v1680_v1  ;;  %488 = vmatprep.mubr.f32.mxu0 %v368_v37  ;;  %v387_v37 = vld [vmem:[%s1999_s18 + $0xb0] sm:$0xff] }
  0x50   : > { %1236 = vmatpush1.msra.mxu1 %v1727_v0  ;;  %489 = vmatmul.mubr.f32.gmra.mxu0 %v367_v38  ;;  %v633_v0 = vld [vmem:[%s2017_s26 + $0x70] sm:$0xff]  ;;  %v642_v38 = vld [vmem:[%s2017_s26 + $0xb8] sm:$0xff] }
  0x51   : > { %742 = vmatprep.mubr.f32.mxu1 %v622_v39  ;;  %956 = vmatprep.subr.mxu0 %v1680_v1  ;;  %v390_v39 = vld [vmem:[%s1999_s18 + $0xc8] sm:$0xff] }
  0x52   : > { %743 = vmatmul.mubr.f32.gmra.mxu1 %v621_v40  ;;  %957 = vmatpush1.msra.mxu0 %v1734_v2  ;;  %v389_v40 = vld [vmem:[%s1999_s18 + $0xc0] sm:$0xff] }
  0x53   : > { %1237 = vmatprep.subr.mxu1 %v1680_v1  ;;  %493 = vmatprep.mubr.f32.mxu0 %v370_v41  ;;  %v643_v41 = vld [vmem:[%s2017_s26 + $0xc0] sm:$0xff] }
  0x54   : > { %958 = vmatprep.subr.mxu0 %v1680_v1  ;;  %1238 = vmatpush1.msra.mxu1 %v1734_v2  ;;  %v382_v2 = vld [vmem:[%s1999_s18 + $0x88] sm:$0xff] }
  0x55   : > { %494 = vmatmul.mubr.f32.gmra.mxu0 %v369_v42  ;;  %747 = vmatprep.mubr.f32.mxu1 %v624_v43  ;;  %v392_v42 = vld [vmem:[%s1999_s18 + $0xd8] sm:$0xff] }
  0x56   : > { %959 = vmatpush1.msra.mxu0 %v1743_v3  ;;  %748 = vmatmul.mubr.f32.gmra.mxu1 %v623_v44  ;;  %v646_v43 = vld [vmem:[%s2017_s26 + $0xd8] sm:$0xff]  ;;  %v645_v44 = vld [vmem:[%s2017_s26 + $0xd0] sm:$0xff] }
  0x57   : > { %1239 = vmatprep.subr.mxu1 %v1680_v1  ;;  %498 = vmatprep.mubr.f32.mxu0 %v372_v45  ;;  %v648_v45 = vld [vmem:[%s2017_s26 + $0xe8] sm:$0xff] }
  0x58   : > { %1240 = vmatpush1.msra.mxu1 %v1743_v3  ;;  %960 = vmatprep.subr.mxu0 %v1680_v1  ;;  %v381_v3 = vld [vmem:[%s1999_s18 + $0x80] sm:$0xff] }
  0x59   : > { %499 = vmatmul.mubr.f32.gmra.mxu0 %v371_v46  ;;  %752 = vmatprep.mubr.f32.mxu1 %v626_v47  ;;  %v393_v46 = vld [vmem:[%s1999_s18 + $0xe0] sm:$0xff] }
  0x5a   : > { %961 = vmatpush1.msra.mxu0 %v1752_v4  ;;  %753 = vmatmul.mubr.f32.gmra.mxu1 %v625_v48  ;;  %v647_v47 = vld [vmem:[%s2017_s26 + $0xe0] sm:$0xff]  ;;  %v650_v48 = vld [vmem:[%s2017_s26 + $0xf8] sm:$0xff] }
  0x5b   : > { %1241 = vmatprep.subr.mxu1 %v1680_v1  ;;  %962 = vmatprep.subr.mxu0 %v1680_v1 }
  0x5c   : > { %1242 = vmatpush1.msra.mxu1 %v1752_v4  ;;  %503 = vmatprep.mubr.f32.mxu0 %v374_v49  ;;  %v636_v4 = vld [vmem:[%s2017_s26 + $0x88] sm:$0xff]  ;;  %v395_v49 = vld [vmem:[%s1999_s18 + $0xf0] sm:$0xff] }
  0x5d   : > { %963 = vmatpush1.msra.mxu0 %v1761_v5  ;;  %757 = vmatprep.mubr.f32.mxu1 %v628_v50  ;;  %v398_v50 = vld [vmem:[%s1999_s18 + $0x108] sm:$0xff] }
  0x5e   : > { %504 = vmatmul.mubr.f32.gmra.mxu0 %v373_v51  ;;  %1243 = vmatprep.subr.mxu1 %v1680_v1  ;;  %v397_v51 = vld [vmem:[%s1999_s18 + $0x100] sm:$0xff] }
  0x5f   : > { %758 = vmatmul.mubr.f32.gmra.mxu1 %v627_v52  ;;  %964 = vmatprep.subr.mxu0 %v1680_v1  ;;  %v652_v52 = vld [vmem:[%s2017_s26 + $0x108] sm:$0xff] }
  0x60   : > { %1244 = vmatpush1.msra.mxu1 %v1761_v5  ;;  %965 = vmatpush1.msra.mxu0 %v1770_v6  ;;  %v635_v5 = vld [vmem:[%s2017_s26 + $0x80] sm:$0xff] }
  0x61   : > { %508 = vmatprep.mubr.f32.mxu0 %v376_v53  ;;  %1245 = vmatprep.subr.mxu1 %v1680_v1  ;;  %v400_v53 = vld [vmem:[%s1999_s18 + $0x118] sm:$0xff] }
  0x62   : > { %509 = vmatmul.mubr.f32.gmra.mxu0 %v375_v54  ;;  %762 = vmatprep.mubr.f32.mxu1 %v630_v55  ;;  %v399_v54 = vld [vmem:[%s1999_s18 + $0x110] sm:$0xff]  ;;  %v654_v55 = vld [vmem:[%s2017_s26 + $0x118] sm:$0xff] }
  0x63   : > { %1246 = vmatpush1.msra.mxu1 %v1770_v6  ;;  %966 = vmatprep.subr.mxu0 %v1680_v1  ;;  %v384_v6 = vld [vmem:[%s1999_s18 + $0x98] sm:$0xff] }
  0x64   : > { %763 = vmatmul.mubr.f32.gmra.mxu1 %v629_v56  ;;  %967 = vmatpush1.msra.mxu0 %v1779_v7  ;;  %v402_v56 = vld [vmem:[%s1999_s18 + $0x128] sm:$0xff] }
  0x65   : > { %513 = vmatprep.mubr.f32.mxu0 %v378_v57  ;;  %1247 = vmatprep.subr.mxu1 %v1680_v1  ;;  %v656_v57 = vld [vmem:[%s2017_s26 + $0x128] sm:$0xff] }
  0x66   : > { %514 = vmatmul.mubr.f32.gmra.mxu0 %v377_v58  ;;  %767 = vmatprep.mubr.f32.mxu1 %v632_v59  ;;  %v655_v58 = vld [vmem:[%s2017_s26 + $0x120] sm:$0xff]  ;;  %v404_v59 = vld [vmem:[%s1999_s18 + $0x138] sm:$0xff] }
  0x67   : > { %968 = vmatprep.subr.mxu0 %v1680_v1  ;;  %1248 = vmatpush1.msra.mxu1 %v1779_v7  ;;  %v638_v7 = vld [vmem:[%s2017_s26 + $0x98] sm:$0xff] }
  0x68   : > { %768 = vmatmul.mubr.f32.gmra.mxu1 %v631_v60  ;;  %969 = vmatpush1.msra.mxu0 %v1788_v8  ;;  %v658_v60 = vld [vmem:[%s2017_s26 + $0x138] sm:$0xff] }
  0x69   : > { %1249 = vmatprep.subr.mxu1 %v1680_v1  ;;  %518 = vmatprep.mubr.f32.mxu0 %v380_v61  ;;  %v657_v61 = vld [vmem:[%s2017_s26 + $0x130] sm:$0xff] }
  0x6a   : > { %970 = vmatprep.subr.mxu0 %v1680_v1  ;;  %1250 = vmatpush1.msra.mxu1 %v1788_v8  ;;  %v383_v8 = vld [vmem:[%s1999_s18 + $0x90] sm:$0xff] }
  0x6b   : > { %519 = vmatmul.mubr.f32.gmra.mxu0 %v379_v62  ;;  %772 = vmatprep.mubr.f32.mxu1 %v634_v63  ;;  %v660_v62 = vld [vmem:[%s2017_s26 + $0x148] sm:$0xff]  ;;  %v405_v63 = vld [vmem:[%s1999_s18 + $0x140] sm:$0xff] }
  0x6c   : > { %971 = vmatpush1.msra.mxu0 %v1797_v9  ;;  %773 = vmatmul.mubr.f32.gmra.mxu1 %v633_v0  ;;  %v408_v0 = vld [vmem:[%s1999_s18 + $0x158] sm:$0xff] }
  0x6d   : > { %1251 = vmatprep.subr.mxu1 %v1680_v1  ;;  %523 = vmatprep.mubr.f32.mxu0 %v382_v2  ;;  %v407_v2 = vld [vmem:[%s1999_s18 + $0x150] sm:$0xff] }
  0x6e   : > { %1252 = vmatpush1.msra.mxu1 %v1797_v9  ;;  %972 = vmatprep.subr.mxu0 %v1680_v1  ;;  %v637_v9 = vld [vmem:[%s2017_s26 + $0x90] sm:$0xff] }
  0x6f   : > { %524 = vmatmul.mubr.f32.gmra.mxu0 %v381_v3  ;;  %777 = vmatprep.mubr.f32.mxu1 %v636_v4  ;;  %v662_v3 = vld [vmem:[%s2017_s26 + $0x158] sm:$0xff]  ;;  %v410_v4 = vld [vmem:[%s1999_s18 + $0x168] sm:$0xff] }
  0x70   : > { %973 = vmatpush1.msra.mxu0 %v1806_v10  ;;  %778 = vmatmul.mubr.f32.gmra.mxu1 %v635_v5  ;;  %v409_v5 = vld [vmem:[%s1999_s18 + $0x160] sm:$0xff] }
  0x71   : > { %1253 = vmatprep.subr.mxu1 %v1680_v1  ;;  %974 = vmatprep.subr.mxu0 %v1680_v1 }
  0x72   : > { %1254 = vmatpush1.msra.mxu1 %v1806_v10  ;;  %528 = vmatprep.mubr.f32.mxu0 %v384_v6  ;;  %v639_v10 = vld [vmem:[%s2017_s26 + $0xa0] sm:$0xff]  ;;  %v664_v6 = vld [vmem:[%s2017_s26 + $0x168] sm:$0xff] }
  0x73   : > { %975 = vmatpush1.msra.mxu0 %v1815_v11  ;;  %782 = vmatprep.mubr.f32.mxu1 %v638_v7  ;;  %v412_v7 = vld [vmem:[%s1999_s18 + $0x178] sm:$0xff] }
  0x74   : > { %529 = vmatmul.mubr.f32.gmra.mxu0 %v383_v8  ;;  %1255 = vmatprep.subr.mxu1 %v1680_v1  ;;  %v666_v8 = vld [vmem:[%s2017_s26 + $0x178] sm:$0xff] }
  0x75   : > { %783 = vmatmul.mubr.f32.gmra.mxu1 %v637_v9  ;;  %976 = vmatprep.subr.mxu0 %v1680_v1  ;;  %v665_v9 = vld [vmem:[%s2017_s26 + $0x170] sm:$0xff] }
  0x76   : > { %1256 = vmatpush1.msra.mxu1 %v1815_v11  ;;  %533 = vmatprep.mubr.f32.mxu0 %v386_v32  ;;  %v641_v11 = vld [vmem:[%s2017_s26 + $0xb0] sm:$0xff]  ;;  %v414_v32 = vld [vmem:[%s1999_s18 + $0x188] sm:$0xff] }
  0x77   : > { %977 = vmatpush1.msra.mxu0 %v1824_v12  ;;  %787 = vmatprep.mubr.f32.mxu1 %v640_v34  ;;  %v668_v34 = vld [vmem:[%s2017_s26 + $0x188] sm:$0xff] }
  0x78   : > { %534 = vmatmul.mubr.f32.gmra.mxu0 %v385_v35  ;;  %1257 = vmatprep.subr.mxu1 %v1680_v1  ;;  %v667_v35 = vld [vmem:[%s2017_s26 + $0x180] sm:$0xff] }
  0x79   : > { %788 = vmatmul.mubr.f32.gmra.mxu1 %v639_v10  ;;  %978 = vmatprep.subr.mxu0 %v1680_v1  ;;  %v670_v10 = vld [vmem:[%s2017_s26 + $0x198] sm:$0xff] }
  0x7a   : > { %1258 = vmatpush1.msra.mxu1 %v1824_v12  ;;  %979 = vmatpush1.msra.mxu0 %v1833_v13  ;;  %v644_v12 = vld [vmem:[%s2017_s26 + $0xc8] sm:$0xff] }
  0x7b   : > { %538 = vmatprep.mubr.f32.mxu0 %v388_v36  ;;  %1259 = vmatprep.subr.mxu1 %v1680_v1  ;;  %v415_v36 = vld [vmem:[%s1999_s18 + $0x190] sm:$0xff] }
  0x7c   : > { %539 = vmatmul.mubr.f32.gmra.mxu0 %v387_v37  ;;  %792 = vmatprep.mubr.f32.mxu1 %v642_v38  ;;  %v418_v37 = vld [vmem:[%s1999_s18 + $0x1a8] sm:$0xff] }
  0x7d   : > { %980 = vmatprep.subr.mxu0 %v1680_v1  ;;  %1260 = vmatpush1.msra.mxu1 %v1833_v13  ;;  %v391_v13 = vld [vmem:[%s1999_s18 + $0xd0] sm:$0xff]  ;;  %v672_v38 = vld [vmem:[%s2017_s26 + $0x1a8] sm:$0xff] }
  0x7e   : > { %793 = vmatmul.mubr.f32.gmra.mxu1 %v641_v11  ;;  %981 = vmatpush1.msra.mxu0 %v1842_v14  ;;  %v417_v11 = vld [vmem:[%s1999_s18 + $0x1a0] sm:$0xff] }
  0x7f   : > { %1261 = vmatprep.subr.mxu1 %v1680_v1  ;;  %543 = vmatprep.mubr.f32.mxu0 %v390_v39  ;;  %v901_v39 = vld [vmem:[%s2262_s30 + $0x8] sm:$0xff] }
  0x80   : > { %1262 = vmatpush1.msra.mxu1 %v1842_v14  ;;  %544 = vmatmul.mubr.f32.gmra.mxu0 %v389_v40  ;;  %v394_v14 = vld [vmem:[%s1999_s18 + $0xe8] sm:$0xff] }
  0x81   : > { %797 = vmatprep.mubr.f32.mxu1 %v644_v12  ;;  %982 = vmatprep.subr.mxu0 %v1680_v1  ;;  %v1182_v40 = vld [vmem:[%s2271_s9 + $0x8] sm:$0xff]  ;;  %v903_v12 = vld [vmem:[%s2262_s30 + $0x18] sm:$0xff] }
  0x82   : > { %798 = vmatmul.mubr.f32.gmra.mxu1 %v643_v41  ;;  %983 = vmatpush1.msra.mxu0 %v1851_v15  ;;  %v1181_v41 = vld [vmem:[%s2271_s9] sm:$0xff] }
  0x83   : > { %1263 = vmatprep.subr.mxu1 %v1680_v1  ;;  %548 = vmatprep.mubr.f32.mxu0 %v392_v42  ;;  %v1184_v42 = vld [vmem:[%s2271_s9 + $0x18] sm:$0xff] }
  0x84   : > { %984 = vmatprep.subr.mxu0 %v1680_v1  ;;  %1264 = vmatpush1.msra.mxu1 %v1851_v15  ;;  %v396_v15 = vld [vmem:[%s1999_s18 + $0xf8] sm:$0xff] }
  0x85   : > { %549 = vmatmul.mubr.f32.gmra.mxu0 %v391_v13  ;;  %802 = vmatprep.mubr.f32.mxu1 %v646_v43  ;;  %v905_v13 = vld [vmem:[%s2262_s30 + $0x28] sm:$0xff]  ;;  %v1183_v43 = vld [vmem:[%s2271_s9 + $0x10] sm:$0xff] }
  0x86   : > { %985 = vmatpush1.msra.mxu0 %v1860_v16  ;;  %803 = vmatmul.mubr.f32.gmra.mxu1 %v645_v44  ;;  %v904_v44 = vld [vmem:[%s2262_s30 + $0x20] sm:$0xff] }
  0x87   : > { %1265 = vmatprep.subr.mxu1 %v1680_v1  ;;  %986 = vmatprep.subr.mxu0 %v1680_v1 }
  0x88   : > { %1266 = vmatpush1.msra.mxu1 %v1860_v16  ;;  %553 = vmatprep.mubr.f32.mxu0 %v394_v14  ;;  %v649_v16 = vld [vmem:[%s2017_s26 + $0xf0] sm:$0xff]  ;;  %v1185_v14 = vld [vmem:[%s2271_s9 + $0x20] sm:$0xff] }
  0x89   : > { %987 = vmatpush2.msra.mxu0 %v1869_v17  ;;  %807 = vmatprep.mubr.f32.mxu1 %v648_v45  ;;  %v1188_v45 = vld [vmem:[%s2271_s9 + $0x38] sm:$0xff] }
  0x8a   : > { %554 = vmatmul.mubr.f32.gmra.mxu0 %v393_v46  ;;  %1267 = vmatprep.subr.mxu1 %v1680_v1  ;;  %v906_v46 = vld [vmem:[%s2262_s30 + $0x30] sm:$0xff] }
  0x8b   : > { %808 = vmatmul.mubr.f32.gmra.mxu1 %v647_v47  ;;  %988 = vmatprep.subr.mxu0 %v1680_v1  ;;  %v909_v47 = vld [vmem:[%s2262_s30 + $0x48] sm:$0xff] }
  0x8c   : > { %1268 = vmatpush2.msra.mxu1 %v1869_v17  ;;  %558 = vmatprep.mubr.f32.mxu0 %v396_v15  ;;  %v651_v17 = vld [vmem:[%s2017_s26 + $0x100] sm:$0xff]  ;;  %v1187_v15 = vld [vmem:[%s2271_s9 + $0x30] sm:$0xff] }
  0x8d   : > { %989 = vmatpush2.msra.mxu0 %v1878_v18  ;;  %812 = vmatprep.mubr.f32.mxu1 %v650_v48  ;;  %v1190_v48 = vld [vmem:[%s2271_s9 + $0x48] sm:$0xff] }
  0x8e   : > { %559 = vmatmul.mubr.f32.gmra.mxu0 %v395_v49  ;;  %1269 = vmatprep.subr.mxu1 %v1680_v1  ;;  %v908_v49 = vld [vmem:[%s2262_s30 + $0x40] sm:$0xff] }
  0x8f   : > { %813 = vmatmul.mubr.f32.gmra.mxu1 %v649_v16  ;;  %990 = vmatprep.subr.mxu0 %v1680_v1  ;;  %v911_v16 = vld [vmem:[%s2262_s30 + $0x58] sm:$0xff] }
  0x90   : > { %1270 = vmatpush2.msra.mxu1 %v1878_v18  ;;  %991 = vmatpush2.msra.mxu0 %v1887_v19  ;;  %v653_v18 = vld [vmem:[%s2017_s26 + $0x110] sm:$0xff] }
  0x91   : > { %563 = vmatprep.mubr.f32.mxu0 %v398_v50  ;;  %1271 = vmatprep.subr.mxu1 %v1680_v1  ;;  %v1189_v50 = vld [vmem:[%s2271_s9 + $0x40] sm:$0xff] }
  0x92   : > { %564 = vmatmul.mubr.f32.gmra.mxu0 %v397_v51  ;;  %817 = vmatprep.mubr.f32.mxu1 %v652_v52  ;;  %v1192_v51 = vld [vmem:[%s2271_s9 + $0x58] sm:$0xff]  ;;  %v910_v52 = vld [vmem:[%s2262_s30 + $0x50] sm:$0xff] }
  0x93   : > { %1272 = vmatpush2.msra.mxu1 %v1887_v19  ;;  %992 = vmatprep.subr.mxu0 %v1680_v1  ;;  %v401_v19 = vld [vmem:[%s1999_s18 + $0x120] sm:$0xff] }
  0x94   : > { %818 = vmatmul.mubr.f32.gmra.mxu1 %v651_v17  ;;  %993 = vmatpush2.msra.mxu0 %v1896_v20  ;;  %v913_v17 = vld [vmem:[%s2262_s30 + $0x68] sm:$0xff] }
  0x95   : > { %568 = vmatprep.mubr.f32.mxu0 %v400_v53  ;;  %1273 = vmatprep.subr.mxu1 %v1680_v1  ;;  %v1191_v53 = vld [vmem:[%s2271_s9 + $0x50] sm:$0xff] }
  0x96   : > { %569 = vmatmul.mubr.f32.gmra.mxu0 %v399_v54  ;;  %822 = vmatprep.mubr.f32.mxu1 %v654_v55  ;;  %v1194_v54 = vld [vmem:[%s2271_s9 + $0x68] sm:$0xff]  ;;  %v912_v55 = vld [vmem:[%s2262_s30 + $0x60] sm:$0xff] }
  0x97   : > { %994 = vmatprep.subr.mxu0 %v1680_v1  ;;  %1274 = vmatpush2.msra.mxu1 %v1896_v20  ;;  %v403_v20 = vld [vmem:[%s1999_s18 + $0x130] sm:$0xff] }
  0x98   : > { %823 = vmatmul.mubr.f32.gmra.mxu1 %v653_v18  ;;  %995 = vmatpush2.msra.mxu0 %v1905_v21  ;;  %v915_v18 = vld [vmem:[%s2262_s30 + $0x78] sm:$0xff] }
  0x99   : > { %1275 = vmatprep.subr.mxu1 %v1680_v1  ;;  %573 = vmatprep.mubr.f32.mxu0 %v402_v56  ;;  %v1193_v56 = vld [vmem:[%s2271_s9 + $0x60] sm:$0xff] }
  0x9a   : > { %996 = vmatprep.subr.mxu0 %v1680_v1  ;;  %1276 = vmatpush2.msra.mxu1 %v1905_v21  ;;  %v406_v21 = vld [vmem:[%s1999_s18 + $0x148] sm:$0xff] }
  0x9b   : > { %574 = vmatmul.mubr.f32.gmra.mxu0 %v401_v19  ;;  %827 = vmatprep.mubr.f32.mxu1 %v656_v57  ;;  %v1196_v19 = vld [vmem:[%s2271_s9 + $0x78] sm:$0xff]  ;;  %v914_v57 = vld [vmem:[%s2262_s30 + $0x70] sm:$0xff] }
  0x9c   : > { %997 = vmatpush2.msra.mxu0 %v1914_v22  ;;  %828 = vmatmul.mubr.f32.gmra.mxu1 %v655_v58  ;;  %v917_v58 = vld [vmem:[%s2262_s30 + $0x88] sm:$0xff] }
  0x9d   : > { %1277 = vmatprep.subr.mxu1 %v1680_v1  ;;  %578 = vmatprep.mubr.f32.mxu0 %v404_v59  ;;  %v1195_v59 = vld [vmem:[%s2271_s9 + $0x70] sm:$0xff] }
  0x9e   : > { %1278 = vmatpush2.msra.mxu1 %v1914_v22  ;;  %998 = vmatprep.subr.mxu0 %v1680_v1  ;;  %v659_v22 = vld [vmem:[%s2017_s26 + $0x140] sm:$0xff] }
  0x9f   : > { %579 = vmatmul.mubr.f32.gmra.mxu0 %v403_v20  ;;  %832 = vmatprep.mubr.f32.mxu1 %v658_v60  ;;  %v1198_v20 = vld [vmem:[%s2271_s9 + $0x88] sm:$0xff]  ;;  %v916_v60 = vld [vmem:[%s2262_s30 + $0x80] sm:$0xff] }
  0xa0   : > { %999 = vmatpush2.msra.mxu0 %v1925_v23  ;;  %833 = vmatmul.mubr.f32.gmra.mxu1 %v657_v61  ;;  %v919_v61 = vld [vmem:[%s2262_s30 + $0x98] sm:$0xff] }
  0xa1   : > { %1279 = vmatprep.subr.mxu1 %v1680_v1  ;;  %1000 = vmatprep.subr.mxu0 %v1680_v1 }
  0xa2   : > { %1280 = vmatpush2.msra.mxu1 %v1925_v23  ;;  %583 = vmatprep.mubr.f32.mxu0 %v406_v21  ;;  %v661_v23 = vld [vmem:[%s2017_s26 + $0x150] sm:$0xff]  ;;  %v1197_v21 = vld [vmem:[%s2271_s9 + $0x80] sm:$0xff] }
  0xa3   : > { %1001 = vmatpush2.msra.mxu0 %v1934_v24  ;;  %837 = vmatprep.mubr.f32.mxu1 %v660_v62  ;;  %v1200_v62 = vld [vmem:[%s2271_s9 + $0x98] sm:$0xff] }
  0xa4   : > { %584 = vmatmul.mubr.f32.gmra.mxu0 %v405_v63  ;;  %1281 = vmatprep.subr.mxu1 %v1680_v1  ;;  %v918_v63 = vld [vmem:[%s2262_s30 + $0x90] sm:$0xff] }
  0xa5   : > { %838 = vmatmul.mubr.f32.gmra.mxu1 %v659_v22  ;;  %1002 = vmatprep.subr.mxu0 %v1680_v1  ;;  %v921_v22 = vld [vmem:[%s2262_s30 + $0xa8] sm:$0xff] }
  0xa6   : > { %1282 = vmatpush2.msra.mxu1 %v1934_v24  ;;  %1003 = vmatpush2.msra.mxu0 %v1943_v25  ;;  %v663_v24 = vld [vmem:[%s2017_s26 + $0x160] sm:$0xff] }
  0xa7   : > { %588 = vmatprep.mubr.f32.mxu0 %v408_v0  ;;  %1283 = vmatprep.subr.mxu1 %v1680_v1  ;;  %v1199_v0 = vld [vmem:[%s2271_s9 + $0x90] sm:$0xff] }
  0xa8   : > { %589 = vmatmul.mubr.f32.gmra.mxu0 %v407_v2  ;;  %842 = vmatprep.mubr.f32.mxu1 %v662_v3  ;;  %v1202_v2 = vld [vmem:[%s2271_s9 + $0xa8] sm:$0xff]  ;;  %v920_v3 = vld [vmem:[%s2262_s30 + $0xa0] sm:$0xff] }
  0xa9   : > { %1284 = vmatpush2.msra.mxu1 %v1943_v25  ;;  %1004 = vmatprep.subr.mxu0 %v1680_v1  ;;  %v411_v25 = vld [vmem:[%s1999_s18 + $0x170] sm:$0xff] }
  0xaa   : > { %843 = vmatmul.mubr.f32.gmra.mxu1 %v661_v23  ;;  %1005 = vmatpush2.msra.mxu0 %v1952_v26  ;;  %v923_v23 = vld [vmem:[%s2262_s30 + $0xb8] sm:$0xff] }
  0xab   : > { %593 = vmatprep.mubr.f32.mxu0 %v410_v4  ;;  %1285 = vmatprep.subr.mxu1 %v1680_v1  ;;  %v1201_v4 = vld [vmem:[%s2271_s9 + $0xa0] sm:$0xff] }
  0xac   : > { %594 = vmatmul.mubr.f32.gmra.mxu0 %v409_v5  ;;  %847 = vmatprep.mubr.f32.mxu1 %v664_v6  ;;  %v1204_v5 = vld [vmem:[%s2271_s9 + $0xb8] sm:$0xff]  ;;  %v922_v6 = vld [vmem:[%s2262_s30 + $0xb0] sm:$0xff] }
  0xad   : > { %1006 = vmatprep.subr.mxu0 %v1680_v1  ;;  %1286 = vmatpush2.msra.mxu1 %v1952_v26  ;;  %v413_v26 = vld [vmem:[%s1999_s18 + $0x180] sm:$0xff] }
  0xae   : > { %848 = vmatmul.mubr.f32.gmra.mxu1 %v663_v24  ;;  %1007 = vmatpush2.msra.mxu0 %v1963_v27  ;;  %v925_v24 = vld [vmem:[%s2262_s30 + $0xc8] sm:$0xff] }
  0xaf   : > { %1287 = vmatprep.subr.mxu1 %v1680_v1  ;;  %598 = vmatprep.mubr.f32.mxu0 %v412_v7  ;;  %v1203_v7 = vld [vmem:[%s2271_s9 + $0xb0] sm:$0xff] }
  0xb0   : > { %1288 = vmatpush2.msra.mxu1 %v1963_v27  ;;  %599 = vmatmul.mubr.f32.gmra.mxu0 %v411_v25  ;;  %v416_v27 = vld [vmem:[%s1999_s18 + $0x198] sm:$0xff]  ;;  %v1206_v25 = vld [vmem:[%s2271_s9 + $0xc8] sm:$0xff] }
  0xb1   : > { %852 = vmatprep.mubr.f32.mxu1 %v666_v8  ;;  %1008 = vmatprep.subr.mxu0 %v1680_v1  ;;  %v924_v8 = vld [vmem:[%s2262_s30 + $0xc0] sm:$0xff] }
  0xb2   : > { %853 = vmatmul.mubr.f32.gmra.mxu1 %v665_v9  ;;  %1009 = vmatpush2.msra.mxu0 %v1972_v28  ;;  %v927_v9 = vld [vmem:[%s2262_s30 + $0xd8] sm:$0xff] }
  0xb3   : > { %1289 = vmatprep.subr.mxu1 %v1680_v1  ;;  %603 = vmatprep.mubr.f32.mxu0 %v414_v32  ;;  %v1205_v32 = vld [vmem:[%s2271_s9 + $0xc0] sm:$0xff] }
  0xb4   : > { %1010 = vmatprep.subr.mxu0 %v1680_v1  ;;  %1290 = vmatpush2.msra.mxu1 %v1972_v28  ;;  %v669_v28 = vld [vmem:[%s2017_s26 + $0x190] sm:$0xff] }
  0xb5   : > { %604 = vmatmul.mubr.f32.gmra.mxu0 %v413_v26  ;;  %857 = vmatprep.mubr.f32.mxu1 %v668_v34  ;;  %v1208_v26 = vld [vmem:[%s2271_s9 + $0xd8] sm:$0xff]  ;;  %v926_v34 = vld [vmem:[%s2262_s30 + $0xd0] sm:$0xff] }
  0xb6   : > { %1011 = vmatpush2.msra.mxu0 %v1984_v29  ;;  %858 = vmatmul.mubr.f32.gmra.mxu1 %v667_v35  ;;  %v929_v35 = vld [vmem:[%s2262_s30 + $0xe8] sm:$0xff] }
  0xb7   : > { %1291 = vmatprep.subr.mxu1 %v1680_v1  ;;  %1012 = vmatprep.subr.mxu0 %v1680_v1 }
  0xb8   : > { %1292 = vmatpush2.msra.mxu1 %v1984_v29  ;;  %608 = vmatprep.mubr.f32.mxu0 %v416_v27  ;;  %v671_v29 = vld [vmem:[%s2017_s26 + $0x1a0] sm:$0xff]  ;;  %v1207_v27 = vld [vmem:[%s2271_s9 + $0xd0] sm:$0xff] }
  0xb9   : > { %1013 = vmatpush2.msra.mxu0 %v1993_v30  ;;  %862 = vmatprep.mubr.f32.mxu1 %v670_v10  ;;  %v1210_v10 = vld [vmem:[%s2271_s9 + $0xe8] sm:$0xff] }
  0xba   : > { %609 = vmatmul.mubr.f32.gmra.mxu0 %v415_v36  ;;  %1293 = vmatprep.subr.mxu1 %v1680_v1  ;;  %v928_v36 = vld [vmem:[%s2262_s30 + $0xe0] sm:$0xff] }
  0xbb   : > { %863 = vmatmul.mubr.f32.gmra.mxu1 %v669_v28  ;;  %1014 = vmatprep.subr.mxu0 %v1680_v1  ;;  %v931_v28 = vld [vmem:[%s2262_s30 + $0xf8] sm:$0xff] }
  0xbc   : > { %1294 = vmatpush2.msra.mxu1 %v1993_v30  ;;  %613 = vmatprep.mubr.f32.mxu0 %v418_v37  ;;  %v900_v30 = vld [vmem:[%s2262_s30] sm:$0xff] }
  0xbd   : > { %1015 = vmatpush2.msra.mxu0 %v2008_v31  ;;  %867 = vmatprep.mubr.f32.mxu1 %v672_v38  ;;  %v1209_v37 = vld [vmem:[%s2271_s9 + $0xe0] sm:$0xff]  ;;  %v1212_v38 = vld [vmem:[%s2271_s9 + $0xf8] sm:$0xff] }
  0xbe   : > { %614 = vmatmul.mubr.f32.gmra.mxu0 %v417_v11  ;;  %1295 = vmatprep.subr.mxu1 %v1680_v1  ;;  %v930_v11 = vld [vmem:[%s2262_s30 + $0xf0] sm:$0xff] }
  0xbf   : > { %868 = vmatmul.mubr.f32.gmra.mxu1 %v671_v29  ;;  %1016 = vmatprep.subr.mxu0 %v1680_v1  ;;  %v933_v29 = vld [vmem:[%s2262_s30 + $0x108] sm:$0xff] }
  0xc0   : > { %1296 = vmatpush2.msra.mxu1 %v2008_v31  ;;  %1017 = vmatpush2.msra.mxu0 %v2024_v33  ;;  %v902_v31 = vld [vmem:[%s2262_s30 + $0x10] sm:$0xff] }
  0xc1   : > { %1018 = vmatprep.mubr.f32.mxu0 %v901_v39  ;;  %1297 = vmatprep.subr.mxu1 %v1680_v1  ;;  %v1186_v1 = vld [vmem:[%s2271_s9 + $0x28] sm:$0xff]  ;;  %v1211_v39 = vld [vmem:[%s2271_s9 + $0xf0] sm:$0xff] }
  0xc2   : > { %1019 = vmatmul.mubr.f32.vlgmr.msra.gmra.mxu0 %v900_v30  ;;  %1298 = vmatpush2.msra.mxu1 %v2024_v33  ;;  %v907_v33 = vld [vmem:[%s2262_s30 + $0x38] sm:$0xff]  ;;  %v1214_v30 = vld [vmem:[%s2271_s9 + $0x108] sm:$0xff] }
  0xc3   : > { %1299 = vmatprep.mubr.f32.mxu1 %v1182_v40  ;;  %1023 = vmatprep.mubr.f32.mxu0 %v903_v12  ;;  %v932_v40 = vld [vmem:[%s2262_s30 + $0x100] sm:$0xff]  ;;  %v935_v12 = vld [vmem:[%s2262_s30 + $0x118] sm:$0xff] }
  0xc4   : > { %1300 = vmatmul.mubr.f32.vlgmr.msra.gmra.mxu1 %v1181_v41  ;;  %v1213_v41 = vld [vmem:[%s2271_s9 + $0x100] sm:$0xff] }
  0xc5   : > { %1304 = vmatprep.mubr.f32.mxu1 %v1184_v42  ;;  %v1216_v42 = vld [vmem:[%s2271_s9 + $0x118] sm:$0xff] }
  0xc6   : > { %1024 = vmatmul.mubr.f32.gmra.mxu0 %v902_v31  ;;  %v934_v31 = vld [vmem:[%s2262_s30 + $0x110] sm:$0xff] }
  0xc7   : > { %1028 = vmatprep.mubr.f32.mxu0 %v905_v13  ;;  %v937_v13 = vld [vmem:[%s2262_s30 + $0x128] sm:$0xff] }
  0xc8   : > { %1305 = vmatmul.mubr.f32.gmra.mxu1 %v1183_v43  ;;  %v1215_v43 = vld [vmem:[%s2271_s9 + $0x110] sm:$0xff] }
  0xc9   : > { %1309 = vmatprep.mubr.f32.mxu1 %v1186_v1  ;;  %v1218_v1 = vld [vmem:[%s2271_s9 + $0x128] sm:$0xff] }
  0xca   : > { %1029 = vmatmul.mubr.f32.gmra.mxu0 %v904_v44  ;;  %v936_v44 = vld [vmem:[%s2262_s30 + $0x120] sm:$0xff] }
  0xcb   : > { %1033 = vmatprep.mubr.f32.mxu0 %v907_v33  ;;  %v939_v33 = vld [vmem:[%s2262_s30 + $0x138] sm:$0xff] }
  0xcc   : > { %1310 = vmatmul.mubr.f32.gmra.mxu1 %v1185_v14  ;;  %v1217_v14 = vld [vmem:[%s2271_s9 + $0x120] sm:$0xff] }
  0xcd   : > { %1314 = vmatprep.mubr.f32.mxu1 %v1188_v45  ;;  %v1220_v45 = vld [vmem:[%s2271_s9 + $0x138] sm:$0xff] }
  0xce   : > { %1034 = vmatmul.mubr.f32.gmra.mxu0 %v906_v46  ;;  %v938_v46 = vld [vmem:[%s2262_s30 + $0x130] sm:$0xff] }
  0xcf   : > { %1038 = vmatprep.mubr.f32.mxu0 %v909_v47  ;;  %v941_v47 = vld [vmem:[%s2262_s30 + $0x148] sm:$0xff] }
  0xd0   : > { %1315 = vmatmul.mubr.f32.gmra.mxu1 %v1187_v15 }
  0xd1   : > { %1319 = vmatprep.mubr.f32.mxu1 %v1190_v48  ;;  %v1219_v48 = vld [vmem:[%s2271_s9 + $0x130] sm:$0xff] }
  0xd2   : > { %1039 = vmatmul.mubr.f32.gmra.mxu0 %v908_v49  ;;  %v1222_v49 = vld [vmem:[%s2271_s9 + $0x148] sm:$0xff] }
  0xd3   : > { %1043 = vmatprep.mubr.f32.mxu0 %v911_v16 }
  0xd4   : > { %1320 = vmatmul.mubr.f32.gmra.mxu1 %v1189_v50 }
  0xd5   : > { %1324 = vmatprep.mubr.f32.mxu1 %v1192_v51  ;;  %v940_v51 = vld [vmem:[%s2262_s30 + $0x140] sm:$0xff] }
  0xd6   : > { %1044 = vmatmul.mubr.f32.gmra.mxu0 %v910_v52 }
  0xd7   : > { %1048 = vmatprep.mubr.f32.mxu0 %v913_v17  ;;  %v943_v17 = vld [vmem:[%s2262_s30 + $0x158] sm:$0xff] }
  0xd8   : > { %1325 = vmatmul.mubr.f32.gmra.mxu1 %v1191_v53 }
  0xd9   : > { %1329 = vmatprep.mubr.f32.mxu1 %v1194_v54 }
  0xda   : > { %1049 = vmatmul.mubr.f32.gmra.mxu0 %v912_v55  ;;  %v1221_v55 = vld [vmem:[%s2271_s9 + $0x140] sm:$0xff] }
  0xdb   : > { %1053 = vmatprep.mubr.f32.mxu0 %v915_v18  ;;  %v1224_v18 = vld [vmem:[%s2271_s9 + $0x158] sm:$0xff] }
  0xdc   : > { %1330 = vmatmul.mubr.f32.gmra.mxu1 %v1193_v56 }
  0xdd   : > { %1334 = vmatprep.mubr.f32.mxu1 %v1196_v19 }
  0xde   : > { %1054 = vmatmul.mubr.f32.gmra.mxu0 %v914_v57  ;;  %v942_v57 = vld [vmem:[%s2262_s30 + $0x150] sm:$0xff] }
  0xdf   : > { %1058 = vmatprep.mubr.f32.mxu0 %v917_v58 }
  0xe0   : > { %1335 = vmatmul.mubr.f32.gmra.mxu1 %v1195_v59  ;;  %v945_v59 = vld [vmem:[%s2262_s30 + $0x168] sm:$0xff] }
  0xe1   : > { %1339 = vmatprep.mubr.f32.mxu1 %v1198_v20 }
  0xe2   : > { %1059 = vmatmul.mubr.f32.gmra.mxu0 %v916_v60  ;;  %v1223_v60 = vld [vmem:[%s2271_s9 + $0x150] sm:$0xff] }
  0xe3   : > { %1063 = vmatprep.mubr.f32.mxu0 %v919_v61 }
  0xe4   : > { %1340 = vmatmul.mubr.f32.gmra.mxu1 %v1197_v21  ;;  %v1226_v21 = vld [vmem:[%s2271_s9 + $0x168] sm:$0xff] }
  0xe5   : > { %1344 = vmatprep.mubr.f32.mxu1 %v1200_v62 }
  0xe6   : > { %1064 = vmatmul.mubr.f32.gmra.mxu0 %v918_v63  ;;  %v944_v63 = vld [vmem:[%s2262_s30 + $0x160] sm:$0xff] }
  0xe7   : > { %1068 = vmatprep.mubr.f32.mxu0 %v921_v22 }
  0xe8   : > { %1345 = vmatmul.mubr.f32.gmra.mxu1 %v1199_v0 }
  0xe9   : > { %1349 = vmatprep.mubr.f32.mxu1 %v1202_v2  ;;  %v947_v2 = vld [vmem:[%s2262_s30 + $0x178] sm:$0xff] }
  0xea   : > { %1069 = vmatmul.mubr.f32.gmra.mxu0 %v920_v3 }
  0xeb   : > { %1073 = vmatprep.mubr.f32.mxu0 %v923_v23  ;;  %v1225_v23 = vld [vmem:[%s2271_s9 + $0x160] sm:$0xff] }
  0xec   : > { %1350 = vmatmul.mubr.f32.gmra.mxu1 %v1201_v4 }
  0xed   : > { %1354 = vmatprep.mubr.f32.mxu1 %v1204_v5  ;;  %v1228_v5 = vld [vmem:[%s2271_s9 + $0x178] sm:$0xff] }
  0xee   : > { %1074 = vmatmul.mubr.f32.gmra.mxu0 %v922_v6 }
  0xef   : > { %1078 = vmatprep.mubr.f32.mxu0 %v925_v24  ;;  %v946_v24 = vld [vmem:[%s2262_s30 + $0x170] sm:$0xff] }
  0xf0   : > { %1355 = vmatmul.mubr.f32.gmra.mxu1 %v1203_v7 }
  0xf1   : > { %1359 = vmatprep.mubr.f32.mxu1 %v1206_v25 }
  0xf2   : > { %1079 = vmatmul.mubr.f32.gmra.mxu0 %v924_v8  ;;  %v949_v8 = vld [vmem:[%s2262_s30 + $0x188] sm:$0xff] }
  0xf3   : > { %1083 = vmatprep.mubr.f32.mxu0 %v927_v9 }
  0xf4   : > { %1360 = vmatmul.mubr.f32.gmra.mxu1 %v1205_v32  ;;  %v1227_v32 = vld [vmem:[%s2271_s9 + $0x170] sm:$0xff] }
  0xf5   : > { %1364 = vmatprep.mubr.f32.mxu1 %v1208_v26  ;;  %v1230_v26 = vld [vmem:[%s2271_s9 + $0x188] sm:$0xff] }
  0xf6   : > { %1084 = vmatmul.mubr.f32.gmra.mxu0 %v926_v34 }
  0xf7   : > { %1088 = vmatprep.mubr.f32.mxu0 %v929_v35  ;;  %v948_v35 = vld [vmem:[%s2262_s30 + $0x180] sm:$0xff] }
  0xf8   : > { %1365 = vmatmul.mubr.f32.gmra.mxu1 %v1207_v27 }
  0xf9   : > { %1369 = vmatprep.mubr.f32.mxu1 %v1210_v10  ;;  %v951_v10 = vld [vmem:[%s2262_s30 + $0x198] sm:$0xff] }
  0xfa   : > { %1089 = vmatmul.mubr.f32.gmra.mxu0 %v928_v36 }
  0xfb   : > { %1093 = vmatprep.mubr.f32.mxu0 %v931_v28 }
  0xfc   : > { %1370 = vmatmul.mubr.f32.gmra.mxu1 %v1209_v37  ;;  %v1229_v37 = vld [vmem:[%s2271_s9 + $0x180] sm:$0xff] }
  0xfd   : > { %1374 = vmatprep.mubr.f32.mxu1 %v1212_v38 }
  0xfe   : > { %1094 = vmatmul.mubr.f32.gmra.mxu0 %v930_v11  ;;  %v1232_v11 = vld [vmem:[%s2271_s9 + $0x198] sm:$0xff] }
  0xff   : > { %1098 = vmatprep.mubr.f32.mxu0 %v933_v29 }
 0x100   : > { %1375 = vmatmul.mubr.f32.gmra.mxu1 %v1211_v39  ;;  %v950_v39 = vld [vmem:[%s2262_s30 + $0x190] sm:$0xff] }
 0x101   : > { %1379 = vmatprep.mubr.f32.mxu1 %v1214_v30  ;;  %v953_v30 = vld [vmem:[%s2262_s30 + $0x1a8] sm:$0xff] }
 0x102   : > { %1099 = vmatmul.mubr.f32.gmra.mxu0 %v932_v40 }
 0x103   : > { %1103 = vmatprep.mubr.f32.mxu0 %v935_v12 }
 0x104   : > { %1380 = vmatmul.mubr.f32.gmra.mxu1 %v1213_v41  ;;  %v1231_v41 = vld [vmem:[%s2271_s9 + $0x190] sm:$0xff] }
 0x105   : > { %1384 = vmatprep.mubr.f32.mxu1 %v1216_v42 }
 0x106   : > { %1104 = vmatmul.mubr.f32.gmra.mxu0 %v934_v31  ;;  %v1234_v31 = vld [vmem:[%s2271_s9 + $0x1a8] sm:$0xff] }
 0x107   : > { %1108 = vmatprep.mubr.f32.mxu0 %v937_v13 }
 0x108   : > { %1385 = vmatmul.mubr.f32.gmra.mxu1 %v1215_v43 }
 0x109   : > { %1389 = vmatprep.mubr.f32.mxu1 %v1218_v1  ;;  %v952_v1 = vld [vmem:[%s2262_s30 + $0x1a0] sm:$0xff] }
 0x10a   : > { %1109 = vmatmul.mubr.f32.gmra.mxu0 %v936_v44 }
 0x10b   : > { %1113 = vmatprep.mubr.f32.mxu0 %v939_v33 }
 0x10c   : > { %1390 = vmatmul.mubr.f32.gmra.mxu1 %v1217_v14  ;;  %v2359_v15 = vpop.f32.mrf.mxu0  ;;  %v1233_v14 = vld [vmem:[%s2271_s9 + $0x1a0] sm:$0xff] }
 0x10d   : > { %1394 = vmatprep.mubr.f32.mxu1 %v1220_v45 }
 0x10e   : > { %1114 = vmatmul.mubr.f32.gmra.mxu0 %v938_v46  ;;  %v2363_v16 = vpop.f32.mrf.mxu1  ;;  %v487_v50 = vpop.f32.mrf.mxu0 }
 0x10f   : > { %1118 = vmatprep.mubr.f32.mxu0 %v941_v47  ;;  %v873_v52 = vmax.f32 %v2359_v15, %v2363_v16 }
 0x110   : > { %1395 = vmatmul.mubr.f32.gmra.mxu1 %v1219_v48  ;;  %v741_v53 = vpop.f32.mrf.mxu1  ;;  %v2369_v54 = vpop.f32.mrf.mxu0 }
 0x111   : > { %1399 = vmatprep.mubr.f32.mxu1 %v1222_v49 }
 0x112   : > { %1119 = vmatmul.mubr.f32.gmra.mxu0 %v940_v51  ;;  %v2373_v56 = vpop.f32.mrf.mxu1  ;;  %v492_v19 = vpop.f32.mrf.mxu0 }
 0x113   : > { %1123 = vmatprep.mubr.f32.mxu0 %v943_v17 }
 0x114   : > { %1400 = vmatmul.mubr.f32.gmra.mxu1 %v1221_v55  ;;  %v746_v20 = vpop.f32.mrf.mxu1 }
 0x115   : > { %1404 = vmatprep.mubr.f32.mxu1 %v1224_v18  ;;  %v2380_v61 = vpop.f32.mrf.mxu0 }
 0x116   : > { %1124 = vmatmul.mubr.f32.gmra.mxu0 %v942_v57  ;;  %v2383_v62 = vpop.f32.mrf.mxu1 }
 0x117   : > { %1128 = vmatprep.mubr.f32.mxu0 %v945_v59  ;;  %v497_v0 = vpop.f32.mrf.mxu0 }
 0x118   : > { %1405 = vmatmul.mubr.f32.gmra.mxu1 %v1223_v60  ;;  %v751_v3 = vpop.f32.mrf.mxu1 }
 0x119   : > { %1409 = vmatprep.mubr.f32.mxu1 %v1226_v21  ;;  %v2390_v4 = vpop.f32.mrf.mxu0 }
 0x11a   : > { %1129 = vmatmul.mubr.f32.gmra.mxu0 %v944_v63  ;;  %v2393_v6 = vpop.f32.mrf.mxu1 }
 0x11b   : > { %1133 = vmatprep.mubr.f32.mxu0 %v947_v2  ;;  %v502_v25 = vpop.f32.mrf.mxu0 }
 0x11c   : > { %1410 = vmatmul.mubr.f32.gmra.mxu1 %v1225_v23  ;;  %v756_v9 = vpop.f32.mrf.mxu1 }
 0x11d   : > { %1414 = vmatprep.mubr.f32.mxu1 %v1228_v5 }
 0x11e   : > { %1134 = vmatmul.mubr.f32.gmra.mxu0 %v946_v24  ;;  %v2401_v34 = vpop.f32.mrf.mxu0 }
 0x11f   : > { %1138 = vmatprep.mubr.f32.mxu0 %v949_v8  ;;  %v2404_v27 = vpop.f32.mrf.mxu1 }
 0x120   : > { %1415 = vmatmul.mubr.f32.gmra.mxu1 %v1227_v32  ;;  %v507_v28 = vpop.f32.mrf.mxu0 }
 0x121   : > { %1419 = vmatprep.mubr.f32.mxu1 %v1230_v26  ;;  %v761_v38 = vpop.f32.mrf.mxu1 }
 0x122   : > { %1139 = vmatmul.mubr.f32.gmra.mxu0 %v948_v35  ;;  %v2411_v29 = vpop.f32.mrf.mxu0 }
 0x123   : > { %1143 = vmatprep.mubr.f32.mxu0 %v951_v10 }
 0x124   : > { %1420 = vmatmul.mubr.f32.gmra.mxu1 %v1229_v37  ;;  %v2415_v40 = vpop.f32.mrf.mxu1  ;;  %v512_v12 = vpop.f32.mrf.mxu0 }
 0x125   : > { %1424 = vmatprep.mubr.f32.mxu1 %v1232_v11 }
 0x126   : > { %1144 = vmatmul.mubr.f32.gmra.mxu0 %v950_v39  ;;  %v766_v13 = vpop.f32.mrf.mxu1  ;;  %v2421_v43 = vpop.f32.mrf.mxu0 }
 0x127   : > { %1148 = vmatprep.mubr.f32.mxu0 %v953_v30 }
 0x128   : > { %1425 = vmatmul.mubr.f32.gmra.mxu1 %v1231_v41  ;;  %v2424_v44 = vpop.f32.mrf.mxu1  ;;  %v517_v33 = vpop.f32.mrf.mxu0 }
 0x129   : > { %1429 = vmatprep.mubr.f32.mxu1 %v1234_v31 }
 0x12a   : > { %1149 = vmatmul.mubr.f32.gmra.mxu0 %v952_v1  ;;  %v771_v46 = vpop.f32.mrf.mxu1 }
 0x12b   : > { %v2429_v47 = vpop.f32.mrf.mxu0 }
 0x12c   : > { %1430 = vmatmul.mubr.f32.gmra.mxu1 %v1233_v14  ;;  %v2431_v48 = vpop.f32.mrf.mxu1 }
 0x12d   : > { %v522_v50 = vpop.f32.mrf.mxu0 }
 0x12e   : > { %v776_v51 = vpop.f32.mrf.mxu1 }
 0x12f   : > { %v2435_v17 = vpop.f32.mrf.mxu0 }
 0x130   : > { %v2437_v53 = vpop.f32.mrf.mxu1 }
 0x131   : > { %v527_v18 = vpop.f32.mrf.mxu0 }
 0x132   : > { %v781_v19 = vpop.f32.mrf.mxu1 }
 0x134   : > { %v2441_v57 = vpop.f32.mrf.mxu0 }
 0x135   : > { %v2443_v59 = vpop.f32.mrf.mxu1 }
 0x136   : > { %v532_v60 = vpop.f32.mrf.mxu0 }
 0x137   : > { %v786_v21 = vpop.f32.mrf.mxu1 }
 0x138   : > { %v2447_v63 = vpop.f32.mrf.mxu0 }
 0x139   : > { %v2449_v0 = vpop.f32.mrf.mxu1 }
 0x13a   : > { %v537_v3 = vpop.f32.mrf.mxu0 }
 0x13b   : > { %v791_v23 = vpop.f32.mrf.mxu1 }
 0x13c   : > { %v2453_v5 = vpop.f32.mrf.mxu0 }
 0x13e   : > { %v2455_v24 = vpop.f32.mrf.mxu1  ;;  %v542_v25 = vpop.f32.mrf.mxu0 }
 0x140   : > { %v796_v9 = vpop.f32.mrf.mxu1  ;;  %v2459_v32 = vpop.f32.mrf.mxu0 }
 0x142   : > { %v2461_v26 = vpop.f32.mrf.mxu1  ;;  %v547_v35 = vpop.f32.mrf.mxu0 }
 0x144   : > { %v801_v28 = vpop.f32.mrf.mxu1 }
 0x145   : > { %v2465_v37 = vpop.f32.mrf.mxu0 }
 0x146   : > { %v2467_v38 = vpop.f32.mrf.mxu1 }
 0x147   : > { %v552_v39 = vpop.f32.mrf.mxu0 }
 0x148   : > { %v806_v30 = vpop.f32.mrf.mxu1 }
 0x14a   : > { %v2471_v12 = vpop.f32.mrf.mxu0 }
 0x14b   : > { %v2473_v41 = vpop.f32.mrf.mxu1 }
 0x14c   : > { %v557_v13 = vpop.f32.mrf.mxu0 }
 0x14d   : > { %v811_v1 = vpop.f32.mrf.mxu1 }
 0x14e   : > { %v2477_v33 = vpop.f32.mrf.mxu0 }
 0x14f   : > { %v2479_v14 = vpop.f32.mrf.mxu1 }
 0x150   : > { %v562_v50 = vpop.f32.mrf.mxu0 }
 0x151   : > { %v816_v51 = vpop.f32.mrf.mxu1 }
 0x152   : > { %v2483_v18 = vpop.f32.mrf.mxu0 }
 0x154   : > { %v2485_v19 = vpop.f32.mrf.mxu1  ;;  %v567_v60 = vpop.f32.mrf.mxu0 }
 0x156   : > { %v821_v3 = vpop.f32.mrf.mxu1  ;;  %v2489_v23 = vpop.f32.mrf.mxu0 }
 0x158   : > { %v2491_v25 = vpop.f32.mrf.mxu1  ;;  %v572_v9 = vpop.f32.mrf.mxu0 }
 0x15a   : > { %v826_v28 = vpop.f32.mrf.mxu1 }
 0x15b   : > { %v2495_v39 = vpop.f32.mrf.mxu0 }
 0x15c   : > { %v2497_v30 = vpop.f32.mrf.mxu1 }
 0x15d   : > { %v577_v1 = vpop.f32.mrf.mxu0 }
 0x15e   : > { %v831_v50 = vpop.f32.mrf.mxu1 }
 0x15f   : > { %v2501_v51 = vpop.f32.mrf.mxu0 }
 0x160   : > { %v2503_v60 = vpop.f32.mrf.mxu1 }
 0x161   : > { %v582_v9 = vpop.f32.mrf.mxu0 }
 0x162   : > { %v836_v21 = vpop.f32.mrf.mxu1 }
 0x164   : > { %v2507_v35 = vpop.f32.mrf.mxu0 }
 0x165   : > { %v2509_v28 = vpop.f32.mrf.mxu1 }
 0x166   : > { %v587_v31 = vpop.f32.mrf.mxu0 }
 0x167   : > { %v841_v13 = vpop.f32.mrf.mxu1 }
 0x168   : > { %v2513_v1 = vpop.f32.mrf.mxu0 }
 0x16a   : > { %v2515_v50 = vpop.f32.mrf.mxu1  ;;  %v592_v11 = vpop.f32.mrf.mxu0 }
 0x16c   : > { %v846_v3 = vpop.f32.mrf.mxu1  ;;  %v2519_v9 = vpop.f32.mrf.mxu0 }
 0x16e   : > { %v2521_v21 = vpop.f32.mrf.mxu1  ;;  %v597_v8 = vpop.f32.mrf.mxu0 }
 0x170   : > { %v851_v46 = vpop.f32.mrf.mxu1  ;;  %v2525_v31 = vpop.f32.mrf.mxu0 }
 0x172   : > { %v2527_v13 = vpop.f32.mrf.mxu1  ;;  %v602_v20 = vpop.f32.mrf.mxu0 }
 0x174   : > { %v856_v55 = vpop.f32.mrf.mxu1 }
 0x175   : > { %v2531_v10 = vpop.f32.mrf.mxu0 }
 0x176   : > { %v2533_v3 = vpop.f32.mrf.mxu1 }
 0x177   : > { %v607_v49 = vpop.f32.mrf.mxu0 }
 0x178   : > { %v861_v45 = vpop.f32.mrf.mxu1 }
 0x17a   : > { %v2537_v46 = vpop.f32.mrf.mxu0 }
 0x17b   : > { %2709 = vst [vmem:[#allocation2_spill] sm:$0xff] %v2537_v46  ;;  %v2539_v2 = vpop.f32.mrf.mxu1 }
 0x17c   : > { %2710 = vst [vmem:[#allocation3_spill] sm:$0xff] %v2539_v2  ;;  %v612_v42 = vpop.f32.mrf.mxu0 }
 0x17d   : > { %v866_v11 = vpop.f32.mrf.mxu1  ;;  %v2555_v42 = vld [vmem:[%s2703_s5] ss:$0 sm:$0xff] }
 0x17e   : > { %v2543_v55 = vpop.f32.mrf.mxu0 }
 0x17f   : > { %2711 = vst [vmem:[#allocation4_spill] sm:$0xff] %v2543_v55  ;;  %v2545_v36 = vpop.f32.mrf.mxu1 }
 0x180   : > { %2712 = vst [vmem:[#allocation5_spill] sm:$0xff] %v2545_v36  ;;  %v617_v8 = vpop.f32.mrf.mxu0 }
 0x181   : > { %v871_v49 = vpop.f32.mrf.mxu1  ;;  %v2713_v8 = vmax.f32 %v2369_v54, %v2373_v56  ;;  %v2714_v54 = vmax.f32 %v2380_v61, %v2383_v62 }
 0x182   : > { %v1020_v45 = vpop.f32.mrf.mxu0 }
 0x183   : > { %v1154_v22 = vmax.f32 %v873_v52, %v1020_v45 }
 0x184   : > { %v1301_v58 = vpop.f32.mrf.mxu1  ;;  %v1022_v11 = vpop.f32.mrf.mxu0 }
 0x185   : > { %v1435_v20 = vmax.f32 %v1154_v22, %v1301_v58 }
 0x186   : > { %v1303_v2 = vpop.f32.mrf.mxu1  ;;  %v1025_v46 = vpop.f32.mrf.mxu0 }
 0x187   : > { %v1469_v7 = vadd.f32 %v2555_v42, %v1435_v20  ;;  %v1155_v49 = vmax.f32 %v2713_v8, %v1025_v46 }
 0x188   : > { %v1306_v15 = vpop.f32.mrf.mxu1  ;;  %v1027_v16 = vpop.f32.mrf.mxu0 }
 0x189   : > { %v1496_v52 = vmax.f32 %v1469_v7, 0.0  ;;  %v1436_v45 = vmax.f32 %v1155_v49, %v1306_v15  ;;  %v2715_v49 = vmax.f32 %v2390_v4, %v2393_v6 }
 0x18a   : > { %v1308_v58 = vpop.f32.mrf.mxu1  ;;  %v1030_v22 = vpop.f32.mrf.mxu0 }
 0x18b   : > { %1523 = vst [vmem:[%s2565_s15] sm:$0xff] %v1496_v52  ;;  %v1470_v2 = vadd.f32 %v2555_v42, %v1436_v45  ;;  %v1156_v56 = vmax.f32 %v2714_v54, %v1030_v22 }
 0x18c   : > { %v1311_v46 = vpop.f32.mrf.mxu1  ;;  %v1032_v20 = vpop.f32.mrf.mxu0 }
 0x18d   : > { %v1497_v11 = vmax.f32 %v1470_v2, 0.0  ;;  %v1437_v8 = vmax.f32 %v1156_v56, %v1311_v46 }
 0x18e   : > { %v1313_v36 = vpop.f32.mrf.mxu1  ;;  %v1035_v55 = vpop.f32.mrf.mxu0 }
 0x18f   : > { %1524 = vst [vmem:[%s2565_s15 + $0x8] sm:$0xff] %v1497_v11  ;;  %v1471_v7 = vadd.f32 %v2555_v42, %v1437_v8  ;;  %v1157_v15 = vmax.f32 %v2715_v49, %v1035_v55  ;;  %v2716_v36 = vmax.f32 %v2401_v34, %v2404_v27  ;;  %v2717_v11 = vmax.f32 %v2411_v29, %v2415_v40 }
 0x190   : > { %v1316_v16 = vpop.f32.mrf.mxu1  ;;  %v1037_v52 = vpop.f32.mrf.mxu0 }
 0x191   : > { %v1498_v45 = vmax.f32 %v1471_v7, 0.0  ;;  %v1438_v61 = vmax.f32 %v1157_v15, %v1316_v16 }
 0x192   : > { %v1318_v62 = vpop.f32.mrf.mxu1  ;;  %v1040_v58 = vpop.f32.mrf.mxu0 }
 0x193   : > { %1525 = vst [vmem:[%s2565_s15 + $0x10] sm:$0xff] %v1498_v45  ;;  %v1472_v22 = vadd.f32 %v2555_v42, %v1438_v61  ;;  %v1158_v2 = vmax.f32 %v2716_v36, %v1040_v58  ;;  %v2718_v45 = vmax.f32 %v2421_v43, %v2424_v44 }
 0x194   : > { %v1321_v54 = vpop.f32.mrf.mxu1  ;;  %v1042_v56 = vpop.f32.mrf.mxu0 }
 0x195   : > { %v1499_v46 = vmax.f32 %v1472_v22, 0.0  ;;  %v1439_v4 = vmax.f32 %v1158_v2, %v1321_v54  ;;  %v2719_v54 = vmax.f32 %v2429_v47, %v2431_v48 }
 0x196   : > { %v1323_v6 = vpop.f32.mrf.mxu1  ;;  %v1045_v55 = vpop.f32.mrf.mxu0 }
 0x197   : > { %1526 = vst [vmem:[%s2565_s15 + $0x18] sm:$0xff] %v1499_v46  ;;  %v1473_v20 = vadd.f32 %v2555_v42, %v1439_v4  ;;  %v1159_v8 = vmax.f32 %v2717_v11, %v1045_v55  ;;  %v2720_v11 = vmax.f32 %v2435_v17, %v2437_v53 }
 0x198   : > { %v1326_v7 = vpop.f32.mrf.mxu1  ;;  %v1047_v49 = vpop.f32.mrf.mxu0 }
 0x199   : > { %v1500_v15 = vmax.f32 %v1473_v20, 0.0  ;;  %v1440_v34 = vmax.f32 %v1159_v8, %v1326_v7 }
 0x19a   : > { %v1328_v27 = vpop.f32.mrf.mxu1  ;;  %v1050_v16 = vpop.f32.mrf.mxu0 }
 0x19b   : > { %1527 = vst [vmem:[%s2565_s15 + $0x20] sm:$0xff] %v1500_v15  ;;  %v1474_v52 = vadd.f32 %v2555_v42, %v1440_v34  ;;  %v1160_v61 = vmax.f32 %v2718_v45, %v1050_v16  ;;  %v2721_v16 = vmax.f32 %v2441_v57, %v2443_v59 }
 0x19c   : > { %v1331_v62 = vpop.f32.mrf.mxu1  ;;  %v1052_v58 = vpop.f32.mrf.mxu0 }
 0x19d   : > { %v1501_v22 = vmax.f32 %v1474_v52, 0.0  ;;  %v1441_v29 = vmax.f32 %v1160_v61, %v1331_v62 }
 0x19e   : > { %v1333_v40 = vpop.f32.mrf.mxu1  ;;  %v1055_v36 = vpop.f32.mrf.mxu0 }
 0x19f   : > { %1528 = vst [vmem:[%s2565_s15 + $0x28] sm:$0xff] %v1501_v22  ;;  %v1475_v2 = vadd.f32 %v2555_v42, %v1441_v29  ;;  %v1161_v56 = vmax.f32 %v2719_v54, %v1055_v36  ;;  %v2722_v29 = vmax.f32 %v2447_v63, %v2449_v0 }
 0x1a0   : > { %v1336_v46 = vpop.f32.mrf.mxu1  ;;  %v1057_v4 = vpop.f32.mrf.mxu0 }
 0x1a1   : > { %v1502_v6 = vmax.f32 %v1475_v2, 0.0  ;;  %v1442_v43 = vmax.f32 %v1161_v56, %v1336_v46  ;;  %v2723_v4 = vmax.f32 %v2453_v5, %v2455_v24 }
 0x1a2   : > { %v1338_v44 = vpop.f32.mrf.mxu1  ;;  %v1060_v55 = vpop.f32.mrf.mxu0 }
 0x1a3   : > { %1529 = vst [vmem:[%s2565_s15 + $0x30] sm:$0xff] %v1502_v6  ;;  %v1476_v20 = vadd.f32 %v2555_v42, %v1442_v43  ;;  %v1162_v8 = vmax.f32 %v2720_v11, %v1060_v55 }
 0x1a4   : > { %v1341_v7 = vpop.f32.mrf.mxu1  ;;  %v1062_v49 = vpop.f32.mrf.mxu0 }
 0x1a5   : > { %v1503_v15 = vmax.f32 %v1476_v20, 0.0  ;;  %v1443_v47 = vmax.f32 %v1162_v8, %v1341_v7  ;;  %v2724_v8 = vmax.f32 %v2459_v32, %v2461_v26 }
 0x1a6   : > { %v1343_v48 = vpop.f32.mrf.mxu1  ;;  %v1065_v34 = vpop.f32.mrf.mxu0 }
 0x1a7   : > { %1530 = vst [vmem:[%s2565_s15 + $0x38] sm:$0xff] %v1503_v15  ;;  %v1477_v27 = vadd.f32 %v2555_v42, %v1443_v47  ;;  %v1163_v52 = vmax.f32 %v2721_v16, %v1065_v34 }
 0x1a8   : > { %v1346_v45 = vpop.f32.mrf.mxu1  ;;  %v1067_v61 = vpop.f32.mrf.mxu0 }
 0x1a9   : > { %v1504_v62 = vmax.f32 %v1477_v27, 0.0  ;;  %v1444_v17 = vmax.f32 %v1163_v52, %v1346_v45  ;;  %v2725_v27 = vmax.f32 %v2465_v37, %v2467_v38 }
 0x1aa   : > { %v1348_v53 = vpop.f32.mrf.mxu1  ;;  %v1070_v58 = vpop.f32.mrf.mxu0 }
 0x1ab   : > { %1531 = vst [vmem:[%s2565_s15 + $0x40] sm:$0xff] %v1504_v62  ;;  %v1478_v22 = vadd.f32 %v2555_v42, %v1444_v17  ;;  %v1164_v40 = vmax.f32 %v2722_v29, %v1070_v58  ;;  %v2726_v53 = vmax.f32 %v2471_v12, %v2473_v41 }
 0x1ac   : > { %v1351_v36 = vpop.f32.mrf.mxu1  ;;  %v1072_v2 = vpop.f32.mrf.mxu0 }
 0x1ad   : > { %v1505_v54 = vmax.f32 %v1478_v22, 0.0  ;;  %v1445_v57 = vmax.f32 %v1164_v40, %v1351_v36 }
 0x1ae   : > { %v1353_v59 = vpop.f32.mrf.mxu1  ;;  %v1075_v56 = vpop.f32.mrf.mxu0 }
 0x1af   : > { %1532 = vst [vmem:[%s2565_s15 + $0x48] sm:$0xff] %v1505_v54  ;;  %v1479_v46 = vadd.f32 %v2555_v42, %v1445_v57  ;;  %v1165_v6 = vmax.f32 %v2723_v4, %v1075_v56  ;;  %v2727_v54 = vmax.f32 %v2477_v33, %v2479_v14 }
 0x1b0   : > { %v1356_v43 = vpop.f32.mrf.mxu1  ;;  %v1077_v44 = vpop.f32.mrf.mxu0 }
 0x1b1   : > { %v1506_v55 = vmax.f32 %v1479_v46, 0.0  ;;  %v1446_v63 = vmax.f32 %v1165_v6, %v1356_v43  ;;  %v2728_v43 = vmax.f32 %v2483_v18, %v2485_v19 }
 0x1b2   : > { %v1358_v0 = vpop.f32.mrf.mxu1  ;;  %v1080_v20 = vpop.f32.mrf.mxu0 }
 0x1b3   : > { %1533 = vst [vmem:[%s2565_s15 + $0x50] sm:$0xff] %v1506_v55  ;;  %v1480_v11 = vadd.f32 %v2555_v42, %v1446_v63  ;;  %v1166_v7 = vmax.f32 %v2724_v8, %v1080_v20  ;;  %v2729_v8 = vmax.f32 %v2489_v23, %v2491_v25 }
 0x1b4   : > { %v1361_v49 = vpop.f32.mrf.mxu1  ;;  %v1082_v15 = vpop.f32.mrf.mxu0 }
 0x1b5   : > { %v1507_v47 = vmax.f32 %v1480_v11, 0.0  ;;  %v1447_v5 = vmax.f32 %v1166_v7, %v1361_v49 }
 0x1b6   : > { %v1363_v24 = vpop.f32.mrf.mxu1  ;;  %v1085_v48 = vpop.f32.mrf.mxu0 }
 0x1b7   : > { %1534 = vst [vmem:[%s2565_s15 + $0x58] sm:$0xff] %v1507_v47  ;;  %v1481_v34 = vadd.f32 %v2555_v42, %v1447_v5  ;;  %v1167_v16 = vmax.f32 %v2725_v27, %v1085_v48  ;;  %v2730_v48 = vmax.f32 %v2495_v39, %v2497_v30 }
 0x1b8   : > { %v1366_v52 = vpop.f32.mrf.mxu1  ;;  %v1087_v45 = vpop.f32.mrf.mxu0 }
 0x1b9   : > { %v1508_v61 = vmax.f32 %v1481_v34, 0.0  ;;  %v1448_v32 = vmax.f32 %v1167_v16, %v1366_v52 }
 0x1ba   : > { %v1368_v26 = vpop.f32.mrf.mxu1  ;;  %v1090_v62 = vpop.f32.mrf.mxu0 }
 0x1bb   : > { %1535 = vst [vmem:[%s2565_s15 + $0x60] sm:$0xff] %v1508_v61  ;;  %v1482_v17 = vadd.f32 %v2555_v42, %v1448_v32  ;;  %v1168_v58 = vmax.f32 %v2726_v53, %v1090_v62  ;;  %v2731_v32 = vmax.f32 %v2501_v51, %v2503_v60 }
 0x1bc   : > { %v1371_v22 = vpop.f32.mrf.mxu1  ;;  %v1092_v29 = vpop.f32.mrf.mxu0 }
 0x1bd   : > { %v1509_v40 = vmax.f32 %v1482_v17, 0.0  ;;  %v1449_v37 = vmax.f32 %v1168_v58, %v1371_v22  ;;  %v2732_v29 = vmax.f32 %v2507_v35, %v2509_v28 }
 0x1be   : > { %v1373_v38 = vpop.f32.mrf.mxu1  ;;  %v1095_v36 = vpop.f32.mrf.mxu0 }
 0x1bf   : > { %1536 = vst [vmem:[%s2565_s15 + $0x68] sm:$0xff] %v1509_v40  ;;  %v1483_v2 = vadd.f32 %v2555_v42, %v1449_v37  ;;  %v1169_v57 = vmax.f32 %v2727_v54, %v1095_v36 }
 0x1c0   : > { %v1376_v59 = vpop.f32.mrf.mxu1  ;;  %v1097_v56 = vpop.f32.mrf.mxu0 }
 0x1c1   : > { %v1510_v46 = vmax.f32 %v1483_v2, 0.0  ;;  %v1450_v12 = vmax.f32 %v1169_v57, %v1376_v59  ;;  %v2733_v57 = vmax.f32 %v2513_v1, %v2515_v50 }
 0x1c2   : > { %v1378_v41 = vpop.f32.mrf.mxu1  ;;  %v1100_v4 = vpop.f32.mrf.mxu0 }
 0x1c3   : > { %1537 = vst [vmem:[%s2565_s15 + $0x70] sm:$0xff] %v1510_v46  ;;  %v1484_v6 = vadd.f32 %v2555_v42, %v1450_v12  ;;  %v1170_v44 = vmax.f32 %v2728_v43, %v1100_v4 }
 0x1c4   : > { %v1381_v55 = vpop.f32.mrf.mxu1  ;;  %v1102_v63 = vpop.f32.mrf.mxu0 }
 0x1c5   : > { %v1511_v0 = vmax.f32 %v1484_v6, 0.0  ;;  %v1451_v33 = vmax.f32 %v1170_v44, %v1381_v55  ;;  %v2734_v6 = vmax.f32 %v2519_v9, %v2521_v21 }
 0x1c6   : > { %v1383_v14 = vpop.f32.mrf.mxu1  ;;  %v1105_v20 = vpop.f32.mrf.mxu0 }
 0x1c7   : > { %1538 = vst [vmem:[%s2565_s15 + $0x78] sm:$0xff] %v1511_v0  ;;  %v1485_v11 = vadd.f32 %v2555_v42, %v1451_v33  ;;  %v1171_v7 = vmax.f32 %v2729_v8, %v1105_v20  ;;  %v2735_v14 = vmax.f32 %v2525_v31, %v2527_v13 }
 0x1c8   : > { %v1386_v49 = vpop.f32.mrf.mxu1  ;;  %v1107_v15 = vpop.f32.mrf.mxu0 }
 0x1c9   : > { %v1512_v47 = vmax.f32 %v1485_v11, 0.0  ;;  %v1452_v18 = vmax.f32 %v1171_v7, %v1386_v49 }
 0x1ca   : > { %v1388_v19 = vpop.f32.mrf.mxu1  ;;  %v1110_v5 = vpop.f32.mrf.mxu0 }
 0x1cb   : > { %1539 = vst [vmem:[%s2565_s15 + $0x80] sm:$0xff] %v1512_v47  ;;  %v1486_v24 = vadd.f32 %v2555_v42, %v1452_v18  ;;  %v1172_v34 = vmax.f32 %v2730_v48, %v1110_v5  ;;  %v2736_v47 = vmax.f32 %v2531_v10, %v2533_v3 }
 0x1cc   : > { %v1391_v27 = vpop.f32.mrf.mxu1  ;;  %v1112_v16 = vpop.f32.mrf.mxu0 }
 0x1cd   : > { %v1513_v52 = vmax.f32 %v1486_v24, 0.0  ;;  %v1453_v23 = vmax.f32 %v1172_v34, %v1391_v27  ;;  %v2737_v27 = vld [vmem:[#allocation2_spill] sm:$0xff]  ;;  %v2738_v16 = vld [vmem:[#allocation3_spill] sm:$0xff] }
 0x1ce   : > { %v1393_v25 = vpop.f32.mrf.mxu1  ;;  %v1115_v45 = vpop.f32.mrf.mxu0 }
 0x1cf   : > { %1540 = vst [vmem:[%s2565_s15 + $0x88] sm:$0xff] %v1513_v52  ;;  %v1487_v61 = vadd.f32 %v2555_v42, %v1453_v23  ;;  %v1173_v26 = vmax.f32 %v2731_v32, %v1115_v45  ;;  %v2739_v52 = vmax.f32 %v2737_v27, %v2738_v16 }
 0x1d0   : > { %v1396_v62 = vpop.f32.mrf.mxu1  ;;  %v1117_v17 = vpop.f32.mrf.mxu0 }
 0x1d1   : > { %v1514_v53 = vmax.f32 %v1487_v61, 0.0  ;;  %v1454_v39 = vmax.f32 %v1173_v26, %v1396_v62  ;;  %v2740_v62 = vld [vmem:[#allocation4_spill] sm:$0xff]  ;;  %v2741_v17 = vld [vmem:[#allocation5_spill] sm:$0xff] }
 0x1d2   : > { %v1398_v30 = vpop.f32.mrf.mxu1  ;;  %v1120_v58 = vpop.f32.mrf.mxu0 }
 0x1d3   : > { %1541 = vst [vmem:[%s2565_s15 + $0x90] sm:$0xff] %v1514_v53  ;;  %v1488_v22 = vadd.f32 %v2555_v42, %v1454_v39  ;;  %v1174_v40 = vmax.f32 %v2732_v29, %v1120_v58  ;;  %v2742_v53 = vmax.f32 %v2740_v62, %v2741_v17 }
 0x1d4   : > { %v1401_v37 = vpop.f32.mrf.mxu1  ;;  %v1122_v38 = vpop.f32.mrf.mxu0 }
 0x1d5   : > { %v1515_v36 = vmax.f32 %v1488_v22, 0.0  ;;  %v1455_v51 = vmax.f32 %v1174_v40, %v1401_v37 }
 0x1d6   : > { %v1403_v60 = vpop.f32.mrf.mxu1  ;;  %v1125_v2 = vpop.f32.mrf.mxu0 }
 0x1d7   : > { %1542 = vst [vmem:[%s2565_s15 + $0x98] sm:$0xff] %v1515_v36  ;;  %v1489_v54 = vadd.f32 %v2555_v42, %v1455_v51  ;;  %v1175_v59 = vmax.f32 %v2733_v57, %v1125_v2 }
 0x1d8   : > { %v1406_v56 = vpop.f32.mrf.mxu1  ;;  %v1127_v46 = vpop.f32.mrf.mxu0 }
 0x1d9   : > { %v1516_v12 = vmax.f32 %v1489_v54, 0.0  ;;  %v1456_v35 = vmax.f32 %v1175_v59, %v1406_v56 }
 0x1da   : > { %v1408_v28 = vpop.f32.mrf.mxu1  ;;  %v1130_v41 = vpop.f32.mrf.mxu0 }
 0x1db   : > { %1543 = vst [vmem:[%s2565_s15 + $0xa0] sm:$0xff] %v1516_v12  ;;  %v1490_v4 = vadd.f32 %v2555_v42, %v1456_v35  ;;  %v1176_v43 = vmax.f32 %v2734_v6, %v1130_v41 }
 0x1dc   : > { %v1411_v44 = vpop.f32.mrf.mxu1  ;;  %v1132_v55 = vpop.f32.mrf.mxu0 }
 0x1dd   : > { %v1517_v63 = vmax.f32 %v1490_v4, 0.0  ;;  %v1457_v1 = vmax.f32 %v1176_v43, %v1411_v44 }
 0x1de   : > { %v1413_v50 = vpop.f32.mrf.mxu1  ;;  %v1135_v0 = vpop.f32.mrf.mxu0 }
 0x1df   : > { %1544 = vst [vmem:[%s2565_s15 + $0xa8] sm:$0xff] %v1517_v63  ;;  %v1491_v33 = vadd.f32 %v2555_v42, %v1457_v1  ;;  %v1177_v20 = vmax.f32 %v2735_v14, %v1135_v0 }
 0x1e0   : > { %v1416_v11 = vpop.f32.mrf.mxu1  ;;  %v1137_v8 = vpop.f32.mrf.mxu0 }
 0x1e1   : > { %v1518_v7 = vmax.f32 %v1491_v33, 0.0  ;;  %v1458_v9 = vmax.f32 %v1177_v20, %v1416_v11 }
 0x1e2   : > { %v1418_v21 = vpop.f32.mrf.mxu1  ;;  %v1140_v49 = vpop.f32.mrf.mxu0 }
 0x1e3   : > { %1545 = vst [vmem:[%s2565_s15 + $0xb0] sm:$0xff] %v1518_v7  ;;  %v1492_v15 = vadd.f32 %v2555_v42, %v1458_v9  ;;  %v1178_v18 = vmax.f32 %v2736_v47, %v1140_v49 }
 0x1e4   : > { %v1421_v19 = vpop.f32.mrf.mxu1  ;;  %v1142_v5 = vpop.f32.mrf.mxu0 }
 0x1e5   : > { %v1519_v24 = vmax.f32 %v1492_v15, 0.0  ;;  %v1459_v31 = vmax.f32 %v1178_v18, %v1421_v19 }
 0x1e6   : > { %v1423_v13 = vpop.f32.mrf.mxu1  ;;  %v1145_v48 = vpop.f32.mrf.mxu0 }
 0x1e7   : > { %1546 = vst [vmem:[%s2565_s15 + $0xb8] sm:$0xff] %v1519_v24  ;;  %v1493_v34 = vadd.f32 %v2555_v42, %v1459_v31  ;;  %v1179_v23 = vmax.f32 %v2739_v52, %v1145_v48 }
 0x1e8   : > { %v1426_v25 = vpop.f32.mrf.mxu1  ;;  %v1147_v45 = vpop.f32.mrf.mxu0 }
 0x1e9   : > { %v1520_v10 = vmax.f32 %v1493_v34, 0.0  ;;  %v1460_v3 = vmax.f32 %v1179_v23, %v1426_v25 }
 0x1ea   : > { %v1428_v61 = vpop.f32.mrf.mxu1  ;;  %v1150_v32 = vpop.f32.mrf.mxu0 }
 0x1eb   : > { %1547 = vst [vmem:[%s2565_s15 + $0xc0] sm:$0xff] %v1520_v10  ;;  %v1494_v26 = vadd.f32 %v2555_v42, %v1460_v3  ;;  %v1180_v39 = vmax.f32 %v2742_v53, %v1150_v32 }
 0x1ec   : > { %v1431_v30 = vpop.f32.mrf.mxu1  ;;  %v1152_v58 = vpop.f32.mrf.mxu0 }
 0x1ed   : > { %v1521_v22 = vmax.f32 %v1494_v26, 0.0  ;;  %v1461_v29 = vmax.f32 %v1180_v39, %v1431_v30 }
 0x1ee   : > { %v1433_v40 = vpop.f32.mrf.mxu1 }
 0x1ef   : > { %1548 = vst [vmem:[%s2565_s15 + $0xc8] sm:$0xff] %v1521_v22  ;;  %v1495_v37 = vadd.f32 %v2555_v42, %v1461_v29 }
 0x1f1   : > { %v1522_v38 = vmax.f32 %v1495_v37, 0.0 }
 0x1f3   : > { %1549 = vst [vmem:[%s2565_s15 + $0xd0] sm:$0xff] %v1522_v38 }
 0x1f4 PF: > { %s16_s21 = sadd.s32 1, %s1678_s21  }
 0x1f5   : > { %p13_p4 = scmp.ge.s32.totalorder %s16_s21, 5  }
 0x1f7   :  { %15 = sbr.rel (!%p13_p4) target bundleno = 1 (0x1), region = 83 }

// kernel: cnn_qnetwork_forward.4
= control target key start
LH: loop header
LB: loop body
LE: loop exit
PB: predicated region body
PF: predicated region fallthrough
CT: control target
= control target key end

     0   :  { %s9501_s4 = inlined_call_operand.vmem [shape: f32[2048,128], index: 4, kind: input, shape index: {}]   ;;  %s9502_s0 = inlined_call_operand.vmem [shape: f32[32,2048], index: 0, kind: input, shape index: {}]   ;;  %s9503_s1 = inlined_call_operand.vmem [shape: f32[32,2048], index: 1, kind: input, shape index: {}]   ;;  %s9504_s2 = inlined_call_operand.vmem [shape: f32[32,2048], index: 2, kind: input, shape index: {}]   ;;  %s9505_s3 = inlined_call_operand.vmem [shape: f32[32,2048], index: 3, kind: input, shape index: {}]   ;;  %s9506_s5 = inlined_call_operand.vmem [shape: f32[1,128], index: 5, kind: input, shape index: {}]   ;;  %s9507_s6 = inlined_call_operand.vmem [shape: f32[32,128], index: 6, kind: output, shape index: {}]  }
   0x1   :  { %v54_v0 = vld [vmem:[%s9501_s4 + $0xf8] sm:$0xff]  ;;  %v53_v4 = vld [vmem:[%s9501_s4 + $0xf0] sm:$0xff]  ;;  %v52_v8 = vld [vmem:[%s9501_s4 + $0xe8] sm:$0xff] }
   0x2   :  { %v86_v1 = vld [vmem:[%s9501_s4 + $0x1f8] sm:$0xff]  ;;  %3291 = vmatprep.subr.mxu0 %v54_v0  ;;  %v85_v5 = vld [vmem:[%s9501_s4 + $0x1f0] sm:$0xff]  ;;  %v84_v9 = vld [vmem:[%s9501_s4 + $0x1e8] sm:$0xff] }
   0x3   :  { %v38_v2 = vld [vmem:[%s9501_s4 + $0x78] sm:$0xff]  ;;  %3335 = vmatprep.subr.mxu1 %v86_v1  ;;  %v37_v6 = vld [vmem:[%s9501_s4 + $0x70] sm:$0xff]  ;;  %v36_v10 = vld [vmem:[%s9501_s4 + $0x68] sm:$0xff] }
   0x4   :  { %v70_v3 = vld [vmem:[%s9501_s4 + $0x178] sm:$0xff]  ;;  %3292 = vmatpush3.msra.mxu0 %v38_v2  ;;  %v69_v7 = vld [vmem:[%s9501_s4 + $0x170] sm:$0xff]  ;;  %v68_v11 = vld [vmem:[%s9501_s4 + $0x168] sm:$0xff] }
   0x5   :  { %3336 = vmatpush3.msra.mxu1 %v70_v3  ;;  %3293 = vmatprep.subr.mxu0 %v53_v4  ;;  %v51_v12 = vld [vmem:[%s9501_s4 + $0xe0] sm:$0xff]  ;;  %v50_v16 = vld [vmem:[%s9501_s4 + $0xd8] sm:$0xff]  ;;  %v49_v20 = vld [vmem:[%s9501_s4 + $0xd0] sm:$0xff] }
   0x6   :  { %3337 = vmatprep.subr.mxu1 %v85_v5  ;;  %3294 = vmatpush3.msra.mxu0 %v37_v6  ;;  %v83_v13 = vld [vmem:[%s9501_s4 + $0x1e0] sm:$0xff]  ;;  %v82_v17 = vld [vmem:[%s9501_s4 + $0x1d8] sm:$0xff]  ;;  %v81_v21 = vld [vmem:[%s9501_s4 + $0x1d0] sm:$0xff] }
   0x7   :  { %3338 = vmatpush3.msra.mxu1 %v69_v7  ;;  %3295 = vmatprep.subr.mxu0 %v52_v8  ;;  %v35_v14 = vld [vmem:[%s9501_s4 + $0x60] sm:$0xff]  ;;  %v34_v18 = vld [vmem:[%s9501_s4 + $0x58] sm:$0xff]  ;;  %v33_v22 = vld [vmem:[%s9501_s4 + $0x50] sm:$0xff] }
   0x8   :  { %3339 = vmatprep.subr.mxu1 %v84_v9  ;;  %v67_v15 = vld [vmem:[%s9501_s4 + $0x160] sm:$0xff]  ;;  %3296 = vmatpush3.msra.mxu0 %v36_v10  ;;  %v66_v19 = vld [vmem:[%s9501_s4 + $0x158] sm:$0xff]  ;;  %v65_v23 = vld [vmem:[%s9501_s4 + $0x150] sm:$0xff] }
   0x9   :  { %3340 = vmatpush3.msra.mxu1 %v68_v11  ;;  %3297 = vmatprep.subr.mxu0 %v51_v12  ;;  %v48_v24 = vld [vmem:[%s9501_s4 + $0xc8] sm:$0xff]  ;;  %v47_v28 = vld [vmem:[%s9501_s4 + $0xc0] sm:$0xff]  ;;  %v46_v32 = vld [vmem:[%s9501_s4 + $0xb8] sm:$0xff] }
   0xa   :  { %3341 = vmatprep.subr.mxu1 %v83_v13  ;;  %3298 = vmatpush3.msra.mxu0 %v35_v14  ;;  %v80_v25 = vld [vmem:[%s9501_s4 + $0x1c8] sm:$0xff]  ;;  %v79_v29 = vld [vmem:[%s9501_s4 + $0x1c0] sm:$0xff]  ;;  %v78_v33 = vld [vmem:[%s9501_s4 + $0x1b8] sm:$0xff] }
   0xb   :  { %3342 = vmatpush3.msra.mxu1 %v67_v15  ;;  %3299 = vmatprep.subr.mxu0 %v50_v16  ;;  %v32_v26 = vld [vmem:[%s9501_s4 + $0x48] sm:$0xff]  ;;  %v31_v30 = vld [vmem:[%s9501_s4 + $0x40] sm:$0xff]  ;;  %v30_v34 = vld [vmem:[%s9501_s4 + $0x38] sm:$0xff] }
   0xc   :  { %3343 = vmatprep.subr.mxu1 %v82_v17  ;;  %3300 = vmatpush3.msra.mxu0 %v34_v18  ;;  %v64_v27 = vld [vmem:[%s9501_s4 + $0x148] sm:$0xff]  ;;  %v63_v31 = vld [vmem:[%s9501_s4 + $0x140] sm:$0xff]  ;;  %v62_v35 = vld [vmem:[%s9501_s4 + $0x138] sm:$0xff] }
   0xd   :  { %3344 = vmatpush3.msra.mxu1 %v66_v19  ;;  %3301 = vmatprep.subr.mxu0 %v49_v20  ;;  %v45_v36 = vld [vmem:[%s9501_s4 + $0xb0] sm:$0xff]  ;;  %v44_v40 = vld [vmem:[%s9501_s4 + $0xa8] sm:$0xff]  ;;  %v43_v44 = vld [vmem:[%s9501_s4 + $0xa0] sm:$0xff] }
   0xe   :  { %3345 = vmatprep.subr.mxu1 %v81_v21  ;;  %3302 = vmatpush3.msra.mxu0 %v33_v22  ;;  %v77_v37 = vld [vmem:[%s9501_s4 + $0x1b0] sm:$0xff]  ;;  %v76_v41 = vld [vmem:[%s9501_s4 + $0x1a8] sm:$0xff]  ;;  %v75_v45 = vld [vmem:[%s9501_s4 + $0x1a0] sm:$0xff] }
   0xf   :  { %3346 = vmatpush3.msra.mxu1 %v65_v23  ;;  %3303 = vmatprep.subr.mxu0 %v48_v24  ;;  %v29_v38 = vld [vmem:[%s9501_s4 + $0x30] sm:$0xff]  ;;  %v28_v42 = vld [vmem:[%s9501_s4 + $0x28] sm:$0xff]  ;;  %v27_v46 = vld [vmem:[%s9501_s4 + $0x20] sm:$0xff] }
  0x10   :  { %3347 = vmatprep.subr.mxu1 %v80_v25  ;;  %3304 = vmatpush3.msra.mxu0 %v32_v26  ;;  %v61_v39 = vld [vmem:[%s9501_s4 + $0x130] sm:$0xff]  ;;  %v60_v43 = vld [vmem:[%s9501_s4 + $0x128] sm:$0xff]  ;;  %v59_v47 = vld [vmem:[%s9501_s4 + $0x120] sm:$0xff] }
  0x11   :  { %3348 = vmatpush3.msra.mxu1 %v64_v27  ;;  %3305 = vmatprep.subr.mxu0 %v47_v28  ;;  %v42_v48 = vld [vmem:[%s9501_s4 + $0x98] sm:$0xff]  ;;  %v41_v52 = vld [vmem:[%s9501_s4 + $0x90] sm:$0xff]  ;;  %v40_v56 = vld [vmem:[%s9501_s4 + $0x88] sm:$0xff] }
  0x12   :  { %3349 = vmatprep.subr.mxu1 %v79_v29  ;;  %3306 = vmatpush3.msra.mxu0 %v31_v30  ;;  %v74_v49 = vld [vmem:[%s9501_s4 + $0x198] sm:$0xff]  ;;  %v73_v53 = vld [vmem:[%s9501_s4 + $0x190] sm:$0xff]  ;;  %v72_v57 = vld [vmem:[%s9501_s4 + $0x188] sm:$0xff] }
  0x13   :  { %3350 = vmatpush3.msra.mxu1 %v63_v31  ;;  %3307 = vmatprep.subr.mxu0 %v46_v32  ;;  %v26_v50 = vld [vmem:[%s9501_s4 + $0x18] sm:$0xff]  ;;  %v25_v54 = vld [vmem:[%s9501_s4 + $0x10] sm:$0xff]  ;;  %v24_v58 = vld [vmem:[%s9501_s4 + $0x8] sm:$0xff] }
  0x14   :  { %3351 = vmatprep.subr.mxu1 %v78_v33  ;;  %3308 = vmatpush3.msra.mxu0 %v30_v34  ;;  %v58_v51 = vld [vmem:[%s9501_s4 + $0x118] sm:$0xff]  ;;  %v57_v55 = vld [vmem:[%s9501_s4 + $0x110] sm:$0xff]  ;;  %v56_v59 = vld [vmem:[%s9501_s4 + $0x108] sm:$0xff] }
  0x15   :  { %3352 = vmatpush3.msra.mxu1 %v62_v35  ;;  %3309 = vmatprep.subr.mxu0 %v45_v36  ;;  %v39_v60 = vld [vmem:[%s9501_s4 + $0x80] sm:$0xff]  ;;  %v280_v63 = vld [vmem:[%s9502_s0 + $0x8] sm:$0xff]  ;;  %v282_v1 = vld [vmem:[%s9502_s0 + $0x18] sm:$0xff] }
  0x16   :  { %3353 = vmatprep.subr.mxu1 %v77_v37  ;;  %3310 = vmatpush3.msra.mxu0 %v29_v38  ;;  %v71_v61 = vld [vmem:[%s9501_s4 + $0x180] sm:$0xff]  ;;  %v281_v3 = vld [vmem:[%s9502_s0 + $0x10] sm:$0xff]  ;;  %v118_v4 = vld [vmem:[%s9501_s4 + $0x2f8] sm:$0xff] }
  0x17   :  { %3354 = vmatpush3.msra.mxu1 %v61_v39  ;;  %3311 = vmatprep.subr.mxu0 %v44_v40  ;;  %v23_v62 = vld [vmem:[%s9501_s4] sm:$0xff]  ;;  %v150_v5 = vld [vmem:[%s9501_s4 + $0x3f8] sm:$0xff]  ;;  %v117_v8 = vld [vmem:[%s9501_s4 + $0x2f0] sm:$0xff] }
  0x18   :  { %3355 = vmatprep.subr.mxu1 %v76_v41  ;;  %3312 = vmatpush3.msra.mxu0 %v28_v42  ;;  %v55_v0 = vld [vmem:[%s9501_s4 + $0x100] sm:$0xff]  ;;  %v102_v6 = vld [vmem:[%s9501_s4 + $0x278] sm:$0xff]  ;;  %v149_v9 = vld [vmem:[%s9501_s4 + $0x3f0] sm:$0xff] }
  0x19   :  { %3356 = vmatpush3.msra.mxu1 %v60_v43  ;;  %3313 = vmatprep.subr.mxu0 %v43_v44  ;;  %v279_v2 = vld [vmem:[%s9502_s0] sm:$0xff]  ;;  %v134_v7 = vld [vmem:[%s9501_s4 + $0x378] sm:$0xff]  ;;  %v101_v10 = vld [vmem:[%s9501_s4 + $0x270] sm:$0xff] }
  0x1a   :  { %3357 = vmatprep.subr.mxu1 %v75_v45  ;;  %3314 = vmatpush3.msra.mxu0 %v27_v46  ;;  %v133_v11 = vld [vmem:[%s9501_s4 + $0x370] sm:$0xff]  ;;  %v116_v12 = vld [vmem:[%s9501_s4 + $0x2e8] sm:$0xff]  ;;  %v115_v16 = vld [vmem:[%s9501_s4 + $0x2e0] sm:$0xff] }
  0x1b   :  { %3358 = vmatpush3.msra.mxu1 %v59_v47  ;;  %3315 = vmatprep.subr.mxu0 %v42_v48  ;;  %v148_v13 = vld [vmem:[%s9501_s4 + $0x3e8] sm:$0xff]  ;;  %v147_v17 = vld [vmem:[%s9501_s4 + $0x3e0] sm:$0xff]  ;;  %v114_v20 = vld [vmem:[%s9501_s4 + $0x2d8] sm:$0xff] }
  0x1c   :  { %3359 = vmatprep.subr.mxu1 %v74_v49  ;;  %3316 = vmatpush3.msra.mxu0 %v26_v50  ;;  %v100_v14 = vld [vmem:[%s9501_s4 + $0x268] sm:$0xff]  ;;  %v99_v18 = vld [vmem:[%s9501_s4 + $0x260] sm:$0xff]  ;;  %v146_v21 = vld [vmem:[%s9501_s4 + $0x3d8] sm:$0xff] }
  0x1d   :  { %3360 = vmatpush3.msra.mxu1 %v58_v51  ;;  %3317 = vmatprep.subr.mxu0 %v41_v52  ;;  %v132_v15 = vld [vmem:[%s9501_s4 + $0x368] sm:$0xff]  ;;  %v131_v19 = vld [vmem:[%s9501_s4 + $0x360] sm:$0xff]  ;;  %v98_v22 = vld [vmem:[%s9501_s4 + $0x258] sm:$0xff] }
  0x1e   :  { %3361 = vmatprep.subr.mxu1 %v73_v53  ;;  %3318 = vmatpush3.msra.mxu0 %v25_v54  ;;  %v130_v23 = vld [vmem:[%s9501_s4 + $0x358] sm:$0xff]  ;;  %v113_v24 = vld [vmem:[%s9501_s4 + $0x2d0] sm:$0xff]  ;;  %v112_v28 = vld [vmem:[%s9501_s4 + $0x2c8] sm:$0xff] }
  0x1f   :  { %3362 = vmatpush3.msra.mxu1 %v57_v55  ;;  %3319 = vmatprep.subr.mxu0 %v40_v56  ;;  %v145_v25 = vld [vmem:[%s9501_s4 + $0x3d0] sm:$0xff]  ;;  %v144_v29 = vld [vmem:[%s9501_s4 + $0x3c8] sm:$0xff]  ;;  %v111_v32 = vld [vmem:[%s9501_s4 + $0x2c0] sm:$0xff] }
  0x20   :  { %3363 = vmatprep.subr.mxu1 %v72_v57  ;;  %3320 = vmatpush3.msra.mxu0 %v24_v58  ;;  %v97_v26 = vld [vmem:[%s9501_s4 + $0x250] sm:$0xff]  ;;  %v96_v30 = vld [vmem:[%s9501_s4 + $0x248] sm:$0xff]  ;;  %v143_v33 = vld [vmem:[%s9501_s4 + $0x3c0] sm:$0xff] }
  0x21   :  { %3364 = vmatpush3.msra.mxu1 %v56_v59  ;;  %3321 = vmatprep.subr.mxu0 %v39_v60  ;;  %v129_v27 = vld [vmem:[%s9501_s4 + $0x350] sm:$0xff]  ;;  %v128_v31 = vld [vmem:[%s9501_s4 + $0x348] sm:$0xff]  ;;  %v95_v34 = vld [vmem:[%s9501_s4 + $0x240] sm:$0xff] }
  0x22   :  { %3365 = vmatprep.subr.mxu1 %v71_v61  ;;  %3322 = vmatpush3.msra.mxu0 %v23_v62  ;;  %v127_v35 = vld [vmem:[%s9501_s4 + $0x340] sm:$0xff]  ;;  %v110_v36 = vld [vmem:[%s9501_s4 + $0x2b8] sm:$0xff]  ;;  %v296_v40 = vld [vmem:[%s9502_s0 + $0x88] sm:$0xff] }
  0x23   :  { %407 = vmatprep.mubr.f32.mxu0 %v280_v63  ;;  %3366 = vmatpush3.msra.mxu1 %v55_v0  ;;  %v142_v37 = vld [vmem:[%s9501_s4 + $0x3b8] sm:$0xff]  ;;  %v109_v42 = vld [vmem:[%s9501_s4 + $0x2b0] sm:$0xff]  ;;  %v295_v44 = vld [vmem:[%s9502_s0 + $0x80] sm:$0xff] }
  0x24   :  { %492 = vmatprep.mubr.f32.mxu1 %v282_v1  ;;  %408 = vmatmul.mubr.f32.vlgmr.msra.gmra.mxu0 %v279_v2  ;;  %v94_v38 = vld [vmem:[%s9501_s4 + $0x238] sm:$0xff]  ;;  %v141_v43 = vld [vmem:[%s9501_s4 + $0x3b0] sm:$0xff]  ;;  %v108_v48 = vld [vmem:[%s9501_s4 + $0x2a8] sm:$0xff] }
  0x25   :  { %493 = vmatmul.mubr.f32.vlgmr.msra.gmra.mxu1 %v281_v3  ;;  %3379 = vmatprep.subr.mxu0 %v118_v4  ;;  %v126_v39 = vld [vmem:[%s9501_s4 + $0x338] sm:$0xff]  ;;  %v297_v45 = vld [vmem:[%s9502_s0 + $0x90] sm:$0xff]  ;;  %v140_v49 = vld [vmem:[%s9501_s4 + $0x3a8] sm:$0xff] }
  0x26   :  { %3423 = vmatprep.subr.mxu1 %v150_v5  ;;  %3380 = vmatpush3.msra.mxu0 %v102_v6  ;;  %v298_v41 = vld [vmem:[%s9502_s0 + $0x98] sm:$0xff]  ;;  %v93_v46 = vld [vmem:[%s9501_s4 + $0x230] sm:$0xff]  ;;  %v92_v50 = vld [vmem:[%s9501_s4 + $0x228] sm:$0xff] }
  0x27   :  { %3424 = vmatpush3.msra.mxu1 %v134_v7  ;;  %3381 = vmatprep.subr.mxu0 %v117_v8  ;;  %v125_v47 = vld [vmem:[%s9501_s4 + $0x330] sm:$0xff]  ;;  %v124_v51 = vld [vmem:[%s9501_s4 + $0x328] sm:$0xff]  ;;  %v314_v53 = vld [vmem:[%s9502_s0 + $0x118] sm:$0xff] }
  0x28   :  { %3425 = vmatprep.subr.mxu1 %v149_v9  ;;  %3382 = vmatpush3.msra.mxu0 %v101_v10  ;;  %v312_v52 = vld [vmem:[%s9502_s0 + $0x108] sm:$0xff]  ;;  %v107_v54 = vld [vmem:[%s9501_s4 + $0x2a0] sm:$0xff]  ;;  %v313_v57 = vld [vmem:[%s9502_s0 + $0x110] sm:$0xff] }
  0x29   :  { %3426 = vmatpush3.msra.mxu1 %v133_v11  ;;  %3383 = vmatprep.subr.mxu0 %v116_v12  ;;  %v139_v55 = vld [vmem:[%s9501_s4 + $0x3a0] sm:$0xff]  ;;  %v106_v60 = vld [vmem:[%s9501_s4 + $0x298] sm:$0xff]  ;;  %v328_v0 = vld [vmem:[%s9502_s0 + $0x188] sm:$0xff] }
  0x2a   :  { %3427 = vmatprep.subr.mxu1 %v148_v13  ;;  %3384 = vmatpush3.msra.mxu0 %v100_v14  ;;  %v311_v56 = vld [vmem:[%s9502_s0 + $0x100] sm:$0xff]  ;;  %v138_v61 = vld [vmem:[%s9501_s4 + $0x398] sm:$0xff]  ;;  %v105_v2 = vld [vmem:[%s9501_s4 + $0x290] sm:$0xff] }
  0x2b   :  { %3428 = vmatpush3.msra.mxu1 %v132_v15  ;;  %3385 = vmatprep.subr.mxu0 %v115_v16  ;;  %v91_v58 = vld [vmem:[%s9501_s4 + $0x220] sm:$0xff]  ;;  %v90_v62 = vld [vmem:[%s9501_s4 + $0x218] sm:$0xff]  ;;  %v137_v3 = vld [vmem:[%s9501_s4 + $0x390] sm:$0xff] }
  0x2c   :  { %3429 = vmatprep.subr.mxu1 %v147_v17  ;;  %3386 = vmatpush3.msra.mxu0 %v99_v18  ;;  %v123_v59 = vld [vmem:[%s9501_s4 + $0x320] sm:$0xff]  ;;  %v122_v63 = vld [vmem:[%s9501_s4 + $0x318] sm:$0xff]  ;;  %v329_v5 = vld [vmem:[%s9502_s0 + $0x190] sm:$0xff] }
  0x2d   :  { %3430 = vmatpush3.msra.mxu1 %v131_v19  ;;  %3387 = vmatprep.subr.mxu0 %v114_v20  ;;  %v330_v1 = vld [vmem:[%s9502_s0 + $0x198] sm:$0xff]  ;;  %v327_v4 = vld [vmem:[%s9502_s0 + $0x180] sm:$0xff]  ;;  %v89_v6 = vld [vmem:[%s9501_s4 + $0x210] sm:$0xff] }
  0x2e   :  { %3431 = vmatprep.subr.mxu1 %v146_v21  ;;  %3388 = vmatpush3.msra.mxu0 %v98_v22  ;;  %v121_v7 = vld [vmem:[%s9501_s4 + $0x310] sm:$0xff]  ;;  %v104_v8 = vld [vmem:[%s9501_s4 + $0x288] sm:$0xff]  ;;  %v103_v12 = vld [vmem:[%s9501_s4 + $0x280] sm:$0xff] }
  0x2f   :  { %3432 = vmatpush3.msra.mxu1 %v130_v23  ;;  %3389 = vmatprep.subr.mxu0 %v113_v24  ;;  %v136_v9 = vld [vmem:[%s9501_s4 + $0x388] sm:$0xff]  ;;  %v135_v13 = vld [vmem:[%s9501_s4 + $0x380] sm:$0xff]  ;;  %v286_v18 = vld [vmem:[%s9502_s0 + $0x38] sm:$0xff] }
  0x30   :  { %3433 = vmatprep.subr.mxu1 %v145_v25  ;;  %3390 = vmatpush3.msra.mxu0 %v97_v26  ;;  %v88_v10 = vld [vmem:[%s9501_s4 + $0x208] sm:$0xff]  ;;  %v87_v14 = vld [vmem:[%s9501_s4 + $0x200] sm:$0xff]  ;;  %v182_v19 = vld [vmem:[%s9501_s4 + $0x4f8] sm:$0xff] }
  0x31   :  { %3434 = vmatpush3.msra.mxu1 %v129_v27  ;;  %3391 = vmatprep.subr.mxu0 %v112_v28  ;;  %v120_v11 = vld [vmem:[%s9501_s4 + $0x308] sm:$0xff]  ;;  %v119_v16 = vld [vmem:[%s9501_s4 + $0x300] sm:$0xff]  ;;  %v214_v20 = vld [vmem:[%s9501_s4 + $0x5f8] sm:$0xff] }
  0x32   :  { %3435 = vmatprep.subr.mxu1 %v144_v29  ;;  %3392 = vmatpush3.msra.mxu0 %v96_v30  ;;  %v284_v15 = vld [vmem:[%s9502_s0 + $0x28] sm:$0xff]  ;;  %v283_v17 = vld [vmem:[%s9502_s0 + $0x20] sm:$0xff]  ;;  %v285_v21 = vld [vmem:[%s9502_s0 + $0x30] sm:$0xff] }
  0x33   :  { %3436 = vmatpush3.msra.mxu1 %v128_v31  ;;  %3393 = vmatprep.subr.mxu0 %v111_v32  ;;  %v166_v22 = vld [vmem:[%s9501_s4 + $0x478] sm:$0xff]  ;;  %v181_v24 = vld [vmem:[%s9501_s4 + $0x4f0] sm:$0xff]  ;;  %v300_v26 = vld [vmem:[%s9502_s0 + $0xa8] sm:$0xff] }
  0x34   :  { %3437 = vmatprep.subr.mxu1 %v143_v33  ;;  %3394 = vmatpush3.msra.mxu0 %v95_v34  ;;  %v198_v23 = vld [vmem:[%s9501_s4 + $0x578] sm:$0xff]  ;;  %v213_v25 = vld [vmem:[%s9501_s4 + $0x5f0] sm:$0xff]  ;;  %v299_v29 = vld [vmem:[%s9502_s0 + $0xa0] sm:$0xff] }
  0x35   :  { %3438 = vmatpush3.msra.mxu1 %v127_v35  ;;  %3395 = vmatprep.subr.mxu0 %v110_v36  ;;  %v165_v27 = vld [vmem:[%s9501_s4 + $0x470] sm:$0xff]  ;;  %v180_v30 = vld [vmem:[%s9501_s4 + $0x4e8] sm:$0xff]  ;;  %v302_v32 = vld [vmem:[%s9502_s0 + $0xb8] sm:$0xff] }
  0x36   :  { %3439 = vmatprep.subr.mxu1 %v142_v37  ;;  %3396 = vmatpush3.msra.mxu0 %v94_v38  ;;  %v197_v28 = vld [vmem:[%s9501_s4 + $0x570] sm:$0xff]  ;;  %v212_v31 = vld [vmem:[%s9501_s4 + $0x5e8] sm:$0xff]  ;;  %v179_v35 = vld [vmem:[%s9501_s4 + $0x4e0] sm:$0xff] }
  0x37   :  { %3440 = vmatpush3.msra.mxu1 %v126_v39  ;;  %412 = vmatprep.mubr.f32.mxu0 %v296_v40  ;;  %v164_v33 = vld [vmem:[%s9501_s4 + $0x468] sm:$0xff]  ;;  %v301_v36 = vld [vmem:[%s9502_s0 + $0xb0] sm:$0xff]  ;;  %v211_v37 = vld [vmem:[%s9501_s4 + $0x5e0] sm:$0xff] }
  0x38   :  { %497 = vmatprep.mubr.f32.mxu1 %v298_v41  ;;  %3397 = vmatprep.subr.mxu0 %v109_v42  ;;  %v196_v34 = vld [vmem:[%s9501_s4 + $0x568] sm:$0xff]  ;;  %v163_v39 = vld [vmem:[%s9501_s4 + $0x460] sm:$0xff]  ;;  %v5761_v42 = vld [vmem:[%s9501_s4 + $0x4d8] sm:$0xff] }
  0x39   :  { %3441 = vmatprep.subr.mxu1 %v141_v43  ;;  %413 = vmatmul.mubr.f32.gmra.mxu0 %v295_v44  ;;  %v316_v38 = vld [vmem:[%s9502_s0 + $0x128] sm:$0xff]  ;;  %v5753_v40 = vld [vmem:[%s9501_s4 + $0x560] sm:$0xff]  ;;  %v5766_v43 = vld [vmem:[%s9501_s4 + $0x5d8] sm:$0xff] }
  0x3a   :  { %498 = vmatmul.mubr.f32.gmra.mxu1 %v297_v45  ;;  %3398 = vmatpush3.msra.mxu0 %v93_v46  ;;  %v315_v41 = vld [vmem:[%s9502_s0 + $0x120] sm:$0xff]  ;;  %v318_v44 = vld [vmem:[%s9502_s0 + $0x138] sm:$0xff] }
  0x3b   :  { %3442 = vmatpush3.msra.mxu1 %v125_v47  ;;  %3399 = vmatprep.subr.mxu0 %v108_v48  ;;  %v5774_v45 = vld [vmem:[%s9501_s4 + $0x458] sm:$0xff]  ;;  %v5785_v47 = vld [vmem:[%s9501_s4 + $0x4d0] sm:$0xff] }
  0x3c   :  { %3443 = vmatprep.subr.mxu1 %v140_v49  ;;  %3400 = vmatpush3.msra.mxu0 %v92_v50  ;;  %v5780_v46 = vld [vmem:[%s9501_s4 + $0x558] sm:$0xff]  ;;  %v317_v48 = vld [vmem:[%s9502_s0 + $0x130] sm:$0xff]  ;;  %v332_v50 = vld [vmem:[%s9502_s0 + $0x1a8] sm:$0xff] }
  0x3d   :  { %3444 = vmatpush3.msra.mxu1 %v124_v51  ;;  %417 = vmatprep.mubr.f32.mxu0 %v312_v52  ;;  %v5795_v49 = vld [vmem:[%s9501_s4 + $0x5d0] sm:$0xff] }
  0x3e   :  { %502 = vmatprep.mubr.f32.mxu1 %v314_v53  ;;  %3401 = vmatprep.subr.mxu0 %v107_v54  ;;  %v5804_v51 = vld [vmem:[%s9501_s4 + $0x450] sm:$0xff]  ;;  %v331_v53 = vld [vmem:[%s9502_s0 + $0x1a0] sm:$0xff]  ;;  %v5820_v54 = vld [vmem:[%s9501_s4 + $0x4c8] sm:$0xff] }
  0x3f   :  { %3445 = vmatprep.subr.mxu1 %v139_v55  ;;  %418 = vmatmul.mubr.f32.gmra.mxu0 %v311_v56  ;;  %v5811_v52 = vld [vmem:[%s9501_s4 + $0x550] sm:$0xff]  ;;  %v5825_v55 = vld [vmem:[%s9501_s4 + $0x5c8] sm:$0xff]  ;;  %v334_v56 = vld [vmem:[%s9502_s0 + $0x1b8] sm:$0xff] }
  0x40   :  { %503 = vmatmul.mubr.f32.gmra.mxu1 %v313_v57  ;;  %3402 = vmatpush3.msra.mxu0 %v91_v58  ;;  %v5834_v57 = vld [vmem:[%s9501_s4 + $0x448] sm:$0xff] }
  0x41   :  { %3446 = vmatpush3.msra.mxu1 %v123_v59  ;;  %3403 = vmatprep.subr.mxu0 %v106_v60  ;;  %v5840_v58 = vld [vmem:[%s9501_s4 + $0x548] sm:$0xff]  ;;  %v5845_v59 = vld [vmem:[%s9501_s4 + $0x4c0] sm:$0xff]  ;;  %v333_v60 = vld [vmem:[%s9502_s0 + $0x1b0] sm:$0xff] }
  0x42   :  { %3447 = vmatprep.subr.mxu1 %v138_v61  ;;  %3404 = vmatpush3.msra.mxu0 %v90_v62  ;;  %v5855_v61 = vld [vmem:[%s9501_s4 + $0x5c0] sm:$0xff] }
  0x43   :  { %3448 = vmatpush3.msra.mxu1 %v122_v63  ;;  %422 = vmatprep.mubr.f32.mxu0 %v328_v0  ;;  %v5861_v62 = vld [vmem:[%s9501_s4 + $0x440] sm:$0xff]  ;;  %v5873_v0 = vld [vmem:[%s9501_s4 + $0x4b8] sm:$0xff] }
  0x44   :  { %507 = vmatprep.mubr.f32.mxu1 %v330_v1  ;;  %3405 = vmatprep.subr.mxu0 %v105_v2  ;;  %v5866_v63 = vld [vmem:[%s9501_s4 + $0x540] sm:$0xff]  ;;  %v5878_v1 = vld [vmem:[%s9501_s4 + $0x5b8] sm:$0xff] }
  0x45   :  { %3449 = vmatprep.subr.mxu1 %v137_v3  ;;  %423 = vmatmul.mubr.f32.gmra.mxu0 %v327_v4  ;;  %v5884_v2 = vld [vmem:[%s9501_s4 + $0x438] sm:$0xff]  ;;  %v5896_v4 = vld [vmem:[%s9501_s4 + $0x4b0] sm:$0xff] }
  0x46   :  { %508 = vmatmul.mubr.f32.gmra.mxu1 %v329_v5  ;;  %3406 = vmatpush3.msra.mxu0 %v89_v6  ;;  %v5889_v3 = vld [vmem:[%s9501_s4 + $0x538] sm:$0xff]  ;;  %v5901_v5 = vld [vmem:[%s9501_s4 + $0x5b0] sm:$0xff] }
  0x47   :  { %3450 = vmatpush3.msra.mxu1 %v121_v7  ;;  %3407 = vmatprep.subr.mxu0 %v104_v8  ;;  %v5908_v6 = vld [vmem:[%s9501_s4 + $0x430] sm:$0xff]  ;;  %v5920_v8 = vld [vmem:[%s9501_s4 + $0x4a8] sm:$0xff] }
  0x48   :  { %3451 = vmatprep.subr.mxu1 %v136_v9  ;;  %3408 = vmatpush3.msra.mxu0 %v88_v10  ;;  %v5913_v7 = vld [vmem:[%s9501_s4 + $0x530] sm:$0xff]  ;;  %v5925_v9 = vld [vmem:[%s9501_s4 + $0x5a8] sm:$0xff] }
  0x49   :  { %3452 = vmatpush3.msra.mxu1 %v120_v11  ;;  %3409 = vmatprep.subr.mxu0 %v103_v12  ;;  %v5932_v10 = vld [vmem:[%s9501_s4 + $0x428] sm:$0xff]  ;;  %v5944_v12 = vld [vmem:[%s9501_s4 + $0x4a0] sm:$0xff] }
  0x4a   :  { %3453 = vmatprep.subr.mxu1 %v135_v13  ;;  %3410 = vmatpush3.msra.mxu0 %v87_v14  ;;  %v5937_v11 = vld [vmem:[%s9501_s4 + $0x528] sm:$0xff]  ;;  %v5949_v13 = vld [vmem:[%s9501_s4 + $0x5a0] sm:$0xff] }
  0x4b   :  { %577 = vmatprep.mubr.f32.mxu0 %v284_v15  ;;  %3454 = vmatpush3.msra.mxu1 %v119_v16  ;;  %v5956_v14 = vld [vmem:[%s9501_s4 + $0x420] sm:$0xff]  ;;  %v5968_v16 = vld [vmem:[%s9501_s4 + $0x498] sm:$0xff] }
  0x4c   :  { %578 = vmatmul.mubr.f32.vlgmr.msra.gmra.mxu0 %v283_v17  ;;  %662 = vmatprep.mubr.f32.mxu1 %v286_v18  ;;  %v5961_v15 = vld [vmem:[%s9501_s4 + $0x520] sm:$0xff]  ;;  %v5973_v17 = vld [vmem:[%s9501_s4 + $0x598] sm:$0xff] }
  0x4d   :  { %3467 = vmatprep.subr.mxu0 %v182_v19  ;;  %3511 = vmatprep.subr.mxu1 %v214_v20  ;;  %v5980_v18 = vld [vmem:[%s9501_s4 + $0x418] sm:$0xff]  ;;  %v5992_v20 = vld [vmem:[%s9501_s4 + $0x490] sm:$0xff] }
  0x4e   :  { %663 = vmatmul.mubr.f32.vlgmr.msra.gmra.mxu1 %v285_v21  ;;  %3468 = vmatpush3.msra.mxu0 %v166_v22  ;;  %v5985_v19 = vld [vmem:[%s9501_s4 + $0x518] sm:$0xff]  ;;  %v5997_v21 = vld [vmem:[%s9501_s4 + $0x590] sm:$0xff] }
  0x4f   :  { %3512 = vmatpush3.msra.mxu1 %v198_v23  ;;  %3469 = vmatprep.subr.mxu0 %v181_v24  ;;  %v6004_v22 = vld [vmem:[%s9501_s4 + $0x410] sm:$0xff]  ;;  %v6016_v24 = vld [vmem:[%s9501_s4 + $0x488] sm:$0xff] }
  0x50   :  { %3513 = vmatprep.subr.mxu1 %v213_v25  ;;  %582 = vmatprep.mubr.f32.mxu0 %v300_v26  ;;  %v6009_v23 = vld [vmem:[%s9501_s4 + $0x510] sm:$0xff]  ;;  %v6021_v25 = vld [vmem:[%s9501_s4 + $0x588] sm:$0xff] }
  0x51   :  { %3470 = vmatpush3.msra.mxu0 %v165_v27  ;;  %3514 = vmatpush3.msra.mxu1 %v197_v28  ;;  %v6028_v26 = vld [vmem:[%s9501_s4 + $0x408] sm:$0xff]  ;;  %v6040_v28 = vld [vmem:[%s9501_s4 + $0x480] sm:$0xff] }
  0x52   :  { %583 = vmatmul.mubr.f32.gmra.mxu0 %v299_v29  ;;  %3471 = vmatprep.subr.mxu0 %v180_v30  ;;  %v6033_v27 = vld [vmem:[%s9501_s4 + $0x508] sm:$0xff]  ;;  %v6045_v29 = vld [vmem:[%s9501_s4 + $0x580] sm:$0xff] }
  0x53   :  { %3515 = vmatprep.subr.mxu1 %v212_v31  ;;  %667 = vmatprep.mubr.f32.mxu1 %v302_v32  ;;  %v6052_v30 = vld [vmem:[%s9501_s4 + $0x400] sm:$0xff]  ;;  %v288_v31 = vld [vmem:[%s9502_s0 + $0x48] sm:$0xff] }
  0x54   :  { %3472 = vmatpush3.msra.mxu0 %v164_v33  ;;  %3516 = vmatpush3.msra.mxu1 %v196_v34  ;;  %v6062_v32 = vld [vmem:[%s9501_s4 + $0x500] sm:$0xff]  ;;  %v290_v34 = vld [vmem:[%s9502_s0 + $0x58] sm:$0xff] }
  0x55   :  { %3473 = vmatprep.subr.mxu0 %v179_v35  ;;  %668 = vmatmul.mubr.f32.gmra.mxu1 %v301_v36  ;;  %v287_v33 = vld [vmem:[%s9502_s0 + $0x40] sm:$0xff]  ;;  %v6075_v35 = vld [vmem:[%s9501_s4 + $0x6f8] sm:$0xff] }
  0x56   :  { %3517 = vmatprep.subr.mxu1 %v211_v37  ;;  %587 = vmatprep.mubr.f32.mxu0 %v316_v38  ;;  %v6081_v36 = vld [vmem:[%s9501_s4 + $0x7f8] sm:$0xff]  ;;  %v289_v37 = vld [vmem:[%s9502_s0 + $0x50] sm:$0xff] }
  0x57   :  { %3474 = vmatpush3.msra.mxu0 %v163_v39  ;;  %3518 = vmatpush3.msra.mxu1 %v5753_v40  ;;  %v6090_v38 = vld [vmem:[%s9501_s4 + $0x678] sm:$0xff] }
  0x58   :  { %588 = vmatmul.mubr.f32.gmra.mxu0 %v315_v41  ;;  %3475 = vmatprep.subr.mxu0 %v5761_v42  ;;  %v6095_v39 = vld [vmem:[%s9501_s4 + $0x778] sm:$0xff]  ;;  %v6101_v41 = vld [vmem:[%s9501_s4 + $0x6f0] sm:$0xff] }
  0x59   :  { %3519 = vmatprep.subr.mxu1 %v5766_v43  ;;  %672 = vmatprep.mubr.f32.mxu1 %v318_v44  ;;  %v6106_v44 = vld [vmem:[%s9501_s4 + $0x7f0] sm:$0xff] }
  0x5a   :  { %3476 = vmatpush3.msra.mxu0 %v5774_v45  ;;  %3520 = vmatpush3.msra.mxu1 %v5780_v46  ;;  %9707 = vst [vmem:[#allocation2_spill] sm:$0xff] %v6106_v44 }
  0x5b   :  { %3477 = vmatprep.subr.mxu0 %v5785_v47  ;;  %673 = vmatmul.mubr.f32.gmra.mxu1 %v317_v48  ;;  %v304_v48 = vld [vmem:[%s9502_s0 + $0xc8] sm:$0xff] }
  0x5c   :  { %3521 = vmatprep.subr.mxu1 %v5795_v49  ;;  %592 = vmatprep.mubr.f32.mxu0 %v332_v50  ;;  %v6115_v50 = vld [vmem:[%s9501_s4 + $0x670] sm:$0xff] }
  0x5d   :  { %3478 = vmatpush3.msra.mxu0 %v5804_v51  ;;  %3522 = vmatpush3.msra.mxu1 %v5811_v52  ;;  %9708 = vst [vmem:[#allocation3_spill] sm:$0xff] %v6115_v50 }
  0x5e   :  { %593 = vmatmul.mubr.f32.gmra.mxu0 %v331_v53  ;;  %3479 = vmatprep.subr.mxu0 %v5820_v54  ;;  %v6122_v53 = vld [vmem:[%s9501_s4 + $0x770] sm:$0xff] }
  0x5f   :  { %3523 = vmatprep.subr.mxu1 %v5825_v55  ;;  %677 = vmatprep.mubr.f32.mxu1 %v334_v56  ;;  %9709 = vst [vmem:[#allocation4_spill] sm:$0xff] %v6122_v53  ;;  %v303_v56 = vld [vmem:[%s9502_s0 + $0xc0] sm:$0xff] }
  0x60   :  { %3480 = vmatpush3.msra.mxu0 %v5834_v57  ;;  %3524 = vmatpush3.msra.mxu1 %v5840_v58 }
  0x61   :  { %3481 = vmatprep.subr.mxu0 %v5845_v59  ;;  %678 = vmatmul.mubr.f32.gmra.mxu1 %v333_v60  ;;  %v6132_v60 = vld [vmem:[%s9501_s4 + $0x6e8] sm:$0xff] }
  0x62   :  { %3525 = vmatprep.subr.mxu1 %v5855_v61  ;;  %3482 = vmatpush3.msra.mxu0 %v5861_v62  ;;  %9710 = vst [vmem:[#allocation5_spill] sm:$0xff] %v6132_v60 }
  0x63   :  { %3526 = vmatpush3.msra.mxu1 %v5866_v63  ;;  %3483 = vmatprep.subr.mxu0 %v5873_v0 }
  0x64   :  { %3527 = vmatprep.subr.mxu1 %v5878_v1  ;;  %3484 = vmatpush3.msra.mxu0 %v5884_v2 }
  0x65   :  { %3528 = vmatpush3.msra.mxu1 %v5889_v3  ;;  %3485 = vmatprep.subr.mxu0 %v5896_v4 }
  0x66   :  { %3529 = vmatprep.subr.mxu1 %v5901_v5  ;;  %3486 = vmatpush3.msra.mxu0 %v5908_v6 }
  0x67   :  { %3530 = vmatpush3.msra.mxu1 %v5913_v7  ;;  %3487 = vmatprep.subr.mxu0 %v5920_v8 }
  0x68   :  { %3531 = vmatprep.subr.mxu1 %v5925_v9  ;;  %3488 = vmatpush3.msra.mxu0 %v5932_v10 }
  0x69   :  { %3532 = vmatpush3.msra.mxu1 %v5937_v11  ;;  %3489 = vmatprep.subr.mxu0 %v5944_v12 }
  0x6a   :  { %3533 = vmatprep.subr.mxu1 %v5949_v13  ;;  %3490 = vmatpush3.msra.mxu0 %v5956_v14 }
  0x6b   :  { %3534 = vmatpush3.msra.mxu1 %v5961_v15  ;;  %3491 = vmatprep.subr.mxu0 %v5968_v16 }
  0x6c   :  { %3535 = vmatprep.subr.mxu1 %v5973_v17  ;;  %3492 = vmatpush3.msra.mxu0 %v5980_v18 }
  0x6d   :  { %3536 = vmatpush3.msra.mxu1 %v5985_v19  ;;  %3493 = vmatprep.subr.mxu0 %v5992_v20 }
  0x6e   :  { %3537 = vmatprep.subr.mxu1 %v5997_v21  ;;  %3494 = vmatpush3.msra.mxu0 %v6004_v22 }
  0x6f   :  { %3538 = vmatpush3.msra.mxu1 %v6009_v23  ;;  %3495 = vmatprep.subr.mxu0 %v6016_v24 }
  0x70   :  { %3539 = vmatprep.subr.mxu1 %v6021_v25  ;;  %3496 = vmatpush3.msra.mxu0 %v6028_v26 }
  0x71   :  { %3540 = vmatpush3.msra.mxu1 %v6033_v27  ;;  %3497 = vmatprep.subr.mxu0 %v6040_v28 }
  0x72   :  { %3541 = vmatprep.subr.mxu1 %v6045_v29  ;;  %3498 = vmatpush3.msra.mxu0 %v6052_v30 }
  0x73   :  { %747 = vmatprep.mubr.f32.mxu0 %v288_v31  ;;  %3542 = vmatpush3.msra.mxu1 %v6062_v32  ;;  %v6137_v31 = vld [vmem:[%s9501_s4 + $0x7e8] sm:$0xff] }
  0x74   :  { %748 = vmatmul.mubr.f32.vlgmr.msra.gmra.mxu0 %v287_v33  ;;  %832 = vmatprep.mubr.f32.mxu1 %v290_v34  ;;  %9711 = vst [vmem:[#allocation6_spill] sm:$0xff] %v6137_v31  ;;  %v306_v33 = vld [vmem:[%s9502_s0 + $0xd8] sm:$0xff]  ;;  %v6146_v34 = vld [vmem:[%s9501_s4 + $0x668] sm:$0xff] }
  0x75   :  { %3555 = vmatprep.subr.mxu0 %v6075_v35  ;;  %3599 = vmatprep.subr.mxu1 %v6081_v36  ;;  %9712 = vst [vmem:[#allocation7_spill] sm:$0xff] %v6146_v34 }
  0x76   :  { %833 = vmatmul.mubr.f32.vlgmr.msra.gmra.mxu1 %v289_v37  ;;  %3556 = vmatpush3.msra.mxu0 %v6090_v38  ;;  %v6152_v37 = vld [vmem:[%s9501_s4 + $0x768] sm:$0xff] }
  0x77   :  { %3600 = vmatpush3.msra.mxu1 %v6095_v39  ;;  %3557 = vmatprep.subr.mxu0 %v6101_v41  ;;  %9713 = vst [vmem:[#allocation8_spill] sm:$0xff] %v6152_v37 }
  0x78   :  { %3601 = vmatprep.subr.mxu1 %v6106_v44  ;;  %752 = vmatprep.mubr.f32.mxu0 %v304_v48  ;;  %v6157_v48 = vld [vmem:[%s9501_s4 + $0x6e0] sm:$0xff]  ;;  %v7331_v44 = vld [vmem:[%s9501_s4 + $0x208] sm:$0xff] }
  0x79   :  { %3558 = vmatpush3.msra.mxu0 %v6115_v50  ;;  %3602 = vmatpush3.msra.mxu1 %v6122_v53  ;;  %9714 = vst [vmem:[#allocation9_spill] sm:$0xff] %v6157_v48  ;;  %v305_v50 = vld [vmem:[%s9502_s0 + $0xd0] sm:$0xff]  ;;  %v320_v53 = vld [vmem:[%s9502_s0 + $0x148] sm:$0xff] }
  0x7a   :  { %753 = vmatmul.mubr.f32.gmra.mxu0 %v303_v56  ;;  %3559 = vmatprep.subr.mxu0 %v6132_v60  ;;  %v6167_v56 = vld [vmem:[%s9501_s4 + $0x7e0] sm:$0xff] }
  0x7b   :  { %3603 = vmatprep.subr.mxu1 %v6137_v31  ;;  %9715 = vst [vmem:[#allocation10_spill] sm:$0xff] %v6167_v56  ;;  %837 = vmatprep.mubr.f32.mxu1 %v306_v33  ;;  %v6176_v31 = vld [vmem:[%s9501_s4 + $0x660] sm:$0xff] }
  0x7c   :  { %3560 = vmatpush3.msra.mxu0 %v6146_v34  ;;  %9716 = vst [vmem:[#allocation11_spill] sm:$0xff] %v6176_v31  ;;  %3604 = vmatpush3.msra.mxu1 %v6152_v37  ;;  %v6183_v60 = vld [vmem:[%s9501_s4 + $0x760] sm:$0xff]  ;;  %v6192_v34 = vld [vmem:[%s9501_s4 + $0x6d8] sm:$0xff] }
  0x7d   :  { %3561 = vmatprep.subr.mxu0 %v6157_v48  ;;  %9717 = vst [vmem:[#allocation12_spill] sm:$0xff] %v6183_v60  ;;  %v319_v33 = vld [vmem:[%s9502_s0 + $0x140] sm:$0xff]  ;;  %838 = vmatmul.mubr.f32.gmra.mxu1 %v305_v50  ;;  %9718 = vst [vmem:[#allocation13_spill] sm:$0xff] %v6192_v34  ;;  %v6197_v48 = vld [vmem:[%s9501_s4 + $0x7d8] sm:$0xff] }
  0x7e   :  { %3605 = vmatprep.subr.mxu1 %v6167_v56  ;;  %9719 = vst [vmem:[#allocation14_spill] sm:$0xff] %v6197_v48  ;;  %757 = vmatprep.mubr.f32.mxu0 %v320_v53  ;;  %v322_v37 = vld [vmem:[%s9502_s0 + $0x158] sm:$0xff]  ;;  %v6217_v53 = vld [vmem:[%s9501_s4 + $0x6d0] sm:$0xff] }
  0x7f   :  { %3562 = vmatpush3.msra.mxu0 %v6176_v31  ;;  %v6206_v50 = vld [vmem:[%s9501_s4 + $0x658] sm:$0xff]  ;;  %3606 = vmatpush3.msra.mxu1 %v6183_v60  ;;  %9722 = vst [vmem:[#allocation17_spill] sm:$0xff] %v6217_v53  ;;  %v321_v31 = vld [vmem:[%s9502_s0 + $0x150] sm:$0xff]  ;;  %v336_v60 = vld [vmem:[%s9502_s0 + $0x1c8] sm:$0xff] }
  0x80   :  { %9720 = vst [vmem:[#allocation15_spill] sm:$0xff] %v6206_v50  ;;  %758 = vmatmul.mubr.f32.gmra.mxu0 %v319_v33  ;;  %v6212_v56 = vld [vmem:[%s9501_s4 + $0x758] sm:$0xff]  ;;  %3563 = vmatprep.subr.mxu0 %v6192_v34  ;;  %v6227_v33 = vld [vmem:[%s9501_s4 + $0x7d0] sm:$0xff] }
  0x81   :  { %9721 = vst [vmem:[#allocation16_spill] sm:$0xff] %v6212_v56  ;;  %3607 = vmatprep.subr.mxu1 %v6197_v48  ;;  %9723 = vst [vmem:[#allocation18_spill] sm:$0xff] %v6227_v33  ;;  %842 = vmatprep.mubr.f32.mxu1 %v322_v37  ;;  %v6236_v48 = vld [vmem:[%s9501_s4 + $0x650] sm:$0xff]  ;;  %v335_v37 = vld [vmem:[%s9502_s0 + $0x1c0] sm:$0xff] }
  0x82   :  { %3564 = vmatpush3.msra.mxu0 %v6206_v50  ;;  %9724 = vst [vmem:[#allocation19_spill] sm:$0xff] %v6236_v48  ;;  %3608 = vmatpush3.msra.mxu1 %v6212_v56  ;;  %v6243_v34 = vld [vmem:[%s9501_s4 + $0x750] sm:$0xff]  ;;  %v6252_v50 = vld [vmem:[%s9501_s4 + $0x6c8] sm:$0xff]  ;;  %v338_v56 = vld [vmem:[%s9502_s0 + $0x1d8] sm:$0xff] }
  0x83   :  { %3565 = vmatprep.subr.mxu0 %v6217_v53  ;;  %9725 = vst [vmem:[#allocation20_spill] sm:$0xff] %v6243_v34  ;;  %843 = vmatmul.mubr.f32.gmra.mxu1 %v321_v31  ;;  %9726 = vst [vmem:[#allocation21_spill] sm:$0xff] %v6252_v50  ;;  %v6257_v53 = vld [vmem:[%s9501_s4 + $0x7c8] sm:$0xff] }
  0x84   :  { %3609 = vmatprep.subr.mxu1 %v6227_v33  ;;  %9727 = vst [vmem:[#allocation22_spill] sm:$0xff] %v6257_v53  ;;  %762 = vmatprep.mubr.f32.mxu0 %v336_v60  ;;  %v6266_v31 = vld [vmem:[%s9501_s4 + $0x648] sm:$0xff]  ;;  %v6277_v60 = vld [vmem:[%s9501_s4 + $0x6c0] sm:$0xff] }
  0x85   :  { %3566 = vmatpush3.msra.mxu0 %v6236_v48  ;;  %9728 = vst [vmem:[#allocation23_spill] sm:$0xff] %v6266_v31  ;;  %3610 = vmatpush3.msra.mxu1 %v6243_v34  ;;  %v6272_v33 = vld [vmem:[%s9501_s4 + $0x748] sm:$0xff]  ;;  %9730 = vst [vmem:[#allocation25_spill] sm:$0xff] %v6277_v60  ;;  %v337_v48 = vld [vmem:[%s9502_s0 + $0x1d0] sm:$0xff] }
  0x86   :  { %763 = vmatmul.mubr.f32.gmra.mxu0 %v335_v37  ;;  %9729 = vst [vmem:[#allocation24_spill] sm:$0xff] %v6272_v33  ;;  %3567 = vmatprep.subr.mxu0 %v6252_v50  ;;  %v6287_v37 = vld [vmem:[%s9501_s4 + $0x7c0] sm:$0xff]  ;;  %v6316_v50 = vld [vmem:[%s9501_s4 + $0x638] sm:$0xff] }
  0x87   :  { %3611 = vmatprep.subr.mxu1 %v6257_v53  ;;  %9731 = vst [vmem:[#allocation26_spill] sm:$0xff] %v6287_v37  ;;  %847 = vmatprep.mubr.f32.mxu1 %v338_v56  ;;  %v6293_v34 = vld [vmem:[%s9501_s4 + $0x640] sm:$0xff]  ;;  %v6305_v56 = vld [vmem:[%s9501_s4 + $0x6b8] sm:$0xff]  ;;  %9736 = vst [vmem:[#allocation31_spill] sm:$0xff] %v6316_v50 }
  0x88   :  { %3568 = vmatpush3.msra.mxu0 %v6266_v31  ;;  %9732 = vst [vmem:[#allocation27_spill] sm:$0xff] %v6293_v34  ;;  %v6298_v53 = vld [vmem:[%s9501_s4 + $0x740] sm:$0xff]  ;;  %3612 = vmatpush3.msra.mxu1 %v6272_v33  ;;  %9734 = vst [vmem:[#allocation29_spill] sm:$0xff] %v6305_v56  ;;  %v6310_v31 = vld [vmem:[%s9501_s4 + $0x7b8] sm:$0xff] }
  0x89   :  { %9733 = vst [vmem:[#allocation28_spill] sm:$0xff] %v6298_v53  ;;  %3569 = vmatprep.subr.mxu0 %v6277_v60  ;;  %9735 = vst [vmem:[#allocation30_spill] sm:$0xff] %v6310_v31  ;;  %848 = vmatmul.mubr.f32.gmra.mxu1 %v337_v48  ;;  %v6321_v60 = vld [vmem:[%s9501_s4 + $0x738] sm:$0xff]  ;;  %v6328_v48 = vld [vmem:[%s9501_s4 + $0x6b0] sm:$0xff] }
  0x8a   :  { %3613 = vmatprep.subr.mxu1 %v6287_v37  ;;  %9737 = vst [vmem:[#allocation32_spill] sm:$0xff] %v6321_v60  ;;  %3570 = vmatpush3.msra.mxu0 %v6293_v34  ;;  %9738 = vst [vmem:[#allocation33_spill] sm:$0xff] %v6328_v48  ;;  %v6333_v37 = vld [vmem:[%s9501_s4 + $0x7b0] sm:$0xff]  ;;  %v6494_v33 = vld [vmem:[%s9501_s4 + $0x700] sm:$0xff] }
  0x8b   :  { %3614 = vmatpush3.msra.mxu1 %v6298_v53  ;;  %9739 = vst [vmem:[#allocation34_spill] sm:$0xff] %v6333_v37  ;;  %3571 = vmatprep.subr.mxu0 %v6305_v56  ;;  %v6340_v34 = vld [vmem:[%s9501_s4 + $0x630] sm:$0xff]  ;;  %v6352_v56 = vld [vmem:[%s9501_s4 + $0x6a8] sm:$0xff]  ;;  %9765 = vst [vmem:[#allocation60_spill] sm:$0xff] %v6494_v33 }
  0x8c   :  { %3615 = vmatprep.subr.mxu1 %v6310_v31  ;;  %9740 = vst [vmem:[#allocation35_spill] sm:$0xff] %v6340_v34  ;;  %v6345_v53 = vld [vmem:[%s9501_s4 + $0x730] sm:$0xff]  ;;  %3572 = vmatpush3.msra.mxu0 %v6316_v50  ;;  %9742 = vst [vmem:[#allocation37_spill] sm:$0xff] %v6352_v56  ;;  %v6357_v31 = vld [vmem:[%s9501_s4 + $0x7a8] sm:$0xff] }
  0x8d   :  { %9741 = vst [vmem:[#allocation36_spill] sm:$0xff] %v6345_v53  ;;  %3616 = vmatpush3.msra.mxu1 %v6321_v60  ;;  %9743 = vst [vmem:[#allocation38_spill] sm:$0xff] %v6357_v31  ;;  %3573 = vmatprep.subr.mxu0 %v6328_v48  ;;  %v6364_v50 = vld [vmem:[%s9501_s4 + $0x628] sm:$0xff]  ;;  %v6376_v48 = vld [vmem:[%s9501_s4 + $0x6a0] sm:$0xff] }
  0x8e   :  { %3617 = vmatprep.subr.mxu1 %v6333_v37  ;;  %9744 = vst [vmem:[#allocation39_spill] sm:$0xff] %v6364_v50  ;;  %v6369_v60 = vld [vmem:[%s9501_s4 + $0x728] sm:$0xff]  ;;  %3574 = vmatpush3.msra.mxu0 %v6340_v34  ;;  %9746 = vst [vmem:[#allocation41_spill] sm:$0xff] %v6376_v48  ;;  %v6381_v37 = vld [vmem:[%s9501_s4 + $0x7a0] sm:$0xff] }
  0x8f   :  { %9745 = vst [vmem:[#allocation40_spill] sm:$0xff] %v6369_v60  ;;  %3618 = vmatpush3.msra.mxu1 %v6345_v53  ;;  %9747 = vst [vmem:[#allocation42_spill] sm:$0xff] %v6381_v37  ;;  %3575 = vmatprep.subr.mxu0 %v6352_v56  ;;  %v6388_v34 = vld [vmem:[%s9501_s4 + $0x620] sm:$0xff]  ;;  %v6400_v56 = vld [vmem:[%s9501_s4 + $0x698] sm:$0xff] }
  0x90   :  { %3619 = vmatprep.subr.mxu1 %v6357_v31  ;;  %9748 = vst [vmem:[#allocation43_spill] sm:$0xff] %v6388_v34  ;;  %v6393_v53 = vld [vmem:[%s9501_s4 + $0x720] sm:$0xff]  ;;  %3576 = vmatpush3.msra.mxu0 %v6364_v50  ;;  %9750 = vst [vmem:[#allocation45_spill] sm:$0xff] %v6400_v56  ;;  %v6405_v31 = vld [vmem:[%s9501_s4 + $0x798] sm:$0xff] }
  0x91   :  { %9749 = vst [vmem:[#allocation44_spill] sm:$0xff] %v6393_v53  ;;  %3620 = vmatpush3.msra.mxu1 %v6369_v60  ;;  %9751 = vst [vmem:[#allocation46_spill] sm:$0xff] %v6405_v31  ;;  %3577 = vmatprep.subr.mxu0 %v6376_v48  ;;  %v6412_v50 = vld [vmem:[%s9501_s4 + $0x618] sm:$0xff]  ;;  %v6424_v48 = vld [vmem:[%s9501_s4 + $0x690] sm:$0xff] }
  0x92   :  { %3621 = vmatprep.subr.mxu1 %v6381_v37  ;;  %9752 = vst [vmem:[#allocation47_spill] sm:$0xff] %v6412_v50  ;;  %v6417_v60 = vld [vmem:[%s9501_s4 + $0x718] sm:$0xff]  ;;  %3578 = vmatpush3.msra.mxu0 %v6388_v34  ;;  %9754 = vst [vmem:[#allocation49_spill] sm:$0xff] %v6424_v48  ;;  %v6429_v37 = vld [vmem:[%s9501_s4 + $0x790] sm:$0xff] }
  0x93   :  { %9753 = vst [vmem:[#allocation48_spill] sm:$0xff] %v6417_v60  ;;  %3622 = vmatpush3.msra.mxu1 %v6393_v53  ;;  %9755 = vst [vmem:[#allocation50_spill] sm:$0xff] %v6429_v37  ;;  %3579 = vmatprep.subr.mxu0 %v6400_v56  ;;  %v6436_v34 = vld [vmem:[%s9501_s4 + $0x610] sm:$0xff]  ;;  %v6448_v56 = vld [vmem:[%s9501_s4 + $0x688] sm:$0xff] }
  0x94   :  { %3623 = vmatprep.subr.mxu1 %v6405_v31  ;;  %9756 = vst [vmem:[#allocation51_spill] sm:$0xff] %v6436_v34  ;;  %v6441_v53 = vld [vmem:[%s9501_s4 + $0x710] sm:$0xff]  ;;  %3580 = vmatpush3.msra.mxu0 %v6412_v50  ;;  %9758 = vst [vmem:[#allocation53_spill] sm:$0xff] %v6448_v56  ;;  %v6453_v31 = vld [vmem:[%s9501_s4 + $0x788] sm:$0xff] }
  0x95   :  { %9757 = vst [vmem:[#allocation52_spill] sm:$0xff] %v6441_v53  ;;  %3624 = vmatpush3.msra.mxu1 %v6417_v60  ;;  %9759 = vst [vmem:[#allocation54_spill] sm:$0xff] %v6453_v31  ;;  %3581 = vmatprep.subr.mxu0 %v6424_v48  ;;  %v6460_v50 = vld [vmem:[%s9501_s4 + $0x608] sm:$0xff]  ;;  %v6472_v48 = vld [vmem:[%s9501_s4 + $0x680] sm:$0xff] }
  0x96   :  { %3625 = vmatprep.subr.mxu1 %v6429_v37  ;;  %9760 = vst [vmem:[#allocation55_spill] sm:$0xff] %v6460_v50  ;;  %v6465_v60 = vld [vmem:[%s9501_s4 + $0x708] sm:$0xff]  ;;  %3582 = vmatpush3.msra.mxu0 %v6436_v34  ;;  %9762 = vst [vmem:[#allocation57_spill] sm:$0xff] %v6472_v48  ;;  %v6477_v37 = vld [vmem:[%s9501_s4 + $0x780] sm:$0xff] }
  0x97   :  { %9761 = vst [vmem:[#allocation56_spill] sm:$0xff] %v6465_v60  ;;  %3626 = vmatpush3.msra.mxu1 %v6441_v53  ;;  %9763 = vst [vmem:[#allocation58_spill] sm:$0xff] %v6477_v37  ;;  %3583 = vmatprep.subr.mxu0 %v6448_v56  ;;  %v6484_v34 = vld [vmem:[%s9501_s4 + $0x600] sm:$0xff]  ;;  %v292_v53 = vld [vmem:[%s9502_s0 + $0x68] sm:$0xff] }
  0x98   :  { %3627 = vmatprep.subr.mxu1 %v6453_v31  ;;  %9764 = vst [vmem:[#allocation59_spill] sm:$0xff] %v6484_v34  ;;  %3584 = vmatpush3.msra.mxu0 %v6460_v50  ;;  %v291_v31 = vld [vmem:[%s9502_s0 + $0x60] sm:$0xff]  ;;  %v294_v56 = vld [vmem:[%s9502_s0 + $0x78] sm:$0xff] }
  0x99   :  { %3628 = vmatpush3.msra.mxu1 %v6465_v60  ;;  %3585 = vmatprep.subr.mxu0 %v6472_v48  ;;  %v293_v60 = vld [vmem:[%s9502_s0 + $0x70] sm:$0xff]  ;;  %v6512_v48 = vld [vmem:[%s9501_s4 + $0xf8] sm:$0xff] }
  0x9a   :  { %3629 = vmatprep.subr.mxu1 %v6477_v37  ;;  %3586 = vmatpush3.msra.mxu0 %v6484_v34  ;;  %9766 = vst [vmem:[#allocation61_spill] sm:$0xff] %v6512_v48  ;;  %v6518_v34 = vld [vmem:[%s9501_s4 + $0x1f8] sm:$0xff] }
  0x9b   :  { %917 = vmatprep.mubr.f32.mxu0 %v292_v53  ;;  %3630 = vmatpush3.msra.mxu1 %v6494_v33  ;;  %9767 = vst [vmem:[#allocation62_spill] sm:$0xff] %v6518_v34  ;;  %v308_v53 = vld [vmem:[%s9502_s0 + $0xe8] sm:$0xff]  ;;  %v6932_v33 = vld [vmem:[%s9501_s4] sm:$0xff] }
  0x9c   :  { %918 = vmatmul.mubr.f32.vlgmr.msra.gmra.mxu0 %v291_v31  ;;  %1002 = vmatprep.mubr.f32.mxu1 %v294_v56  ;;  %v6527_v31 = vld [vmem:[%s9501_s4 + $0x78] sm:$0xff]  ;;  %9828 = vst [vmem:[#allocation123_spill] sm:$0xff] %v6932_v33 }
  0x9d   :  { %3643 = vmatprep.subr.mxu0 %v6512_v48  ;;  %3687 = vmatprep.subr.mxu1 %v6518_v34  ;;  %9768 = vst [vmem:[#allocation63_spill] sm:$0xff] %v6527_v31  ;;  %v6533_v56 = vld [vmem:[%s9501_s4 + $0x178] sm:$0xff]  ;;  %v6542_v34 = vld [vmem:[%s9501_s4 + $0xf0] sm:$0xff] }
  0x9e   :  { %1003 = vmatmul.mubr.f32.vlgmr.msra.gmra.mxu1 %v293_v60  ;;  %3644 = vmatpush3.msra.mxu0 %v6527_v31  ;;  %9769 = vst [vmem:[#allocation64_spill] sm:$0xff] %v6533_v56  ;;  %v307_v60 = vld [vmem:[%s9502_s0 + $0xe0] sm:$0xff]  ;;  %9770 = vst [vmem:[#allocation65_spill] sm:$0xff] %v6542_v34  ;;  %v6548_v31 = vld [vmem:[%s9501_s4 + $0x1f0] sm:$0xff] }
  0x9f   :  { %3688 = vmatpush3.msra.mxu1 %v6533_v56  ;;  %3645 = vmatprep.subr.mxu0 %v6542_v34  ;;  %9771 = vst [vmem:[#allocation66_spill] sm:$0xff] %v6548_v31  ;;  %v6554_v56 = vld [vmem:[%s9501_s4 + $0x70] sm:$0xff]  ;;  %v310_v48 = vld [vmem:[%s9502_s0 + $0xf8] sm:$0xff] }
  0xa0   :  { %3689 = vmatprep.subr.mxu1 %v6548_v31  ;;  %922 = vmatprep.mubr.f32.mxu0 %v308_v53  ;;  %9772 = vst [vmem:[#allocation67_spill] sm:$0xff] %v6554_v56  ;;  %v6563_v34 = vld [vmem:[%s9501_s4 + $0x170] sm:$0xff]  ;;  %v6569_v53 = vld [vmem:[%s9501_s4 + $0xe8] sm:$0xff] }
  0xa1   :  { %3646 = vmatpush3.msra.mxu0 %v6554_v56  ;;  %9773 = vst [vmem:[#allocation68_spill] sm:$0xff] %v6563_v34  ;;  %3690 = vmatpush3.msra.mxu1 %v6563_v34  ;;  %9774 = vst [vmem:[#allocation69_spill] sm:$0xff] %v6569_v53  ;;  %v6575_v56 = vld [vmem:[%s9501_s4 + $0x1e8] sm:$0xff]  ;;  %v309_v31 = vld [vmem:[%s9502_s0 + $0xf0] sm:$0xff] }
  0xa2   :  { %923 = vmatmul.mubr.f32.gmra.mxu0 %v307_v60  ;;  %3647 = vmatprep.subr.mxu0 %v6569_v53  ;;  %9775 = vst [vmem:[#allocation70_spill] sm:$0xff] %v6575_v56  ;;  %v6584_v60 = vld [vmem:[%s9501_s4 + $0x68] sm:$0xff]  ;;  %v6608_v34 = vld [vmem:[%s9501_s4 + $0x1e0] sm:$0xff] }
  0xa3   :  { %3691 = vmatprep.subr.mxu1 %v6575_v56  ;;  %1007 = vmatprep.mubr.f32.mxu1 %v310_v48  ;;  %9776 = vst [vmem:[#allocation71_spill] sm:$0xff] %v6584_v60  ;;  %v324_v53 = vld [vmem:[%s9502_s0 + $0x168] sm:$0xff]  ;;  %v6599_v48 = vld [vmem:[%s9501_s4 + $0xe0] sm:$0xff]  ;;  %9779 = vst [vmem:[#allocation74_spill] sm:$0xff] %v6608_v34 }
  0xa4   :  { %3648 = vmatpush3.msra.mxu0 %v6584_v60  ;;  %v6593_v56 = vld [vmem:[%s9501_s4 + $0x168] sm:$0xff]  ;;  %9778 = vst [vmem:[#allocation73_spill] sm:$0xff] %v6599_v48  ;;  %v323_v60 = vld [vmem:[%s9502_s0 + $0x160] sm:$0xff]  ;;  %1008 = vmatmul.mubr.f32.gmra.mxu1 %v309_v31 }
  0xa5   :  { %9777 = vst [vmem:[#allocation72_spill] sm:$0xff] %v6593_v56  ;;  %3692 = vmatpush3.msra.mxu1 %v6593_v56  ;;  %3649 = vmatprep.subr.mxu0 %v6599_v48  ;;  %v6614_v56 = vld [vmem:[%s9501_s4 + $0x60] sm:$0xff]  ;;  %v326_v48 = vld [vmem:[%s9502_s0 + $0x178] sm:$0xff] }
  0xa6   :  { %3693 = vmatprep.subr.mxu1 %v6608_v34  ;;  %927 = vmatprep.mubr.f32.mxu0 %v324_v53  ;;  %9780 = vst [vmem:[#allocation75_spill] sm:$0xff] %v6614_v56  ;;  %v6623_v31 = vld [vmem:[%s9501_s4 + $0x160] sm:$0xff]  ;;  %v6629_v53 = vld [vmem:[%s9501_s4 + $0xd8] sm:$0xff]  ;;  %v325_v34 = vld [vmem:[%s9502_s0 + $0x170] sm:$0xff] }
  0xa7   :  { %3650 = vmatpush3.msra.mxu0 %v6614_v56  ;;  %9781 = vst [vmem:[#allocation76_spill] sm:$0xff] %v6623_v31  ;;  %3694 = vmatpush3.msra.mxu1 %v6623_v31  ;;  %9782 = vst [vmem:[#allocation77_spill] sm:$0xff] %v6629_v53  ;;  %v6635_v56 = vld [vmem:[%s9501_s4 + $0x1d8] sm:$0xff]  ;;  %v6668_v31 = vld [vmem:[%s9501_s4 + $0x1d0] sm:$0xff] }
  0xa8   :  { %928 = vmatmul.mubr.f32.gmra.mxu0 %v323_v60  ;;  %3651 = vmatprep.subr.mxu0 %v6629_v53  ;;  %9783 = vst [vmem:[#allocation78_spill] sm:$0xff] %v6635_v56  ;;  %v6644_v60 = vld [vmem:[%s9501_s4 + $0x58] sm:$0xff]  ;;  %v340_v53 = vld [vmem:[%s9502_s0 + $0x1e8] sm:$0xff]  ;;  %9787 = vst [vmem:[#allocation82_spill] sm:$0xff] %v6668_v31 }
  0xa9   :  { %3695 = vmatprep.subr.mxu1 %v6635_v56  ;;  %1012 = vmatprep.mubr.f32.mxu1 %v326_v48  ;;  %9784 = vst [vmem:[#allocation79_spill] sm:$0xff] %v6644_v60  ;;  %v6653_v56 = vld [vmem:[%s9501_s4 + $0x158] sm:$0xff]  ;;  %v6659_v48 = vld [vmem:[%s9501_s4 + $0xd0] sm:$0xff] }
  0xaa   :  { %3652 = vmatpush3.msra.mxu0 %v6644_v60  ;;  %9785 = vst [vmem:[#allocation80_spill] sm:$0xff] %v6653_v56  ;;  %3696 = vmatpush3.msra.mxu1 %v6653_v56  ;;  %9786 = vst [vmem:[#allocation81_spill] sm:$0xff] %v6659_v48  ;;  %v339_v60 = vld [vmem:[%s9502_s0 + $0x1e0] sm:$0xff]  ;;  %v6674_v56 = vld [vmem:[%s9501_s4 + $0x50] sm:$0xff] }
  0xab   :  { %3653 = vmatprep.subr.mxu0 %v6659_v48  ;;  %1013 = vmatmul.mubr.f32.gmra.mxu1 %v325_v34  ;;  %9788 = vst [vmem:[#allocation83_spill] sm:$0xff] %v6674_v56  ;;  %v342_v48 = vld [vmem:[%s9502_s0 + $0x1f8] sm:$0xff]  ;;  %v6683_v34 = vld [vmem:[%s9501_s4 + $0x150] sm:$0xff] }
  0xac   :  { %3697 = vmatprep.subr.mxu1 %v6668_v31  ;;  %932 = vmatprep.mubr.f32.mxu0 %v340_v53  ;;  %9789 = vst [vmem:[#allocation84_spill] sm:$0xff] %v6683_v34  ;;  %v6689_v53 = vld [vmem:[%s9501_s4 + $0xc8] sm:$0xff]  ;;  %v341_v31 = vld [vmem:[%s9502_s0 + $0x1f0] sm:$0xff] }
  0xad   :  { %3654 = vmatpush3.msra.mxu0 %v6674_v56  ;;  %3698 = vmatpush3.msra.mxu1 %v6683_v34  ;;  %9790 = vst [vmem:[#allocation85_spill] sm:$0xff] %v6689_v53  ;;  %v6695_v56 = vld [vmem:[%s9501_s4 + $0x1c8] sm:$0xff]  ;;  %v1025_v34 = vld [vmem:[%s9503_s1 + $0x10] sm:$0xff] }
  0xae   :  { %933 = vmatmul.mubr.f32.gmra.mxu0 %v339_v60  ;;  %3655 = vmatprep.subr.mxu0 %v6689_v53  ;;  %9791 = vst [vmem:[#allocation86_spill] sm:$0xff] %v6695_v56  ;;  %v6704_v60 = vld [vmem:[%s9501_s4 + $0x48] sm:$0xff] }
  0xaf   :  { %3699 = vmatprep.subr.mxu1 %v6695_v56  ;;  %1017 = vmatprep.mubr.f32.mxu1 %v342_v48  ;;  %9792 = vst [vmem:[#allocation87_spill] sm:$0xff] %v6704_v60  ;;  %v6710_v53 = vld [vmem:[%s9501_s4 + $0x148] sm:$0xff]  ;;  %v6716_v56 = vld [vmem:[%s9501_s4 + $0xc0] sm:$0xff] }
  0xb0   :  { %3656 = vmatpush3.msra.mxu0 %v6704_v60  ;;  %9793 = vst [vmem:[#allocation88_spill] sm:$0xff] %v6710_v53  ;;  %3700 = vmatpush3.msra.mxu1 %v6710_v53  ;;  %9794 = vst [vmem:[#allocation89_spill] sm:$0xff] %v6716_v56  ;;  %v6722_v48 = vld [vmem:[%s9501_s4 + $0x1c0] sm:$0xff] }
  0xb1   :  { %3657 = vmatprep.subr.mxu0 %v6716_v56  ;;  %1018 = vmatmul.mubr.f32.gmra.mxu1 %v341_v31  ;;  %9795 = vst [vmem:[#allocation90_spill] sm:$0xff] %v6722_v48  ;;  %v6728_v60 = vld [vmem:[%s9501_s4 + $0x40] sm:$0xff]  ;;  %v6740_v31 = vld [vmem:[%s9501_s4 + $0xb8] sm:$0xff] }
  0xb2   :  { %3701 = vmatprep.subr.mxu1 %v6722_v48  ;;  %9796 = vst [vmem:[#allocation91_spill] sm:$0xff] %v6728_v60  ;;  %3658 = vmatpush3.msra.mxu0 %v6728_v60  ;;  %v6734_v53 = vld [vmem:[%s9501_s4 + $0x140] sm:$0xff]  ;;  %9798 = vst [vmem:[#allocation93_spill] sm:$0xff] %v6740_v31  ;;  %v6746_v48 = vld [vmem:[%s9501_s4 + $0x1b8] sm:$0xff] }
  0xb3   :  { %9797 = vst [vmem:[#allocation92_spill] sm:$0xff] %v6734_v53  ;;  %3702 = vmatpush3.msra.mxu1 %v6734_v53  ;;  %3659 = vmatprep.subr.mxu0 %v6740_v31  ;;  %9799 = vst [vmem:[#allocation94_spill] sm:$0xff] %v6746_v48  ;;  %v6752_v60 = vld [vmem:[%s9501_s4 + $0x38] sm:$0xff]  ;;  %v6764_v31 = vld [vmem:[%s9501_s4 + $0xb0] sm:$0xff] }
  0xb4   :  { %3703 = vmatprep.subr.mxu1 %v6746_v48  ;;  %9800 = vst [vmem:[#allocation95_spill] sm:$0xff] %v6752_v60  ;;  %3660 = vmatpush3.msra.mxu0 %v6752_v60  ;;  %v6758_v53 = vld [vmem:[%s9501_s4 + $0x138] sm:$0xff]  ;;  %9802 = vst [vmem:[#allocation97_spill] sm:$0xff] %v6764_v31  ;;  %v6770_v48 = vld [vmem:[%s9501_s4 + $0x1b0] sm:$0xff] }
  0xb5   :  { %9801 = vst [vmem:[#allocation96_spill] sm:$0xff] %v6758_v53  ;;  %3704 = vmatpush3.msra.mxu1 %v6758_v53  ;;  %3661 = vmatprep.subr.mxu0 %v6764_v31  ;;  %9803 = vst [vmem:[#allocation98_spill] sm:$0xff] %v6770_v48  ;;  %v6776_v60 = vld [vmem:[%s9501_s4 + $0x30] sm:$0xff]  ;;  %v6788_v31 = vld [vmem:[%s9501_s4 + $0xa8] sm:$0xff] }
  0xb6   :  { %3705 = vmatprep.subr.mxu1 %v6770_v48  ;;  %9804 = vst [vmem:[#allocation99_spill] sm:$0xff] %v6776_v60  ;;  %3662 = vmatpush3.msra.mxu0 %v6776_v60  ;;  %v6782_v53 = vld [vmem:[%s9501_s4 + $0x130] sm:$0xff]  ;;  %9806 = vst [vmem:[#allocation101_spill] sm:$0xff] %v6788_v31  ;;  %v6794_v48 = vld [vmem:[%s9501_s4 + $0x1a8] sm:$0xff] }
  0xb7   :  { %9805 = vst [vmem:[#allocation100_spill] sm:$0xff] %v6782_v53  ;;  %3706 = vmatpush3.msra.mxu1 %v6782_v53  ;;  %3663 = vmatprep.subr.mxu0 %v6788_v31  ;;  %9807 = vst [vmem:[#allocation102_spill] sm:$0xff] %v6794_v48  ;;  %v6800_v60 = vld [vmem:[%s9501_s4 + $0x28] sm:$0xff]  ;;  %v6812_v31 = vld [vmem:[%s9501_s4 + $0xa0] sm:$0xff] }
  0xb8   :  { %3707 = vmatprep.subr.mxu1 %v6794_v48  ;;  %9808 = vst [vmem:[#allocation103_spill] sm:$0xff] %v6800_v60  ;;  %3664 = vmatpush3.msra.mxu0 %v6800_v60  ;;  %v6806_v53 = vld [vmem:[%s9501_s4 + $0x128] sm:$0xff]  ;;  %9810 = vst [vmem:[#allocation105_spill] sm:$0xff] %v6812_v31  ;;  %v6818_v48 = vld [vmem:[%s9501_s4 + $0x1a0] sm:$0xff] }
  0xb9   :  { %9809 = vst [vmem:[#allocation104_spill] sm:$0xff] %v6806_v53  ;;  %3708 = vmatpush3.msra.mxu1 %v6806_v53  ;;  %3665 = vmatprep.subr.mxu0 %v6812_v31  ;;  %9811 = vst [vmem:[#allocation106_spill] sm:$0xff] %v6818_v48  ;;  %v6824_v60 = vld [vmem:[%s9501_s4 + $0x20] sm:$0xff]  ;;  %v6836_v31 = vld [vmem:[%s9501_s4 + $0x98] sm:$0xff] }
  0xba   :  { %3709 = vmatprep.subr.mxu1 %v6818_v48  ;;  %9812 = vst [vmem:[#allocation107_spill] sm:$0xff] %v6824_v60  ;;  %3666 = vmatpush3.msra.mxu0 %v6824_v60  ;;  %v6830_v53 = vld [vmem:[%s9501_s4 + $0x120] sm:$0xff]  ;;  %9814 = vst [vmem:[#allocation109_spill] sm:$0xff] %v6836_v31  ;;  %v6842_v48 = vld [vmem:[%s9501_s4 + $0x198] sm:$0xff] }
  0xbb   :  { %9813 = vst [vmem:[#allocation108_spill] sm:$0xff] %v6830_v53  ;;  %3710 = vmatpush3.msra.mxu1 %v6830_v53  ;;  %3667 = vmatprep.subr.mxu0 %v6836_v31  ;;  %9815 = vst [vmem:[#allocation110_spill] sm:$0xff] %v6842_v48  ;;  %v6848_v60 = vld [vmem:[%s9501_s4 + $0x18] sm:$0xff]  ;;  %v6860_v31 = vld [vmem:[%s9501_s4 + $0x90] sm:$0xff] }
  0xbc   :  { %3711 = vmatprep.subr.mxu1 %v6842_v48  ;;  %9816 = vst [vmem:[#allocation111_spill] sm:$0xff] %v6848_v60  ;;  %3668 = vmatpush3.msra.mxu0 %v6848_v60  ;;  %v6854_v53 = vld [vmem:[%s9501_s4 + $0x118] sm:$0xff]  ;;  %9818 = vst [vmem:[#allocation113_spill] sm:$0xff] %v6860_v31  ;;  %v6866_v48 = vld [vmem:[%s9501_s4 + $0x190] sm:$0xff] }
  0xbd   :  { %9817 = vst [vmem:[#allocation112_spill] sm:$0xff] %v6854_v53  ;;  %3712 = vmatpush3.msra.mxu1 %v6854_v53  ;;  %3669 = vmatprep.subr.mxu0 %v6860_v31  ;;  %9819 = vst [vmem:[#allocation114_spill] sm:$0xff] %v6866_v48  ;;  %v6872_v60 = vld [vmem:[%s9501_s4 + $0x10] sm:$0xff]  ;;  %v6884_v31 = vld [vmem:[%s9501_s4 + $0x88] sm:$0xff] }
  0xbe   :  { %3713 = vmatprep.subr.mxu1 %v6866_v48  ;;  %9820 = vst [vmem:[#allocation115_spill] sm:$0xff] %v6872_v60  ;;  %3670 = vmatpush3.msra.mxu0 %v6872_v60  ;;  %v6878_v53 = vld [vmem:[%s9501_s4 + $0x110] sm:$0xff]  ;;  %9822 = vst [vmem:[#allocation117_spill] sm:$0xff] %v6884_v31  ;;  %v6890_v48 = vld [vmem:[%s9501_s4 + $0x188] sm:$0xff] }
  0xbf   :  { %9821 = vst [vmem:[#allocation116_spill] sm:$0xff] %v6878_v53  ;;  %3714 = vmatpush3.msra.mxu1 %v6878_v53  ;;  %3671 = vmatprep.subr.mxu0 %v6884_v31  ;;  %9823 = vst [vmem:[#allocation118_spill] sm:$0xff] %v6890_v48  ;;  %v1024_v60 = vld [vmem:[%s9503_s1 + $0x8] sm:$0xff]  ;;  %v6914_v56 = vld [vmem:[%s9501_s4 + $0x80] sm:$0xff] }
  0xc0   :  { %3715 = vmatprep.subr.mxu1 %v6890_v48  ;;  %v6899_v53 = vld [vmem:[%s9501_s4 + $0x8] sm:$0xff]  ;;  %v1026_v48 = vld [vmem:[%s9503_s1 + $0x18] sm:$0xff]  ;;  %9826 = vst [vmem:[#allocation121_spill] sm:$0xff] %v6914_v56  ;;  %1151 = vmatprep.mubr.f32.mxu0 %v1024_v60 }
  0xc1   :  { %9824 = vst [vmem:[#allocation119_spill] sm:$0xff] %v6899_v53  ;;  %3672 = vmatpush3.msra.mxu0 %v6899_v53  ;;  %v6905_v31 = vld [vmem:[%s9501_s4 + $0x108] sm:$0xff]  ;;  %v6920_v53 = vld [vmem:[%s9501_s4 + $0x180] sm:$0xff]  ;;  %1236 = vmatprep.mubr.f32.mxu1 %v1026_v48  ;;  %v6950_v60 = vld [vmem:[%s9501_s4 + $0x3f8] sm:$0xff] }
  0xc2   :  { %9825 = vst [vmem:[#allocation120_spill] sm:$0xff] %v6905_v31  ;;  %3716 = vmatpush3.msra.mxu1 %v6905_v31  ;;  %3673 = vmatprep.subr.mxu0 %v6914_v56  ;;  %9827 = vst [vmem:[#allocation122_spill] sm:$0xff] %v6920_v53  ;;  %v1023_v31 = vld [vmem:[%s9503_s1] sm:$0xff]  ;;  %v6944_v56 = vld [vmem:[%s9501_s4 + $0x2f8] sm:$0xff] }
  0xc3   :  { %3717 = vmatprep.subr.mxu1 %v6920_v53  ;;  %3674 = vmatpush3.msra.mxu0 %v6932_v33  ;;  %v6938_v53 = vld [vmem:[%s9501_s4 + $0x100] sm:$0xff]  ;;  %9830 = vst [vmem:[#allocation125_spill] sm:$0xff] %v6944_v56  ;;  %9831 = vst [vmem:[#allocation126_spill] sm:$0xff] %v6950_v60  ;;  %v6956_v48 = vld [vmem:[%s9501_s4 + $0x278] sm:$0xff] }
  0xc4   :  { %9829 = vst [vmem:[#allocation124_spill] sm:$0xff] %v6938_v53  ;;  %3718 = vmatpush3.msra.mxu1 %v6938_v53  ;;  %1152 = vmatmul.mubr.f32.vlgmr.msra.gmra.mxu0 %v1023_v31  ;;  %9832 = vst [vmem:[#allocation127_spill] sm:$0xff] %v6956_v48  ;;  %v6968_v31 = vld [vmem:[%s9501_s4 + $0x2f0] sm:$0xff]  ;;  %v7160_v53 = vld [vmem:[%s9501_s4 + $0x338] sm:$0xff] }
  0xc5   :  { %1237 = vmatmul.mubr.f32.vlgmr.msra.gmra.mxu1 %v1025_v34  ;;  %3731 = vmatprep.subr.mxu0 %v6944_v56  ;;  %v6962_v34 = vld [vmem:[%s9501_s4 + $0x378] sm:$0xff]  ;;  %9834 = vst [vmem:[#allocation129_spill] sm:$0xff] %v6968_v31  ;;  %9865 = vst [vmem:[#allocation160_spill] sm:$0xff] %v7160_v53 }
  0xc6   :  { %3775 = vmatprep.subr.mxu1 %v6950_v60  ;;  %3732 = vmatpush3.msra.mxu0 %v6956_v48  ;;  %9833 = vst [vmem:[#allocation128_spill] sm:$0xff] %v6962_v34  ;;  %v6974_v60 = vld [vmem:[%s9501_s4 + $0x3f0] sm:$0xff]  ;;  %v7142_v56 = vld [vmem:[%s9501_s4 + $0x2b8] sm:$0xff] }
  0xc7   :  { %3776 = vmatpush3.msra.mxu1 %v6962_v34  ;;  %3733 = vmatprep.subr.mxu0 %v6968_v31  ;;  %9835 = vst [vmem:[#allocation130_spill] sm:$0xff] %v6974_v60  ;;  %v6980_v48 = vld [vmem:[%s9501_s4 + $0x270] sm:$0xff]  ;;  %v6992_v31 = vld [vmem:[%s9501_s4 + $0x2e8] sm:$0xff]  ;;  %9862 = vst [vmem:[#allocation157_spill] sm:$0xff] %v7142_v56 }
  0xc8   :  { %3777 = vmatprep.subr.mxu1 %v6974_v60  ;;  %9836 = vst [vmem:[#allocation131_spill] sm:$0xff] %v6980_v48  ;;  %3734 = vmatpush3.msra.mxu0 %v6980_v48  ;;  %v6986_v34 = vld [vmem:[%s9501_s4 + $0x370] sm:$0xff]  ;;  %9838 = vst [vmem:[#allocation133_spill] sm:$0xff] %v6992_v31  ;;  %v6998_v60 = vld [vmem:[%s9501_s4 + $0x3e8] sm:$0xff] }
  0xc9   :  { %9837 = vst [vmem:[#allocation132_spill] sm:$0xff] %v6986_v34  ;;  %3778 = vmatpush3.msra.mxu1 %v6986_v34  ;;  %3735 = vmatprep.subr.mxu0 %v6992_v31  ;;  %9839 = vst [vmem:[#allocation134_spill] sm:$0xff] %v6998_v60  ;;  %v7004_v48 = vld [vmem:[%s9501_s4 + $0x268] sm:$0xff]  ;;  %v7016_v31 = vld [vmem:[%s9501_s4 + $0x2e0] sm:$0xff] }
  0xca   :  { %3779 = vmatprep.subr.mxu1 %v6998_v60  ;;  %9840 = vst [vmem:[#allocation135_spill] sm:$0xff] %v7004_v48  ;;  %3736 = vmatpush3.msra.mxu0 %v7004_v48  ;;  %v7010_v34 = vld [vmem:[%s9501_s4 + $0x368] sm:$0xff]  ;;  %9842 = vst [vmem:[#allocation137_spill] sm:$0xff] %v7016_v31  ;;  %v7022_v60 = vld [vmem:[%s9501_s4 + $0x3e0] sm:$0xff] }
  0xcb   :  { %9841 = vst [vmem:[#allocation136_spill] sm:$0xff] %v7010_v34  ;;  %3780 = vmatpush3.msra.mxu1 %v7010_v34  ;;  %3737 = vmatprep.subr.mxu0 %v7016_v31  ;;  %9843 = vst [vmem:[#allocation138_spill] sm:$0xff] %v7022_v60  ;;  %v7028_v48 = vld [vmem:[%s9501_s4 + $0x260] sm:$0xff]  ;;  %v7040_v31 = vld [vmem:[%s9501_s4 + $0x2d8] sm:$0xff] }
  0xcc   :  { %3781 = vmatprep.subr.mxu1 %v7022_v60  ;;  %9844 = vst [vmem:[#allocation139_spill] sm:$0xff] %v7028_v48  ;;  %3738 = vmatpush3.msra.mxu0 %v7028_v48  ;;  %v7034_v34 = vld [vmem:[%s9501_s4 + $0x360] sm:$0xff]  ;;  %9846 = vst [vmem:[#allocation141_spill] sm:$0xff] %v7040_v31  ;;  %v7046_v60 = vld [vmem:[%s9501_s4 + $0x3d8] sm:$0xff] }
  0xcd   :  { %9845 = vst [vmem:[#allocation140_spill] sm:$0xff] %v7034_v34  ;;  %3782 = vmatpush3.msra.mxu1 %v7034_v34  ;;  %3739 = vmatprep.subr.mxu0 %v7040_v31  ;;  %9847 = vst [vmem:[#allocation142_spill] sm:$0xff] %v7046_v60  ;;  %v7052_v48 = vld [vmem:[%s9501_s4 + $0x258] sm:$0xff]  ;;  %v7064_v31 = vld [vmem:[%s9501_s4 + $0x2d0] sm:$0xff] }
  0xce   :  { %3783 = vmatprep.subr.mxu1 %v7046_v60  ;;  %9848 = vst [vmem:[#allocation143_spill] sm:$0xff] %v7052_v48  ;;  %3740 = vmatpush3.msra.mxu0 %v7052_v48  ;;  %v7058_v34 = vld [vmem:[%s9501_s4 + $0x358] sm:$0xff]  ;;  %9850 = vst [vmem:[#allocation145_spill] sm:$0xff] %v7064_v31  ;;  %v7070_v60 = vld [vmem:[%s9501_s4 + $0x3d0] sm:$0xff] }
  0xcf   :  { %9849 = vst [vmem:[#allocation144_spill] sm:$0xff] %v7058_v34  ;;  %3784 = vmatpush3.msra.mxu1 %v7058_v34  ;;  %3741 = vmatprep.subr.mxu0 %v7064_v31  ;;  %9851 = vst [vmem:[#allocation146_spill] sm:$0xff] %v7070_v60  ;;  %v7076_v48 = vld [vmem:[%s9501_s4 + $0x250] sm:$0xff]  ;;  %v7088_v31 = vld [vmem:[%s9501_s4 + $0x2c8] sm:$0xff] }
  0xd0   :  { %3785 = vmatprep.subr.mxu1 %v7070_v60  ;;  %9852 = vst [vmem:[#allocation147_spill] sm:$0xff] %v7076_v48  ;;  %3742 = vmatpush3.msra.mxu0 %v7076_v48  ;;  %v7082_v34 = vld [vmem:[%s9501_s4 + $0x350] sm:$0xff]  ;;  %9854 = vst [vmem:[#allocation149_spill] sm:$0xff] %v7088_v31  ;;  %v7094_v60 = vld [vmem:[%s9501_s4 + $0x3c8] sm:$0xff] }
  0xd1   :  { %9853 = vst [vmem:[#allocation148_spill] sm:$0xff] %v7082_v34  ;;  %3786 = vmatpush3.msra.mxu1 %v7082_v34  ;;  %3743 = vmatprep.subr.mxu0 %v7088_v31  ;;  %9855 = vst [vmem:[#allocation150_spill] sm:$0xff] %v7094_v60  ;;  %v7100_v48 = vld [vmem:[%s9501_s4 + $0x248] sm:$0xff]  ;;  %v7112_v31 = vld [vmem:[%s9501_s4 + $0x2c0] sm:$0xff] }
  0xd2   :  { %3787 = vmatprep.subr.mxu1 %v7094_v60  ;;  %9856 = vst [vmem:[#allocation151_spill] sm:$0xff] %v7100_v48  ;;  %3744 = vmatpush3.msra.mxu0 %v7100_v48  ;;  %v7106_v34 = vld [vmem:[%s9501_s4 + $0x348] sm:$0xff]  ;;  %9858 = vst [vmem:[#allocation153_spill] sm:$0xff] %v7112_v31  ;;  %v7118_v60 = vld [vmem:[%s9501_s4 + $0x3c0] sm:$0xff] }
  0xd3   :  { %9857 = vst [vmem:[#allocation152_spill] sm:$0xff] %v7106_v34  ;;  %3788 = vmatpush3.msra.mxu1 %v7106_v34  ;;  %3745 = vmatprep.subr.mxu0 %v7112_v31  ;;  %9859 = vst [vmem:[#allocation154_spill] sm:$0xff] %v7118_v60  ;;  %v7124_v48 = vld [vmem:[%s9501_s4 + $0x240] sm:$0xff]  ;;  %v1040_v31 = vld [vmem:[%s9503_s1 + $0x88] sm:$0xff] }
  0xd4   :  { %3789 = vmatprep.subr.mxu1 %v7118_v60  ;;  %9860 = vst [vmem:[#allocation155_spill] sm:$0xff] %v7124_v48  ;;  %3746 = vmatpush3.msra.mxu0 %v7124_v48  ;;  %v7130_v34 = vld [vmem:[%s9501_s4 + $0x340] sm:$0xff]  ;;  %v1042_v60 = vld [vmem:[%s9503_s1 + $0x98] sm:$0xff] }
  0xd5   :  { %9861 = vst [vmem:[#allocation156_spill] sm:$0xff] %v7130_v34  ;;  %3790 = vmatpush3.msra.mxu1 %v7130_v34  ;;  %3747 = vmatprep.subr.mxu0 %v7142_v56  ;;  %v7148_v48 = vld [vmem:[%s9501_s4 + $0x3b8] sm:$0xff]  ;;  %v1039_v56 = vld [vmem:[%s9503_s1 + $0x80] sm:$0xff] }
  0xd6   :  { %9863 = vst [vmem:[#allocation158_spill] sm:$0xff] %v7148_v48  ;;  %3791 = vmatprep.subr.mxu1 %v7148_v48  ;;  %v7154_v34 = vld [vmem:[%s9501_s4 + $0x238] sm:$0xff]  ;;  %v1041_v48 = vld [vmem:[%s9503_s1 + $0x90] sm:$0xff]  ;;  %1156 = vmatprep.mubr.f32.mxu0 %v1040_v31 }
  0xd7   :  { %9864 = vst [vmem:[#allocation159_spill] sm:$0xff] %v7154_v34  ;;  %3748 = vmatpush3.msra.mxu0 %v7154_v34  ;;  %3792 = vmatpush3.msra.mxu1 %v7160_v53  ;;  %v7172_v34 = vld [vmem:[%s9501_s4 + $0x2b0] sm:$0xff] }
  0xd8   :  { %1241 = vmatprep.mubr.f32.mxu1 %v1042_v60  ;;  %9866 = vst [vmem:[#allocation161_spill] sm:$0xff] %v7172_v34  ;;  %3749 = vmatprep.subr.mxu0 %v7172_v34  ;;  %v7178_v53 = vld [vmem:[%s9501_s4 + $0x3b0] sm:$0xff]  ;;  %v7220_v34 = vld [vmem:[%s9501_s4 + $0x328] sm:$0xff] }
  0xd9   :  { %9867 = vst [vmem:[#allocation162_spill] sm:$0xff] %v7178_v53  ;;  %3793 = vmatprep.subr.mxu1 %v7178_v53  ;;  %1157 = vmatmul.mubr.f32.gmra.mxu0 %v1039_v56  ;;  %v7184_v60 = vld [vmem:[%s9501_s4 + $0x230] sm:$0xff]  ;;  %v1056_v53 = vld [vmem:[%s9503_s1 + $0x108] sm:$0xff]  ;;  %v1058_v56 = vld [vmem:[%s9503_s1 + $0x118] sm:$0xff] }
  0xda   :  { %1242 = vmatmul.mubr.f32.gmra.mxu1 %v1041_v48  ;;  %9868 = vst [vmem:[#allocation163_spill] sm:$0xff] %v7184_v60  ;;  %3750 = vmatpush3.msra.mxu0 %v7184_v60  ;;  %v7190_v31 = vld [vmem:[%s9501_s4 + $0x330] sm:$0xff]  ;;  %v7202_v48 = vld [vmem:[%s9501_s4 + $0x2a8] sm:$0xff]  ;;  %9873 = vst [vmem:[#allocation168_spill] sm:$0xff] %v7220_v34 }
  0xdb   :  { %9869 = vst [vmem:[#allocation164_spill] sm:$0xff] %v7190_v31  ;;  %3794 = vmatpush3.msra.mxu1 %v7190_v31  ;;  %9870 = vst [vmem:[#allocation165_spill] sm:$0xff] %v7202_v48  ;;  %3751 = vmatprep.subr.mxu0 %v7202_v48  ;;  %v7208_v60 = vld [vmem:[%s9501_s4 + $0x3a8] sm:$0xff]  ;;  %v1055_v48 = vld [vmem:[%s9503_s1 + $0x100] sm:$0xff] }
  0xdc   :  { %9871 = vst [vmem:[#allocation166_spill] sm:$0xff] %v7208_v60  ;;  %3795 = vmatprep.subr.mxu1 %v7208_v60  ;;  %v7214_v31 = vld [vmem:[%s9501_s4 + $0x228] sm:$0xff]  ;;  %v1057_v60 = vld [vmem:[%s9503_s1 + $0x110] sm:$0xff]  ;;  %1161 = vmatprep.mubr.f32.mxu0 %v1056_v53  ;;  %v7244_v53 = vld [vmem:[%s9501_s4 + $0x220] sm:$0xff] }
  0xdd   :  { %9872 = vst [vmem:[#allocation167_spill] sm:$0xff] %v7214_v31  ;;  %3752 = vmatpush3.msra.mxu0 %v7214_v31  ;;  %3796 = vmatpush3.msra.mxu1 %v7220_v34  ;;  %v7232_v31 = vld [vmem:[%s9501_s4 + $0x2a0] sm:$0xff]  ;;  %9876 = vst [vmem:[#allocation171_spill] sm:$0xff] %v7244_v53 }
  0xde   :  { %1246 = vmatprep.mubr.f32.mxu1 %v1058_v56  ;;  %9874 = vst [vmem:[#allocation169_spill] sm:$0xff] %v7232_v31  ;;  %3753 = vmatprep.subr.mxu0 %v7232_v31  ;;  %v7238_v34 = vld [vmem:[%s9501_s4 + $0x3a0] sm:$0xff]  ;;  %v7280_v31 = vld [vmem:[%s9501_s4 + $0x318] sm:$0xff] }
  0xdf   :  { %9875 = vst [vmem:[#allocation170_spill] sm:$0xff] %v7238_v34  ;;  %3797 = vmatprep.subr.mxu1 %v7238_v34  ;;  %1162 = vmatmul.mubr.f32.gmra.mxu0 %v1055_v48  ;;  %v7250_v56 = vld [vmem:[%s9501_s4 + $0x320] sm:$0xff]  ;;  %v1072_v34 = vld [vmem:[%s9503_s1 + $0x188] sm:$0xff]  ;;  %v7262_v48 = vld [vmem:[%s9501_s4 + $0x298] sm:$0xff] }
  0xe0   :  { %1247 = vmatmul.mubr.f32.gmra.mxu1 %v1057_v60  ;;  %3754 = vmatpush3.msra.mxu0 %v7244_v53  ;;  %9877 = vst [vmem:[#allocation172_spill] sm:$0xff] %v7250_v56  ;;  %v1074_v60 = vld [vmem:[%s9503_s1 + $0x198] sm:$0xff]  ;;  %9878 = vst [vmem:[#allocation173_spill] sm:$0xff] %v7262_v48 }
  0xe1   :  { %3798 = vmatpush3.msra.mxu1 %v7250_v56  ;;  %3755 = vmatprep.subr.mxu0 %v7262_v48  ;;  %v7268_v53 = vld [vmem:[%s9501_s4 + $0x398] sm:$0xff]  ;;  %9881 = vst [vmem:[#allocation176_spill] sm:$0xff] %v7280_v31  ;;  %v1071_v48 = vld [vmem:[%s9503_s1 + $0x180] sm:$0xff] }
  0xe2   :  { %9879 = vst [vmem:[#allocation174_spill] sm:$0xff] %v7268_v53  ;;  %3799 = vmatprep.subr.mxu1 %v7268_v53  ;;  %v7274_v56 = vld [vmem:[%s9501_s4 + $0x218] sm:$0xff]  ;;  %v1073_v53 = vld [vmem:[%s9503_s1 + $0x190] sm:$0xff]  ;;  %1166 = vmatprep.mubr.f32.mxu0 %v1072_v34 }
  0xe3   :  { %9880 = vst [vmem:[#allocation175_spill] sm:$0xff] %v7274_v56  ;;  %3756 = vmatpush3.msra.mxu0 %v7274_v56  ;;  %3800 = vmatpush3.msra.mxu1 %v7280_v31  ;;  %v7292_v56 = vld [vmem:[%s9501_s4 + $0x290] sm:$0xff] }
  0xe4   :  { %1251 = vmatprep.mubr.f32.mxu1 %v1074_v60  ;;  %9882 = vst [vmem:[#allocation177_spill] sm:$0xff] %v7292_v56  ;;  %3757 = vmatprep.subr.mxu0 %v7292_v56  ;;  %v7298_v31 = vld [vmem:[%s9501_s4 + $0x390] sm:$0xff]  ;;  %v3323_v33 = vpop.f32.mrf.mxu0 }
  0xe5   :  { %9883 = vst [vmem:[#allocation178_spill] sm:$0xff] %v7298_v31  ;;  %3801 = vmatprep.subr.mxu1 %v7298_v31  ;;  %v3367_v37 = vpop.f32.mrf.mxu1  ;;  %1167 = vmatmul.mubr.f32.gmra.mxu0 %v1071_v48  ;;  %v7304_v34 = vld [vmem:[%s9501_s4 + $0x210] sm:$0xff]  ;;  %v7322_v48 = vld [vmem:[%s9501_s4 + $0x388] sm:$0xff] }
  0xe6   :  { %1252 = vmatmul.mubr.f32.gmra.mxu1 %v1073_v53  ;;  %9884 = vst [vmem:[#allocation179_spill] sm:$0xff] %v7304_v34  ;;  %3758 = vmatpush3.msra.mxu0 %v7304_v34  ;;  %v7310_v60 = vld [vmem:[%s9501_s4 + $0x310] sm:$0xff]  ;;  %v3324_v56 = vpop.f32.mrf.mxu0  ;;  %v7316_v53 = vld [vmem:[%s9501_s4 + $0x288] sm:$0xff]  ;;  %9887 = vst [vmem:[#allocation182_spill] sm:$0xff] %v7322_v48 }
  0xe7   :  { %9885 = vst [vmem:[#allocation180_spill] sm:$0xff] %v7310_v60  ;;  %3802 = vmatpush3.msra.mxu1 %v7310_v60  ;;  %v3368_v31 = vpop.f32.mrf.mxu1  ;;  %9886 = vst [vmem:[#allocation181_spill] sm:$0xff] %v7316_v53  ;;  %3759 = vmatprep.subr.mxu0 %v7316_v53  ;;  %v1028_v60 = vld [vmem:[%s9503_s1 + $0x28] sm:$0xff]  ;;  %v3325_v34 = vadd.f32 %v3324_v56, %v3323_v33  ;;  %v7346_v33 = vld [vmem:[%s9501_s4 + $0x280] sm:$0xff] }
  0xe8   :  { %3803 = vmatprep.subr.mxu1 %v7322_v48  ;;  %v3369_v50 = vadd.f32 %v3368_v31, %v3367_v37  ;;  %3760 = vmatpush3.msra.mxu0 %v7331_v44  ;;  %v7337_v53 = vld [vmem:[%s9501_s4 + $0x308] sm:$0xff]  ;;  %v1027_v48 = vld [vmem:[%s9503_s1 + $0x20] sm:$0xff]  ;;  %9889 = vst [vmem:[#allocation184_spill] sm:$0xff] %v7346_v33  ;;  %v1030_v31 = vld [vmem:[%s9503_s1 + $0x38] sm:$0xff] }
  0xe9   :  { %9888 = vst [vmem:[#allocation183_spill] sm:$0xff] %v7337_v53  ;;  %3804 = vmatpush3.msra.mxu1 %v7337_v53  ;;  %3761 = vmatprep.subr.mxu0 %v7346_v33  ;;  %v7352_v37 = vld [vmem:[%s9501_s4 + $0x380] sm:$0xff]  ;;  %v1029_v33 = vld [vmem:[%s9503_s1 + $0x30] sm:$0xff] }
  0xea   :  { %9890 = vst [vmem:[#allocation185_spill] sm:$0xff] %v7352_v37  ;;  %3805 = vmatprep.subr.mxu1 %v7352_v37  ;;  %v7358_v56 = vadd.f32 %v3369_v50, %v3325_v34  ;;  %v7363_v53 = vld [vmem:[%s9501_s4 + $0x200] sm:$0xff]  ;;  %1321 = vmatprep.mubr.f32.mxu0 %v1028_v60  ;;  %v7378_v50 = vld [vmem:[%s9501_s4 + $0x4f8] sm:$0xff]  ;;  %v1044_v60 = vld [vmem:[%s9503_s1 + $0xa8] sm:$0xff] }
  0xeb   :  { %3762 = vmatpush3.msra.mxu0 %v7363_v53  ;;  %v7372_v37 = vld [vmem:[%s9501_s4 + $0x300] sm:$0xff]  ;;  %1406 = vmatprep.mubr.f32.mxu1 %v1030_v31  ;;  %9891 = vst [vmem:[#allocation186_spill] sm:$0xff] %v7378_v50  ;;  %v7384_v34 = vld [vmem:[%s9501_s4 + $0x5f8] sm:$0xff] }
  0xec   :  { %3806 = vmatpush3.msra.mxu1 %v7372_v37  ;;  %1322 = vmatmul.mubr.f32.vlgmr.msra.gmra.mxu0 %v1027_v48  ;;  %9892 = vst [vmem:[#allocation187_spill] sm:$0xff] %v7384_v34  ;;  %v7393_v48 = vld [vmem:[%s9501_s4 + $0x478] sm:$0xff] }
  0xed   :  { %3819 = vmatprep.subr.mxu0 %v7378_v50  ;;  %3863 = vmatprep.subr.mxu1 %v7384_v34  ;;  %9893 = vst [vmem:[#allocation188_spill] sm:$0xff] %v7393_v48  ;;  %v7399_v31 = vld [vmem:[%s9501_s4 + $0x578] sm:$0xff]  ;;  %v7408_v34 = vld [vmem:[%s9501_s4 + $0x4f0] sm:$0xff] }
  0xee   :  { %1407 = vmatmul.mubr.f32.vlgmr.msra.gmra.mxu1 %v1029_v33  ;;  %3820 = vmatpush3.msra.mxu0 %v7393_v48  ;;  %9894 = vst [vmem:[#allocation189_spill] sm:$0xff] %v7399_v31  ;;  %v1043_v33 = vld [vmem:[%s9503_s1 + $0xa0] sm:$0xff]  ;;  %9895 = vst [vmem:[#allocation190_spill] sm:$0xff] %v7408_v34  ;;  %v7414_v48 = vld [vmem:[%s9501_s4 + $0x5f0] sm:$0xff] }
  0xef   :  { %3864 = vmatpush3.msra.mxu1 %v7399_v31  ;;  %3821 = vmatprep.subr.mxu0 %v7408_v34  ;;  %9896 = vst [vmem:[#allocation191_spill] sm:$0xff] %v7414_v48  ;;  %v7420_v31 = vld [vmem:[%s9501_s4 + $0x470] sm:$0xff]  ;;  %v1046_v50 = vld [vmem:[%s9503_s1 + $0xb8] sm:$0xff] }
  0xf0   :  { %3865 = vmatprep.subr.mxu1 %v7414_v48  ;;  %1326 = vmatprep.mubr.f32.mxu0 %v1044_v60  ;;  %9897 = vst [vmem:[#allocation192_spill] sm:$0xff] %v7420_v31  ;;  %v7429_v34 = vld [vmem:[%s9501_s4 + $0x570] sm:$0xff]  ;;  %v7435_v60 = vld [vmem:[%s9501_s4 + $0x4e8] sm:$0xff] }
  0xf1   :  { %3822 = vmatpush3.msra.mxu0 %v7420_v31  ;;  %9898 = vst [vmem:[#allocation193_spill] sm:$0xff] %v7429_v34  ;;  %3866 = vmatpush3.msra.mxu1 %v7429_v34  ;;  %9899 = vst [vmem:[#allocation194_spill] sm:$0xff] %v7435_v60  ;;  %v7441_v31 = vld [vmem:[%s9501_s4 + $0x5e8] sm:$0xff]  ;;  %v1045_v48 = vld [vmem:[%s9503_s1 + $0xb0] sm:$0xff] }
  0xf2   :  { %1327 = vmatmul.mubr.f32.gmra.mxu0 %v1043_v33  ;;  %3823 = vmatprep.subr.mxu0 %v7435_v60  ;;  %9900 = vst [vmem:[#allocation195_spill] sm:$0xff] %v7441_v31  ;;  %v7450_v33 = vld [vmem:[%s9501_s4 + $0x468] sm:$0xff]  ;;  %v7474_v34 = vld [vmem:[%s9501_s4 + $0x5e0] sm:$0xff] }
  0xf3   :  { %3867 = vmatprep.subr.mxu1 %v7441_v31  ;;  %1411 = vmatprep.mubr.f32.mxu1 %v1046_v50  ;;  %9901 = vst [vmem:[#allocation196_spill] sm:$0xff] %v7450_v33  ;;  %v1060_v60 = vld [vmem:[%s9503_s1 + $0x128] sm:$0xff]  ;;  %v7465_v50 = vld [vmem:[%s9501_s4 + $0x4e0] sm:$0xff]  ;;  %9904 = vst [vmem:[#allocation199_spill] sm:$0xff] %v7474_v34 }
  0xf4   :  { %3824 = vmatpush3.msra.mxu0 %v7450_v33  ;;  %v7459_v31 = vld [vmem:[%s9501_s4 + $0x568] sm:$0xff]  ;;  %9903 = vst [vmem:[#allocation198_spill] sm:$0xff] %v7465_v50  ;;  %v1059_v33 = vld [vmem:[%s9503_s1 + $0x120] sm:$0xff]  ;;  %1412 = vmatmul.mubr.f32.gmra.mxu1 %v1045_v48  ;;  %v1061_v48 = vld [vmem:[%s9503_s1 + $0x130] sm:$0xff] }
  0xf5   :  { %9902 = vst [vmem:[#allocation197_spill] sm:$0xff] %v7459_v31  ;;  %3868 = vmatpush3.msra.mxu1 %v7459_v31  ;;  %3825 = vmatprep.subr.mxu0 %v7465_v50  ;;  %v7480_v31 = vld [vmem:[%s9501_s4 + $0x460] sm:$0xff]  ;;  %v1062_v50 = vld [vmem:[%s9503_s1 + $0x138] sm:$0xff] }
  0xf6   :  { %3869 = vmatprep.subr.mxu1 %v7474_v34  ;;  %1331 = vmatprep.mubr.f32.mxu0 %v1060_v60  ;;  %9905 = vst [vmem:[#allocation200_spill] sm:$0xff] %v7480_v31  ;;  %v1076_v60 = vld [vmem:[%s9503_s1 + $0x1a8] sm:$0xff] }
  0xf7   :  { %3826 = vmatpush3.msra.mxu0 %v7480_v31  ;;  %3870 = vmatpush3.msra.mxu1 %v5753_v40  ;;  %v1075_v40 = vld [vmem:[%s9503_s1 + $0x1a0] sm:$0xff] }
  0xf8   :  { %1332 = vmatmul.mubr.f32.gmra.mxu0 %v1059_v33  ;;  %3827 = vmatprep.subr.mxu0 %v5761_v42 }
  0xf9   :  { %3871 = vmatprep.subr.mxu1 %v5766_v43  ;;  %1416 = vmatprep.mubr.f32.mxu1 %v1062_v50  ;;  %v3326_v31 = vpop.f32.mrf.mxu0 }
  0xfa   :  { %3828 = vmatpush3.msra.mxu0 %v5774_v45  ;;  %v3370_v34 = vpop.f32.mrf.mxu1  ;;  %3872 = vmatpush3.msra.mxu1 %v5780_v46  ;;  %v1078_v45 = vld [vmem:[%s9503_s1 + $0x1b8] sm:$0xff] }
  0xfb   :  { %3829 = vmatprep.subr.mxu0 %v5785_v47  ;;  %1417 = vmatmul.mubr.f32.gmra.mxu1 %v1061_v48  ;;  %v3327_v42 = vpop.f32.mrf.mxu0  ;;  %v1077_v47 = vld [vmem:[%s9503_s1 + $0x1b0] sm:$0xff]  ;;  %v1063_v48 = vld [vmem:[%s9503_s1 + $0x140] sm:$0xff] }
  0xfc   :  { %3873 = vmatprep.subr.mxu1 %v5795_v49  ;;  %v3371_v43 = vpop.f32.mrf.mxu1  ;;  %1336 = vmatprep.mubr.f32.mxu0 %v1076_v60  ;;  %v3328_v33 = vadd.f32 %v3327_v42, %v3326_v31  ;;  %v9913_v31 = vld [vmem:[#allocation9_spill] sm:$0xff] }
  0xfd   :  { %3830 = vmatpush3.msra.mxu0 %v5804_v51  ;;  %v3372_v46 = vadd.f32 %v3371_v43, %v3370_v34  ;;  %3874 = vmatpush3.msra.mxu1 %v5811_v52 }
  0xfe   :  { %1337 = vmatmul.mubr.f32.gmra.mxu0 %v1075_v40  ;;  %3831 = vmatprep.subr.mxu0 %v5820_v54  ;;  %v9914_v40 = vld [vmem:[#allocation10_spill] sm:$0xff] }
  0xff   :  { %3875 = vmatprep.subr.mxu1 %v5825_v55  ;;  %v7512_v49 = vadd.f32 %v3372_v46, %v3328_v33  ;;  %1421 = vmatprep.mubr.f32.mxu1 %v1078_v45  ;;  %v3329_v51 = vpop.f32.mrf.mxu0  ;;  %v9915_v45 = vld [vmem:[#allocation11_spill] sm:$0xff]  ;;  %v1066_v33 = vld [vmem:[%s9503_s1 + $0x158] sm:$0xff] }
 0x100   :  { %3832 = vmatpush3.msra.mxu0 %v5834_v57  ;;  %v3373_v50 = vpop.f32.mrf.mxu1  ;;  %3876 = vmatpush3.msra.mxu1 %v5840_v58 }
 0x101   :  { %3833 = vmatprep.subr.mxu0 %v5845_v59  ;;  %1422 = vmatmul.mubr.f32.gmra.mxu1 %v1077_v47  ;;  %v3330_v52 = vpop.f32.mrf.mxu0  ;;  %v9916_v47 = vld [vmem:[#allocation12_spill] sm:$0xff] }
 0x102   :  { %3877 = vmatprep.subr.mxu1 %v5855_v61  ;;  %v3374_v54 = vpop.f32.mrf.mxu1  ;;  %3834 = vmatpush3.msra.mxu0 %v5861_v62  ;;  %v3331_v55 = vadd.f32 %v3330_v52, %v3329_v51  ;;  %v9917_v51 = vld [vmem:[#allocation13_spill] sm:$0xff]  ;;  %v1065_v52 = vld [vmem:[%s9503_s1 + $0x150] sm:$0xff] }
 0x103   :  { %3878 = vmatpush3.msra.mxu1 %v5866_v63  ;;  %v3375_v34 = vadd.f32 %v3374_v54, %v3373_v50  ;;  %3835 = vmatprep.subr.mxu0 %v5873_v0  ;;  %v9918_v50 = vld [vmem:[#allocation14_spill] sm:$0xff] }
 0x104   :  { %3879 = vmatprep.subr.mxu1 %v5878_v1  ;;  %3836 = vmatpush3.msra.mxu0 %v5884_v2 }
 0x105   :  { %3880 = vmatpush3.msra.mxu1 %v5889_v3  ;;  %v7524_v57 = vadd.f32 %v3375_v34, %v3331_v55  ;;  %3837 = vmatprep.subr.mxu0 %v5896_v4  ;;  %v3332_v58 = vpop.f32.mrf.mxu0  ;;  %v9919_v34 = vld [vmem:[#allocation15_spill] sm:$0xff] }
 0x106   :  { %3881 = vmatprep.subr.mxu1 %v5901_v5  ;;  %v3376_v59 = vpop.f32.mrf.mxu1  ;;  %3838 = vmatpush3.msra.mxu0 %v5908_v6  ;;  %v1032_v6 = vld [vmem:[%s9503_s1 + $0x48] sm:$0xff] }
 0x107   :  { %3882 = vmatpush3.msra.mxu1 %v5913_v7  ;;  %3839 = vmatprep.subr.mxu0 %v5920_v8  ;;  %v3333_v61 = vpop.f32.mrf.mxu0  ;;  %v1031_v8 = vld [vmem:[%s9503_s1 + $0x40] sm:$0xff] }
 0x108   :  { %3883 = vmatprep.subr.mxu1 %v5925_v9  ;;  %v3377_v62 = vpop.f32.mrf.mxu1  ;;  %3840 = vmatpush3.msra.mxu0 %v5932_v10  ;;  %v3334_v63 = vadd.f32 %v3333_v61, %v3332_v58  ;;  %v9921_v61 = vld [vmem:[#allocation17_spill] sm:$0xff] }
 0x109   :  { %3884 = vmatpush3.msra.mxu1 %v5937_v11  ;;  %v3378_v0 = vadd.f32 %v3377_v62, %v3376_v59  ;;  %3841 = vmatprep.subr.mxu0 %v5944_v12  ;;  %v1034_v11 = vld [vmem:[%s9503_s1 + $0x58] sm:$0xff]  ;;  %v9920_v59 = vld [vmem:[#allocation16_spill] sm:$0xff]  ;;  %v1079_v62 = vld [vmem:[%s9503_s1 + $0x1c0] sm:$0xff] }
 0x10a   :  { %3885 = vmatprep.subr.mxu1 %v5949_v13  ;;  %3842 = vmatpush3.msra.mxu0 %v5956_v14  ;;  %v1033_v13 = vld [vmem:[%s9503_s1 + $0x50] sm:$0xff] }
 0x10b   :  { %3886 = vmatpush3.msra.mxu1 %v5961_v15  ;;  %v7538_v1 = vadd.f32 %v3378_v0, %v3334_v63  ;;  %3843 = vmatprep.subr.mxu0 %v5968_v16  ;;  %v9922_v0 = vld [vmem:[#allocation18_spill] sm:$0xff] }
 0x10c   :  { %3887 = vmatprep.subr.mxu1 %v5973_v17  ;;  %v3411_v2 = vpop.f32.mrf.mxu0  ;;  %3844 = vmatpush3.msra.mxu0 %v5980_v18  ;;  %v1048_v17 = vld [vmem:[%s9503_s1 + $0xc8] sm:$0xff] }
 0x10d   :  { %3888 = vmatpush3.msra.mxu1 %v5985_v19  ;;  %3845 = vmatprep.subr.mxu0 %v5992_v20  ;;  %v1047_v19 = vld [vmem:[%s9503_s1 + $0xc0] sm:$0xff] }
 0x10e   :  { %3889 = vmatprep.subr.mxu1 %v5997_v21  ;;  %v3455_v3 = vpop.f32.mrf.mxu1  ;;  %v3412_v4 = vpop.f32.mrf.mxu0  ;;  %3846 = vmatpush3.msra.mxu0 %v6004_v22  ;;  %v9906_v21 = vld [vmem:[#allocation2_spill] sm:$0xff] }
 0x10f   :  { %3890 = vmatpush3.msra.mxu1 %v6009_v23  ;;  %v3413_v5 = vadd.f32 %v3412_v4, %v3411_v2  ;;  %3847 = vmatprep.subr.mxu0 %v6016_v24  ;;  %v9907_v24 = vld [vmem:[#allocation3_spill] sm:$0xff]  ;;  %v1082_v4 = vld [vmem:[%s9503_s1 + $0x1d8] sm:$0xff] }
 0x110   :  { %3891 = vmatprep.subr.mxu1 %v6021_v25  ;;  %v3456_v7 = vpop.f32.mrf.mxu1  ;;  %3848 = vmatpush3.msra.mxu0 %v6028_v26  ;;  %v1050_v25 = vld [vmem:[%s9503_s1 + $0xd8] sm:$0xff] }
 0x111   :  { %3892 = vmatpush3.msra.mxu1 %v6033_v27  ;;  %v580_v9 = vadd.f32 %v3413_v5, %v7358_v56  ;;  %v3457_v10 = vadd.f32 %v3456_v7, %v3455_v3  ;;  %3849 = vmatprep.subr.mxu0 %v6040_v28  ;;  %v9908_v27 = vld [vmem:[#allocation4_spill] sm:$0xff]  ;;  %v9923_v3 = vld [vmem:[#allocation19_spill] sm:$0xff]  ;;  %v9925_v7 = vld [vmem:[#allocation21_spill] sm:$0xff] }
 0x112   :  { %3893 = vmatprep.subr.mxu1 %v6045_v29  ;;  %v3414_v12 = vpop.f32.mrf.mxu0  ;;  %3850 = vmatpush3.msra.mxu0 %v6052_v30  ;;  %v9909_v29 = vld [vmem:[#allocation5_spill] sm:$0xff]  ;;  %v9910_v30 = vld [vmem:[#allocation6_spill] sm:$0xff]  ;;  %v9912_v56 = vld [vmem:[#allocation8_spill] sm:$0xff] }
 0x113   :  { %1491 = vmatprep.mubr.f32.mxu0 %v1032_v6  ;;  %v7568_v14 = vadd.f32 %v3457_v10, %v580_v9  ;;  %3894 = vmatpush3.msra.mxu1 %v6062_v32  ;;  %v1049_v32 = vld [vmem:[%s9503_s1 + $0xd0] sm:$0xff]  ;;  %v9927_v10 = vld [vmem:[#allocation23_spill] sm:$0xff] }
 0x114   :  { %1492 = vmatmul.mubr.f32.vlgmr.msra.gmra.mxu0 %v1031_v8  ;;  %v3415_v15 = vpop.f32.mrf.mxu0  ;;  %1576 = vmatprep.mubr.f32.mxu1 %v1034_v11  ;;  %v9924_v6 = vld [vmem:[#allocation20_spill] sm:$0xff]  ;;  %v9926_v8 = vld [vmem:[#allocation22_spill] sm:$0xff] }
 0x115   :  { %3907 = vmatprep.subr.mxu0 %v6075_v35  ;;  %v3416_v16 = vadd.f32 %v3415_v15, %v3414_v12  ;;  %3951 = vmatprep.subr.mxu1 %v6081_v36  ;;  %v3458_v18 = vpop.f32.mrf.mxu1  ;;  %v9928_v11 = vld [vmem:[#allocation24_spill] sm:$0xff]  ;;  %v9929_v12 = vld [vmem:[#allocation25_spill] sm:$0xff]  ;;  %v9931_v15 = vld [vmem:[#allocation27_spill] sm:$0xff] }
 0x116   :  { %1577 = vmatmul.mubr.f32.vlgmr.msra.gmra.mxu1 %v1033_v13  ;;  %3908 = vmatpush3.msra.mxu0 %v6090_v38  ;;  %v9911_v38 = vld [vmem:[#allocation7_spill] sm:$0xff]  ;;  %v9930_v13 = vld [vmem:[#allocation26_spill] sm:$0xff] }
 0x117   :  { %3952 = vmatpush3.msra.mxu1 %v6095_v39  ;;  %v585_v20 = vadd.f32 %v3416_v16, %v7512_v49  ;;  %3909 = vmatprep.subr.mxu0 %v6101_v41  ;;  %v3459_v23 = vpop.f32.mrf.mxu1  ;;  %v1064_v39 = vld [vmem:[%s9503_s1 + $0x148] sm:$0xff]  ;;  %v9932_v16 = vld [vmem:[#allocation28_spill] sm:$0xff] }
 0x118   :  { %3953 = vmatprep.subr.mxu1 %v9906_v21  ;;  %v3417_v22 = vpop.f32.mrf.mxu0  ;;  %1496 = vmatprep.mubr.f32.mxu0 %v1048_v17  ;;  %v3460_v26 = vadd.f32 %v3459_v23, %v3458_v18  ;;  %v9933_v17 = vld [vmem:[#allocation29_spill] sm:$0xff]  ;;  %v9934_v18 = vld [vmem:[#allocation30_spill] sm:$0xff]  ;;  %v9939_v23 = vld [vmem:[#allocation35_spill] sm:$0xff] }
 0x119   :  { %3910 = vmatpush3.msra.mxu0 %v9907_v24  ;;  %3954 = vmatpush3.msra.mxu1 %v9908_v27  ;;  %v9937_v21 = vld [vmem:[#allocation33_spill] sm:$0xff]  ;;  %v9940_v24 = vld [vmem:[#allocation36_spill] sm:$0xff]  ;;  %v9943_v27 = vld [vmem:[#allocation39_spill] sm:$0xff] }
 0x11a   :  { %1497 = vmatmul.mubr.f32.gmra.mxu0 %v1047_v19  ;;  %v3418_v28 = vpop.f32.mrf.mxu0  ;;  %3911 = vmatprep.subr.mxu0 %v9909_v29  ;;  %v7594_v35 = vadd.f32 %v3460_v26, %v585_v20  ;;  %v9935_v19 = vld [vmem:[#allocation31_spill] sm:$0xff]  ;;  %v9936_v20 = vld [vmem:[#allocation32_spill] sm:$0xff]  ;;  %v9942_v26 = vld [vmem:[#allocation38_spill] sm:$0xff] }
 0x11b   :  { %3955 = vmatprep.subr.mxu1 %v9910_v30  ;;  %v3419_v36 = vadd.f32 %v3418_v28, %v3417_v22  ;;  %1581 = vmatprep.mubr.f32.mxu1 %v1050_v25  ;;  %v3461_v41 = vpop.f32.mrf.mxu1  ;;  %v9938_v22 = vld [vmem:[#allocation34_spill] sm:$0xff]  ;;  %v9941_v25 = vld [vmem:[#allocation37_spill] sm:$0xff]  ;;  %v9944_v28 = vld [vmem:[#allocation40_spill] sm:$0xff] }
 0x11c   :  { %3912 = vmatpush3.msra.mxu0 %v9911_v38  ;;  %3956 = vmatpush3.msra.mxu1 %v9912_v56  ;;  %v9945_v29 = vld [vmem:[#allocation41_spill] sm:$0xff]  ;;  %v9946_v30 = vld [vmem:[#allocation42_spill] sm:$0xff]  ;;  %v9951_v56 = vld [vmem:[#allocation47_spill] sm:$0xff] }
 0x11d   :  { %3913 = vmatprep.subr.mxu0 %v9913_v31  ;;  %v590_v60 = vadd.f32 %v3419_v36, %v7524_v57  ;;  %1582 = vmatmul.mubr.f32.gmra.mxu1 %v1049_v32  ;;  %v3462_v43 = vpop.f32.mrf.mxu1  ;;  %v1080_v57 = vld [vmem:[%s9503_s1 + $0x1c8] sm:$0xff]  ;;  %v9948_v36 = vld [vmem:[#allocation44_spill] sm:$0xff]  ;;  %v9949_v38 = vld [vmem:[#allocation45_spill] sm:$0xff] }
 0x11e   :  { %3957 = vmatprep.subr.mxu1 %v9914_v40  ;;  %v3420_v42 = vpop.f32.mrf.mxu0  ;;  %1501 = vmatprep.mubr.f32.mxu0 %v1064_v39  ;;  %v3463_v46 = vadd.f32 %v3462_v43, %v3461_v41  ;;  %v9947_v32 = vld [vmem:[#allocation43_spill] sm:$0xff]  ;;  %v9950_v39 = vld [vmem:[#allocation46_spill] sm:$0xff]  ;;  %v9952_v31 = vld [vmem:[#allocation48_spill] sm:$0xff] }
 0x11f   :  { %3914 = vmatpush3.msra.mxu0 %v9915_v45  ;;  %3958 = vmatpush3.msra.mxu1 %v9916_v47  ;;  %v9955_v43 = vld [vmem:[#allocation51_spill] sm:$0xff]  ;;  %v9956_v45 = vld [vmem:[#allocation52_spill] sm:$0xff]  ;;  %v9958_v47 = vld [vmem:[#allocation54_spill] sm:$0xff] }
 0x120   :  { %1502 = vmatmul.mubr.f32.gmra.mxu0 %v1063_v48  ;;  %v3421_v49 = vpop.f32.mrf.mxu0  ;;  %3915 = vmatprep.subr.mxu0 %v9917_v51  ;;  %v7617_v54 = vadd.f32 %v3463_v46, %v590_v60  ;;  %v9953_v48 = vld [vmem:[#allocation49_spill] sm:$0xff]  ;;  %v9954_v60 = vld [vmem:[#allocation50_spill] sm:$0xff] }
 0x121   :  { %3959 = vmatprep.subr.mxu1 %v9918_v50  ;;  %v3422_v55 = vadd.f32 %v3421_v49, %v3420_v42  ;;  %1586 = vmatprep.mubr.f32.mxu1 %v1066_v33  ;;  %v3464_v58 = vpop.f32.mrf.mxu1  ;;  %v9957_v46 = vld [vmem:[#allocation53_spill] sm:$0xff]  ;;  %v1036_v49 = vld [vmem:[%s9503_s1 + $0x68] sm:$0xff] }
 0x122   :  { %3916 = vmatpush3.msra.mxu0 %v9919_v34  ;;  %3960 = vmatpush3.msra.mxu1 %v9920_v59  ;;  %v9959_v50 = vld [vmem:[#allocation55_spill] sm:$0xff]  ;;  %v9962_v59 = vld [vmem:[#allocation58_spill] sm:$0xff] }
 0x123   :  { %3917 = vmatprep.subr.mxu0 %v9921_v61  ;;  %v595_v63 = vadd.f32 %v3422_v55, %v7538_v1  ;;  %1587 = vmatmul.mubr.f32.gmra.mxu1 %v1065_v52  ;;  %v3465_v2 = vpop.f32.mrf.mxu1  ;;  %v1081_v1 = vld [vmem:[%s9503_s1 + $0x1d0] sm:$0xff]  ;;  %v1035_v55 = vld [vmem:[%s9503_s1 + $0x60] sm:$0xff]  ;;  %v1038_v61 = vld [vmem:[%s9503_s1 + $0x78] sm:$0xff] }
 0x124   :  { %3961 = vmatprep.subr.mxu1 %v9922_v0  ;;  %1506 = vmatprep.mubr.f32.mxu0 %v1080_v57  ;;  %v3466_v5 = vadd.f32 %v3465_v2, %v3464_v58  ;;  %v9960_v52 = vld [vmem:[#allocation56_spill] sm:$0xff]  ;;  %v9961_v58 = vld [vmem:[#allocation57_spill] sm:$0xff] }
 0x125   :  { %3918 = vmatpush3.msra.mxu0 %v9923_v3  ;;  %3962 = vmatpush3.msra.mxu1 %v9924_v6  ;;  %v1037_v0 = vld [vmem:[%s9503_s1 + $0x70] sm:$0xff]  ;;  %v9966_v6 = vld [vmem:[#allocation62_spill] sm:$0xff] }
 0x126   :  { %1507 = vmatmul.mubr.f32.gmra.mxu0 %v1079_v62  ;;  %3919 = vmatprep.subr.mxu0 %v9925_v7  ;;  %v7640_v9 = vadd.f32 %v3466_v5, %v595_v63  ;;  %v9963_v63 = vld [vmem:[#allocation59_spill] sm:$0xff] }
 0x127   :  { %3963 = vmatprep.subr.mxu1 %v9926_v8  ;;  %1591 = vmatprep.mubr.f32.mxu1 %v1082_v4  ;;  %v9965_v4 = vld [vmem:[#allocation61_spill] sm:$0xff]  ;;  %v1052_v7 = vld [vmem:[%s9503_s1 + $0xe8] sm:$0xff] }
 0x128   :  { %3920 = vmatpush3.msra.mxu0 %v9927_v10  ;;  %3964 = vmatpush3.msra.mxu1 %v9928_v11  ;;  %v9968_v10 = vld [vmem:[#allocation64_spill] sm:$0xff]  ;;  %v1051_v11 = vld [vmem:[%s9503_s1 + $0xe0] sm:$0xff] }
 0x129   :  { %3921 = vmatprep.subr.mxu0 %v9929_v12  ;;  %1592 = vmatmul.mubr.f32.gmra.mxu1 %v1081_v1  ;;  %v9967_v1 = vld [vmem:[#allocation63_spill] sm:$0xff] }
 0x12a   :  { %3965 = vmatprep.subr.mxu1 %v9930_v13  ;;  %3922 = vmatpush3.msra.mxu0 %v9931_v15  ;;  %v9969_v13 = vld [vmem:[#allocation65_spill] sm:$0xff]  ;;  %v9970_v15 = vld [vmem:[#allocation66_spill] sm:$0xff] }
 0x12b   :  { %3966 = vmatpush3.msra.mxu1 %v9932_v16  ;;  %3923 = vmatprep.subr.mxu0 %v9933_v17 }
 0x12c   :  { %3967 = vmatprep.subr.mxu1 %v9934_v18  ;;  %3924 = vmatpush3.msra.mxu0 %v9935_v19  ;;  %v9971_v18 = vld [vmem:[#allocation67_spill] sm:$0xff]  ;;  %v1054_v19 = vld [vmem:[%s9503_s1 + $0xf8] sm:$0xff] }
 0x12d   :  { %3968 = vmatpush3.msra.mxu1 %v9936_v20  ;;  %3925 = vmatprep.subr.mxu0 %v9937_v21  ;;  %v9972_v21 = vld [vmem:[#allocation68_spill] sm:$0xff] }
 0x12e   :  { %3969 = vmatprep.subr.mxu1 %v9938_v22  ;;  %3926 = vmatpush3.msra.mxu0 %v9939_v23  ;;  %v9973_v23 = vld [vmem:[#allocation69_spill] sm:$0xff] }
 0x12f   :  { %3970 = vmatpush3.msra.mxu1 %v9940_v24  ;;  %3927 = vmatprep.subr.mxu0 %v9941_v25  ;;  %v1053_v24 = vld [vmem:[%s9503_s1 + $0xf0] sm:$0xff] }
 0x130   :  { %3971 = vmatprep.subr.mxu1 %v9942_v26  ;;  %3928 = vmatpush3.msra.mxu0 %v9943_v27  ;;  %v9975_v27 = vld [vmem:[#allocation71_spill] sm:$0xff] }
 0x131   :  { %3972 = vmatpush3.msra.mxu1 %v9944_v28  ;;  %3929 = vmatprep.subr.mxu0 %v9945_v29  ;;  %v1068_v28 = vld [vmem:[%s9503_s1 + $0x168] sm:$0xff] }
 0x132   :  { %3973 = vmatprep.subr.mxu1 %v9946_v30  ;;  %3930 = vmatpush3.msra.mxu0 %v9947_v32  ;;  %v9976_v30 = vld [vmem:[#allocation72_spill] sm:$0xff]  ;;  %v9977_v32 = vld [vmem:[#allocation73_spill] sm:$0xff] }
 0x133   :  { %3974 = vmatpush3.msra.mxu1 %v9948_v36  ;;  %3931 = vmatprep.subr.mxu0 %v9949_v38  ;;  %v1067_v36 = vld [vmem:[%s9503_s1 + $0x160] sm:$0xff] }
 0x134   :  { %3975 = vmatprep.subr.mxu1 %v9950_v39  ;;  %v3499_v41 = vpop.f32.mrf.mxu0  ;;  %3932 = vmatpush3.msra.mxu0 %v9951_v56  ;;  %v9978_v39 = vld [vmem:[#allocation74_spill] sm:$0xff] }
 0x135   :  { %3976 = vmatpush3.msra.mxu1 %v9952_v31  ;;  %3933 = vmatprep.subr.mxu0 %v9953_v48  ;;  %v9979_v31 = vld [vmem:[#allocation75_spill] sm:$0xff]  ;;  %v1070_v48 = vld [vmem:[%s9503_s1 + $0x178] sm:$0xff] }
 0x136   :  { %3977 = vmatprep.subr.mxu1 %v9954_v60  ;;  %v3543_v40 = vpop.f32.mrf.mxu1  ;;  %v3500_v42 = vpop.f32.mrf.mxu0  ;;  %3934 = vmatpush3.msra.mxu0 %v9955_v43  ;;  %v9981_v43 = vld [vmem:[#allocation77_spill] sm:$0xff] }
 0x137   :  { %3978 = vmatpush3.msra.mxu1 %v9956_v45  ;;  %v3501_v33 = vadd.f32 %v3500_v42, %v3499_v41  ;;  %3935 = vmatprep.subr.mxu0 %v9957_v46  ;;  %v1069_v45 = vld [vmem:[%s9503_s1 + $0x170] sm:$0xff] }
 0x138   :  { %3979 = vmatprep.subr.mxu1 %v9958_v47  ;;  %v3544_v51 = vpop.f32.mrf.mxu1  ;;  %3936 = vmatpush3.msra.mxu0 %v9959_v50  ;;  %v9983_v47 = vld [vmem:[#allocation79_spill] sm:$0xff]  ;;  %v9984_v50 = vld [vmem:[#allocation80_spill] sm:$0xff] }
 0x139   :  { %3980 = vmatpush3.msra.mxu1 %v9960_v52  ;;  %v750_v34 = vadd.f32 %v3501_v33, %v7568_v14  ;;  %v3545_v57 = vadd.f32 %v3544_v51, %v3543_v40  ;;  %3937 = vmatprep.subr.mxu0 %v9961_v58  ;;  %v9964_v14 = vld [vmem:[#allocation60_spill] sm:$0xff]  ;;  %v9985_v52 = vld [vmem:[#allocation81_spill] sm:$0xff] }
 0x13a   :  { %3981 = vmatprep.subr.mxu1 %v9962_v59  ;;  %v3502_v62 = vpop.f32.mrf.mxu0  ;;  %3938 = vmatpush3.msra.mxu0 %v9963_v63  ;;  %v9980_v40 = vld [vmem:[#allocation76_spill] sm:$0xff]  ;;  %v9987_v59 = vld [vmem:[#allocation83_spill] sm:$0xff] }
 0x13b   :  { %1661 = vmatprep.mubr.f32.mxu0 %v1036_v49  ;;  %v7692_v2 = vadd.f32 %v3545_v57, %v750_v34  ;;  %3982 = vmatpush3.msra.mxu1 %v9964_v14  ;;  %v1084_v49 = vld [vmem:[%s9503_s1 + $0x1e8] sm:$0xff]  ;;  %v9986_v57 = vld [vmem:[#allocation82_spill] sm:$0xff]  ;;  %v9988_v63 = vld [vmem:[#allocation84_spill] sm:$0xff] }
 0x13c   :  { %1662 = vmatmul.mubr.f32.vlgmr.msra.gmra.mxu0 %v1035_v55  ;;  %v3503_v3 = vpop.f32.mrf.mxu0  ;;  %1746 = vmatprep.mubr.f32.mxu1 %v1038_v61  ;;  %v1083_v55 = vld [vmem:[%s9503_s1 + $0x1e0] sm:$0xff]  ;;  %v1086_v61 = vld [vmem:[%s9503_s1 + $0x1f8] sm:$0xff] }
 0x13d   :  { %3995 = vmatprep.subr.mxu0 %v9965_v4  ;;  %v3504_v5 = vadd.f32 %v3503_v3, %v3502_v62  ;;  %4039 = vmatprep.subr.mxu1 %v9966_v6  ;;  %v3546_v8 = vpop.f32.mrf.mxu1  ;;  %v9990_v14 = vld [vmem:[#allocation86_spill] sm:$0xff]  ;;  %v9991_v4 = vld [vmem:[#allocation87_spill] sm:$0xff]  ;;  %v9993_v6 = vld [vmem:[#allocation89_spill] sm:$0xff] }
 0x13e   :  { %1747 = vmatmul.mubr.f32.vlgmr.msra.gmra.mxu1 %v1037_v0  ;;  %3996 = vmatpush3.msra.mxu0 %v9967_v1  ;;  %v9989_v0 = vld [vmem:[#allocation85_spill] sm:$0xff]  ;;  %v9996_v1 = vld [vmem:[#allocation92_spill] sm:$0xff] }
 0x13f   :  { %4040 = vmatpush3.msra.mxu1 %v9968_v10  ;;  %v755_v12 = vadd.f32 %v3504_v5, %v7594_v35  ;;  %3997 = vmatprep.subr.mxu0 %v9969_v13  ;;  %v3547_v17 = vpop.f32.mrf.mxu1  ;;  %v9974_v35 = vld [vmem:[#allocation70_spill] sm:$0xff]  ;;  %v9992_v5 = vld [vmem:[#allocation88_spill] sm:$0xff]  ;;  %v9997_v10 = vld [vmem:[#allocation93_spill] sm:$0xff] }
 0x140   :  { %4041 = vmatprep.subr.mxu1 %v9970_v15  ;;  %v3505_v16 = vpop.f32.mrf.mxu0  ;;  %1666 = vmatprep.mubr.f32.mxu0 %v1052_v7  ;;  %v3548_v20 = vadd.f32 %v3547_v17, %v3546_v8  ;;  %v9994_v7 = vld [vmem:[#allocation90_spill] sm:$0xff]  ;;  %v9995_v8 = vld [vmem:[#allocation91_spill] sm:$0xff]  ;;  %v10000_v13 = vld [vmem:[#allocation96_spill] sm:$0xff] }
 0x141   :  { %3998 = vmatpush3.msra.mxu0 %v9971_v18  ;;  %4042 = vmatpush3.msra.mxu1 %v9972_v21  ;;  %v10001_v15 = vld [vmem:[#allocation97_spill] sm:$0xff]  ;;  %v10003_v17 = vld [vmem:[#allocation99_spill] sm:$0xff]  ;;  %v10004_v18 = vld [vmem:[#allocation100_spill] sm:$0xff] }
 0x142   :  { %1667 = vmatmul.mubr.f32.gmra.mxu0 %v1051_v11  ;;  %v3506_v22 = vpop.f32.mrf.mxu0  ;;  %3999 = vmatprep.subr.mxu0 %v9973_v23  ;;  %v7718_v25 = vadd.f32 %v3548_v20, %v755_v12  ;;  %v9998_v11 = vld [vmem:[#allocation94_spill] sm:$0xff]  ;;  %v9999_v12 = vld [vmem:[#allocation95_spill] sm:$0xff]  ;;  %v10009_v23 = vld [vmem:[#allocation105_spill] sm:$0xff] }
 0x143   :  { %4043 = vmatprep.subr.mxu1 %v9974_v35  ;;  %v3507_v26 = vadd.f32 %v3506_v22, %v3505_v16  ;;  %1751 = vmatprep.mubr.f32.mxu1 %v1054_v19  ;;  %v3549_v29 = vpop.f32.mrf.mxu1  ;;  %v10002_v16 = vld [vmem:[#allocation98_spill] sm:$0xff]  ;;  %v10005_v19 = vld [vmem:[#allocation101_spill] sm:$0xff]  ;;  %v10007_v21 = vld [vmem:[#allocation103_spill] sm:$0xff] }
 0x144   :  { %4000 = vmatpush3.msra.mxu0 %v9975_v27  ;;  %4044 = vmatpush3.msra.mxu1 %v9976_v30  ;;  %v10006_v20 = vld [vmem:[#allocation102_spill] sm:$0xff]  ;;  %v10008_v22 = vld [vmem:[#allocation104_spill] sm:$0xff]  ;;  %v10013_v27 = vld [vmem:[#allocation109_spill] sm:$0xff] }
 0x145   :  { %4001 = vmatprep.subr.mxu0 %v9977_v32  ;;  %v760_v38 = vadd.f32 %v3507_v26, %v7617_v54  ;;  %1752 = vmatmul.mubr.f32.gmra.mxu1 %v1053_v24  ;;  %v3550_v56 = vpop.f32.mrf.mxu1  ;;  %v9982_v54 = vld [vmem:[#allocation78_spill] sm:$0xff]  ;;  %v10011_v24 = vld [vmem:[#allocation107_spill] sm:$0xff]  ;;  %v10012_v26 = vld [vmem:[#allocation108_spill] sm:$0xff] }
 0x146   :  { %4045 = vmatprep.subr.mxu1 %v9978_v39  ;;  %v3508_v41 = vpop.f32.mrf.mxu0  ;;  %1671 = vmatprep.mubr.f32.mxu0 %v1068_v28  ;;  %v3551_v60 = vadd.f32 %v3550_v56, %v3549_v29  ;;  %v10010_v35 = vld [vmem:[#allocation106_spill] sm:$0xff]  ;;  %v10015_v30 = vld [vmem:[#allocation111_spill] sm:$0xff]  ;;  %v10016_v32 = vld [vmem:[#allocation112_spill] sm:$0xff] }
 0x147   :  { %4002 = vmatpush3.msra.mxu0 %v9979_v31  ;;  %4046 = vmatpush3.msra.mxu1 %v9980_v40  ;;  %v10014_v28 = vld [vmem:[#allocation110_spill] sm:$0xff]  ;;  %v10019_v56 = vld [vmem:[#allocation115_spill] sm:$0xff]  ;;  %v10020_v31 = vld [vmem:[#allocation116_spill] sm:$0xff] }
 0x148   :  { %1672 = vmatmul.mubr.f32.gmra.mxu0 %v1067_v36  ;;  %v3509_v42 = vpop.f32.mrf.mxu0  ;;  %4003 = vmatprep.subr.mxu0 %v9981_v43  ;;  %v7741_v33 = vadd.f32 %v3551_v60, %v760_v38  ;;  %v10017_v36 = vld [vmem:[#allocation113_spill] sm:$0xff]  ;;  %v10018_v38 = vld [vmem:[#allocation114_spill] sm:$0xff] }
 0x149   :  { %4047 = vmatprep.subr.mxu1 %v9982_v54  ;;  %v3510_v46 = vadd.f32 %v3509_v42, %v3508_v41  ;;  %1756 = vmatprep.mubr.f32.mxu1 %v1070_v48  ;;  %v3552_v51 = vpop.f32.mrf.mxu1  ;;  %v10021_v60 = vld [vmem:[#allocation117_spill] sm:$0xff]  ;;  %v10022_v40 = vld [vmem:[#allocation118_spill] sm:$0xff]  ;;  %v1772_v42 = vld [vmem:[%s9504_s2 + $0x8] sm:$0xff] }
 0x14a   :  { %4004 = vmatpush3.msra.mxu0 %v9983_v47  ;;  %4048 = vmatpush3.msra.mxu1 %v9984_v50  ;;  %v10023_v54 = vld [vmem:[#allocation119_spill] sm:$0xff]  ;;  %v10026_v50 = vld [vmem:[#allocation122_spill] sm:$0xff] }
 0x14b   :  { %4005 = vmatprep.subr.mxu0 %v9985_v52  ;;  %v765_v34 = vadd.f32 %v3510_v46, %v7640_v9  ;;  %1757 = vmatmul.mubr.f32.gmra.mxu1 %v1069_v45  ;;  %v3553_v58 = vpop.f32.mrf.mxu1  ;;  %v1085_v9 = vld [vmem:[%s9503_s1 + $0x1f0] sm:$0xff]  ;;  %v1774_v46 = vld [vmem:[%s9504_s2 + $0x18] sm:$0xff]  ;;  %v1771_v52 = vld [vmem:[%s9504_s2] sm:$0xff] }
 0x14c   :  { %4049 = vmatprep.subr.mxu1 %v9986_v57  ;;  %1676 = vmatprep.mubr.f32.mxu0 %v1084_v49  ;;  %v3554_v62 = vadd.f32 %v3553_v58, %v3552_v51  ;;  %v10024_v45 = vld [vmem:[#allocation120_spill] sm:$0xff]  ;;  %v10025_v51 = vld [vmem:[#allocation121_spill] sm:$0xff]  ;;  %v10027_v57 = vld [vmem:[#allocation123_spill] sm:$0xff] }
 0x14d   :  { %4006 = vmatpush3.msra.mxu0 %v9987_v59  ;;  %4050 = vmatpush3.msra.mxu1 %v9988_v63  ;;  %v10030_v63 = vld [vmem:[#allocation126_spill] sm:$0xff] }
 0x14e   :  { %1677 = vmatmul.mubr.f32.gmra.mxu0 %v1083_v55  ;;  %4007 = vmatprep.subr.mxu0 %v9989_v0  ;;  %v7764_v3 = vadd.f32 %v3554_v62, %v765_v34  ;;  %v1773_v55 = vld [vmem:[%s9504_s2 + $0x10] sm:$0xff]  ;;  %v10029_v62 = vld [vmem:[#allocation125_spill] sm:$0xff] }
 0x14f   :  { %4051 = vmatprep.subr.mxu1 %v9990_v14  ;;  %1761 = vmatprep.mubr.f32.mxu1 %v1086_v61  ;;  %v10031_v14 = vld [vmem:[#allocation127_spill] sm:$0xff] }
 0x150   :  { %4008 = vmatpush3.msra.mxu0 %v9991_v4  ;;  %4052 = vmatpush3.msra.mxu1 %v9992_v5  ;;  %v10033_v5 = vld [vmem:[#allocation129_spill] sm:$0xff] }
 0x151   :  { %4009 = vmatprep.subr.mxu0 %v9993_v6  ;;  %1762 = vmatmul.mubr.f32.gmra.mxu1 %v1085_v9  ;;  %v10032_v9 = vld [vmem:[#allocation128_spill] sm:$0xff]  ;;  %v10034_v6 = vld [vmem:[#allocation130_spill] sm:$0xff] }
 0x152   :  { %4053 = vmatprep.subr.mxu1 %v9994_v7  ;;  %4010 = vmatpush3.msra.mxu0 %v9995_v8 }
 0x153   :  { %4054 = vmatpush3.msra.mxu1 %v9996_v1  ;;  %4011 = vmatprep.subr.mxu0 %v9997_v10  ;;  %v10035_v1 = vld [vmem:[#allocation131_spill] sm:$0xff]  ;;  %v10036_v10 = vld [vmem:[#allocation132_spill] sm:$0xff] }
 0x154   :  { %4055 = vmatprep.subr.mxu1 %v9998_v11  ;;  %4012 = vmatpush3.msra.mxu0 %v9999_v12  ;;  %v10037_v12 = vld [vmem:[#allocation133_spill] sm:$0xff] }
 0x155   :  { %4056 = vmatpush3.msra.mxu1 %v10000_v13  ;;  %4013 = vmatprep.subr.mxu0 %v10001_v15  ;;  %v10038_v13 = vld [vmem:[#allocation134_spill] sm:$0xff] }
 0x156   :  { %4057 = vmatprep.subr.mxu1 %v10002_v16  ;;  %4014 = vmatpush3.msra.mxu0 %v10003_v17  ;;  %v10039_v16 = vld [vmem:[#allocation135_spill] sm:$0xff]  ;;  %v10040_v17 = vld [vmem:[#allocation136_spill] sm:$0xff] }
 0x157   :  { %4058 = vmatpush3.msra.mxu1 %v10004_v18  ;;  %4015 = vmatprep.subr.mxu0 %v10005_v19  ;;  %v10041_v19 = vld [vmem:[#allocation137_spill] sm:$0xff] }
 0x158   :  { %4059 = vmatprep.subr.mxu1 %v10006_v20  ;;  %4016 = vmatpush3.msra.mxu0 %v10007_v21  ;;  %v10042_v20 = vld [vmem:[#allocation138_spill] sm:$0xff] }
 0x159   :  { %4060 = vmatpush3.msra.mxu1 %v10008_v22  ;;  %4017 = vmatprep.subr.mxu0 %v10009_v23  ;;  %v10043_v22 = vld [vmem:[#allocation139_spill] sm:$0xff]  ;;  %v10044_v23 = vld [vmem:[#allocation140_spill] sm:$0xff] }
 0x15a   :  { %4061 = vmatprep.subr.mxu1 %v10010_v35  ;;  %4018 = vmatpush3.msra.mxu0 %v10011_v24  ;;  %v10045_v24 = vld [vmem:[#allocation141_spill] sm:$0xff] }
 0x15b   :  { %4062 = vmatpush3.msra.mxu1 %v10012_v26  ;;  %4019 = vmatprep.subr.mxu0 %v10013_v27  ;;  %v10046_v26 = vld [vmem:[#allocation142_spill] sm:$0xff] }
 0x15c   :  { %4063 = vmatprep.subr.mxu1 %v10014_v28  ;;  %v3587_v29 = vpop.f32.mrf.mxu0  ;;  %4020 = vmatpush3.msra.mxu0 %v10015_v30  ;;  %v10048_v30 = vld [vmem:[#allocation144_spill] sm:$0xff] }
 0x15d   :  { %4064 = vmatpush3.msra.mxu1 %v10016_v32  ;;  %4021 = vmatprep.subr.mxu0 %v10017_v36  ;;  %v10049_v36 = vld [vmem:[#allocation145_spill] sm:$0xff] }
 0x15e   :  { %4065 = vmatprep.subr.mxu1 %v10018_v38  ;;  %v3631_v39 = vpop.f32.mrf.mxu1  ;;  %v3588_v41 = vpop.f32.mrf.mxu0  ;;  %4022 = vmatpush3.msra.mxu0 %v10019_v56  ;;  %v10050_v38 = vld [vmem:[#allocation146_spill] sm:$0xff]  ;;  %v10052_v56 = vld [vmem:[#allocation148_spill] sm:$0xff] }
 0x15f   :  { %4066 = vmatpush3.msra.mxu1 %v10020_v31  ;;  %v3589_v48 = vadd.f32 %v3588_v41, %v3587_v29  ;;  %4023 = vmatprep.subr.mxu0 %v10021_v60  ;;  %v10047_v29 = vld [vmem:[#allocation143_spill] sm:$0xff]  ;;  %v10054_v60 = vld [vmem:[#allocation150_spill] sm:$0xff] }
 0x160   :  { %4067 = vmatprep.subr.mxu1 %v10022_v40  ;;  %v3632_v43 = vpop.f32.mrf.mxu1  ;;  %4024 = vmatpush3.msra.mxu0 %v10023_v54  ;;  %v10051_v41 = vld [vmem:[#allocation147_spill] sm:$0xff] }
 0x161   :  { %4068 = vmatpush3.msra.mxu1 %v10024_v45  ;;  %v920_v47 = vadd.f32 %v3589_v48, %v7692_v2  ;;  %v3633_v49 = vadd.f32 %v3632_v43, %v3631_v39  ;;  %4025 = vmatprep.subr.mxu0 %v10025_v51  ;;  %v10028_v2 = vld [vmem:[#allocation124_spill] sm:$0xff]  ;;  %v10053_v48 = vld [vmem:[#allocation149_spill] sm:$0xff] }
 0x162   :  { %4069 = vmatprep.subr.mxu1 %v10026_v50  ;;  %v3590_v34 = vpop.f32.mrf.mxu0  ;;  %4026 = vmatpush3.msra.mxu0 %v10027_v57  ;;  %v10056_v43 = vld [vmem:[#allocation152_spill] sm:$0xff]  ;;  %v10057_v45 = vld [vmem:[#allocation153_spill] sm:$0xff]  ;;  %v1788_v50 = vld [vmem:[%s9504_s2 + $0x88] sm:$0xff] }
 0x163   :  { %1899 = vmatprep.mubr.f32.mxu0 %v1772_v42  ;;  %v7816_v58 = vadd.f32 %v3633_v49, %v920_v47  ;;  %4070 = vmatpush3.msra.mxu1 %v10028_v2  ;;  %v10055_v42 = vld [vmem:[#allocation151_spill] sm:$0xff]  ;;  %v10060_v51 = vld [vmem:[#allocation156_spill] sm:$0xff] }
 0x164   :  { %1984 = vmatprep.mubr.f32.mxu1 %v1774_v46  ;;  %v3591_v59 = vpop.f32.mrf.mxu0  ;;  %1900 = vmatmul.mubr.f32.vlgmr.msra.gmra.mxu0 %v1771_v52  ;;  %v3634_v0 = vpop.f32.mrf.mxu1  ;;  %v10058_v46 = vld [vmem:[#allocation154_spill] sm:$0xff]  ;;  %v10059_v49 = vld [vmem:[#allocation155_spill] sm:$0xff]  ;;  %v1790_v52 = vld [vmem:[%s9504_s2 + $0x98] sm:$0xff] }
 0x165   :  { %1985 = vmatmul.mubr.f32.vlgmr.msra.gmra.mxu1 %v1773_v55  ;;  %v3592_v61 = vadd.f32 %v3591_v59, %v3590_v34  ;;  %4083 = vmatprep.subr.mxu0 %v10029_v62  ;;  %v10061_v34 = vld [vmem:[#allocation157_spill] sm:$0xff]  ;;  %v10063_v57 = vld [vmem:[#allocation159_spill] sm:$0xff]  ;;  %v10064_v2 = vld [vmem:[#allocation160_spill] sm:$0xff] }
 0x166   :  { %4127 = vmatprep.subr.mxu1 %v10030_v63  ;;  %4084 = vmatpush3.msra.mxu0 %v10031_v14  ;;  %v3635_v8 = vpop.f32.mrf.mxu1  ;;  %v1787_v59 = vld [vmem:[%s9504_s2 + $0x80] sm:$0xff]  ;;  %v10065_v63 = vld [vmem:[#allocation161_spill] sm:$0xff]  ;;  %v10067_v14 = vld [vmem:[#allocation163_spill] sm:$0xff] }
 0x167   :  { %4128 = vmatpush3.msra.mxu1 %v10032_v9  ;;  %v925_v4 = vadd.f32 %v3592_v61, %v7718_v25  ;;  %4085 = vmatprep.subr.mxu0 %v10033_v5  ;;  %v3636_v11 = vadd.f32 %v3635_v8, %v3634_v0  ;;  %v1789_v61 = vld [vmem:[%s9504_s2 + $0x90] sm:$0xff]  ;;  %v10066_v0 = vld [vmem:[#allocation162_spill] sm:$0xff]  ;;  %v1806_v5 = vld [vmem:[%s9504_s2 + $0x118] sm:$0xff] }
 0x168   :  { %4129 = vmatprep.subr.mxu1 %v10034_v6  ;;  %v3593_v7 = vpop.f32.mrf.mxu0  ;;  %4086 = vmatpush3.msra.mxu0 %v10035_v1  ;;  %v10068_v9 = vld [vmem:[#allocation164_spill] sm:$0xff]  ;;  %v10069_v6 = vld [vmem:[#allocation165_spill] sm:$0xff]  ;;  %v10071_v8 = vld [vmem:[#allocation167_spill] sm:$0xff] }
 0x169   :  { %4130 = vmatpush3.msra.mxu1 %v10036_v10  ;;  %4087 = vmatprep.subr.mxu0 %v10037_v12  ;;  %v7832_v25 = vadd.f32 %v3636_v11, %v925_v4  ;;  %v1804_v4 = vld [vmem:[%s9504_s2 + $0x108] sm:$0xff]  ;;  %v10072_v1 = vld [vmem:[#allocation168_spill] sm:$0xff]  ;;  %v1803_v10 = vld [vmem:[%s9504_s2 + $0x100] sm:$0xff] }
 0x16a   :  { %4131 = vmatprep.subr.mxu1 %v10038_v13  ;;  %v3594_v15 = vpop.f32.mrf.mxu0  ;;  %4088 = vmatpush3.msra.mxu0 %v10039_v16  ;;  %v1805_v11 = vld [vmem:[%s9504_s2 + $0x110] sm:$0xff]  ;;  %v10073_v12 = vld [vmem:[#allocation169_spill] sm:$0xff]  ;;  %v10074_v13 = vld [vmem:[#allocation170_spill] sm:$0xff] }
 0x16b   :  { %4132 = vmatpush3.msra.mxu1 %v10040_v17  ;;  %v3595_v18 = vadd.f32 %v3594_v15, %v3593_v7  ;;  %4089 = vmatprep.subr.mxu0 %v10041_v19  ;;  %v3637_v21 = vpop.f32.mrf.mxu1  ;;  %v10070_v7 = vld [vmem:[#allocation166_spill] sm:$0xff]  ;;  %v10075_v15 = vld [vmem:[#allocation171_spill] sm:$0xff]  ;;  %v10076_v16 = vld [vmem:[#allocation172_spill] sm:$0xff] }
 0x16c   :  { %4133 = vmatprep.subr.mxu1 %v10042_v20  ;;  %4090 = vmatpush3.msra.mxu0 %v10043_v22  ;;  %v1820_v17 = vld [vmem:[%s9504_s2 + $0x188] sm:$0xff]  ;;  %v10077_v19 = vld [vmem:[#allocation173_spill] sm:$0xff]  ;;  %v10078_v20 = vld [vmem:[#allocation174_spill] sm:$0xff] }
 0x16d   :  { %4134 = vmatpush3.msra.mxu1 %v10044_v23  ;;  %v930_v35 = vadd.f32 %v3595_v18, %v7741_v33  ;;  %4091 = vmatprep.subr.mxu0 %v10045_v24  ;;  %v3638_v28 = vpop.f32.mrf.mxu1  ;;  %v1822_v18 = vld [vmem:[%s9504_s2 + $0x198] sm:$0xff]  ;;  %v10080_v22 = vld [vmem:[#allocation176_spill] sm:$0xff]  ;;  %v1819_v23 = vld [vmem:[%s9504_s2 + $0x180] sm:$0xff] }
 0x16e   :  { %4135 = vmatprep.subr.mxu1 %v10046_v26  ;;  %v3596_v27 = vpop.f32.mrf.mxu0  ;;  %4092 = vmatpush3.msra.mxu0 %v10047_v29  ;;  %v3639_v32 = vadd.f32 %v3638_v28, %v3637_v21  ;;  %v10079_v21 = vld [vmem:[#allocation175_spill] sm:$0xff]  ;;  %v10081_v24 = vld [vmem:[#allocation177_spill] sm:$0xff]  ;;  %v10082_v26 = vld [vmem:[#allocation178_spill] sm:$0xff] }
 0x16f   :  { %4136 = vmatpush3.msra.mxu1 %v10048_v30  ;;  %4093 = vmatprep.subr.mxu0 %v10049_v36  ;;  %v10083_v29 = vld [vmem:[#allocation179_spill] sm:$0xff]  ;;  %v10084_v30 = vld [vmem:[#allocation180_spill] sm:$0xff] }
 0x170   :  { %4137 = vmatprep.subr.mxu1 %v10050_v38  ;;  %v3597_v39 = vpop.f32.mrf.mxu0  ;;  %4094 = vmatpush3.msra.mxu0 %v10051_v41  ;;  %v7847_v33 = vadd.f32 %v3639_v32, %v930_v35  ;;  %v1821_v35 = vld [vmem:[%s9504_s2 + $0x190] sm:$0xff]  ;;  %v10085_v38 = vld [vmem:[#allocation181_spill] sm:$0xff]  ;;  %v1776_v41 = vld [vmem:[%s9504_s2 + $0x28] sm:$0xff] }
 0x171   :  { %4138 = vmatpush3.msra.mxu1 %v10052_v56  ;;  %v3598_v31 = vadd.f32 %v3597_v39, %v3596_v27  ;;  %4095 = vmatprep.subr.mxu0 %v10053_v48  ;;  %v3640_v40 = vpop.f32.mrf.mxu1  ;;  %v10086_v39 = vld [vmem:[#allocation182_spill] sm:$0xff]  ;;  %v10087_v48 = vld [vmem:[#allocation183_spill] sm:$0xff] }
 0x172   :  { %4139 = vmatprep.subr.mxu1 %v10054_v60  ;;  %4096 = vmatpush3.msra.mxu0 %v10055_v42  ;;  %v1775_v60 = vld [vmem:[%s9504_s2 + $0x20] sm:$0xff]  ;;  %v10089_v42 = vld [vmem:[#allocation185_spill] sm:$0xff] }
 0x173   :  { %4140 = vmatpush3.msra.mxu1 %v10056_v43  ;;  %v935_v54 = vadd.f32 %v3598_v31, %v7764_v3  ;;  %4097 = vmatprep.subr.mxu0 %v10057_v45  ;;  %v3641_v47 = vpop.f32.mrf.mxu1  ;;  %v10062_v3 = vld [vmem:[#allocation158_spill] sm:$0xff]  ;;  %v1778_v43 = vld [vmem:[%s9504_s2 + $0x38] sm:$0xff] }
 0x174   :  { %4141 = vmatprep.subr.mxu1 %v10058_v46  ;;  %4098 = vmatpush3.msra.mxu0 %v10059_v49  ;;  %v3642_v55 = vadd.f32 %v3641_v47, %v3640_v40  ;;  %v10088_v40 = vld [vmem:[#allocation184_spill] sm:$0xff]  ;;  %v10090_v45 = vld [vmem:[#allocation186_spill] sm:$0xff]  ;;  %v10091_v46 = vld [vmem:[#allocation187_spill] sm:$0xff] }
 0x175   :  { %4142 = vmatpush3.msra.mxu1 %v10060_v51  ;;  %4099 = vmatprep.subr.mxu0 %v10061_v34  ;;  %v1792_v47 = vld [vmem:[%s9504_s2 + $0xa8] sm:$0xff]  ;;  %v10092_v49 = vld [vmem:[#allocation188_spill] sm:$0xff]  ;;  %v1791_v51 = vld [vmem:[%s9504_s2 + $0xa0] sm:$0xff] }
 0x176   :  { %4143 = vmatprep.subr.mxu1 %v10062_v3  ;;  %4100 = vmatpush3.msra.mxu0 %v10063_v57  ;;  %v7874_v62 = vadd.f32 %v3642_v55, %v935_v54  ;;  %v1794_v55 = vld [vmem:[%s9504_s2 + $0xb8] sm:$0xff]  ;;  %v10098_v3 = vld [vmem:[#allocation194_spill] sm:$0xff]  ;;  %v10099_v57 = vld [vmem:[#allocation195_spill] sm:$0xff] }
 0x177   :  { %4144 = vmatpush3.msra.mxu1 %v10064_v2  ;;  %1904 = vmatprep.mubr.f32.mxu0 %v1788_v50  ;;  %v10095_v50 = vld [vmem:[#allocation191_spill] sm:$0xff]  ;;  %v10097_v34 = vld [vmem:[#allocation193_spill] sm:$0xff]  ;;  %v1793_v2 = vld [vmem:[%s9504_s2 + $0xb0] sm:$0xff] }
 0x178   :  { %1989 = vmatprep.mubr.f32.mxu1 %v1790_v52  ;;  %4101 = vmatprep.subr.mxu0 %v10065_v63  ;;  %v10096_v52 = vld [vmem:[#allocation192_spill] sm:$0xff]  ;;  %v10101_v63 = vld [vmem:[#allocation197_spill] sm:$0xff] }
 0x179   :  { %4145 = vmatprep.subr.mxu1 %v10066_v0  ;;  %1905 = vmatmul.mubr.f32.gmra.mxu0 %v1787_v59  ;;  %v10100_v59 = vld [vmem:[#allocation196_spill] sm:$0xff]  ;;  %v10102_v0 = vld [vmem:[#allocation198_spill] sm:$0xff] }
 0x17a   :  { %1990 = vmatmul.mubr.f32.gmra.mxu1 %v1789_v61  ;;  %4102 = vmatpush3.msra.mxu0 %v10067_v14  ;;  %v1808_v61 = vld [vmem:[%s9504_s2 + $0x128] sm:$0xff]  ;;  %v1807_v14 = vld [vmem:[%s9504_s2 + $0x120] sm:$0xff] }
 0x17b   :  { %4146 = vmatpush3.msra.mxu1 %v10068_v9  ;;  %4103 = vmatprep.subr.mxu0 %v10069_v6  ;;  %v10103_v9 = vld [vmem:[#allocation199_spill] sm:$0xff]  ;;  %v4842_v6 = vld [vmem:[%s9501_s4 + $0x560] sm:$0xff] }
 0x17c   :  { %4147 = vmatprep.subr.mxu1 %v10070_v7  ;;  %4104 = vmatpush3.msra.mxu0 %v10071_v8  ;;  %v4843_v7 = vld [vmem:[%s9501_s4 + $0x4d8] sm:$0xff] }
 0x17d   :  { %4148 = vmatpush3.msra.mxu1 %v10072_v1  ;;  %1909 = vmatprep.mubr.f32.mxu0 %v1804_v4  ;;  %v10104_v4 = vld [vmem:[#allocation200_spill] sm:$0xff]  ;;  %v4844_v8 = vld [vmem:[%s9501_s4 + $0x5d8] sm:$0xff] }
 0x17e   :  { %1994 = vmatprep.mubr.f32.mxu1 %v1806_v5  ;;  %4105 = vmatprep.subr.mxu0 %v10073_v12  ;;  %v1810_v5 = vld [vmem:[%s9504_s2 + $0x138] sm:$0xff]  ;;  %v1809_v1 = vld [vmem:[%s9504_s2 + $0x130] sm:$0xff] }
 0x17f   :  { %4149 = vmatprep.subr.mxu1 %v10074_v13  ;;  %1910 = vmatmul.mubr.f32.gmra.mxu0 %v1803_v10  ;;  %v4845_v10 = vld [vmem:[%s9501_s4 + $0x458] sm:$0xff] }
 0x180   :  { %1995 = vmatmul.mubr.f32.gmra.mxu1 %v1805_v11  ;;  %4106 = vmatpush3.msra.mxu0 %v10075_v15  ;;  %v1824_v11 = vld [vmem:[%s9504_s2 + $0x1a8] sm:$0xff]  ;;  %v4846_v15 = vld [vmem:[%s9501_s4 + $0x558] sm:$0xff] }
 0x181   :  { %4150 = vmatpush3.msra.mxu1 %v10076_v16  ;;  %4107 = vmatprep.subr.mxu0 %v10077_v19  ;;  %v4847_v16 = vld [vmem:[%s9501_s4 + $0x4d0] sm:$0xff] }
 0x182   :  { %4151 = vmatprep.subr.mxu1 %v10078_v20  ;;  %4108 = vmatpush3.msra.mxu0 %v10079_v21  ;;  %v4849_v21 = vld [vmem:[%s9501_s4 + $0x450] sm:$0xff] }
 0x183   :  { %4152 = vmatpush3.msra.mxu1 %v10080_v22  ;;  %1914 = vmatprep.mubr.f32.mxu0 %v1820_v17  ;;  %v1823_v17 = vld [vmem:[%s9504_s2 + $0x1a0] sm:$0xff]  ;;  %v1826_v22 = vld [vmem:[%s9504_s2 + $0x1b8] sm:$0xff] }
 0x184   :  { %1999 = vmatprep.mubr.f32.mxu1 %v1822_v18  ;;  %4109 = vmatprep.subr.mxu0 %v10081_v24  ;;  %v3675_v27 = vpop.f32.mrf.mxu0  ;;  %v4848_v18 = vld [vmem:[%s9501_s4 + $0x5d0] sm:$0xff] }
 0x185   :  { %4153 = vmatprep.subr.mxu1 %v10082_v26  ;;  %v3719_v28 = vpop.f32.mrf.mxu1  ;;  %1915 = vmatmul.mubr.f32.gmra.mxu0 %v1819_v23  ;;  %v4850_v24 = vld [vmem:[%s9501_s4 + $0x550] sm:$0xff]  ;;  %v4851_v26 = vld [vmem:[%s9501_s4 + $0x4c8] sm:$0xff] }
 0x186   :  { %2000 = vmatmul.mubr.f32.gmra.mxu1 %v1821_v35  ;;  %4110 = vmatpush3.msra.mxu0 %v10083_v29  ;;  %v3676_v32 = vpop.f32.mrf.mxu0 }
 0x187   :  { %4154 = vmatpush3.msra.mxu1 %v10084_v30  ;;  %v3720_v36 = vpop.f32.mrf.mxu1  ;;  %4111 = vmatprep.subr.mxu0 %v10085_v38  ;;  %v3677_v56 = vadd.f32 %v3676_v32, %v3675_v27  ;;  %v4852_v27 = vld [vmem:[%s9501_s4 + $0x5c8] sm:$0xff] }
 0x188   :  { %4155 = vmatprep.subr.mxu1 %v10086_v39  ;;  %v3721_v31 = vadd.f32 %v3720_v36, %v3719_v28  ;;  %4112 = vmatpush3.msra.mxu0 %v7331_v44  ;;  %v1777_v44 = vld [vmem:[%s9504_s2 + $0x30] sm:$0xff]  ;;  %v4853_v30 = vld [vmem:[%s9501_s4 + $0x448] sm:$0xff]  ;;  %v4855_v39 = vld [vmem:[%s9501_s4 + $0x4c0] sm:$0xff] }
 0x189   :  { %4156 = vmatpush3.msra.mxu1 %v10087_v48  ;;  %4113 = vmatprep.subr.mxu0 %v10088_v40  ;;  %v1825_v28 = vld [vmem:[%s9504_s2 + $0x1b0] sm:$0xff]  ;;  %v4854_v38 = vld [vmem:[%s9501_s4 + $0x548] sm:$0xff]  ;;  %v4857_v48 = vld [vmem:[%s9501_s4 + $0x440] sm:$0xff] }
 0x18a   :  { %4157 = vmatprep.subr.mxu1 %v10089_v42  ;;  %v7935_v54 = vadd.f32 %v3721_v31, %v3677_v56  ;;  %4114 = vmatpush3.msra.mxu0 %v7363_v53  ;;  %v10093_v53 = vld [vmem:[#allocation189_spill] sm:$0xff] }
 0x18b   :  { %2069 = vmatprep.mubr.f32.mxu0 %v1776_v41  ;;  %4158 = vmatpush3.msra.mxu1 %v7372_v37  ;;  %v10094_v37 = vld [vmem:[#allocation190_spill] sm:$0xff] }
 0x18c   :  { %2070 = vmatmul.mubr.f32.vlgmr.msra.gmra.mxu0 %v1775_v60  ;;  %2154 = vmatprep.mubr.f32.mxu1 %v1778_v43  ;;  %v4856_v41 = vld [vmem:[%s9501_s4 + $0x5c0] sm:$0xff]  ;;  %v4859_v43 = vld [vmem:[%s9501_s4 + $0x4b8] sm:$0xff] }
 0x18d   :  { %4171 = vmatprep.subr.mxu0 %v10090_v45  ;;  %4215 = vmatprep.subr.mxu1 %v10091_v46  ;;  %v4858_v60 = vld [vmem:[%s9501_s4 + $0x540] sm:$0xff]  ;;  %v4861_v45 = vld [vmem:[%s9501_s4 + $0x438] sm:$0xff] }
 0x18e   :  { %2155 = vmatmul.mubr.f32.vlgmr.msra.gmra.mxu1 %v1777_v44  ;;  %4172 = vmatpush3.msra.mxu0 %v10092_v49  ;;  %v4860_v44 = vld [vmem:[%s9501_s4 + $0x5b8] sm:$0xff]  ;;  %v4863_v49 = vld [vmem:[%s9501_s4 + $0x4b0] sm:$0xff] }
 0x18f   :  { %4216 = vmatpush3.msra.mxu1 %v10093_v53  ;;  %4173 = vmatprep.subr.mxu0 %v10094_v37  ;;  %v4862_v46 = vld [vmem:[%s9501_s4 + $0x538] sm:$0xff]  ;;  %v4864_v53 = vld [vmem:[%s9501_s4 + $0x5b0] sm:$0xff] }
 0x190   :  { %4217 = vmatprep.subr.mxu1 %v10095_v50  ;;  %2074 = vmatprep.mubr.f32.mxu0 %v1792_v47  ;;  %v4865_v50 = vld [vmem:[%s9501_s4 + $0x430] sm:$0xff] }
 0x191   :  { %4174 = vmatpush3.msra.mxu0 %v10096_v52  ;;  %4218 = vmatpush3.msra.mxu1 %v10097_v34  ;;  %v4866_v52 = vld [vmem:[%s9501_s4 + $0x530] sm:$0xff]  ;;  %v4868_v34 = vld [vmem:[%s9501_s4 + $0x5a8] sm:$0xff] }
 0x192   :  { %2075 = vmatmul.mubr.f32.gmra.mxu0 %v1791_v51  ;;  %4175 = vmatprep.subr.mxu0 %v10098_v3 }
 0x193   :  { %4219 = vmatprep.subr.mxu1 %v10099_v57  ;;  %2159 = vmatprep.mubr.f32.mxu1 %v1794_v55  ;;  %v4867_v55 = vld [vmem:[%s9501_s4 + $0x4a8] sm:$0xff] }
 0x194   :  { %4176 = vmatpush3.msra.mxu0 %v10100_v59  ;;  %4220 = vmatpush3.msra.mxu1 %v10101_v63  ;;  %v4870_v59 = vld [vmem:[%s9501_s4 + $0x528] sm:$0xff] }
 0x195   :  { %4177 = vmatprep.subr.mxu0 %v10102_v0  ;;  %2160 = vmatmul.mubr.f32.gmra.mxu1 %v1793_v2  ;;  %v4869_v2 = vld [vmem:[%s9501_s4 + $0x428] sm:$0xff]  ;;  %v4871_v0 = vld [vmem:[%s9501_s4 + $0x4a0] sm:$0xff] }
 0x196   :  { %4221 = vmatprep.subr.mxu1 %v10103_v9  ;;  %2079 = vmatprep.mubr.f32.mxu0 %v1808_v61  ;;  %v4873_v9 = vld [vmem:[%s9501_s4 + $0x420] sm:$0xff] }
 0x197   :  { %4178 = vmatpush3.msra.mxu0 %v10104_v4  ;;  %4222 = vmatpush3.msra.mxu1 %v4842_v6  ;;  %v4874_v4 = vld [vmem:[%s9501_s4 + $0x520] sm:$0xff]  ;;  %v4875_v6 = vld [vmem:[%s9501_s4 + $0x498] sm:$0xff] }
 0x198   :  { %2080 = vmatmul.mubr.f32.gmra.mxu0 %v1807_v14  ;;  %4179 = vmatprep.subr.mxu0 %v4843_v7  ;;  %v4872_v14 = vld [vmem:[%s9501_s4 + $0x5a0] sm:$0xff]  ;;  %v4876_v7 = vld [vmem:[%s9501_s4 + $0x598] sm:$0xff] }
 0x199   :  { %4223 = vmatprep.subr.mxu1 %v4844_v8  ;;  %2164 = vmatprep.mubr.f32.mxu1 %v1810_v5  ;;  %v3678_v12 = vpop.f32.mrf.mxu0 }
 0x19a   :  { %4180 = vmatpush3.msra.mxu0 %v4845_v10  ;;  %v3722_v13 = vpop.f32.mrf.mxu1  ;;  %4224 = vmatpush3.msra.mxu1 %v4846_v15  ;;  %v4878_v10 = vld [vmem:[%s9501_s4 + $0x518] sm:$0xff] }
 0x19b   :  { %4181 = vmatprep.subr.mxu0 %v4847_v16  ;;  %2165 = vmatmul.mubr.f32.gmra.mxu1 %v1809_v1  ;;  %v3679_v19 = vpop.f32.mrf.mxu0  ;;  %v4877_v1 = vld [vmem:[%s9501_s4 + $0x418] sm:$0xff]  ;;  %v4881_v16 = vld [vmem:[%s9501_s4 + $0x410] sm:$0xff] }
 0x19c   :  { %4225 = vmatprep.subr.mxu1 %v4848_v18  ;;  %v3723_v20 = vpop.f32.mrf.mxu1  ;;  %2084 = vmatprep.mubr.f32.mxu0 %v1824_v11  ;;  %v3680_v23 = vadd.f32 %v3679_v19, %v3678_v12  ;;  %v4879_v11 = vld [vmem:[%s9501_s4 + $0x490] sm:$0xff]  ;;  %v4883_v19 = vld [vmem:[%s9501_s4 + $0x488] sm:$0xff] }
 0x19d   :  { %4182 = vmatpush3.msra.mxu0 %v4849_v21  ;;  %v3724_v35 = vadd.f32 %v3723_v20, %v3722_v13  ;;  %4226 = vmatpush3.msra.mxu1 %v4850_v24  ;;  %v4880_v12 = vld [vmem:[%s9501_s4 + $0x590] sm:$0xff]  ;;  %v4884_v20 = vld [vmem:[%s9501_s4 + $0x588] sm:$0xff]  ;;  %v1779_v24 = vld [vmem:[%s9504_s2 + $0x40] sm:$0xff] }
 0x19e   :  { %2085 = vmatmul.mubr.f32.gmra.mxu0 %v1823_v17  ;;  %4183 = vmatprep.subr.mxu0 %v4851_v26  ;;  %v4882_v17 = vld [vmem:[%s9501_s4 + $0x510] sm:$0xff]  ;;  %v1780_v21 = vld [vmem:[%s9504_s2 + $0x48] sm:$0xff] }
 0x19f   :  { %4227 = vmatprep.subr.mxu1 %v4852_v27  ;;  %v8026_v29 = vadd.f32 %v3724_v35, %v3680_v23  ;;  %2169 = vmatprep.mubr.f32.mxu1 %v1826_v22  ;;  %v3681_v32 = vpop.f32.mrf.mxu0  ;;  %v4885_v23 = vld [vmem:[%s9501_s4 + $0x408] sm:$0xff] }
 0x1a0   :  { %4184 = vmatpush3.msra.mxu0 %v4853_v30  ;;  %v3725_v36 = vpop.f32.mrf.mxu1  ;;  %4228 = vmatpush3.msra.mxu1 %v4854_v38  ;;  %v4886_v35 = vld [vmem:[%s9501_s4 + $0x508] sm:$0xff]  ;;  %v4888_v30 = vld [vmem:[%s9501_s4 + $0x580] sm:$0xff]  ;;  %v1781_v38 = vld [vmem:[%s9504_s2 + $0x50] sm:$0xff] }
 0x1a1   :  { %4185 = vmatprep.subr.mxu0 %v4855_v39  ;;  %2170 = vmatmul.mubr.f32.gmra.mxu1 %v1825_v28  ;;  %v3682_v56 = vpop.f32.mrf.mxu0  ;;  %v4887_v28 = vld [vmem:[%s9501_s4 + $0x480] sm:$0xff] }
 0x1a2   :  { %4229 = vmatprep.subr.mxu1 %v4856_v41  ;;  %v3726_v31 = vpop.f32.mrf.mxu1  ;;  %4186 = vmatpush3.msra.mxu0 %v4857_v48  ;;  %v3683_v40 = vadd.f32 %v3682_v56, %v3681_v32  ;;  %v1782_v32 = vld [vmem:[%s9504_s2 + $0x58] sm:$0xff]  ;;  %v4890_v41 = vld [vmem:[%s9501_s4 + $0x500] sm:$0xff] }
 0x1a3   :  { %4230 = vmatpush3.msra.mxu1 %v4858_v60  ;;  %v3727_v42 = vadd.f32 %v3726_v31, %v3725_v36  ;;  %4187 = vmatprep.subr.mxu0 %v4859_v43  ;;  %v4891_v31 = vld [vmem:[%s9501_s4 + $0x6f8] sm:$0xff] }
 0x1a4   :  { %4231 = vmatprep.subr.mxu1 %v4860_v44  ;;  %4188 = vmatpush3.msra.mxu0 %v4861_v45  ;;  %v4892_v60 = vld [vmem:[%s9501_s4 + $0x7f8] sm:$0xff]  ;;  %v1795_v45 = vld [vmem:[%s9504_s2 + $0xc0] sm:$0xff] }
 0x1a5   :  { %4232 = vmatpush3.msra.mxu1 %v4862_v46  ;;  %v8058_v47 = vadd.f32 %v3727_v42, %v3683_v40  ;;  %4189 = vmatprep.subr.mxu0 %v4863_v49  ;;  %v3684_v51 = vpop.f32.mrf.mxu0  ;;  %v1796_v40 = vld [vmem:[%s9504_s2 + $0xc8] sm:$0xff]  ;;  %v4893_v43 = vld [vmem:[%s9501_s4 + $0x678] sm:$0xff]  ;;  %v4895_v49 = vld [vmem:[%s9501_s4 + $0x6f0] sm:$0xff] }
 0x1a6   :  { %4233 = vmatprep.subr.mxu1 %v4864_v53  ;;  %v3728_v37 = vpop.f32.mrf.mxu1  ;;  %4190 = vmatpush3.msra.mxu0 %v4865_v50  ;;  %v4894_v44 = vld [vmem:[%s9501_s4 + $0x778] sm:$0xff]  ;;  %v4896_v53 = vld [vmem:[%s9501_s4 + $0x7f0] sm:$0xff] }
 0x1a7   :  { %4234 = vmatpush3.msra.mxu1 %v4866_v52  ;;  %4191 = vmatprep.subr.mxu0 %v4867_v55  ;;  %v3685_v3 = vpop.f32.mrf.mxu0  ;;  %v4897_v50 = vld [vmem:[%s9501_s4 + $0x670] sm:$0xff] }
 0x1a8   :  { %4235 = vmatprep.subr.mxu1 %v4868_v34  ;;  %v3729_v57 = vpop.f32.mrf.mxu1  ;;  %4192 = vmatpush3.msra.mxu0 %v4869_v2  ;;  %v3686_v61 = vadd.f32 %v3685_v3, %v3684_v51  ;;  %v4898_v55 = vld [vmem:[%s9501_s4 + $0x770] sm:$0xff]  ;;  %v4899_v3 = vld [vmem:[%s9501_s4 + $0x6e8] sm:$0xff] }
 0x1a9   :  { %4236 = vmatpush3.msra.mxu1 %v4870_v59  ;;  %v3730_v63 = vadd.f32 %v3729_v57, %v3728_v37  ;;  %4193 = vmatprep.subr.mxu0 %v4871_v0  ;;  %v4900_v57 = vld [vmem:[%s9501_s4 + $0x7e8] sm:$0xff]  ;;  %v1797_v2 = vld [vmem:[%s9504_s2 + $0xd0] sm:$0xff] }
 0x1aa   :  { %4237 = vmatprep.subr.mxu1 %v4872_v14  ;;  %4194 = vmatpush3.msra.mxu0 %v4873_v9  ;;  %v1812_v0 = vld [vmem:[%s9504_s2 + $0x148] sm:$0xff] }
 0x1ab   :  { %4238 = vmatpush3.msra.mxu1 %v4874_v4  ;;  %v8096_v5 = vadd.f32 %v3730_v63, %v3686_v61  ;;  %4195 = vmatprep.subr.mxu0 %v4875_v6  ;;  %v4901_v63 = vld [vmem:[%s9501_s4 + $0x668] sm:$0xff]  ;;  %v4903_v4 = vld [vmem:[%s9501_s4 + $0x6e0] sm:$0xff] }
 0x1ac   :  { %4239 = vmatprep.subr.mxu1 %v4876_v7  ;;  %v3763_v8 = vpop.f32.mrf.mxu0  ;;  %4196 = vmatpush3.msra.mxu0 %v4877_v1  ;;  %v4902_v9 = vld [vmem:[%s9501_s4 + $0x768] sm:$0xff]  ;;  %v1811_v6 = vld [vmem:[%s9504_s2 + $0x140] sm:$0xff] }
 0x1ad   :  { %4240 = vmatpush3.msra.mxu1 %v4878_v10  ;;  %4197 = vmatprep.subr.mxu0 %v4879_v11  ;;  %v4905_v11 = vld [vmem:[%s9501_s4 + $0x660] sm:$0xff] }
 0x1ae   :  { %4241 = vmatprep.subr.mxu1 %v4880_v12  ;;  %v3807_v13 = vpop.f32.mrf.mxu1  ;;  %v3764_v15 = vpop.f32.mrf.mxu0  ;;  %4198 = vmatpush3.msra.mxu0 %v4881_v16  ;;  %v1814_v12 = vld [vmem:[%s9504_s2 + $0x158] sm:$0xff] }
 0x1af   :  { %4242 = vmatpush3.msra.mxu1 %v4882_v17  ;;  %v3765_v18 = vadd.f32 %v3764_v15, %v3763_v8  ;;  %4199 = vmatprep.subr.mxu0 %v4883_v19  ;;  %v4904_v8 = vld [vmem:[%s9501_s4 + $0x7e0] sm:$0xff]  ;;  %v4907_v16 = vld [vmem:[%s9501_s4 + $0x6d8] sm:$0xff] }
 0x1b0   :  { %4243 = vmatprep.subr.mxu1 %v4884_v20  ;;  %v3808_v22 = vpop.f32.mrf.mxu1  ;;  %4200 = vmatpush3.msra.mxu0 %v4885_v23  ;;  %v4908_v17 = vld [vmem:[%s9501_s4 + $0x7d8] sm:$0xff] }
 0x1b1   :  { %4244 = vmatpush3.msra.mxu1 %v4886_v35  ;;  %v1324_v26 = vadd.f32 %v3765_v18, %v7935_v54  ;;  %v3809_v27 = vadd.f32 %v3808_v22, %v3807_v13  ;;  %4201 = vmatprep.subr.mxu0 %v4887_v28  ;;  %v4889_v54 = vld [vmem:[%s9501_s4 + $0x400] sm:$0xff]  ;;  %v1813_v18 = vld [vmem:[%s9504_s2 + $0x150] sm:$0xff]  ;;  %v1828_v22 = vld [vmem:[%s9504_s2 + $0x1c8] sm:$0xff] }
 0x1b2   :  { %4245 = vmatprep.subr.mxu1 %v4888_v30  ;;  %v3766_v36 = vpop.f32.mrf.mxu0  ;;  %4202 = vmatpush3.msra.mxu0 %v4889_v54  ;;  %v4910_v35 = vld [vmem:[%s9501_s4 + $0x758] sm:$0xff]  ;;  %v4912_v28 = vld [vmem:[%s9501_s4 + $0x7d0] sm:$0xff] }
 0x1b3   :  { %2239 = vmatprep.mubr.f32.mxu0 %v1780_v21  ;;  %v8156_v39 = vadd.f32 %v3809_v27, %v1324_v26  ;;  %4246 = vmatpush3.msra.mxu1 %v4890_v41  ;;  %v4909_v21 = vld [vmem:[%s9501_s4 + $0x658] sm:$0xff]  ;;  %v1827_v26 = vld [vmem:[%s9504_s2 + $0x1c0] sm:$0xff]  ;;  %v4916_v41 = vld [vmem:[%s9501_s4 + $0x7c8] sm:$0xff] }
 0x1b4   :  { %2240 = vmatmul.mubr.f32.vlgmr.msra.gmra.mxu0 %v1779_v24  ;;  %v3767_v56 = vpop.f32.mrf.mxu0  ;;  %2324 = vmatprep.mubr.f32.mxu1 %v1782_v32  ;;  %v3810_v42 = vpop.f32.mrf.mxu1  ;;  %v4911_v24 = vld [vmem:[%s9501_s4 + $0x6d0] sm:$0xff] }
 0x1b5   :  { %4259 = vmatprep.subr.mxu0 %v4891_v31  ;;  %v3768_v48 = vadd.f32 %v3767_v56, %v3766_v36  ;;  %4303 = vmatprep.subr.mxu1 %v4892_v60  ;;  %v4913_v32 = vld [vmem:[%s9501_s4 + $0x650] sm:$0xff]  ;;  %v1830_v36 = vld [vmem:[%s9504_s2 + $0x1d8] sm:$0xff]  ;;  %v4918_v60 = vld [vmem:[%s9501_s4 + $0x748] sm:$0xff] }
 0x1b6   :  { %2325 = vmatmul.mubr.f32.vlgmr.msra.gmra.mxu1 %v1781_v38  ;;  %4260 = vmatpush3.msra.mxu0 %v4893_v43  ;;  %v3811_v37 = vpop.f32.mrf.mxu1  ;;  %v4915_v38 = vld [vmem:[%s9501_s4 + $0x6c8] sm:$0xff]  ;;  %v1829_v56 = vld [vmem:[%s9504_s2 + $0x1d0] sm:$0xff]  ;;  %v4921_v43 = vld [vmem:[%s9501_s4 + $0x640] sm:$0xff] }
 0x1b7   :  { %4304 = vmatpush3.msra.mxu1 %v4894_v44  ;;  %v1329_v46 = vadd.f32 %v3768_v48, %v8026_v29  ;;  %4261 = vmatprep.subr.mxu0 %v4895_v49  ;;  %v1798_v29 = vld [vmem:[%s9504_s2 + $0xd8] sm:$0xff]  ;;  %v3812_v52 = vadd.f32 %v3811_v37, %v3810_v42  ;;  %v4917_v48 = vld [vmem:[%s9501_s4 + $0x648] sm:$0xff]  ;;  %v4920_v42 = vld [vmem:[%s9501_s4 + $0x7c0] sm:$0xff] }
 0x1b8   :  { %4305 = vmatprep.subr.mxu1 %v4896_v53  ;;  %v3769_v51 = vpop.f32.mrf.mxu0  ;;  %2244 = vmatprep.mubr.f32.mxu0 %v1796_v40  ;;  %v4919_v40 = vld [vmem:[%s9501_s4 + $0x6c0] sm:$0xff]  ;;  %v4925_v49 = vld [vmem:[%s9501_s4 + $0x638] sm:$0xff]  ;;  %v4928_v37 = vld [vmem:[%s9501_s4 + $0x7b0] sm:$0xff] }
 0x1b9   :  { %4262 = vmatpush3.msra.mxu0 %v4897_v50  ;;  %4306 = vmatpush3.msra.mxu1 %v4898_v55  ;;  %v8204_v59 = vadd.f32 %v3812_v52, %v1329_v46  ;;  %v4922_v44 = vld [vmem:[%s9501_s4 + $0x740] sm:$0xff]  ;;  %v4924_v46 = vld [vmem:[%s9501_s4 + $0x7b8] sm:$0xff]  ;;  %v4929_v50 = vld [vmem:[%s9501_s4 + $0x630] sm:$0xff] }
 0x1ba   :  { %2245 = vmatmul.mubr.f32.gmra.mxu0 %v1795_v45  ;;  %v3770_v34 = vpop.f32.mrf.mxu0  ;;  %4263 = vmatprep.subr.mxu0 %v4899_v3  ;;  %v4923_v45 = vld [vmem:[%s9501_s4 + $0x6b8] sm:$0xff]  ;;  %v4931_v52 = vld [vmem:[%s9501_s4 + $0x6a8] sm:$0xff] }
 0x1bb   :  { %4307 = vmatprep.subr.mxu1 %v4900_v57  ;;  %v3771_v61 = vadd.f32 %v3770_v34, %v3769_v51  ;;  %2329 = vmatprep.mubr.f32.mxu1 %v1798_v29  ;;  %v3813_v14 = vpop.f32.mrf.mxu1  ;;  %v4926_v53 = vld [vmem:[%s9501_s4 + $0x738] sm:$0xff]  ;;  %v4927_v51 = vld [vmem:[%s9501_s4 + $0x6b0] sm:$0xff]  ;;  %v4932_v55 = vld [vmem:[%s9501_s4 + $0x7a8] sm:$0xff] }
 0x1bc   :  { %4264 = vmatpush3.msra.mxu0 %v4901_v63  ;;  %4308 = vmatpush3.msra.mxu1 %v4902_v9  ;;  %v4930_v29 = vld [vmem:[%s9501_s4 + $0x730] sm:$0xff]  ;;  %v4933_v34 = vld [vmem:[%s9501_s4 + $0x628] sm:$0xff]  ;;  %v4935_v57 = vld [vmem:[%s9501_s4 + $0x6a0] sm:$0xff] }
 0x1bd   :  { %4265 = vmatprep.subr.mxu0 %v4903_v4  ;;  %v1334_v7 = vadd.f32 %v3771_v61, %v8058_v47  ;;  %2330 = vmatmul.mubr.f32.gmra.mxu1 %v1797_v2  ;;  %v3814_v10 = vpop.f32.mrf.mxu1  ;;  %v4906_v47 = vld [vmem:[%s9501_s4 + $0x760] sm:$0xff]  ;;  %v4934_v3 = vld [vmem:[%s9501_s4 + $0x728] sm:$0xff]  ;;  %v4941_v4 = vld [vmem:[%s9501_s4 + $0x618] sm:$0xff] }
 0x1be   :  { %4309 = vmatprep.subr.mxu1 %v4904_v8  ;;  %v3772_v1 = vpop.f32.mrf.mxu0  ;;  %2249 = vmatprep.mubr.f32.mxu0 %v1812_v0  ;;  %v3815_v13 = vadd.f32 %v3814_v10, %v3813_v14  ;;  %v4936_v2 = vld [vmem:[%s9501_s4 + $0x7a0] sm:$0xff]  ;;  %v4939_v0 = vld [vmem:[%s9501_s4 + $0x698] sm:$0xff]  ;;  %v4944_v8 = vld [vmem:[%s9501_s4 + $0x790] sm:$0xff] }
 0x1bf   :  { %4266 = vmatpush3.msra.mxu0 %v4905_v11  ;;  %4310 = vmatpush3.msra.mxu1 %v4906_v47  ;;  %v4937_v61 = vld [vmem:[%s9501_s4 + $0x620] sm:$0xff]  ;;  %v4940_v14 = vld [vmem:[%s9501_s4 + $0x798] sm:$0xff]  ;;  %v4945_v11 = vld [vmem:[%s9501_s4 + $0x610] sm:$0xff] }
 0x1c0   :  { %2250 = vmatmul.mubr.f32.gmra.mxu0 %v1811_v6  ;;  %v3773_v15 = vpop.f32.mrf.mxu0  ;;  %4267 = vmatprep.subr.mxu0 %v4907_v16  ;;  %v8243_v19 = vadd.f32 %v3815_v13, %v1334_v7  ;;  %v4938_v63 = vld [vmem:[%s9501_s4 + $0x720] sm:$0xff]  ;;  %v4942_v6 = vld [vmem:[%s9501_s4 + $0x718] sm:$0xff]  ;;  %v4943_v7 = vld [vmem:[%s9501_s4 + $0x690] sm:$0xff] }
 0x1c1   :  { %4311 = vmatprep.subr.mxu1 %v4908_v17  ;;  %v3774_v20 = vadd.f32 %v3773_v15, %v3772_v1  ;;  %2334 = vmatprep.mubr.f32.mxu1 %v1814_v12  ;;  %v3816_v23 = vpop.f32.mrf.mxu1  ;;  %v4946_v12 = vld [vmem:[%s9501_s4 + $0x710] sm:$0xff]  ;;  %v4947_v47 = vld [vmem:[%s9501_s4 + $0x688] sm:$0xff] }
 0x1c2   :  { %4268 = vmatpush3.msra.mxu0 %v4909_v21  ;;  %4312 = vmatpush3.msra.mxu1 %v4910_v35  ;;  %v4948_v15 = vld [vmem:[%s9501_s4 + $0x788] sm:$0xff]  ;;  %v1783_v21 = vld [vmem:[%s9504_s2 + $0x60] sm:$0xff] }
 0x1c3   :  { %4269 = vmatprep.subr.mxu0 %v4911_v24  ;;  %v1339_v27 = vadd.f32 %v3774_v20, %v8096_v5  ;;  %2335 = vmatmul.mubr.f32.gmra.mxu1 %v1813_v18  ;;  %v3817_v30 = vpop.f32.mrf.mxu1  ;;  %v4914_v5 = vld [vmem:[%s9501_s4 + $0x750] sm:$0xff]  ;;  %v1784_v16 = vld [vmem:[%s9504_s2 + $0x68] sm:$0xff]  ;;  %v4951_v35 = vld [vmem:[%s9501_s4 + $0x680] sm:$0xff] }
 0x1c4   :  { %4313 = vmatprep.subr.mxu1 %v4912_v28  ;;  %2254 = vmatprep.mubr.f32.mxu0 %v1828_v22  ;;  %v3818_v54 = vadd.f32 %v3817_v30, %v3816_v23  ;;  %v4949_v18 = vld [vmem:[%s9501_s4 + $0x608] sm:$0xff]  ;;  %v4952_v24 = vld [vmem:[%s9501_s4 + $0x780] sm:$0xff]  ;;  %v1785_v28 = vld [vmem:[%s9504_s2 + $0x70] sm:$0xff] }
 0x1c5   :  { %4270 = vmatpush3.msra.mxu0 %v4913_v32  ;;  %4314 = vmatpush3.msra.mxu1 %v4914_v5  ;;  %v4950_v20 = vld [vmem:[%s9501_s4 + $0x708] sm:$0xff]  ;;  %v4954_v32 = vld [vmem:[%s9501_s4 + $0x700] sm:$0xff] }
 0x1c6   :  { %2255 = vmatmul.mubr.f32.gmra.mxu0 %v1827_v26  ;;  %4271 = vmatprep.subr.mxu0 %v4915_v38  ;;  %v8282_v31 = vadd.f32 %v3818_v54, %v1339_v27  ;;  %v1786_v26 = vld [vmem:[%s9504_s2 + $0x78] sm:$0xff] }
 0x1c7   :  { %4315 = vmatprep.subr.mxu1 %v4916_v41  ;;  %2339 = vmatprep.mubr.f32.mxu1 %v1830_v36  ;;  %v4955_v54 = vld [vmem:[%s9501_s4 + $0xf8] sm:$0xff]  ;;  %v1800_v41 = vld [vmem:[%s9504_s2 + $0xe8] sm:$0xff] }
 0x1c8   :  { %4272 = vmatpush3.msra.mxu0 %v4917_v48  ;;  %4316 = vmatpush3.msra.mxu1 %v4918_v60  ;;  %v4956_v38 = vld [vmem:[%s9501_s4 + $0x1f8] sm:$0xff] }
 0x1c9   :  { %4273 = vmatprep.subr.mxu0 %v4919_v40  ;;  %2340 = vmatmul.mubr.f32.gmra.mxu1 %v1829_v56  ;;  %v4957_v48 = vld [vmem:[%s9501_s4 + $0x78] sm:$0xff]  ;;  %v1799_v40 = vld [vmem:[%s9504_s2 + $0xe0] sm:$0xff] }
 0x1ca   :  { %4317 = vmatprep.subr.mxu1 %v4920_v42  ;;  %4274 = vmatpush3.msra.mxu0 %v4921_v43  ;;  %v4958_v60 = vld [vmem:[%s9501_s4 + $0x178] sm:$0xff]  ;;  %v4959_v43 = vld [vmem:[%s9501_s4 + $0xf0] sm:$0xff] }
 0x1cb   :  { %4318 = vmatpush3.msra.mxu1 %v4922_v44  ;;  %4275 = vmatprep.subr.mxu0 %v4923_v45  ;;  %v4960_v44 = vld [vmem:[%s9501_s4 + $0x1f0] sm:$0xff] }
 0x1cc   :  { %4319 = vmatprep.subr.mxu1 %v4924_v46  ;;  %4276 = vmatpush3.msra.mxu0 %v4925_v49  ;;  %v4961_v49 = vld [vmem:[%s9501_s4 + $0x70] sm:$0xff] }
 0x1cd   :  { %4320 = vmatpush3.msra.mxu1 %v4926_v53  ;;  %4277 = vmatprep.subr.mxu0 %v4927_v51  ;;  %v4962_v51 = vld [vmem:[%s9501_s4 + $0x170] sm:$0xff] }
 0x1ce   :  { %4321 = vmatprep.subr.mxu1 %v4928_v37  ;;  %4278 = vmatpush3.msra.mxu0 %v4929_v50  ;;  %v4963_v50 = vld [vmem:[%s9501_s4 + $0xe8] sm:$0xff] }
 0x1cf   :  { %4322 = vmatpush3.msra.mxu1 %v4930_v29  ;;  %4279 = vmatprep.subr.mxu0 %v4931_v52  ;;  %v4964_v29 = vld [vmem:[%s9501_s4 + $0x1e8] sm:$0xff]  ;;  %v1801_v52 = vld [vmem:[%s9504_s2 + $0xf0] sm:$0xff] }
 0x1d0   :  { %4323 = vmatprep.subr.mxu1 %v4932_v55  ;;  %4280 = vmatpush3.msra.mxu0 %v4933_v34 }
 0x1d1   :  { %4324 = vmatpush3.msra.mxu1 %v4934_v3  ;;  %4281 = vmatprep.subr.mxu0 %v4935_v57  ;;  %v4965_v3 = vld [vmem:[%s9501_s4 + $0x68] sm:$0xff] }
 0x1d2   :  { %4325 = vmatprep.subr.mxu1 %v4936_v2  ;;  %4282 = vmatpush3.msra.mxu0 %v4937_v61  ;;  %v1816_v57 = vld [vmem:[%s9504_s2 + $0x168] sm:$0xff] }
 0x1d3   :  { %4326 = vmatpush3.msra.mxu1 %v4938_v63  ;;  %4283 = vmatprep.subr.mxu0 %v4939_v0  ;;  %v4966_v61 = vld [vmem:[%s9501_s4 + $0x168] sm:$0xff]  ;;  %v4967_v63 = vld [vmem:[%s9501_s4 + $0xe0] sm:$0xff] }
 0x1d4   :  { %4327 = vmatprep.subr.mxu1 %v4940_v14  ;;  %v3851_v9 = vpop.f32.mrf.mxu0  ;;  %4284 = vmatpush3.msra.mxu0 %v4941_v4  ;;  %v1815_v0 = vld [vmem:[%s9504_s2 + $0x160] sm:$0xff] }
 0x1d5   :  { %4328 = vmatpush3.msra.mxu1 %v4942_v6  ;;  %4285 = vmatprep.subr.mxu0 %v4943_v7  ;;  %v4969_v7 = vld [vmem:[%s9501_s4 + $0x60] sm:$0xff] }
 0x1d6   :  { %4329 = vmatprep.subr.mxu1 %v4944_v8  ;;  %v3895_v1 = vpop.f32.mrf.mxu1  ;;  %v3852_v10 = vpop.f32.mrf.mxu0  ;;  %4286 = vmatpush3.msra.mxu0 %v4945_v11  ;;  %v1818_v8 = vld [vmem:[%s9504_s2 + $0x178] sm:$0xff] }
 0x1d7   :  { %4330 = vmatpush3.msra.mxu1 %v4946_v12  ;;  %v3853_v13 = vadd.f32 %v3852_v10, %v3851_v9  ;;  %4287 = vmatprep.subr.mxu0 %v4947_v47  ;;  %v4968_v9 = vld [vmem:[%s9501_s4 + $0x1e0] sm:$0xff]  ;;  %v4971_v11 = vld [vmem:[%s9501_s4 + $0xd8] sm:$0xff] }
 0x1d8   :  { %4331 = vmatprep.subr.mxu1 %v4948_v15  ;;  %v3896_v17 = vpop.f32.mrf.mxu1  ;;  %4288 = vmatpush3.msra.mxu0 %v4949_v18  ;;  %v4972_v12 = vld [vmem:[%s9501_s4 + $0x1d8] sm:$0xff] }
 0x1d9   :  { %4332 = vmatpush3.msra.mxu1 %v4950_v20  ;;  %v1494_v22 = vadd.f32 %v3853_v13, %v8156_v39  ;;  %v3897_v23 = vadd.f32 %v3896_v17, %v3895_v1  ;;  %4289 = vmatprep.subr.mxu0 %v4951_v35  ;;  %v4953_v39 = vld [vmem:[%s9501_s4 + $0x600] sm:$0xff]  ;;  %v1817_v13 = vld [vmem:[%s9504_s2 + $0x170] sm:$0xff]  ;;  %v1832_v17 = vld [vmem:[%s9504_s2 + $0x1e8] sm:$0xff] }
 0x1da   :  { %4333 = vmatprep.subr.mxu1 %v4952_v24  ;;  %v3854_v27 = vpop.f32.mrf.mxu0  ;;  %4290 = vmatpush3.msra.mxu0 %v4953_v39  ;;  %v4974_v20 = vld [vmem:[%s9501_s4 + $0x158] sm:$0xff]  ;;  %v4976_v35 = vld [vmem:[%s9501_s4 + $0x1d0] sm:$0xff] }
 0x1db   :  { %2409 = vmatprep.mubr.f32.mxu0 %v1784_v16  ;;  %v8408_v30 = vadd.f32 %v3897_v23, %v1494_v22  ;;  %4334 = vmatpush3.msra.mxu1 %v4954_v32  ;;  %v4973_v16 = vld [vmem:[%s9501_s4 + $0x58] sm:$0xff]  ;;  %v1831_v22 = vld [vmem:[%s9504_s2 + $0x1e0] sm:$0xff]  ;;  %v4980_v32 = vld [vmem:[%s9501_s4 + $0x1c8] sm:$0xff] }
 0x1dc   :  { %2410 = vmatmul.mubr.f32.vlgmr.msra.gmra.mxu0 %v1783_v21  ;;  %v3855_v36 = vpop.f32.mrf.mxu0  ;;  %2494 = vmatprep.mubr.f32.mxu1 %v1786_v26  ;;  %v4975_v21 = vld [vmem:[%s9501_s4 + $0xd0] sm:$0xff] }
 0x1dd   :  { %4347 = vmatprep.subr.mxu0 %v4955_v54  ;;  %v3856_v5 = vadd.f32 %v3855_v36, %v3854_v27  ;;  %4391 = vmatprep.subr.mxu1 %v4956_v38  ;;  %v3898_v56 = vpop.f32.mrf.mxu1  ;;  %v4977_v26 = vld [vmem:[%s9501_s4 + $0x50] sm:$0xff]  ;;  %v1834_v27 = vld [vmem:[%s9504_s2 + $0x1f8] sm:$0xff]  ;;  %v4982_v38 = vld [vmem:[%s9501_s4 + $0x148] sm:$0xff] }
 0x1de   :  { %2495 = vmatmul.mubr.f32.vlgmr.msra.gmra.mxu1 %v1785_v28  ;;  %4348 = vmatpush3.msra.mxu0 %v4957_v48  ;;  %v4979_v28 = vld [vmem:[%s9501_s4 + $0xc8] sm:$0xff]  ;;  %v1833_v36 = vld [vmem:[%s9504_s2 + $0x1f0] sm:$0xff]  ;;  %v4985_v48 = vld [vmem:[%s9501_s4 + $0x40] sm:$0xff] }
 0x1df   :  { %4392 = vmatpush3.msra.mxu1 %v4958_v60  ;;  %v1499_v42 = vadd.f32 %v3856_v5, %v8204_v59  ;;  %4349 = vmatprep.subr.mxu0 %v4959_v43  ;;  %v3899_v46 = vpop.f32.mrf.mxu1  ;;  %v1802_v59 = vld [vmem:[%s9504_s2 + $0xf8] sm:$0xff]  ;;  %v4981_v5 = vld [vmem:[%s9501_s4 + $0x48] sm:$0xff]  ;;  %v4986_v60 = vld [vmem:[%s9501_s4 + $0x140] sm:$0xff] }
 0x1e0   :  { %4393 = vmatprep.subr.mxu1 %v4960_v44  ;;  %v3857_v45 = vpop.f32.mrf.mxu0  ;;  %2414 = vmatprep.mubr.f32.mxu0 %v1800_v41  ;;  %v3900_v53 = vadd.f32 %v3899_v46, %v3898_v56  ;;  %v4983_v41 = vld [vmem:[%s9501_s4 + $0xc0] sm:$0xff]  ;;  %v4989_v43 = vld [vmem:[%s9501_s4 + $0x38] sm:$0xff]  ;;  %v4992_v46 = vld [vmem:[%s9501_s4 + $0x1b0] sm:$0xff] }
 0x1e1   :  { %4350 = vmatpush3.msra.mxu0 %v4961_v49  ;;  %4394 = vmatpush3.msra.mxu1 %v4962_v51  ;;  %v4984_v56 = vld [vmem:[%s9501_s4 + $0x1c0] sm:$0xff]  ;;  %v4990_v44 = vld [vmem:[%s9501_s4 + $0x138] sm:$0xff]  ;;  %v4993_v49 = vld [vmem:[%s9501_s4 + $0x30] sm:$0xff] }
 0x1e2   :  { %2415 = vmatmul.mubr.f32.gmra.mxu0 %v1799_v40  ;;  %v3858_v37 = vpop.f32.mrf.mxu0  ;;  %4351 = vmatprep.subr.mxu0 %v4963_v50  ;;  %v8456_v55 = vadd.f32 %v3900_v53, %v1499_v42  ;;  %v4987_v40 = vld [vmem:[%s9501_s4 + $0xb8] sm:$0xff]  ;;  %v4995_v53 = vld [vmem:[%s9501_s4 + $0xa8] sm:$0xff] }
 0x1e3   :  { %4395 = vmatprep.subr.mxu1 %v4964_v29  ;;  %v3859_v34 = vadd.f32 %v3858_v37, %v3857_v45  ;;  %2499 = vmatprep.mubr.f32.mxu1 %v1802_v59  ;;  %v3901_v2 = vpop.f32.mrf.mxu1  ;;  %v4988_v42 = vld [vmem:[%s9501_s4 + $0x1b8] sm:$0xff]  ;;  %v4991_v45 = vld [vmem:[%s9501_s4 + $0xb0] sm:$0xff]  ;;  %v4996_v51 = vld [vmem:[%s9501_s4 + $0x1a8] sm:$0xff] }
 0x1e4   :  { %4352 = vmatpush3.msra.mxu0 %v4965_v3  ;;  %4396 = vmatpush3.msra.mxu1 %v4966_v61  ;;  %v4994_v59 = vld [vmem:[%s9501_s4 + $0x130] sm:$0xff]  ;;  %v4997_v37 = vld [vmem:[%s9501_s4 + $0x28] sm:$0xff]  ;;  %v4999_v29 = vld [vmem:[%s9501_s4 + $0xa0] sm:$0xff] }
 0x1e5   :  { %4353 = vmatprep.subr.mxu0 %v4967_v63  ;;  %v1504_v14 = vadd.f32 %v3859_v34, %v8243_v19  ;;  %2500 = vmatmul.mubr.f32.gmra.mxu1 %v1801_v52  ;;  %v3902_v6 = vpop.f32.mrf.mxu1  ;;  %v4970_v19 = vld [vmem:[%s9501_s4 + $0x160] sm:$0xff]  ;;  %v4998_v50 = vld [vmem:[%s9501_s4 + $0x128] sm:$0xff]  ;;  %v5005_v63 = vld [vmem:[%s9501_s4 + $0x18] sm:$0xff] }
 0x1e6   :  { %4397 = vmatprep.subr.mxu1 %v4968_v9  ;;  %v3860_v4 = vpop.f32.mrf.mxu0  ;;  %2419 = vmatprep.mubr.f32.mxu0 %v1816_v57  ;;  %v3903_v1 = vadd.f32 %v3902_v6, %v3901_v2  ;;  %v5000_v52 = vld [vmem:[%s9501_s4 + $0x1a0] sm:$0xff]  ;;  %v5003_v57 = vld [vmem:[%s9501_s4 + $0x98] sm:$0xff]  ;;  %v5008_v9 = vld [vmem:[%s9501_s4 + $0x190] sm:$0xff] }
 0x1e7   :  { %4354 = vmatpush3.msra.mxu0 %v4969_v7  ;;  %4398 = vmatpush3.msra.mxu1 %v4970_v19  ;;  %v5001_v34 = vld [vmem:[%s9501_s4 + $0x20] sm:$0xff]  ;;  %v5004_v2 = vld [vmem:[%s9501_s4 + $0x198] sm:$0xff]  ;;  %v5009_v7 = vld [vmem:[%s9501_s4 + $0x10] sm:$0xff] }
 0x1e8   :  { %2420 = vmatmul.mubr.f32.gmra.mxu0 %v1815_v0  ;;  %v3861_v10 = vpop.f32.mrf.mxu0  ;;  %4355 = vmatprep.subr.mxu0 %v4971_v11  ;;  %v8495_v47 = vadd.f32 %v3903_v1, %v1504_v14  ;;  %v5002_v3 = vld [vmem:[%s9501_s4 + $0x120] sm:$0xff]  ;;  %v5006_v0 = vld [vmem:[%s9501_s4 + $0x118] sm:$0xff]  ;;  %v5007_v14 = vld [vmem:[%s9501_s4 + $0x90] sm:$0xff] }
 0x1e9   :  { %4399 = vmatprep.subr.mxu1 %v4972_v12  ;;  %v3862_v15 = vadd.f32 %v3861_v10, %v3860_v4  ;;  %2504 = vmatprep.mubr.f32.mxu1 %v1818_v8  ;;  %v3904_v18 = vpop.f32.mrf.mxu1  ;;  %v5010_v8 = vld [vmem:[%s9501_s4 + $0x110] sm:$0xff]  ;;  %v5011_v19 = vld [vmem:[%s9501_s4 + $0x88] sm:$0xff] }
 0x1ea   :  { %4356 = vmatpush3.msra.mxu0 %v4973_v16  ;;  %4400 = vmatpush3.msra.mxu1 %v4974_v20  ;;  %v5012_v10 = vld [vmem:[%s9501_s4 + $0x188] sm:$0xff]  ;;  %v2522_v16 = vld [vmem:[%s9505_s3 + $0x18] sm:$0xff]  ;;  %v5015_v20 = vld [vmem:[%s9501_s4 + $0x80] sm:$0xff] }
 0x1eb   :  { %4357 = vmatprep.subr.mxu0 %v4975_v21  ;;  %v1509_v23 = vadd.f32 %v3862_v15, %v8282_v31  ;;  %2505 = vmatmul.mubr.f32.gmra.mxu1 %v1817_v13  ;;  %v3905_v24 = vpop.f32.mrf.mxu1  ;;  %v4978_v31 = vld [vmem:[%s9501_s4 + $0x150] sm:$0xff]  ;;  %v2520_v11 = vld [vmem:[%s9505_s3 + $0x8] sm:$0xff]  ;;  %v5016_v21 = vld [vmem:[%s9501_s4 + $0x180] sm:$0xff] }
 0x1ec   :  { %4401 = vmatprep.subr.mxu1 %v4976_v35  ;;  %2424 = vmatprep.mubr.f32.mxu0 %v1832_v17  ;;  %v3906_v39 = vadd.f32 %v3905_v24, %v3904_v18  ;;  %v5013_v13 = vld [vmem:[%s9501_s4 + $0x8] sm:$0xff]  ;;  %v5017_v35 = vld [vmem:[%s9501_s4] sm:$0xff] }
 0x1ed   :  { %4358 = vmatpush3.msra.mxu0 %v4977_v26  ;;  %4402 = vmatpush3.msra.mxu1 %v4978_v31  ;;  %v5014_v15 = vld [vmem:[%s9501_s4 + $0x108] sm:$0xff]  ;;  %v5018_v26 = vld [vmem:[%s9501_s4 + $0x100] sm:$0xff] }
 0x1ee   :  { %2425 = vmatmul.mubr.f32.gmra.mxu0 %v1831_v22  ;;  %4359 = vmatprep.subr.mxu0 %v4979_v28  ;;  %v8534_v54 = vadd.f32 %v3906_v39, %v1509_v23  ;;  %v2519_v22 = vld [vmem:[%s9505_s3] sm:$0xff]  ;;  %v2521_v23 = vld [vmem:[%s9505_s3 + $0x10] sm:$0xff]  ;;  %v5019_v28 = vld [vmem:[%s9501_s4 + $0x2f8] sm:$0xff] }
 0x1ef   :  { %4403 = vmatprep.subr.mxu1 %v4980_v32  ;;  %2509 = vmatprep.mubr.f32.mxu1 %v1834_v27  ;;  %v5020_v32 = vld [vmem:[%s9501_s4 + $0x3f8] sm:$0xff] }
 0x1f0   :  { %4360 = vmatpush3.msra.mxu0 %v4981_v5  ;;  %4404 = vmatpush3.msra.mxu1 %v4982_v38  ;;  %v5021_v5 = vld [vmem:[%s9501_s4 + $0x278] sm:$0xff] }
 0x1f1   :  { %4361 = vmatprep.subr.mxu0 %v4983_v41  ;;  %2510 = vmatmul.mubr.f32.gmra.mxu1 %v1833_v36  ;;  %v5022_v38 = vld [vmem:[%s9501_s4 + $0x378] sm:$0xff] }
 0x1f2   :  { %4405 = vmatprep.subr.mxu1 %v4984_v56  ;;  %4362 = vmatpush3.msra.mxu0 %v4985_v48  ;;  %v5023_v56 = vld [vmem:[%s9501_s4 + $0x2f0] sm:$0xff] }
 0x1f3   :  { %4406 = vmatpush3.msra.mxu1 %v4986_v60  ;;  %4363 = vmatprep.subr.mxu0 %v4987_v40  ;;  %v5024_v48 = vld [vmem:[%s9501_s4 + $0x3f0] sm:$0xff] }
 0x1f4   :  { %4407 = vmatprep.subr.mxu1 %v4988_v42  ;;  %4364 = vmatpush3.msra.mxu0 %v4989_v43  ;;  %v5025_v42 = vld [vmem:[%s9501_s4 + $0x270] sm:$0xff] }
 0x1f5   :  { %4408 = vmatpush3.msra.mxu1 %v4990_v44  ;;  %4365 = vmatprep.subr.mxu0 %v4991_v45  ;;  %v5027_v44 = vld [vmem:[%s9501_s4 + $0x2e8] sm:$0xff] }
 0x1f6   :  { %4409 = vmatprep.subr.mxu1 %v4992_v46  ;;  %4366 = vmatpush3.msra.mxu0 %v4993_v49  ;;  %v5028_v45 = vld [vmem:[%s9501_s4 + $0x3e8] sm:$0xff] }
 0x1f7   :  { %4410 = vmatpush3.msra.mxu1 %v4994_v59  ;;  %4367 = vmatprep.subr.mxu0 %v4995_v53  ;;  %v5029_v49 = vld [vmem:[%s9501_s4 + $0x268] sm:$0xff] }
 0x1f8   :  { %4411 = vmatprep.subr.mxu1 %v4996_v51  ;;  %4368 = vmatpush3.msra.mxu0 %v4997_v37  ;;  %v5030_v59 = vld [vmem:[%s9501_s4 + $0x368] sm:$0xff]  ;;  %v5031_v37 = vld [vmem:[%s9501_s4 + $0x2e0] sm:$0xff] }
 0x1f9   :  { %4412 = vmatpush3.msra.mxu1 %v4998_v50  ;;  %4369 = vmatprep.subr.mxu0 %v4999_v29  ;;  %v5032_v50 = vld [vmem:[%s9501_s4 + $0x3e0] sm:$0xff] }
 0x1fa   :  { %4413 = vmatprep.subr.mxu1 %v5000_v52  ;;  %4370 = vmatpush3.msra.mxu0 %v5001_v34  ;;  %v5033_v52 = vld [vmem:[%s9501_s4 + $0x260] sm:$0xff] }
 0x1fb   :  { %4414 = vmatpush3.msra.mxu1 %v5002_v3  ;;  %4371 = vmatprep.subr.mxu0 %v5003_v57  ;;  %v5034_v34 = vld [vmem:[%s9501_s4 + $0x360] sm:$0xff] }
 0x1fc   :  { %4415 = vmatprep.subr.mxu1 %v5004_v2  ;;  %v3939_v61 = vpop.f32.mrf.mxu0  ;;  %4372 = vmatpush3.msra.mxu0 %v5005_v63  ;;  %v5035_v2 = vld [vmem:[%s9501_s4 + $0x2d8] sm:$0xff] }
 0x1fd   :  { %4416 = vmatpush3.msra.mxu1 %v5006_v0  ;;  %4373 = vmatprep.subr.mxu0 %v5007_v14  ;;  %v5037_v14 = vld [vmem:[%s9501_s4 + $0x258] sm:$0xff] }
 0x1fe   :  { %4417 = vmatprep.subr.mxu1 %v5008_v9  ;;  %v3983_v4 = vpop.f32.mrf.mxu1  ;;  %v3940_v6 = vpop.f32.mrf.mxu0  ;;  %4374 = vmatpush3.msra.mxu0 %v5009_v7 }
 0x1ff   :  { %4418 = vmatpush3.msra.mxu1 %v5010_v8  ;;  %v3941_v1 = vadd.f32 %v3940_v6, %v3939_v61  ;;  %4375 = vmatprep.subr.mxu0 %v5011_v19  ;;  %v5036_v61 = vld [vmem:[%s9501_s4 + $0x3d8] sm:$0xff]  ;;  %v5040_v6 = vld [vmem:[%s9501_s4 + $0x3d0] sm:$0xff] }
 0x200   :  { %4419 = vmatprep.subr.mxu1 %v5012_v10  ;;  %v3984_v12 = vpop.f32.mrf.mxu1  ;;  %4376 = vmatpush3.msra.mxu0 %v5013_v13  ;;  %v5041_v8 = vld [vmem:[%s9501_s4 + $0x250] sm:$0xff] }
 0x201   :  { %4420 = vmatpush3.msra.mxu1 %v5014_v15  ;;  %v1664_v17 = vadd.f32 %v3941_v1, %v8408_v30  ;;  %v3985_v18 = vadd.f32 %v3984_v12, %v3983_v4  ;;  %4377 = vmatprep.subr.mxu0 %v5015_v20  ;;  %v5039_v4 = vld [vmem:[%s9501_s4 + $0x2d0] sm:$0xff]  ;;  %v5044_v12 = vld [vmem:[%s9501_s4 + $0x3c8] sm:$0xff]  ;;  %v5047_v20 = vld [vmem:[%s9501_s4 + $0x2c0] sm:$0xff] }
 0x202   :  { %4421 = vmatprep.subr.mxu1 %v5016_v21  ;;  %v3942_v30 = vpop.f32.mrf.mxu0  ;;  %4378 = vmatpush3.msra.mxu0 %v5017_v35  ;;  %v5042_v1 = vld [vmem:[%s9501_s4 + $0x350] sm:$0xff]  ;;  %v5045_v15 = vld [vmem:[%s9501_s4 + $0x248] sm:$0xff]  ;;  %v5048_v21 = vld [vmem:[%s9501_s4 + $0x3c0] sm:$0xff] }
 0x203   :  { %2647 = vmatprep.mubr.f32.mxu0 %v2520_v11  ;;  %v8660_v24 = vadd.f32 %v3985_v18, %v1664_v17  ;;  %4422 = vmatpush3.msra.mxu1 %v5018_v26  ;;  %v5043_v11 = vld [vmem:[%s9501_s4 + $0x2c8] sm:$0xff]  ;;  %v2538_v35 = vld [vmem:[%s9505_s3 + $0x98] sm:$0xff] }
 0x204   :  { %2732 = vmatprep.mubr.f32.mxu1 %v2522_v16  ;;  %v3943_v27 = vpop.f32.mrf.mxu0  ;;  %2648 = vmatmul.mubr.f32.vlgmr.msra.gmra.mxu0 %v2519_v22  ;;  %v5046_v16 = vld [vmem:[%s9501_s4 + $0x348] sm:$0xff] }
 0x205   :  { %2733 = vmatmul.mubr.f32.vlgmr.msra.gmra.mxu1 %v2521_v23  ;;  %v1767_v39 = vmax.f32 %v7816_v58, %v8660_v24  ;;  %v3944_v31 = vadd.f32 %v3943_v27, %v3942_v30  ;;  %4435 = vmatprep.subr.mxu0 %v5019_v28  ;;  %v3986_v36 = vpop.f32.mrf.mxu1  ;;  %v5049_v23 = vld [vmem:[%s9501_s4 + $0x240] sm:$0xff]  ;;  %v2536_v30 = vld [vmem:[%s9505_s3 + $0x88] sm:$0xff]  ;;  %v5051_v27 = vld [vmem:[%s9501_s4 + $0x2b8] sm:$0xff] }
 0x206   :  { %4479 = vmatprep.subr.mxu1 %v5020_v32  ;;  %4436 = vmatpush3.msra.mxu0 %v5021_v5  ;;  %v5053_v28 = vld [vmem:[%s9501_s4 + $0x238] sm:$0xff]  ;;  %v2537_v5 = vld [vmem:[%s9505_s3 + $0x90] sm:$0xff] }
 0x207   :  { %4480 = vmatpush3.msra.mxu1 %v5022_v38  ;;  %v1669_v41 = vadd.f32 %v3944_v31, %v8456_v55  ;;  %4437 = vmatprep.subr.mxu0 %v5023_v56  ;;  %v3987_v40 = vpop.f32.mrf.mxu1  ;;  %v5026_v55 = vld [vmem:[%s9501_s4 + $0x370] sm:$0xff]  ;;  %v5052_v31 = vld [vmem:[%s9501_s4 + $0x3b8] sm:$0xff] }
 0x208   :  { %4481 = vmatprep.subr.mxu1 %v5024_v48  ;;  %v3945_v60 = vpop.f32.mrf.mxu0  ;;  %4438 = vmatpush3.msra.mxu0 %v5025_v42  ;;  %v3988_v43 = vadd.f32 %v3987_v40, %v3986_v36  ;;  %v5054_v32 = vld [vmem:[%s9501_s4 + $0x338] sm:$0xff]  ;;  %v2535_v36 = vld [vmem:[%s9505_s3 + $0x80] sm:$0xff]  ;;  %v5056_v56 = vld [vmem:[%s9501_s4 + $0x3b0] sm:$0xff] }
 0x209   :  { %4482 = vmatpush3.msra.mxu1 %v5026_v55  ;;  %4439 = vmatprep.subr.mxu0 %v5027_v44  ;;  %v5058_v40 = vld [vmem:[%s9501_s4 + $0x330] sm:$0xff]  ;;  %v2552_v42 = vld [vmem:[%s9505_s3 + $0x108] sm:$0xff]  ;;  %v2554_v55 = vld [vmem:[%s9505_s3 + $0x118] sm:$0xff] }
 0x20a   :  { %4483 = vmatprep.subr.mxu1 %v5028_v45  ;;  %v3946_v46 = vpop.f32.mrf.mxu0  ;;  %4440 = vmatpush3.msra.mxu0 %v5029_v49  ;;  %v8704_v53 = vadd.f32 %v3988_v43, %v1669_v41  ;;  %v5055_v41 = vld [vmem:[%s9501_s4 + $0x2b0] sm:$0xff]  ;;  %v5059_v43 = vld [vmem:[%s9501_s4 + $0x2a8] sm:$0xff]  ;;  %v2551_v49 = vld [vmem:[%s9505_s3 + $0x100] sm:$0xff] }
 0x20b   :  { %4484 = vmatpush3.msra.mxu1 %v5030_v59  ;;  %v3947_v51 = vadd.f32 %v3946_v46, %v3945_v60  ;;  %4441 = vmatprep.subr.mxu0 %v5031_v37  ;;  %v3989_v29 = vpop.f32.mrf.mxu1  ;;  %v5057_v60 = vld [vmem:[%s9501_s4 + $0x230] sm:$0xff]  ;;  %v5060_v44 = vld [vmem:[%s9501_s4 + $0x3a8] sm:$0xff]  ;;  %v5064_v37 = vld [vmem:[%s9501_s4 + $0x3a0] sm:$0xff] }
 0x20c   :  { %4485 = vmatprep.subr.mxu1 %v5032_v50  ;;  %4442 = vmatpush3.msra.mxu0 %v5033_v52  ;;  %v1768_v3 = vmax.f32 %v7832_v25, %v8704_v53  ;;  %v5061_v45 = vld [vmem:[%s9501_s4 + $0x228] sm:$0xff]  ;;  %v2553_v59 = vld [vmem:[%s9505_s3 + $0x110] sm:$0xff]  ;;  %v5065_v50 = vld [vmem:[%s9501_s4 + $0x220] sm:$0xff] }
 0x20d   :  { %4486 = vmatpush3.msra.mxu1 %v5034_v34  ;;  %v1674_v57 = vadd.f32 %v3947_v51, %v8495_v47  ;;  %4443 = vmatprep.subr.mxu0 %v5035_v2  ;;  %v3990_v0 = vpop.f32.mrf.mxu1  ;;  %v5038_v47 = vld [vmem:[%s9501_s4 + $0x358] sm:$0xff]  ;;  %v5062_v46 = vld [vmem:[%s9501_s4 + $0x328] sm:$0xff]  ;;  %v5063_v51 = vld [vmem:[%s9501_s4 + $0x2a0] sm:$0xff] }
 0x20e   :  { %4487 = vmatprep.subr.mxu1 %v5036_v61  ;;  %v3948_v63 = vpop.f32.mrf.mxu0  ;;  %4444 = vmatpush3.msra.mxu0 %v5037_v14  ;;  %v3991_v9 = vadd.f32 %v3990_v0, %v3989_v29  ;;  %v5066_v29 = vld [vmem:[%s9501_s4 + $0x320] sm:$0xff]  ;;  %v2568_v52 = vld [vmem:[%s9505_s3 + $0x188] sm:$0xff]  ;;  %v2570_v34 = vld [vmem:[%s9505_s3 + $0x198] sm:$0xff] }
 0x20f   :  { %4488 = vmatpush3.msra.mxu1 %v5038_v47  ;;  %4445 = vmatprep.subr.mxu0 %v5039_v4  ;;  %v5068_v2 = vld [vmem:[%s9501_s4 + $0x398] sm:$0xff]  ;;  %v2567_v0 = vld [vmem:[%s9505_s3 + $0x180] sm:$0xff]  ;;  %v2569_v14 = vld [vmem:[%s9505_s3 + $0x190] sm:$0xff] }
 0x210   :  { %4489 = vmatprep.subr.mxu1 %v5040_v6  ;;  %v3949_v7 = vpop.f32.mrf.mxu0  ;;  %4446 = vmatpush3.msra.mxu0 %v5041_v8  ;;  %v8745_v19 = vadd.f32 %v3991_v9, %v1674_v57  ;;  %v5067_v57 = vld [vmem:[%s9501_s4 + $0x298] sm:$0xff]  ;;  %v5071_v47 = vld [vmem:[%s9501_s4 + $0x290] sm:$0xff] }
 0x211   :  { %4490 = vmatpush3.msra.mxu1 %v5042_v1  ;;  %v3950_v10 = vadd.f32 %v3949_v7, %v3948_v63  ;;  %4447 = vmatprep.subr.mxu0 %v5043_v11  ;;  %v3992_v13 = vpop.f32.mrf.mxu1  ;;  %v5069_v61 = vld [vmem:[%s9501_s4 + $0x218] sm:$0xff]  ;;  %v5072_v9 = vld [vmem:[%s9501_s4 + $0x390] sm:$0xff]  ;;  %v5075_v11 = vld [vmem:[%s9501_s4 + $0x288] sm:$0xff] }
 0x212   :  { %4491 = vmatprep.subr.mxu1 %v5044_v12  ;;  %4448 = vmatpush3.msra.mxu0 %v5045_v15  ;;  %v1769_v17 = vmax.f32 %v7847_v33, %v8745_v19  ;;  %v5070_v63 = vld [vmem:[%s9501_s4 + $0x318] sm:$0xff]  ;;  %v5073_v7 = vld [vmem:[%s9501_s4 + $0x210] sm:$0xff]  ;;  %v5076_v12 = vld [vmem:[%s9501_s4 + $0x388] sm:$0xff] }
 0x213   :  { %4492 = vmatpush3.msra.mxu1 %v5046_v16  ;;  %v1679_v18 = vadd.f32 %v3950_v10, %v8534_v54  ;;  %4449 = vmatprep.subr.mxu0 %v5047_v20  ;;  %v3993_v22 = vpop.f32.mrf.mxu1  ;;  %v5050_v54 = vld [vmem:[%s9501_s4 + $0x340] sm:$0xff]  ;;  %v5074_v8 = vld [vmem:[%s9501_s4 + $0x310] sm:$0xff]  ;;  %v5078_v20 = vld [vmem:[%s9501_s4 + $0x308] sm:$0xff] }
 0x214   :  { %4493 = vmatprep.subr.mxu1 %v5048_v21  ;;  %4450 = vmatpush3.msra.mxu0 %v5049_v23  ;;  %v3994_v26 = vadd.f32 %v3993_v22, %v3992_v13  ;;  %v2524_v13 = vld [vmem:[%s9505_s3 + $0x28] sm:$0xff]  ;;  %v2523_v21 = vld [vmem:[%s9505_s3 + $0x20] sm:$0xff] }
 0x215   :  { %4494 = vmatpush3.msra.mxu1 %v5050_v54  ;;  %4451 = vmatprep.subr.mxu0 %v5051_v27  ;;  %v5079_v22 = vld [vmem:[%s9501_s4 + $0x280] sm:$0xff]  ;;  %v2526_v54 = vld [vmem:[%s9505_s3 + $0x38] sm:$0xff] }
 0x216   :  { %4495 = vmatprep.subr.mxu1 %v5052_v31  ;;  %4452 = vmatpush3.msra.mxu0 %v5053_v28  ;;  %v8798_v38 = vadd.f32 %v3994_v26, %v1679_v18  ;;  %v5077_v18 = vld [vmem:[%s9501_s4 + $0x208] sm:$0xff]  ;;  %v5080_v23 = vld [vmem:[%s9501_s4 + $0x380] sm:$0xff]  ;;  %v2525_v26 = vld [vmem:[%s9505_s3 + $0x30] sm:$0xff] }
 0x217   :  { %4496 = vmatpush3.msra.mxu1 %v5054_v32  ;;  %2652 = vmatprep.mubr.f32.mxu0 %v2536_v30  ;;  %v5082_v27 = vld [vmem:[%s9501_s4 + $0x300] sm:$0xff]  ;;  %v5083_v31 = vld [vmem:[%s9501_s4 + $0x4f8] sm:$0xff]  ;;  %v2540_v32 = vld [vmem:[%s9505_s3 + $0xa8] sm:$0xff] }
 0x218   :  { %2737 = vmatprep.mubr.f32.mxu1 %v2538_v35  ;;  %4453 = vmatprep.subr.mxu0 %v5055_v41  ;;  %v1770_v48 = vmax.f32 %v7874_v62, %v8798_v38  ;;  %v5081_v35 = vld [vmem:[%s9501_s4 + $0x200] sm:$0xff]  ;;  %v5084_v28 = vld [vmem:[%s9501_s4 + $0x5f8] sm:$0xff] }
 0x219   :  { %4497 = vmatprep.subr.mxu1 %v5056_v56  ;;  %2653 = vmatmul.mubr.f32.gmra.mxu0 %v2535_v36  ;;  %v5085_v36 = vld [vmem:[%s9501_s4 + $0x478] sm:$0xff]  ;;  %v2539_v41 = vld [vmem:[%s9505_s3 + $0xa0] sm:$0xff]  ;;  %v5087_v56 = vld [vmem:[%s9501_s4 + $0x4f0] sm:$0xff] }
 0x21a   :  { %2738 = vmatmul.mubr.f32.gmra.mxu1 %v2537_v5  ;;  %4454 = vmatpush3.msra.mxu0 %v5057_v60  ;;  %v5086_v5 = vld [vmem:[%s9501_s4 + $0x578] sm:$0xff]  ;;  %v5088_v60 = vld [vmem:[%s9501_s4 + $0x5f0] sm:$0xff] }
 0x21b   :  { %4498 = vmatpush3.msra.mxu1 %v5058_v40  ;;  %4455 = vmatprep.subr.mxu0 %v5059_v43  ;;  %v5089_v40 = vld [vmem:[%s9501_s4 + $0x470] sm:$0xff]  ;;  %v5091_v43 = vld [vmem:[%s9501_s4 + $0x4e8] sm:$0xff] }
 0x21c   :  { %4499 = vmatprep.subr.mxu1 %v5060_v44  ;;  %4456 = vmatpush3.msra.mxu0 %v5061_v45  ;;  %v5092_v44 = vld [vmem:[%s9501_s4 + $0x5e8] sm:$0xff]  ;;  %v2541_v45 = vld [vmem:[%s9505_s3 + $0xb0] sm:$0xff] }
 0x21d   :  { %4500 = vmatpush3.msra.mxu1 %v5062_v46  ;;  %2657 = vmatprep.mubr.f32.mxu0 %v2552_v42  ;;  %v2542_v42 = vld [vmem:[%s9505_s3 + $0xb8] sm:$0xff]  ;;  %v5093_v46 = vld [vmem:[%s9501_s4 + $0x468] sm:$0xff] }
 0x21e   :  { %2742 = vmatprep.mubr.f32.mxu1 %v2554_v55  ;;  %4457 = vmatprep.subr.mxu0 %v5063_v51  ;;  %v5090_v55 = vld [vmem:[%s9501_s4 + $0x570] sm:$0xff]  ;;  %v5095_v51 = vld [vmem:[%s9501_s4 + $0x4e0] sm:$0xff] }
 0x21f   :  { %4501 = vmatprep.subr.mxu1 %v5064_v37  ;;  %2658 = vmatmul.mubr.f32.gmra.mxu0 %v2551_v49  ;;  %v2556_v49 = vld [vmem:[%s9505_s3 + $0x128] sm:$0xff]  ;;  %v2555_v37 = vld [vmem:[%s9505_s3 + $0x120] sm:$0xff] }
 0x220   :  { %2743 = vmatmul.mubr.f32.gmra.mxu1 %v2553_v59  ;;  %4458 = vmatpush3.msra.mxu0 %v5065_v50  ;;  %v5094_v59 = vld [vmem:[%s9501_s4 + $0x568] sm:$0xff]  ;;  %v5096_v50 = vld [vmem:[%s9501_s4 + $0x5e0] sm:$0xff] }
 0x221   :  { %4502 = vmatpush3.msra.mxu1 %v5066_v29  ;;  %4459 = vmatprep.subr.mxu0 %v5067_v57  ;;  %v5097_v29 = vld [vmem:[%s9501_s4 + $0x460] sm:$0xff]  ;;  %v5099_v57 = vld [vmem:[%s9501_s4 + $0x4d8] sm:$0xff] }
 0x222   :  { %4503 = vmatprep.subr.mxu1 %v5068_v2  ;;  %4460 = vmatpush3.msra.mxu0 %v5069_v61  ;;  %v5100_v2 = vld [vmem:[%s9501_s4 + $0x5d8] sm:$0xff]  ;;  %v2557_v61 = vld [vmem:[%s9505_s3 + $0x130] sm:$0xff] }
 0x223   :  { %4504 = vmatpush3.msra.mxu1 %v5070_v63  ;;  %2662 = vmatprep.mubr.f32.mxu0 %v2568_v52  ;;  %v2558_v52 = vld [vmem:[%s9505_s3 + $0x138] sm:$0xff] }
 0x224   :  { %2747 = vmatprep.mubr.f32.mxu1 %v2570_v34  ;;  %4461 = vmatprep.subr.mxu0 %v5071_v47  ;;  %v4027_v4 = vpop.f32.mrf.mxu0  ;;  %v5098_v34 = vld [vmem:[%s9501_s4 + $0x560] sm:$0xff]  ;;  %v5101_v63 = vld [vmem:[%s9501_s4 + $0x458] sm:$0xff] }
 0x225   :  { %4505 = vmatprep.subr.mxu1 %v5072_v9  ;;  %v4071_v6 = vpop.f32.mrf.mxu1  ;;  %2663 = vmatmul.mubr.f32.gmra.mxu0 %v2567_v0  ;;  %v2572_v0 = vld [vmem:[%s9505_s3 + $0x1a8] sm:$0xff]  ;;  %v5102_v9 = vld [vmem:[%s9501_s4 + $0x558] sm:$0xff] }
 0x226   :  { %2748 = vmatmul.mubr.f32.gmra.mxu1 %v2569_v14  ;;  %4462 = vmatpush3.msra.mxu0 %v5073_v7  ;;  %v4028_v1 = vpop.f32.mrf.mxu0  ;;  %v5104_v7 = vld [vmem:[%s9501_s4 + $0x5d0] sm:$0xff] }
 0x227   :  { %4506 = vmatpush3.msra.mxu1 %v5074_v8  ;;  %v4072_v10 = vpop.f32.mrf.mxu1  ;;  %4463 = vmatprep.subr.mxu0 %v5075_v11  ;;  %v4029_v15 = vadd.f32 %v4028_v1, %v4027_v4  ;;  %v5103_v4 = vld [vmem:[%s9501_s4 + $0x4d0] sm:$0xff]  ;;  %v2574_v11 = vld [vmem:[%s9505_s3 + $0x1b8] sm:$0xff] }
 0x228   :  { %4507 = vmatprep.subr.mxu1 %v5076_v12  ;;  %v4073_v16 = vadd.f32 %v4072_v10, %v4071_v6  ;;  %4464 = vmatpush3.msra.mxu0 %v5077_v18  ;;  %v2571_v6 = vld [vmem:[%s9505_s3 + $0x1a0] sm:$0xff]  ;;  %v5105_v10 = vld [vmem:[%s9501_s4 + $0x450] sm:$0xff]  ;;  %v5108_v18 = vld [vmem:[%s9501_s4 + $0x5c8] sm:$0xff] }
 0x229   :  { %4508 = vmatpush3.msra.mxu1 %v5078_v20  ;;  %4465 = vmatprep.subr.mxu0 %v5079_v22  ;;  %v2573_v20 = vld [vmem:[%s9505_s3 + $0x1b0] sm:$0xff]  ;;  %v5109_v22 = vld [vmem:[%s9501_s4 + $0x448] sm:$0xff] }
 0x22a   :  { %4509 = vmatprep.subr.mxu1 %v5080_v23  ;;  %v8913_v30 = vadd.f32 %v4073_v16, %v4029_v15  ;;  %4466 = vmatpush3.msra.mxu0 %v5081_v35  ;;  %v5106_v15 = vld [vmem:[%s9501_s4 + $0x550] sm:$0xff]  ;;  %v5107_v16 = vld [vmem:[%s9501_s4 + $0x4c8] sm:$0xff] }
 0x22b   :  { %2817 = vmatprep.mubr.f32.mxu0 %v2524_v13  ;;  %4510 = vmatpush3.msra.mxu1 %v5082_v27  ;;  %v5110_v35 = vld [vmem:[%s9501_s4 + $0x548] sm:$0xff]  ;;  %v5112_v27 = vld [vmem:[%s9501_s4 + $0x5c0] sm:$0xff] }
 0x22c   :  { %2818 = vmatmul.mubr.f32.vlgmr.msra.gmra.mxu0 %v2523_v21  ;;  %2902 = vmatprep.mubr.f32.mxu1 %v2526_v54 }
 0x22d   :  { %4523 = vmatprep.subr.mxu0 %v5083_v31  ;;  %4567 = vmatprep.subr.mxu1 %v5084_v28 }
 0x22e   :  { %2903 = vmatmul.mubr.f32.vlgmr.msra.gmra.mxu1 %v2525_v26  ;;  %4524 = vmatpush3.msra.mxu0 %v5085_v36  ;;  %v5111_v26 = vld [vmem:[%s9501_s4 + $0x4c0] sm:$0xff] }
 0x22f   :  { %4568 = vmatpush3.msra.mxu1 %v5086_v5  ;;  %4525 = vmatprep.subr.mxu0 %v5087_v56  ;;  %v5114_v36 = vld [vmem:[%s9501_s4 + $0x540] sm:$0xff]  ;;  %v5115_v56 = vld [vmem:[%s9501_s4 + $0x4b8] sm:$0xff] }
 0x230   :  { %4569 = vmatprep.subr.mxu1 %v5088_v60  ;;  %2822 = vmatprep.mubr.f32.mxu0 %v2540_v32  ;;  %v5113_v32 = vld [vmem:[%s9501_s4 + $0x440] sm:$0xff]  ;;  %v5116_v60 = vld [vmem:[%s9501_s4 + $0x5b8] sm:$0xff] }
 0x231   :  { %4526 = vmatpush3.msra.mxu0 %v5089_v40  ;;  %4570 = vmatpush3.msra.mxu1 %v5090_v55  ;;  %v5117_v40 = vld [vmem:[%s9501_s4 + $0x438] sm:$0xff] }
 0x232   :  { %2823 = vmatmul.mubr.f32.gmra.mxu0 %v2539_v41  ;;  %4527 = vmatprep.subr.mxu0 %v5091_v43  ;;  %v5119_v43 = vld [vmem:[%s9501_s4 + $0x4b0] sm:$0xff] }
 0x233   :  { %4571 = vmatprep.subr.mxu1 %v5092_v44  ;;  %2907 = vmatprep.mubr.f32.mxu1 %v2542_v42  ;;  %v5118_v42 = vld [vmem:[%s9501_s4 + $0x538] sm:$0xff]  ;;  %v5120_v44 = vld [vmem:[%s9501_s4 + $0x5b0] sm:$0xff] }
 0x234   :  { %4528 = vmatpush3.msra.mxu0 %v5093_v46  ;;  %4572 = vmatpush3.msra.mxu1 %v5094_v59  ;;  %v5122_v59 = vld [vmem:[%s9501_s4 + $0x530] sm:$0xff] }
 0x235   :  { %4529 = vmatprep.subr.mxu0 %v5095_v51  ;;  %2908 = vmatmul.mubr.f32.gmra.mxu1 %v2541_v45  ;;  %v5123_v51 = vld [vmem:[%s9501_s4 + $0x4a8] sm:$0xff] }
 0x236   :  { %4573 = vmatprep.subr.mxu1 %v5096_v50  ;;  %2827 = vmatprep.mubr.f32.mxu0 %v2556_v49  ;;  %v5121_v49 = vld [vmem:[%s9501_s4 + $0x430] sm:$0xff] }
 0x237   :  { %4530 = vmatpush3.msra.mxu0 %v5097_v29  ;;  %4574 = vmatpush3.msra.mxu1 %v5098_v34  ;;  %v5126_v34 = vld [vmem:[%s9501_s4 + $0x528] sm:$0xff] }
 0x238   :  { %2828 = vmatmul.mubr.f32.gmra.mxu0 %v2555_v37  ;;  %4531 = vmatprep.subr.mxu0 %v5099_v57  ;;  %v5124_v37 = vld [vmem:[%s9501_s4 + $0x5a8] sm:$0xff] }
 0x239   :  { %4575 = vmatprep.subr.mxu1 %v5100_v2  ;;  %2912 = vmatprep.mubr.f32.mxu1 %v2558_v52  ;;  %v4030_v14 = vpop.f32.mrf.mxu0  ;;  %v5125_v52 = vld [vmem:[%s9501_s4 + $0x428] sm:$0xff] }
 0x23a   :  { %4532 = vmatpush3.msra.mxu0 %v5101_v63  ;;  %v4074_v47 = vpop.f32.mrf.mxu1  ;;  %4576 = vmatpush3.msra.mxu1 %v5102_v9  ;;  %v5128_v63 = vld [vmem:[%s9501_s4 + $0x5a0] sm:$0xff]  ;;  %v5131_v9 = vld [vmem:[%s9501_s4 + $0x498] sm:$0xff] }
 0x23b   :  { %4533 = vmatprep.subr.mxu0 %v5103_v4  ;;  %2913 = vmatmul.mubr.f32.gmra.mxu1 %v2557_v61  ;;  %v4031_v8 = vpop.f32.mrf.mxu0  ;;  %v5127_v61 = vld [vmem:[%s9501_s4 + $0x4a0] sm:$0xff]  ;;  %v5132_v4 = vld [vmem:[%s9501_s4 + $0x598] sm:$0xff] }
 0x23c   :  { %4577 = vmatprep.subr.mxu1 %v5104_v7  ;;  %v4075_v1 = vpop.f32.mrf.mxu1  ;;  %2832 = vmatprep.mubr.f32.mxu0 %v2572_v0  ;;  %v4032_v12 = vadd.f32 %v4031_v8, %v4030_v14  ;;  %v5129_v0 = vld [vmem:[%s9501_s4 + $0x420] sm:$0xff]  ;;  %v5133_v7 = vld [vmem:[%s9501_s4 + $0x418] sm:$0xff] }
 0x23d   :  { %4534 = vmatpush3.msra.mxu0 %v5105_v10  ;;  %v4076_v13 = vadd.f32 %v4075_v1, %v4074_v47  ;;  %4578 = vmatpush3.msra.mxu1 %v5106_v15  ;;  %v5130_v14 = vld [vmem:[%s9501_s4 + $0x520] sm:$0xff]  ;;  %v5134_v8 = vld [vmem:[%s9501_s4 + $0x518] sm:$0xff]  ;;  %v5135_v1 = vld [vmem:[%s9501_s4 + $0x490] sm:$0xff] }
 0x23e   :  { %2833 = vmatmul.mubr.f32.gmra.mxu0 %v2571_v6  ;;  %4535 = vmatprep.subr.mxu0 %v5107_v16  ;;  %v5136_v10 = vld [vmem:[%s9501_s4 + $0x590] sm:$0xff] }
 0x23f   :  { %4579 = vmatprep.subr.mxu1 %v5108_v18  ;;  %v9038_v21 = vadd.f32 %v4076_v13, %v4032_v12  ;;  %2917 = vmatprep.mubr.f32.mxu1 %v2574_v11  ;;  %v4033_v23 = vpop.f32.mrf.mxu0  ;;  %v5137_v13 = vld [vmem:[%s9501_s4 + $0x410] sm:$0xff]  ;;  %v5139_v18 = vld [vmem:[%s9501_s4 + $0x488] sm:$0xff] }
 0x240   :  { %4536 = vmatpush3.msra.mxu0 %v5109_v22  ;;  %v4077_v54 = vpop.f32.mrf.mxu1  ;;  %4580 = vmatpush3.msra.mxu1 %v5110_v35  ;;  %v5138_v15 = vld [vmem:[%s9501_s4 + $0x510] sm:$0xff]  ;;  %v2528_v22 = vld [vmem:[%s9505_s3 + $0x48] sm:$0xff] }
 0x241   :  { %4537 = vmatprep.subr.mxu0 %v5111_v26  ;;  %2918 = vmatmul.mubr.f32.gmra.mxu1 %v2573_v20  ;;  %v4034_v31 = vpop.f32.mrf.mxu0  ;;  %v5140_v20 = vld [vmem:[%s9501_s4 + $0x588] sm:$0xff]  ;;  %v2527_v26 = vld [vmem:[%s9505_s3 + $0x40] sm:$0xff] }
 0x242   :  { %4581 = vmatprep.subr.mxu1 %v5112_v27  ;;  %v4078_v28 = vpop.f32.mrf.mxu1  ;;  %4538 = vmatpush3.msra.mxu0 %v5113_v32  ;;  %v4035_v5 = vadd.f32 %v4034_v31, %v4033_v23  ;;  %v5142_v35 = vld [vmem:[%s9501_s4 + $0x508] sm:$0xff]  ;;  %v5144_v32 = vld [vmem:[%s9501_s4 + $0x580] sm:$0xff] }
 0x243   :  { %4582 = vmatpush3.msra.mxu1 %v5114_v36  ;;  %v4079_v41 = vadd.f32 %v4078_v28, %v4077_v54  ;;  %4539 = vmatprep.subr.mxu0 %v5115_v56  ;;  %v5141_v54 = vld [vmem:[%s9501_s4 + $0x408] sm:$0xff]  ;;  %v5143_v28 = vld [vmem:[%s9501_s4 + $0x480] sm:$0xff]  ;;  %v2530_v36 = vld [vmem:[%s9505_s3 + $0x58] sm:$0xff] }
 0x244   :  { %4583 = vmatprep.subr.mxu1 %v5116_v60  ;;  %4540 = vmatpush3.msra.mxu0 %v5117_v40  ;;  %v5146_v60 = vld [vmem:[%s9501_s4 + $0x500] sm:$0xff] }
 0x245   :  { %4584 = vmatpush3.msra.mxu1 %v5118_v42  ;;  %v9070_v55 = vadd.f32 %v4079_v41, %v4035_v5  ;;  %4541 = vmatprep.subr.mxu0 %v5119_v43  ;;  %v4036_v45 = vpop.f32.mrf.mxu0  ;;  %v2529_v41 = vld [vmem:[%s9505_s3 + $0x50] sm:$0xff]  ;;  %v5147_v42 = vld [vmem:[%s9501_s4 + $0x6f8] sm:$0xff] }
 0x246   :  { %4585 = vmatprep.subr.mxu1 %v5120_v44  ;;  %v4080_v46 = vpop.f32.mrf.mxu1  ;;  %4542 = vmatpush3.msra.mxu0 %v5121_v49  ;;  %v5148_v44 = vld [vmem:[%s9501_s4 + $0x7f8] sm:$0xff] }
 0x247   :  { %4586 = vmatpush3.msra.mxu1 %v5122_v59  ;;  %4543 = vmatprep.subr.mxu0 %v5123_v51  ;;  %v4037_v50 = vpop.f32.mrf.mxu0  ;;  %v5149_v49 = vld [vmem:[%s9501_s4 + $0x678] sm:$0xff]  ;;  %v2543_v51 = vld [vmem:[%s9505_s3 + $0xc0] sm:$0xff] }
 0x248   :  { %4587 = vmatprep.subr.mxu1 %v5124_v37  ;;  %v4081_v29 = vpop.f32.mrf.mxu1  ;;  %4544 = vmatpush3.msra.mxu0 %v5125_v52  ;;  %v4038_v57 = vadd.f32 %v4037_v50, %v4036_v45  ;;  %v2544_v45 = vld [vmem:[%s9505_s3 + $0xc8] sm:$0xff]  ;;  %v5150_v59 = vld [vmem:[%s9501_s4 + $0x778] sm:$0xff]  ;;  %v5151_v50 = vld [vmem:[%s9501_s4 + $0x6f0] sm:$0xff] }
 0x249   :  { %4588 = vmatpush3.msra.mxu1 %v5126_v34  ;;  %v4082_v2 = vadd.f32 %v4081_v29, %v4080_v46  ;;  %4545 = vmatprep.subr.mxu0 %v5127_v61  ;;  %v5152_v29 = vld [vmem:[%s9501_s4 + $0x7f0] sm:$0xff] }
 0x24a   :  { %4589 = vmatprep.subr.mxu1 %v5128_v63  ;;  %4546 = vmatpush3.msra.mxu0 %v5129_v0  ;;  %v5154_v61 = vld [vmem:[%s9501_s4 + $0x770] sm:$0xff]  ;;  %v5155_v0 = vld [vmem:[%s9501_s4 + $0x6e8] sm:$0xff] }
 0x24b   :  { %4590 = vmatpush3.msra.mxu1 %v5130_v14  ;;  %v9108_v47 = vadd.f32 %v4082_v2, %v4038_v57  ;;  %4547 = vmatprep.subr.mxu0 %v5131_v9  ;;  %v5153_v57 = vld [vmem:[%s9501_s4 + $0x670] sm:$0xff]  ;;  %v5156_v14 = vld [vmem:[%s9501_s4 + $0x7e8] sm:$0xff] }
 0x24c   :  { %4591 = vmatprep.subr.mxu1 %v5132_v4  ;;  %v4115_v6 = vpop.f32.mrf.mxu0  ;;  %4548 = vmatpush3.msra.mxu0 %v5133_v7  ;;  %v2545_v9 = vld [vmem:[%s9505_s3 + $0xd0] sm:$0xff]  ;;  %v5157_v7 = vld [vmem:[%s9501_s4 + $0x668] sm:$0xff] }
 0x24d   :  { %4592 = vmatpush3.msra.mxu1 %v5134_v8  ;;  %4549 = vmatprep.subr.mxu0 %v5135_v1  ;;  %v2560_v8 = vld [vmem:[%s9505_s3 + $0x148] sm:$0xff] }
 0x24e   :  { %4593 = vmatprep.subr.mxu1 %v5136_v10  ;;  %v4159_v11 = vpop.f32.mrf.mxu1  ;;  %v4116_v12 = vpop.f32.mrf.mxu0  ;;  %4550 = vmatpush3.msra.mxu0 %v5137_v13  ;;  %v5158_v10 = vld [vmem:[%s9501_s4 + $0x768] sm:$0xff] }
 0x24f   :  { %4594 = vmatpush3.msra.mxu1 %v5138_v15  ;;  %v4117_v16 = vadd.f32 %v4116_v12, %v4115_v6  ;;  %4551 = vmatprep.subr.mxu0 %v5139_v18  ;;  %v2559_v12 = vld [vmem:[%s9505_s3 + $0x140] sm:$0xff] }
 0x250   :  { %4595 = vmatprep.subr.mxu1 %v5140_v20  ;;  %v4160_v23 = vpop.f32.mrf.mxu1  ;;  %4552 = vmatpush3.msra.mxu0 %v5141_v54  ;;  %v5160_v15 = vld [vmem:[%s9501_s4 + $0x7e0] sm:$0xff] }
 0x251   :  { %4596 = vmatpush3.msra.mxu1 %v5142_v35  ;;  %v2072_v27 = vadd.f32 %v4117_v16, %v8913_v30  ;;  %v4161_v31 = vadd.f32 %v4160_v23, %v4159_v11  ;;  %4553 = vmatprep.subr.mxu0 %v5143_v28  ;;  %v5145_v30 = vld [vmem:[%s9501_s4 + $0x400] sm:$0xff]  ;;  %v5163_v35 = vld [vmem:[%s9501_s4 + $0x6d8] sm:$0xff] }
 0x252   :  { %4597 = vmatprep.subr.mxu1 %v5144_v32  ;;  %v4118_v5 = vpop.f32.mrf.mxu0  ;;  %4554 = vmatpush3.msra.mxu0 %v5145_v30  ;;  %v5159_v11 = vld [vmem:[%s9501_s4 + $0x6e0] sm:$0xff]  ;;  %v5165_v32 = vld [vmem:[%s9501_s4 + $0x658] sm:$0xff] }
 0x253   :  { %2987 = vmatprep.mubr.f32.mxu0 %v2528_v22  ;;  %v9168_v56 = vadd.f32 %v4161_v31, %v2072_v27  ;;  %4598 = vmatpush3.msra.mxu1 %v5146_v60  ;;  %v5161_v20 = vld [vmem:[%s9501_s4 + $0x660] sm:$0xff]  ;;  %v2562_v22 = vld [vmem:[%s9505_s3 + $0x158] sm:$0xff]  ;;  %v2561_v27 = vld [vmem:[%s9505_s3 + $0x150] sm:$0xff] }
 0x254   :  { %2988 = vmatmul.mubr.f32.vlgmr.msra.gmra.mxu0 %v2527_v26  ;;  %v4119_v40 = vpop.f32.mrf.mxu0  ;;  %3072 = vmatprep.mubr.f32.mxu1 %v2530_v36  ;;  %v5164_v26 = vld [vmem:[%s9501_s4 + $0x7d8] sm:$0xff]  ;;  %v2576_v36 = vld [vmem:[%s9505_s3 + $0x1c8] sm:$0xff]  ;;  %v2575_v60 = vld [vmem:[%s9505_s3 + $0x1c0] sm:$0xff] }
 0x255   :  { %4611 = vmatprep.subr.mxu0 %v5147_v42  ;;  %v4120_v43 = vadd.f32 %v4119_v40, %v4118_v5  ;;  %4655 = vmatprep.subr.mxu1 %v5148_v44  ;;  %v4162_v46 = vpop.f32.mrf.mxu1  ;;  %v5166_v30 = vld [vmem:[%s9501_s4 + $0x758] sm:$0xff]  ;;  %v5168_v42 = vld [vmem:[%s9501_s4 + $0x7d0] sm:$0xff] }
 0x256   :  { %3073 = vmatmul.mubr.f32.vlgmr.msra.gmra.mxu1 %v2529_v41  ;;  %4612 = vmatpush3.msra.mxu0 %v5149_v49  ;;  %v5167_v41 = vld [vmem:[%s9501_s4 + $0x6d0] sm:$0xff]  ;;  %v5171_v49 = vld [vmem:[%s9501_s4 + $0x6c8] sm:$0xff] }
 0x257   :  { %4656 = vmatpush3.msra.mxu1 %v5150_v59  ;;  %v2077_v37 = vadd.f32 %v4120_v43, %v9038_v21  ;;  %4613 = vmatprep.subr.mxu0 %v5151_v50  ;;  %v4163_v34 = vpop.f32.mrf.mxu1  ;;  %v2546_v21 = vld [vmem:[%s9505_s3 + $0xd8] sm:$0xff]  ;;  %v5169_v44 = vld [vmem:[%s9501_s4 + $0x650] sm:$0xff]  ;;  %v5172_v59 = vld [vmem:[%s9501_s4 + $0x7c8] sm:$0xff] }
 0x258   :  { %4657 = vmatprep.subr.mxu1 %v5152_v29  ;;  %v4121_v52 = vpop.f32.mrf.mxu0  ;;  %2992 = vmatprep.mubr.f32.mxu0 %v2544_v45  ;;  %v4164_v2 = vadd.f32 %v4163_v34, %v4162_v46  ;;  %v2578_v45 = vld [vmem:[%s9505_s3 + $0x1d8] sm:$0xff]  ;;  %v5173_v50 = vld [vmem:[%s9501_s4 + $0x648] sm:$0xff]  ;;  %v5176_v34 = vld [vmem:[%s9501_s4 + $0x7c0] sm:$0xff] }
 0x259   :  { %4614 = vmatpush3.msra.mxu0 %v5153_v57  ;;  %4658 = vmatpush3.msra.mxu1 %v5154_v61  ;;  %v5174_v29 = vld [vmem:[%s9501_s4 + $0x748] sm:$0xff]  ;;  %v5177_v57 = vld [vmem:[%s9501_s4 + $0x640] sm:$0xff]  ;;  %v5180_v61 = vld [vmem:[%s9501_s4 + $0x7b8] sm:$0xff] }
 0x25a   :  { %2993 = vmatmul.mubr.f32.gmra.mxu0 %v2543_v51  ;;  %v4122_v63 = vpop.f32.mrf.mxu0  ;;  %4615 = vmatprep.subr.mxu0 %v5155_v0  ;;  %v9216_v4 = vadd.f32 %v4164_v2, %v2077_v37  ;;  %v2577_v51 = vld [vmem:[%s9505_s3 + $0x1d0] sm:$0xff]  ;;  %v5179_v2 = vld [vmem:[%s9501_s4 + $0x6b8] sm:$0xff] }
 0x25b   :  { %4659 = vmatprep.subr.mxu1 %v5156_v14  ;;  %v4123_v6 = vadd.f32 %v4122_v63, %v4121_v52  ;;  %3077 = vmatprep.mubr.f32.mxu1 %v2546_v21  ;;  %v4165_v1 = vpop.f32.mrf.mxu1  ;;  %v5175_v52 = vld [vmem:[%s9501_s4 + $0x6c0] sm:$0xff]  ;;  %v5181_v63 = vld [vmem:[%s9501_s4 + $0x638] sm:$0xff]  ;;  %v5183_v14 = vld [vmem:[%s9501_s4 + $0x6b0] sm:$0xff] }
 0x25c   :  { %4616 = vmatpush3.msra.mxu0 %v5157_v7  ;;  %4660 = vmatpush3.msra.mxu1 %v5158_v10  ;;  %v5178_v21 = vld [vmem:[%s9501_s4 + $0x740] sm:$0xff]  ;;  %v5182_v0 = vld [vmem:[%s9501_s4 + $0x738] sm:$0xff]  ;;  %v5186_v7 = vld [vmem:[%s9501_s4 + $0x730] sm:$0xff] }
 0x25d   :  { %4617 = vmatprep.subr.mxu0 %v5159_v11  ;;  %v2082_v13 = vadd.f32 %v4123_v6, %v9070_v55  ;;  %3078 = vmatmul.mubr.f32.gmra.mxu1 %v2545_v9  ;;  %v4166_v18 = vpop.f32.mrf.mxu1  ;;  %v5162_v55 = vld [vmem:[%s9501_s4 + $0x760] sm:$0xff]  ;;  %v5184_v9 = vld [vmem:[%s9501_s4 + $0x7b0] sm:$0xff]  ;;  %v5189_v10 = vld [vmem:[%s9501_s4 + $0x628] sm:$0xff] }
 0x25e   :  { %4661 = vmatprep.subr.mxu1 %v5160_v15  ;;  %v4124_v16 = vpop.f32.mrf.mxu0  ;;  %2997 = vmatprep.mubr.f32.mxu0 %v2560_v8  ;;  %v4167_v23 = vadd.f32 %v4166_v18, %v4165_v1  ;;  %v5185_v6 = vld [vmem:[%s9501_s4 + $0x630] sm:$0xff]  ;;  %v5187_v8 = vld [vmem:[%s9501_s4 + $0x6a8] sm:$0xff]  ;;  %v5193_v15 = vld [vmem:[%s9501_s4 + $0x620] sm:$0xff] }
 0x25f   :  { %4618 = vmatpush3.msra.mxu0 %v5161_v20  ;;  %4662 = vmatpush3.msra.mxu1 %v5162_v55  ;;  %v5188_v1 = vld [vmem:[%s9501_s4 + $0x7a8] sm:$0xff]  ;;  %v5195_v18 = vld [vmem:[%s9501_s4 + $0x698] sm:$0xff] }
 0x260   :  { %2998 = vmatmul.mubr.f32.gmra.mxu0 %v2559_v12  ;;  %v4125_v54 = vpop.f32.mrf.mxu0  ;;  %4619 = vmatprep.subr.mxu0 %v5163_v35  ;;  %v9255_v31 = vadd.f32 %v4167_v23, %v2082_v13  ;;  %v5190_v11 = vld [vmem:[%s9501_s4 + $0x728] sm:$0xff]  ;;  %v5191_v12 = vld [vmem:[%s9501_s4 + $0x6a0] sm:$0xff]  ;;  %v5196_v20 = vld [vmem:[%s9501_s4 + $0x798] sm:$0xff] }
 0x261   :  { %4663 = vmatprep.subr.mxu1 %v5164_v26  ;;  %v4126_v28 = vadd.f32 %v4125_v54, %v4124_v16  ;;  %3082 = vmatprep.mubr.f32.mxu1 %v2562_v22  ;;  %v4168_v5 = vpop.f32.mrf.mxu1  ;;  %v5192_v13 = vld [vmem:[%s9501_s4 + $0x7a0] sm:$0xff]  ;;  %v5197_v23 = vld [vmem:[%s9501_s4 + $0x618] sm:$0xff]  ;;  %v5199_v54 = vld [vmem:[%s9501_s4 + $0x690] sm:$0xff] }
 0x262   :  { %4620 = vmatpush3.msra.mxu0 %v5165_v32  ;;  %4664 = vmatpush3.msra.mxu1 %v5166_v30  ;;  %v5194_v16 = vld [vmem:[%s9501_s4 + $0x720] sm:$0xff]  ;;  %v5198_v55 = vld [vmem:[%s9501_s4 + $0x718] sm:$0xff]  ;;  %v5200_v35 = vld [vmem:[%s9501_s4 + $0x790] sm:$0xff] }
 0x263   :  { %4621 = vmatprep.subr.mxu0 %v5167_v41  ;;  %v2087_v40 = vadd.f32 %v4126_v28, %v9108_v47  ;;  %3083 = vmatmul.mubr.f32.gmra.mxu1 %v2561_v27  ;;  %v4169_v43 = vpop.f32.mrf.mxu1  ;;  %v5170_v47 = vld [vmem:[%s9501_s4 + $0x750] sm:$0xff]  ;;  %v5204_v30 = vld [vmem:[%s9501_s4 + $0x788] sm:$0xff] }
 0x264   :  { %4665 = vmatprep.subr.mxu1 %v5168_v42  ;;  %3002 = vmatprep.mubr.f32.mxu0 %v2576_v36  ;;  %v4170_v46 = vadd.f32 %v4169_v43, %v4168_v5  ;;  %v5201_v28 = vld [vmem:[%s9501_s4 + $0x610] sm:$0xff]  ;;  %v5203_v5 = vld [vmem:[%s9501_s4 + $0x688] sm:$0xff]  ;;  %v2534_v43 = vld [vmem:[%s9505_s3 + $0x78] sm:$0xff] }
 0x265   :  { %4622 = vmatpush3.msra.mxu0 %v5169_v44  ;;  %4666 = vmatpush3.msra.mxu1 %v5170_v47  ;;  %v5202_v32 = vld [vmem:[%s9501_s4 + $0x710] sm:$0xff]  ;;  %v2532_v41 = vld [vmem:[%s9505_s3 + $0x68] sm:$0xff]  ;;  %v5208_v47 = vld [vmem:[%s9501_s4 + $0x780] sm:$0xff] }
 0x266   :  { %3003 = vmatmul.mubr.f32.gmra.mxu0 %v2575_v60  ;;  %4623 = vmatprep.subr.mxu0 %v5171_v49  ;;  %v9294_v37 = vadd.f32 %v4170_v46, %v2087_v40  ;;  %v5205_v40 = vld [vmem:[%s9501_s4 + $0x608] sm:$0xff]  ;;  %v5207_v46 = vld [vmem:[%s9501_s4 + $0x680] sm:$0xff] }
 0x267   :  { %4667 = vmatprep.subr.mxu1 %v5172_v59  ;;  %3087 = vmatprep.mubr.f32.mxu1 %v2578_v45  ;;  %v5206_v42 = vld [vmem:[%s9501_s4 + $0x708] sm:$0xff]  ;;  %v2531_v49 = vld [vmem:[%s9505_s3 + $0x60] sm:$0xff]  ;;  %v2533_v59 = vld [vmem:[%s9505_s3 + $0x70] sm:$0xff] }
 0x268   :  { %4624 = vmatpush3.msra.mxu0 %v5173_v50  ;;  %4668 = vmatpush3.msra.mxu1 %v5174_v29  ;;  %v2548_v50 = vld [vmem:[%s9505_s3 + $0xe8] sm:$0xff]  ;;  %v2550_v29 = vld [vmem:[%s9505_s3 + $0xf8] sm:$0xff] }
 0x269   :  { %4625 = vmatprep.subr.mxu0 %v5175_v52  ;;  %3088 = vmatmul.mubr.f32.gmra.mxu1 %v2577_v51  ;;  %v5209_v51 = vld [vmem:[%s9501_s4 + $0x600] sm:$0xff] }
 0x26a   :  { %4669 = vmatprep.subr.mxu1 %v5176_v34  ;;  %4626 = vmatpush3.msra.mxu0 %v5177_v57  ;;  %v5210_v34 = vld [vmem:[%s9501_s4 + $0x700] sm:$0xff] }
 0x26b   :  { %4670 = vmatpush3.msra.mxu1 %v5178_v21  ;;  %4627 = vmatprep.subr.mxu0 %v5179_v2  ;;  %v2547_v2 = vld [vmem:[%s9505_s3 + $0xe0] sm:$0xff] }
 0x26c   :  { %4671 = vmatprep.subr.mxu1 %v5180_v61  ;;  %4628 = vmatpush3.msra.mxu0 %v5181_v63  ;;  %v2549_v61 = vld [vmem:[%s9505_s3 + $0xf0] sm:$0xff] }
 0x26d   :  { %4672 = vmatpush3.msra.mxu1 %v5182_v0  ;;  %4629 = vmatprep.subr.mxu0 %v5183_v14  ;;  %v2564_v0 = vld [vmem:[%s9505_s3 + $0x168] sm:$0xff]  ;;  %v2566_v14 = vld [vmem:[%s9505_s3 + $0x178] sm:$0xff] }
 0x26e   :  { %4673 = vmatprep.subr.mxu1 %v5184_v9  ;;  %4630 = vmatpush3.msra.mxu0 %v5185_v6 }
 0x26f   :  { %4674 = vmatpush3.msra.mxu1 %v5186_v7  ;;  %4631 = vmatprep.subr.mxu0 %v5187_v8 }
 0x270   :  { %4675 = vmatprep.subr.mxu1 %v5188_v1  ;;  %4632 = vmatpush3.msra.mxu0 %v5189_v10  ;;  %v2563_v1 = vld [vmem:[%s9505_s3 + $0x160] sm:$0xff]  ;;  %v2565_v10 = vld [vmem:[%s9505_s3 + $0x170] sm:$0xff] }
 0x271   :  { %4676 = vmatpush3.msra.mxu1 %v5190_v11  ;;  %4633 = vmatprep.subr.mxu0 %v5191_v12  ;;  %v2582_v12 = vld [vmem:[%s9505_s3 + $0x1f8] sm:$0xff] }
 0x272   :  { %4677 = vmatprep.subr.mxu1 %v5192_v13  ;;  %4634 = vmatpush3.msra.mxu0 %v5193_v15 }
 0x273   :  { %4678 = vmatpush3.msra.mxu1 %v5194_v16  ;;  %4635 = vmatprep.subr.mxu0 %v5195_v18 }
 0x274   :  { %4679 = vmatprep.subr.mxu1 %v5196_v20  ;;  %v4203_v22 = vpop.f32.mrf.mxu0  ;;  %4636 = vmatpush3.msra.mxu0 %v5197_v23  ;;  %v2579_v20 = vld [vmem:[%s9505_s3 + $0x1e0] sm:$0xff] }
 0x275   :  { %4680 = vmatpush3.msra.mxu1 %v5198_v55  ;;  %4637 = vmatprep.subr.mxu0 %v5199_v54 }
 0x276   :  { %4681 = vmatprep.subr.mxu1 %v5200_v35  ;;  %v4247_v26 = vpop.f32.mrf.mxu1  ;;  %v4204_v27 = vpop.f32.mrf.mxu0  ;;  %4638 = vmatpush3.msra.mxu0 %v5201_v28 }
 0x277   :  { %4682 = vmatpush3.msra.mxu1 %v5202_v32  ;;  %v4205_v36 = vadd.f32 %v4204_v27, %v4203_v22  ;;  %4639 = vmatprep.subr.mxu0 %v5203_v5  ;;  %v2581_v22 = vld [vmem:[%s9505_s3 + $0x1f0] sm:$0xff] }
 0x278   :  { %4683 = vmatprep.subr.mxu1 %v5204_v30  ;;  %v4248_v60 = vpop.f32.mrf.mxu1  ;;  %4640 = vmatpush3.msra.mxu0 %v5205_v40 }
 0x279   :  { %4684 = vmatpush3.msra.mxu1 %v5206_v42  ;;  %v2242_v44 = vadd.f32 %v4205_v36, %v9168_v56  ;;  %v4249_v45 = vadd.f32 %v4248_v60, %v4247_v26  ;;  %4641 = vmatprep.subr.mxu0 %v5207_v46 }
 0x27a   :  { %4685 = vmatprep.subr.mxu1 %v5208_v47  ;;  %v4206_v56 = vpop.f32.mrf.mxu0  ;;  %4642 = vmatpush3.msra.mxu0 %v5209_v51 }
 0x27b   :  { %3157 = vmatprep.mubr.f32.mxu0 %v2532_v41  ;;  %v2327_v52 = vadd.f32 %v4249_v45, %v2242_v44  ;;  %4686 = vmatpush3.msra.mxu1 %v5210_v34 }
 0x27c   :  { %3242 = vmatprep.mubr.f32.mxu1 %v2534_v43  ;;  %v4207_v57 = vpop.f32.mrf.mxu0  ;;  %3158 = vmatmul.mubr.f32.vlgmr.msra.gmra.mxu0 %v2531_v49 }
 0x27d   :  { %3243 = vmatmul.mubr.f32.vlgmr.msra.gmra.mxu1 %v2533_v59  ;;  %v4208_v21 = vadd.f32 %v4207_v57, %v4206_v56  ;;  %3162 = vmatprep.mubr.f32.mxu0 %v2548_v50  ;;  %v4250_v63 = vpop.f32.mrf.mxu1 }
 0x27e   :  { %3247 = vmatprep.mubr.f32.mxu1 %v2550_v29 }
 0x27f   :  { %v2247_v9 = vadd.f32 %v4208_v21, %v9216_v4  ;;  %v4251_v7 = vpop.f32.mrf.mxu1  ;;  %v2580_v4 = vld [vmem:[%s9505_s3 + $0x1e8] sm:$0xff] }
 0x280   :  { %v4209_v6 = vpop.f32.mrf.mxu0  ;;  %3163 = vmatmul.mubr.f32.gmra.mxu0 %v2547_v2  ;;  %v4252_v8 = vadd.f32 %v4251_v7, %v4250_v63 }
 0x281   :  { %3248 = vmatmul.mubr.f32.gmra.mxu1 %v2549_v61  ;;  %3167 = vmatprep.mubr.f32.mxu0 %v2564_v0 }
 0x282   :  { %3252 = vmatprep.mubr.f32.mxu1 %v2566_v14  ;;  %v4210_v11 = vpop.f32.mrf.mxu0  ;;  %v2332_v13 = vadd.f32 %v4252_v8, %v2247_v9 }
 0x283   :  { %v4211_v15 = vadd.f32 %v4210_v11, %v4209_v6  ;;  %v4253_v16 = vpop.f32.mrf.mxu1 }
 0x284   :  { %3168 = vmatmul.mubr.f32.gmra.mxu0 %v2563_v1 }
 0x285   :  { %3253 = vmatmul.mubr.f32.gmra.mxu1 %v2565_v10  ;;  %v2252_v18 = vadd.f32 %v4211_v15, %v9255_v31  ;;  %3172 = vmatprep.mubr.f32.mxu0 %v2580_v4  ;;  %v4254_v55 = vpop.f32.mrf.mxu1 }
 0x286   :  { %3257 = vmatprep.mubr.f32.mxu1 %v2582_v12  ;;  %v4212_v23 = vpop.f32.mrf.mxu0  ;;  %v4255_v54 = vadd.f32 %v4254_v55, %v4253_v16 }
 0x288   :  { %v4213_v35 = vpop.f32.mrf.mxu0  ;;  %3173 = vmatmul.mubr.f32.gmra.mxu0 %v2579_v20  ;;  %v2337_v26 = vadd.f32 %v4255_v54, %v2252_v18 }
 0x289   :  { %3258 = vmatmul.mubr.f32.gmra.mxu1 %v2581_v22  ;;  %v4214_v27 = vadd.f32 %v4213_v35, %v4212_v23  ;;  %v4256_v28 = vpop.f32.mrf.mxu1 }
 0x28b   :  { %v2257_v31 = vadd.f32 %v4214_v27, %v9294_v37  ;;  %v4257_v32 = vpop.f32.mrf.mxu1 }
 0x28c   :  { %v4258_v36 = vadd.f32 %v4257_v32, %v4256_v28 }
 0x28e   :  { %v2342_v5 = vadd.f32 %v4258_v36, %v2257_v31 }
 0x29c   :  { %v4291_v30 = vpop.f32.mrf.mxu0 }
 0x29e   :  { %v4335_v41 = vpop.f32.mrf.mxu1  ;;  %v4292_v60 = vpop.f32.mrf.mxu0 }
 0x29f   :  { %v4293_v40 = vadd.f32 %v4292_v60, %v4291_v30 }
 0x2a0   :  { %v4336_v42 = vpop.f32.mrf.mxu1 }
 0x2a1   :  { %v2412_v43 = vadd.f32 %v4293_v40, %v2327_v52  ;;  %v4337_v44 = vadd.f32 %v4336_v42, %v4335_v41 }
 0x2a2   :  { %v4294_v45 = vpop.f32.mrf.mxu0 }
 0x2a3   :  { %v2497_v46 = vadd.f32 %v4337_v44, %v2412_v43 }
 0x2a4   :  { %v4295_v47 = vpop.f32.mrf.mxu0 }
 0x2a5   :  { %v9465_v49 = vmax.f32 %v1767_v39, %v2497_v46  ;;  %v4296_v59 = vadd.f32 %v4295_v47, %v4294_v45  ;;  %v4338_v37 = vpop.f32.mrf.mxu1 }
 0x2a7   :  { %v2417_v56 = vadd.f32 %v4296_v59, %v2332_v13  ;;  %v4339_v50 = vpop.f32.mrf.mxu1 }
 0x2a8   :  { %v4297_v51 = vpop.f32.mrf.mxu0  ;;  %v4340_v29 = vadd.f32 %v4339_v50, %v4338_v37 }
 0x2aa   :  { %v4298_v34 = vpop.f32.mrf.mxu0  ;;  %v2502_v57 = vadd.f32 %v4340_v29, %v2417_v56 }
 0x2ab   :  { %v4299_v21 = vadd.f32 %v4298_v34, %v4297_v51  ;;  %v4341_v2 = vpop.f32.mrf.mxu1 }
 0x2ac   :  { %v9470_v52 = vmax.f32 %v1768_v3, %v2502_v57 }
 0x2ad   :  { %v2422_v61 = vadd.f32 %v4299_v21, %v2337_v26  ;;  %v4342_v58 = vpop.f32.mrf.mxu1 }
 0x2ae   :  { %v4300_v63 = vpop.f32.mrf.mxu0  ;;  %v4343_v24 = vadd.f32 %v4342_v58, %v4341_v2 }
 0x2b0   :  { %v4301_v39 = vpop.f32.mrf.mxu0  ;;  %v2507_v0 = vadd.f32 %v4343_v24, %v2422_v61 }
 0x2b1   :  { %v4302_v14 = vadd.f32 %v4301_v39, %v4300_v63  ;;  %v4344_v9 = vpop.f32.mrf.mxu1 }
 0x2b2   :  { %v9475_v6 = vmax.f32 %v1769_v17, %v2507_v0 }
 0x2b3   :  { %v2427_v7 = vadd.f32 %v4302_v14, %v2342_v5  ;;  %v4345_v8 = vpop.f32.mrf.mxu1 }
 0x2b4   :  { %10105 = vst [vmem:[#allocation2_spill] sm:$0xff] %v9475_v6  ;;  %v4346_v1 = vadd.f32 %v4345_v8, %v4344_v9 }
 0x2b6   :  { %v2512_v10 = vadd.f32 %v4346_v1, %v2427_v7 }
 0x2b8   :  { %v9480_v25 = vmax.f32 %v1770_v48, %v2512_v10 }
 0x2ba   :  { %10106 = vst [vmem:[#allocation3_spill] sm:$0xff] %v9480_v25 }
 0x2c4   :  { %v4379_v53 = vpop.f32.mrf.mxu0 }
 0x2c5   :  { %v4423_v3 = vpop.f32.mrf.mxu1 }
 0x2c6   :  { %v4380_v11 = vpop.f32.mrf.mxu0 }
 0x2c7   :  { %v4424_v4 = vpop.f32.mrf.mxu1  ;;  %v4381_v50 = vadd.f32 %v4380_v11, %v4379_v53 }
 0x2c8   :  { %v4425_v29 = vadd.f32 %v4424_v4, %v4423_v3 }
 0x2ca   :  { %v2735_v2 = vadd.f32 %v4425_v29, %v4381_v50 }
 0x2d9   :  { %v4382_v12 = vpop.f32.mrf.mxu0 }
 0x2da   :  { %v4426_v13 = vpop.f32.mrf.mxu1 }
 0x2db   :  { %v4383_v15 = vpop.f32.mrf.mxu0 }
 0x2dc   :  { %v4427_v16 = vpop.f32.mrf.mxu1  ;;  %v4384_v61 = vadd.f32 %v4383_v15, %v4382_v12 }
 0x2dd   :  { %v4428_v63 = vadd.f32 %v4427_v16, %v4426_v13 }
 0x2df   :  { %v4385_v33 = vpop.f32.mrf.mxu0  ;;  %v2740_v8 = vadd.f32 %v4428_v63, %v4384_v61 }
 0x2e0   :  { %v4429_v19 = vpop.f32.mrf.mxu1 }
 0x2e1   :  { %v4386_v17 = vpop.f32.mrf.mxu0 }
 0x2e2   :  { %v4430_v18 = vpop.f32.mrf.mxu1  ;;  %v4387_v0 = vadd.f32 %v4386_v17, %v4385_v33 }
 0x2e3   :  { %v4431_v14 = vadd.f32 %v4430_v18, %v4429_v19 }
 0x2e5   :  { %v4388_v20 = vpop.f32.mrf.mxu0  ;;  %v2745_v3 = vadd.f32 %v4431_v14, %v4387_v0 }
 0x2e6   :  { %v4432_v22 = vpop.f32.mrf.mxu1 }
 0x2e7   :  { %v4389_v23 = vpop.f32.mrf.mxu0 }
 0x2e8   :  { %v4433_v55 = vpop.f32.mrf.mxu1  ;;  %v4390_v11 = vadd.f32 %v4389_v23, %v4388_v20 }
 0x2e9   :  { %v4434_v4 = vadd.f32 %v4433_v55, %v4432_v22 }
 0x2ec   :  { %v4467_v54 = vpop.f32.mrf.mxu0 }
 0x2ee   :  { %v4511_v62 = vpop.f32.mrf.mxu1  ;;  %v4468_v38 = vpop.f32.mrf.mxu0 }
 0x2ef   :  { %v4469_v34 = vadd.f32 %v4468_v38, %v4467_v54 }
 0x2f0   :  { %v4512_v48 = vpop.f32.mrf.mxu1 }
 0x2f1   :  { %v2820_v58 = vadd.f32 %v4469_v34, %v2735_v2  ;;  %v4513_v24 = vadd.f32 %v4512_v48, %v4511_v62  ;;  %v2750_v48 = vadd.f32 %v4434_v4, %v4390_v11  ;;  %v10107_v4 = vld [vmem:[#allocation2_spill] sm:$0xff] }
 0x2f2   :  { %v4470_v35 = vpop.f32.mrf.mxu0 }
 0x2f3   :  { %v2905_v25 = vadd.f32 %v4513_v24, %v2820_v58 }
 0x2f4   :  { %v4471_v27 = vpop.f32.mrf.mxu0 }
 0x2f5   :  { %v4514_v26 = vpop.f32.mrf.mxu1  ;;  %v4472_v39 = vadd.f32 %v4471_v27, %v4470_v35 }
 0x2f7   :  { %v4515_v28 = vpop.f32.mrf.mxu1  ;;  %v2825_v6 = vadd.f32 %v4472_v39, %v2740_v8 }
 0x2f8   :  { %v4473_v31 = vpop.f32.mrf.mxu0  ;;  %v4516_v53 = vadd.f32 %v4515_v28, %v4514_v26 }
 0x2fa   :  { %v4474_v36 = vpop.f32.mrf.mxu0  ;;  %v2910_v18 = vadd.f32 %v4516_v53, %v2825_v6 }
 0x2fb   :  { %v4517_v32 = vpop.f32.mrf.mxu1  ;;  %v4475_v10 = vadd.f32 %v4474_v36, %v4473_v31 }
 0x2fd   :  { %v4518_v5 = vpop.f32.mrf.mxu1  ;;  %v2830_v16 = vadd.f32 %v4475_v10, %v2745_v3 }
 0x2fe   :  { %v4476_v30 = vpop.f32.mrf.mxu0  ;;  %v4519_v62 = vadd.f32 %v4518_v5, %v4517_v32 }
 0x300   :  { %v4477_v60 = vpop.f32.mrf.mxu0  ;;  %v2915_v22 = vadd.f32 %v4519_v62, %v2830_v16  ;;  %v10108_v16 = vld [vmem:[#allocation3_spill] sm:$0xff] }
 0x301   :  { %v4520_v41 = vpop.f32.mrf.mxu1  ;;  %v4478_v33 = vadd.f32 %v4477_v60, %v4476_v30 }
 0x303   :  { %v4521_v40 = vpop.f32.mrf.mxu1  ;;  %v2835_v23 = vadd.f32 %v4478_v33, %v2750_v48 }
 0x304   :  { %v4522_v55 = vadd.f32 %v4521_v40, %v4520_v41 }
 0x314   :  { %v4555_v42 = vpop.f32.mrf.mxu0 }
 0x316   :  { %v4599_v43 = vpop.f32.mrf.mxu1  ;;  %v4556_v44 = vpop.f32.mrf.mxu0 }
 0x317   :  { %v4557_v1 = vadd.f32 %v4556_v44, %v4555_v42 }
 0x318   :  { %v4600_v45 = vpop.f32.mrf.mxu1 }
 0x319   :  { %v2990_v12 = vadd.f32 %v4557_v1, %v2905_v25  ;;  %v4601_v13 = vadd.f32 %v4600_v45, %v4599_v43 }
 0x31a   :  { %v4558_v46 = vpop.f32.mrf.mxu0 }
 0x31b   :  { %v3075_v36 = vadd.f32 %v4601_v13, %v2990_v12 }
 0x31c   :  { %v4559_v59 = vpop.f32.mrf.mxu0 }
 0x31d   :  { %v4602_v47 = vpop.f32.mrf.mxu1  ;;  %v4560_v15 = vadd.f32 %v4559_v59, %v4558_v46 }
 0x31f   :  { %v4603_v37 = vpop.f32.mrf.mxu1  ;;  %v2995_v26 = vadd.f32 %v4560_v15, %v2910_v18 }
 0x320   :  { %v4561_v56 = vpop.f32.mrf.mxu0  ;;  %v4604_v28 = vadd.f32 %v4603_v37, %v4602_v47  ;;  %v3290_v47 = vld [vmem:[%s9506_s5] ss:$0 sm:$0xff] }
 0x322   :  { %v4562_v57 = vpop.f32.mrf.mxu0  ;;  %v3080_v45 = vadd.f32 %v4604_v28, %v2995_v26 }
 0x323   :  { %v4605_v51 = vpop.f32.mrf.mxu1  ;;  %v4563_v35 = vadd.f32 %v4562_v57, %v4561_v56  ;;  %v2920_v56 = vadd.f32 %v4522_v55, %v2835_v23 }
 0x325   :  { %v4606_v21 = vpop.f32.mrf.mxu1  ;;  %v3000_v32 = vadd.f32 %v4563_v35, %v2915_v22 }
 0x326   :  { %v4564_v9 = vpop.f32.mrf.mxu0  ;;  %v4607_v5 = vadd.f32 %v4606_v21, %v4605_v51 }
 0x328   :  { %v4565_v54 = vpop.f32.mrf.mxu0  ;;  %v3085_v34 = vadd.f32 %v4607_v5, %v3000_v32 }
 0x329   :  { %v4608_v7 = vpop.f32.mrf.mxu1  ;;  %v4566_v30 = vadd.f32 %v4565_v54, %v4564_v9 }
 0x32b   :  { %v4609_v38 = vpop.f32.mrf.mxu1  ;;  %v3005_v57 = vadd.f32 %v4566_v30, %v2920_v56 }
 0x32c   :  { %v4610_v2 = vadd.f32 %v4609_v38, %v4608_v7 }
 0x33c   :  { %v4643_v19 = vpop.f32.mrf.mxu0 }
 0x33d   :  { %v4687_v17 = vpop.f32.mrf.mxu1 }
 0x33e   :  { %v4644_v27 = vpop.f32.mrf.mxu0 }
 0x33f   :  { %v4688_v31 = vpop.f32.mrf.mxu1  ;;  %v4645_v20 = vadd.f32 %v4644_v27, %v4643_v19 }
 0x340   :  { %v4646_v25 = vpop.f32.mrf.mxu0  ;;  %v4689_v44 = vadd.f32 %v4688_v31, %v4687_v17 }
 0x341   :  { %v4690_v42 = vpop.f32.mrf.mxu1  ;;  %v3160_v43 = vadd.f32 %v4645_v20, %v3075_v36 }
 0x342   :  { %v4647_v60 = vpop.f32.mrf.mxu0 }
 0x343   :  { %v4691_v6 = vpop.f32.mrf.mxu1  ;;  %v3245_v46 = vadd.f32 %v4689_v44, %v3160_v43  ;;  %v4648_v59 = vadd.f32 %v4647_v60, %v4646_v25 }
 0x344   :  { %v4649_v37 = vpop.f32.mrf.mxu0  ;;  %v4692_v29 = vadd.f32 %v4691_v6, %v4690_v42 }
 0x345   :  { %v4693_v50 = vpop.f32.mrf.mxu1  ;;  %v3263_v41 = vmax.f32 %v9465_v49, %v3245_v46  ;;  %v3165_v40 = vadd.f32 %v4648_v59, %v3080_v45  ;;  %v3090_v49 = vadd.f32 %v4610_v2, %v3005_v57 }
 0x346   :  { %v4650_v51 = vpop.f32.mrf.mxu0 }
 0x347   :  { %v4694_v21 = vpop.f32.mrf.mxu1  ;;  %v3274_v61 = vadd.f32 %v3290_v47, %v3263_v41  ;;  %v3250_v63 = vadd.f32 %v4692_v29, %v3165_v40  ;;  %v4651_v58 = vadd.f32 %v4650_v51, %v4649_v37 }
 0x348   :  { %v4652_v24 = vpop.f32.mrf.mxu0  ;;  %v4695_v8 = vadd.f32 %v4694_v21, %v4693_v50 }
 0x349   :  { %v4696_v39 = vpop.f32.mrf.mxu1  ;;  %v3278_v0 = vmax.f32 %v3274_v61, 0.0  ;;  %v3264_v14 = vmax.f32 %v9470_v52, %v3250_v63  ;;  %v3170_v9 = vadd.f32 %v4651_v58, %v3085_v34 }
 0x34a   :  { %v4653_v1 = vpop.f32.mrf.mxu0 }
 0x34b   :  { %v4697_v10 = vpop.f32.mrf.mxu1  ;;  %3282 = vst [vmem:[%s9507_s6] sm:$0xff] %v3278_v0  ;;  %v3275_v53 = vadd.f32 %v3290_v47, %v3264_v14  ;;  %v3255_v3 = vadd.f32 %v4695_v8, %v3170_v9  ;;  %v4654_v7 = vadd.f32 %v4653_v1, %v4652_v24 }
 0x34c   :  { %v4698_v12 = vadd.f32 %v4697_v10, %v4696_v39 }
 0x34d   :  { %v3279_v11 = vmax.f32 %v3275_v53, 0.0  ;;  %v3265_v54 = vmax.f32 %v10107_v4, %v3255_v3  ;;  %v3175_v38 = vadd.f32 %v4654_v7, %v3090_v49 }
 0x34f   :  { %3283 = vst [vmem:[%s9507_s6 + $0x8] sm:$0xff] %v3279_v11  ;;  %v3276_v52 = vadd.f32 %v3290_v47, %v3265_v54  ;;  %v3260_v13 = vadd.f32 %v4698_v12, %v3175_v38 }
 0x351   :  { %v3280_v15 = vmax.f32 %v3276_v52, 0.0  ;;  %v3266_v62 = vmax.f32 %v10108_v16, %v3260_v13 }
 0x353   :  { %3284 = vst [vmem:[%s9507_s6 + $0x10] sm:$0xff] %v3280_v15  ;;  %v3277_v33 = vadd.f32 %v3290_v47, %v3266_v62 }
 0x355   :  { %v3281_v19 = vmax.f32 %v3277_v33, 0.0 }
 0x357   :  { %3285 = vst [vmem:[%s9507_s6 + $0x18] sm:$0xff] %v3281_v19 }

</bundles_post_ra>
